<compile_context>
chip_gen: v7x
topology: tpu7x:2x2x1
jax: 0.10.0
libtpu: 0.0.40
codegen_flags: <defaults>
</compile_context>

<pallas_src>
import functools
import numpy as np
import jax
import jax.numpy as jnp
from jax.experimental import pallas as pl
from jax.experimental.pallas import tpu as pltpu

KSIZE = 11          # kernel_size
EFF_SIZE = 7        # effective_size
SCALES = [1.0]
C1, C2, C3 = 32, 63, 95
C1P, C2P, C3P = 32, 64, 96       # padded (lane/sublane-friendlier) channel counts
FC_HID = 256
NOUT, NOUT_PAD = 10, 128
BN_EPS = 1e-5
VMEM_LIMIT = 32 * 1024 * 1024


def _round_up(n, m):
    return (n + m - 1) // m * m


# ------------------------------ Pallas kernels --------------------------------
def _tree_max(vals):
    """Balanced-tree max of a list of equal-shape arrays (shorter VPU dep chain)."""
    vals = list(vals)
    while len(vals) > 1:
        nxt = [jnp.maximum(vals[k], vals[k + 1]) for k in range(0, len(vals) - 1, 2)]
        if len(vals) % 2:
            nxt.append(vals[-1])
        vals = nxt
    return vals[0]


def _conv_block_kernel(pat_ref, w_ref, bias_ref, s_ref, t_ref, o_ref, *, P, Mo):
    """Fused: conv matmul (+bias) -> ReLU -> MaxPool (max over P pool offsets) -> BN affine.

    pat_ref: (P*Mo, K*K*Cin) bf16  -- pool-offset-major im2col patches, Mo % 8 == 0
    w_ref:   (K*K*Cin, Cout) bf16
    bias/s/t:(1, Cout) f32          -- conv bias, folded eval-BN scale/shift
    o_ref:   (Mo, Cout) bf16
    """
    # Single matmul for all pool offsets: weight streamed into the MXU only once.
    full = jnp.dot(pat_ref[...], w_ref[...], preferred_element_type=jnp.float32)
    parts = [full[p * Mo:(p + 1) * Mo, :] for p in range(P)]   # sublane-aligned slices
    m = _tree_max(parts)                                       # MaxPool over window offsets
    y = jnp.maximum(m + bias_ref[...], 0.0)                    # bias + ReLU (commute with max)
    o_ref[...] = (y * s_ref[...] + t_ref[...]).astype(o_ref.dtype)


def _conv_head_kernel(pat_ref, w_ref, bias_ref, s_ref, t_ref,
                      w1_ref, s1_ref, t1_ref, w2_ref, b2_ref, o_ref, *, P, Mo):
    """Conv block 3 (spatial out 1x1) fused with the FC head:
       conv+bias -> ReLU -> MaxPool -> BN2d -> fc1 -> BN1d -> ReLU -> (Dropout eval) -> fc2.
    """
    full = jnp.dot(pat_ref[...], w_ref[...], preferred_element_type=jnp.float32)
    parts = [full[p * Mo:(p + 1) * Mo, :] for p in range(P)]
    y = jnp.maximum(_tree_max(parts) + bias_ref[...], 0.0)           # (Mo, C3P) f32
    y = y * s_ref[...] + t_ref[...]                                   # BatchNorm2d (eval)
    h = jnp.dot(y.astype(w1_ref.dtype), w1_ref[...],
                preferred_element_type=jnp.float32)                   # fc1 (no bias)
    h = jnp.maximum(h * s1_ref[...] + t1_ref[...], 0.0)               # BN1d + ReLU; Dropout=id
    o = jnp.dot(h.astype(w2_ref.dtype), w2_ref[...],
                preferred_element_type=jnp.float32)                   # fc2
    o_ref[...] = o + b2_ref[...]


# ------------------------------ pallas_call wrappers ---------------------------
def _fullspec(shape):
    nd = len(shape)
    return pl.BlockSpec(tuple(shape), lambda i, n=nd: (0,) * n)


def _compiler_params():
    return pltpu.CompilerParams(dimension_semantics=("arbitrary",),
                                vmem_limit_bytes=VMEM_LIMIT)


def conv_block(x, wmat, bias, bn_s, bn_t, *, pool_k, pool_pad):
    """x: (B,H,W,Cin) bf16 -> (B,Hoo,Woo,Cout) bf16, one fused pallas_call."""
    B = x.shape[0]
    pat4, _, _ = im2col_nhwc(x, KSIZE, KSIZE // 2)
    pats, P, Mo, Mo_pad, Hoo, Woo = pool_gather(pat4, pool_k, pool_pad)
    PM, KKC = pats.shape
    Cout = wmat.shape[1]
    assert wmat.shape[0] == KKC
    flops = 2 * PM * KKC * Cout
    bytes_acc = 2 * (pats.size + wmat.size + Mo_pad * Cout) + 4 * 3 * Cout
    kern = functools.partial(_conv_block_kernel, P=P, Mo=Mo_pad)
    out = pl.pallas_call(
        kern,
        out_shape=jax.ShapeDtypeStruct((Mo_pad, Cout), jnp.bfloat16),
        grid=(1,),
        in_specs=[_fullspec((PM, KKC)), _fullspec((KKC, Cout)),
                  _fullspec((1, Cout)), _fullspec((1, Cout)), _fullspec((1, Cout))],
        out_specs=_fullspec((Mo_pad, Cout)),
        compiler_params=_compiler_params(),
        cost_estimate=pl.CostEstimate(flops=int(flops), transcendentals=0,
                                      bytes_accessed=int(bytes_acc)),
    )(pats, wmat, bias.reshape(1, Cout), bn_s.reshape(1, Cout), bn_t.reshape(1, Cout))
    return out[:Mo].reshape(B, Hoo, Woo, Cout)


def conv_head(x, wmat, bias, bn_s, bn_t, w1, s1, t1, w2, b2, *, pool_k, pool_pad):
    """Last conv block fused with the FC head. Returns (B, NOUT_PAD) f32."""
    pat4, _, _ = im2col_nhwc(x, KSIZE, KSIZE // 2)
    pats, P, Mo, Mo_pad, Hoo, Woo = pool_gather(pat4, pool_k, pool_pad)
    assert Hoo == 1 and Woo == 1, "flatten requires 1x1 spatial (nn.Linear(C3,256))"
    PM, KKC = pats.shape
    Cp = wmat.shape[1]
    H1 = w1.shape[1]
    NO = w2.shape[1]
    flops = 2 * (PM * KKC * Cp + Mo_pad * Cp * H1 + Mo_pad * H1 * NO)
    bytes_acc = 2 * (pats.size + wmat.size + w1.size + w2.size) + \
                4 * (Mo_pad * NO + 3 * Cp + 2 * H1 + NO)
    kern = functools.partial(_conv_head_kernel, P=P, Mo=Mo_pad)
    out = pl.pallas_call(
        kern,
        out_shape=jax.ShapeDtypeStruct((Mo_pad, NO), jnp.float32),
        grid=(1,),
        in_specs=[_fullspec((PM, KKC)), _fullspec((KKC, Cp)),
                  _fullspec((1, Cp)), _fullspec((1, Cp)), _fullspec((1, Cp)),
                  _fullspec((Cp, H1)), _fullspec((1, H1)), _fullspec((1, H1)),
                  _fullspec((H1, NO)), _fullspec((1, NO))],
        out_specs=_fullspec((Mo_pad, NO)),
        compiler_params=_compiler_params(),
        cost_estimate=pl.CostEstimate(flops=int(flops), transcendentals=0,
                                      bytes_accessed=int(bytes_acc)),
    )(pats, wmat, bias.reshape(1, Cp), bn_s.reshape(1, Cp), bn_t.reshape(1, Cp),
      w1, s1.reshape(1, H1), t1.reshape(1, H1), w2, b2.reshape(1, NO))
    return out[:Mo]


# ------------------------------ XLA glue (layout only) -------------------------
def im2col_nhwc(x, k, pad):
    """x: (B,H,W,C) -> (B,Ho,Wo,k*k*C) im2col patches, last-axis order (dy,dx,ci)."""
    B, H, W, C = x.shape
    xp = jnp.pad(x, ((0, 0), (pad, pad), (pad, pad), (0, 0)))
    Ho, Wo = H + 2 * pad - k + 1, W + 2 * pad - k + 1
    cols = [xp[:, dy:dy + Ho, dx:dx + Wo, :] for dy in range(k) for dx in range(k)]
    return jnp.concatenate(cols, axis=-1), Ho, Wo


def pool_gather(pat4, pool_k, pool_pad):
    """Rearrange im2col patches pool-offset-major: (P * Mo_pad, D), Mo_pad % 8 == 0.

    Only pool-window offsets that land on valid conv-output positions are kept
    (PyTorch MaxPool2d pads with -inf, which never wins, and positions outside
    the window are simply not covered).  Mo is zero-padded up to a multiple of 8
    so the in-kernel per-offset slices of the f32 matmul result are sublane-aligned."""
    B, Ho, Wo, D = pat4.shape
    Hoo = (Ho + 2 * pool_pad - pool_k) // pool_k + 1
    Woo = (Wo + 2 * pool_pad - pool_k) // pool_k + 1

    def valid_offsets(extent, out_extent):
        offs = []
        for d in range(pool_k):
            pos = [o * pool_k + d - pool_pad for o in range(out_extent)]
            inside = [0 <= q < extent for q in pos]
            if all(inside):
                offs.append(d)
            else:
                assert not any(inside), "ragged pool windows not supported at these shapes"
        return offs

    dys = valid_offsets(Ho, Hoo)
    dxs = valid_offsets(Wo, Woo)
    Mo = B * Hoo * Woo
    Mo_pad = _round_up(Mo, 8)
    slabs = []
    for dy in dys:
        r0 = dy - pool_pad
        for dx in dxs:
            c0 = dx - pool_pad
            s = pat4[:, r0:r0 + pool_k * (Hoo - 1) + 1:pool_k,
                        c0:c0 + pool_k * (Woo - 1) + 1:pool_k, :]
            slabs.append(s.reshape(Mo, D))
    P = len(slabs)
    stacked = jnp.stack(slabs, axis=0)                               # (P, Mo, D)
    stacked = jnp.pad(stacked, ((0, 0), (0, Mo_pad - Mo), (0, 0)))   # zero rows, discarded later
    return stacked.reshape(P * Mo_pad, D), P, Mo, Mo_pad, Hoo, Woo


# ---------------------- SES basis / parameter construction --------------------
def _hermite_poly(X, n):
    coeff = [0.0] * n + [1.0]
    return np.polynomial.hermite_e.hermeval(X, coeff)


def steerable_basis_A(size, scales, effective_size):
    """Hermite-Gaussian steerable basis (basis_type='A'): (num_funcs, num_scales, size, size)."""
    max_order = effective_size - 1
    max_scale = max(scales)
    per_scale = []
    for scale in scales:
        sz = int(size * scale / max_scale) // 2 * 2 + 1
        X = np.linspace(-(sz // 2), sz // 2, sz)
        order_y, order_x = np.indices([max_order + 1, max_order + 1])
        G = np.exp(-X ** 2 / (2 * scale ** 2)) / scale
        bx = np.stack([G * _hermite_poly(X / scale, n) for n in order_x.ravel()])
        by = np.stack([G * _hermite_poly(X / scale, n) for n in order_y.ravel()])
        basis = np.einsum('bi,bj->bij', bx, by)
        p = (size - sz) // 2
        basis = np.pad(basis, ((0, 0), (p, p), (p, p)))
        per_scale.append(basis)
    return np.stack(per_scale, axis=1).astype(np.float32)


def build_conv_kernel4d(weight, basis):
    """weight (Cout,Cin,F) @ basis (F,S,K,K), S==1 -> spatial kernel (K,K,Cin,Cout)."""
    kernel = jnp.einsum('oif,fskl->osikl', weight, jnp.asarray(basis))
    Cout, S, Cin, K, _ = kernel.shape
    kernel = kernel.reshape(Cout * S, Cin, K, K)
    return jnp.transpose(kernel, (2, 3, 1, 0))


def _bn_fold(cout, cout_pad):
    gamma = jnp.ones((cout,), jnp.float32)
    beta = jnp.zeros((cout,), jnp.float32)
    mean = jnp.zeros((cout,), jnp.float32)
    var = jnp.ones((cout,), jnp.float32)
    s = gamma / jnp.sqrt(var + BN_EPS)
    t = beta - mean * s
    return jnp.pad(s, (0, cout_pad - cout)), jnp.pad(t, (0, cout_pad - cout))


def init_params(key):
    basis = steerable_basis_A(KSIZE, SCALES, EFF_SIZE)      # (49, 1, 11, 11)
    F = basis.shape[0]
    params = {}
    keys = jax.random.split(key, 9)
    ki = 0
    conv_cfg = [(1, C1, 1, C1P), (C1, C2, C1P, C2P), (C2, C3, C2P, C3P)]
    for i, (cin, cout, cin_p, cout_p) in enumerate(conv_cfg):
        bound = 1.0 / np.sqrt(cin * F)                      # kaiming_uniform(a=sqrt(5)) bound
        w = jax.random.uniform(keys[ki], (cout, cin, F), jnp.float32, -bound, bound); ki += 1
        b = jax.random.uniform(keys[ki], (cout,), jnp.float32, -0.1, 0.1); ki += 1
        k4 = build_conv_kernel4d(w, basis)                  # (K,K,cin,cout) f32
        k4 = jnp.pad(k4, ((0, 0), (0, 0), (0, cin_p - cin), (0, cout_p - cout)))
        params[f'conv{i}_wmat'] = k4.reshape(KSIZE * KSIZE * cin_p, cout_p).astype(jnp.bfloat16)
        params[f'conv{i}_bias'] = jnp.pad(b, (0, cout_p - cout))
        params[f'bn{i}_scale'], params[f'bn{i}_shift'] = _bn_fold(cout, cout_p)
    bound = 1.0 / np.sqrt(C3)
    w1 = jax.random.uniform(keys[ki], (C3, FC_HID), jnp.float32, -bound, bound); ki += 1
    params['fc1_w'] = jnp.pad(w1, ((0, C3P - C3), (0, 0))).astype(jnp.bfloat16)
    params['bnfc_scale'], params['bnfc_shift'] = _bn_fold(FC_HID, FC_HID)
    bound = 1.0 / np.sqrt(FC_HID)
    w2 = jax.random.uniform(keys[ki], (FC_HID, NOUT), jnp.float32, -bound, bound); ki += 1
    b2 = jax.random.uniform(keys[ki], (NOUT,), jnp.float32, -bound, bound); ki += 1
    params['fc2_w'] = jnp.pad(w2, ((0, 0), (0, NOUT_PAD - NOUT))).astype(jnp.bfloat16)
    params['fc2_b'] = jnp.pad(b2, (0, NOUT_PAD - NOUT))
    return params


# ------------------------------ forward pass ----------------------------------
def forward(x_nchw, p):
    x = jnp.transpose(x_nchw, (0, 2, 3, 1)).astype(jnp.bfloat16)        # NCHW -> NHWC, bf16
    # Block 1: SESConv(1->32) + MaxProj + ReLU + MaxPool2d(2) + BN(32)
    x = conv_block(x, p['conv0_wmat'], p['conv0_bias'], p['bn0_scale'], p['bn0_shift'],
                   pool_k=2, pool_pad=0)
    # Block 2: SESConv(32->63) + MaxProj + ReLU + MaxPool2d(2) + BN(63)   (63 padded to 64)
    x = conv_block(x, p['conv1_wmat'], p['conv1_bias'], p['bn1_scale'], p['bn1_shift'],
                   pool_k=2, pool_pad=0)
    # torch: print(x.size()) -- host-side debug print omitted (shape is (B, C3, 1, 1)).
    # Block 3 + head: SESConv(63->95) + MaxProj + ReLU + MaxPool2d(4,pad=2) + BN(95)
    #                 + flatten + fc1 + BN1d + ReLU + Dropout(eval) + fc2   (95->96, 10->128 pad)
    out = conv_head(x, p['conv2_wmat'], p['conv2_bias'], p['bn2_scale'], p['bn2_shift'],
                    p['fc1_w'], p['bnfc_scale'], p['bnfc_shift'], p['fc2_w'], p['fc2_b'],
                    pool_k=4, pool_pad=2)
    return out[:, :NOUT]


if __name__ == "__main__":
    key = jax.random.PRNGKey(0)
    pkey, xkey = jax.random.split(key)
    params = init_params(pkey)
    # Input spatial 12x12 so the final MaxPool2d(4, padding=2) yields 1x1 and the flatten
    # equals C3 exactly (required by nn.Linear(C3, 256) in the given module).
    x = jax.random.normal(xkey, (2, 1, 12, 12), jnp.float32)
    out = jax.jit(forward)(x, params)
    out = jax.block_until_ready(out)
    assert out.shape == (2, 10) and bool(jnp.all(jnp.isfinite(out)))
    print("KERNEL_OK")
</pallas_src>

<mosaic_0001>
module attributes {stable_mosaic.version = 11 : i64} {
  func.func @_conv_block_kernel(%arg0: i32, %arg1: memref<288x121xbf16, #tpu.memory_space<vmem>>, %arg2: memref<121x32xbf16, #tpu.memory_space<vmem>>, %arg3: memref<1x32xf32, #tpu.memory_space<vmem>>, %arg4: memref<1x32xf32, #tpu.memory_space<vmem>>, %arg5: memref<1x32xf32, #tpu.memory_space<vmem>>, %arg6: memref<72x32xbf16, #tpu.memory_space<vmem>>) attributes {dimension_semantics = [#tpu.dimension_semantics<arbitrary>], iteration_bounds = array<i64: 1>, scalar_prefetch = 0 : i64, scratch_operands = 0 : i64, tpu.core_type = #tpu.core_type<tc>, window_params = [{pipeline_mode = #tpu.pipeline_mode<synchronous>, transform_indices = @transform_0, window_bounds = array<i64: 288, 121>}, {pipeline_mode = #tpu.pipeline_mode<synchronous>, transform_indices = @transform_1, window_bounds = array<i64: 121, 32>}, {pipeline_mode = #tpu.pipeline_mode<synchronous>, transform_indices = @transform_2, window_bounds = array<i64: 1, 32>}, {pipeline_mode = #tpu.pipeline_mode<synchronous>, transform_indices = @transform_3, window_bounds = array<i64: 1, 32>}, {pipeline_mode = #tpu.pipeline_mode<synchronous>, transform_indices = @transform_4, window_bounds = array<i64: 1, 32>}, {pipeline_mode = #tpu.pipeline_mode<synchronous>, transform_indices = @transform_5, window_bounds = array<i64: 72, 32>}]} {
    %c0 = arith.constant 0 : index
    %c0_0 = arith.constant 0 : index
    %0 = vector.load %arg1[%c0, %c0_0] : memref<288x121xbf16, #tpu.memory_space<vmem>>, vector<288x121xbf16>
    %c0_1 = arith.constant 0 : index
    %c0_2 = arith.constant 0 : index
    %1 = vector.load %arg2[%c0_1, %c0_2] : memref<121x32xbf16, #tpu.memory_space<vmem>>, vector<121x32xbf16>
    %cst = arith.constant dense<0.000000e+00> : vector<288x32xf32>
    %2 = tpu.matmul %0, %1, %cst {dimension_numbers = #tpu.dot_dimension_numbers<[1], [0], [0], [1], [0, 0, 1, 1], [], []>} : vector<288x121xbf16>, vector<121x32xbf16>, vector<288x32xf32> -> vector<288x32xf32>
    %3 = vector.extract_strided_slice %2 {offsets = [0, 0], sizes = [72, 32], strides = [1, 1]} : vector<288x32xf32> to vector<72x32xf32>
    %4 = vector.extract_strided_slice %2 {offsets = [72, 0], sizes = [72, 32], strides = [1, 1]} : vector<288x32xf32> to vector<72x32xf32>
    %5 = vector.extract_strided_slice %2 {offsets = [144, 0], sizes = [72, 32], strides = [1, 1]} : vector<288x32xf32> to vector<72x32xf32>
    %6 = vector.extract_strided_slice %2 {offsets = [216, 0], sizes = [72, 32], strides = [1, 1]} : vector<288x32xf32> to vector<72x32xf32>
    %7 = arith.maximumf %3, %4 : vector<72x32xf32>
    %8 = arith.maximumf %5, %6 : vector<72x32xf32>
    %9 = arith.maximumf %7, %8 : vector<72x32xf32>
    %c0_3 = arith.constant 0 : index
    %c0_4 = arith.constant 0 : index
    %10 = vector.load %arg3[%c0_3, %c0_4] : memref<1x32xf32, #tpu.memory_space<vmem>>, vector<1x32xf32>
    %11 = vector.broadcast %10 : vector<1x32xf32> to vector<72x32xf32>
    %12 = arith.addf %9, %11 : vector<72x32xf32>
    %cst_5 = arith.constant 0.000000e+00 : f32
    %13 = vector.broadcast %cst_5 : f32 to vector<72x32xf32>
    %14 = arith.maximumf %12, %13 : vector<72x32xf32>
    %c0_6 = arith.constant 0 : index
    %c0_7 = arith.constant 0 : index
    %15 = vector.load %arg4[%c0_6, %c0_7] : memref<1x32xf32, #tpu.memory_space<vmem>>, vector<1x32xf32>
    %16 = vector.broadcast %15 : vector<1x32xf32> to vector<72x32xf32>
    %17 = arith.mulf %14, %16 : vector<72x32xf32>
    %c0_8 = arith.constant 0 : index
    %c0_9 = arith.constant 0 : index
    %18 = vector.load %arg5[%c0_8, %c0_9] : memref<1x32xf32, #tpu.memory_space<vmem>>, vector<1x32xf32>
    %19 = vector.broadcast %18 : vector<1x32xf32> to vector<72x32xf32>
    %20 = arith.addf %17, %19 : vector<72x32xf32>
    %21 = arith.truncf %20 : vector<72x32xf32> to vector<72x32xbf16>
    %c0_10 = arith.constant 0 : index
    %c0_11 = arith.constant 0 : index
    %22 = vector.load %arg6[%c0_10, %c0_11] : memref<72x32xbf16, #tpu.memory_space<vmem>>, vector<72x32xbf16>
    tpu.vector_store %arg6[%c0_10, %c0_11], %21 {strides = array<i32>} : memref<72x32xbf16, #tpu.memory_space<vmem>>, vector<72x32xbf16>,
    return
  }
  func.func @transform_0(%arg0: i32) -> (i32, i32) {
    %c0_i32 = arith.constant 0 : i32
    %c0_i32_0 = arith.constant 0 : i32
    %c0_i32_1 = arith.constant 0 : i32
    return %c0_i32, %c0_i32_0 : i32, i32
  }
  func.func @transform_1(%arg0: i32) -> (i32, i32) {
    %c0_i32 = arith.constant 0 : i32
    %c0_i32_0 = arith.constant 0 : i32
    %c0_i32_1 = arith.constant 0 : i32
    return %c0_i32, %c0_i32_0 : i32, i32
  }
  func.func @transform_2(%arg0: i32) -> (i32, i32) {
    %c0_i32 = arith.constant 0 : i32
    %c0_i32_0 = arith.constant 0 : i32
    %c0_i32_1 = arith.constant 0 : i32
    return %c0_i32, %c0_i32_0 : i32, i32
  }
  func.func @transform_3(%arg0: i32) -> (i32, i32) {
    %c0_i32 = arith.constant 0 : i32
    %c0_i32_0 = arith.constant 0 : i32
    %c0_i32_1 = arith.constant 0 : i32
    return %c0_i32, %c0_i32_0 : i32, i32
  }
  func.func @transform_4(%arg0: i32) -> (i32, i32) {
    %c0_i32 = arith.constant 0 : i32
    %c0_i32_0 = arith.constant 0 : i32
    %c0_i32_1 = arith.constant 0 : i32
    return %c0_i32, %c0_i32_0 : i32, i32
  }
  func.func @transform_5(%arg0: i32) -> (i32, i32) {
    %c0_i32 = arith.constant 0 : i32
    %c0_i32_0 = arith.constant 0 : i32
    %c0_i32_1 = arith.constant 0 : i32
    return %c0_i32, %c0_i32_0 : i32, i32
  }
}

module attributes {stable_mosaic.version = 11 : i64} {
  func.func @_conv_block_kernel(%arg0: i32, %arg1: memref<96x3872xbf16, #tpu.memory_space<vmem>>, %arg2: memref<3872x64xbf16, #tpu.memory_space<vmem>>, %arg3: memref<1x64xf32, #tpu.memory_space<vmem>>, %arg4: memref<1x64xf32, #tpu.memory_space<vmem>>, %arg5: memref<1x64xf32, #tpu.memory_space<vmem>>, %arg6: memref<24x64xbf16, #tpu.memory_space<vmem>>) attributes {dimension_semantics = [#tpu.dimension_semantics<arbitrary>], iteration_bounds = array<i64: 1>, scalar_prefetch = 0 : i64, scratch_operands = 0 : i64, tpu.core_type = #tpu.core_type<tc>, window_params = [{pipeline_mode = #tpu.pipeline_mode<synchronous>, transform_indices = @transform_0, window_bounds = array<i64: 96, 3872>}, {pipeline_mode = #tpu.pipeline_mode<synchronous>, transform_indices = @transform_1, window_bounds = array<i64: 3872, 64>}, {pipeline_mode = #tpu.pipeline_mode<synchronous>, transform_indices = @transform_2, window_bounds = array<i64: 1, 64>}, {pipeline_mode = #tpu.pipeline_mode<synchronous>, transform_indices = @transform_3, window_bounds = array<i64: 1, 64>}, {pipeline_mode = #tpu.pipeline_mode<synchronous>, transform_indices = @transform_4, window_bounds = array<i64: 1, 64>}, {pipeline_mode = #tpu.pipeline_mode<synchronous>, transform_indices = @transform_5, window_bounds = array<i64: 24, 64>}]} {
    %c0 = arith.constant 0 : index
    %c0_0 = arith.constant 0 : index
    %0 = vector.load %arg1[%c0, %c0_0] : memref<96x3872xbf16, #tpu.memory_space<vmem>>, vector<96x3872xbf16>
    %c0_1 = arith.constant 0 : index
    %c0_2 = arith.constant 0 : index
    %1 = vector.load %arg2[%c0_1, %c0_2] : memref<3872x64xbf16, #tpu.memory_space<vmem>>, vector<3872x64xbf16>
    %cst = arith.constant dense<0.000000e+00> : vector<96x64xf32>
    %2 = tpu.matmul %0, %1, %cst {dimension_numbers = #tpu.dot_dimension_numbers<[1], [0], [0], [1], [0, 0, 1, 1], [], []>} : vector<96x3872xbf16>, vector<3872x64xbf16>, vector<96x64xf32> -> vector<96x64xf32>
    %3 = vector.extract_strided_slice %2 {offsets = [0, 0], sizes = [24, 64], strides = [1, 1]} : vector<96x64xf32> to vector<24x64xf32>
    %4 = vector.extract_strided_slice %2 {offsets = [24, 0], sizes = [24, 64], strides = [1, 1]} : vector<96x64xf32> to vector<24x64xf32>
    %5 = vector.extract_strided_slice %2 {offsets = [48, 0], sizes = [24, 64], strides = [1, 1]} : vector<96x64xf32> to vector<24x64xf32>
    %6 = vector.extract_strided_slice %2 {offsets = [72, 0], sizes = [24, 64], strides = [1, 1]} : vector<96x64xf32> to vector<24x64xf32>
    %7 = arith.maximumf %3, %4 : vector<24x64xf32>
    %8 = arith.maximumf %5, %6 : vector<24x64xf32>
    %9 = arith.maximumf %7, %8 : vector<24x64xf32>
    %c0_3 = arith.constant 0 : index
    %c0_4 = arith.constant 0 : index
    %10 = vector.load %arg3[%c0_3, %c0_4] : memref<1x64xf32, #tpu.memory_space<vmem>>, vector<1x64xf32>
    %11 = vector.broadcast %10 : vector<1x64xf32> to vector<24x64xf32>
    %12 = arith.addf %9, %11 : vector<24x64xf32>
    %cst_5 = arith.constant 0.000000e+00 : f32
    %13 = vector.broadcast %cst_5 : f32 to vector<24x64xf32>
    %14 = arith.maximumf %12, %13 : vector<24x64xf32>
    %c0_6 = arith.constant 0 : index
    %c0_7 = arith.constant 0 : index
    %15 = vector.load %arg4[%c0_6, %c0_7] : memref<1x64xf32, #tpu.memory_space<vmem>>, vector<1x64xf32>
    %16 = vector.broadcast %15 : vector<1x64xf32> to vector<24x64xf32>
    %17 = arith.mulf %14, %16 : vector<24x64xf32>
    %c0_8 = arith.constant 0 : index
    %c0_9 = arith.constant 0 : index
    %18 = vector.load %arg5[%c0_8, %c0_9] : memref<1x64xf32, #tpu.memory_space<vmem>>, vector<1x64xf32>
    %19 = vector.broadcast %18 : vector<1x64xf32> to vector<24x64xf32>
    %20 = arith.addf %17, %19 : vector<24x64xf32>
    %21 = arith.truncf %20 : vector<24x64xf32> to vector<24x64xbf16>
    %c0_10 = arith.constant 0 : index
    %c0_11 = arith.constant 0 : index
    %22 = vector.load %arg6[%c0_10, %c0_11] : memref<24x64xbf16, #tpu.memory_space<vmem>>, vector<24x64xbf16>
    tpu.vector_store %arg6[%c0_10, %c0_11], %21 {strides = array<i32>} : memref<24x64xbf16, #tpu.memory_space<vmem>>, vector<24x64xbf16>,
    return
  }
  func.func @transform_0(%arg0: i32) -> (i32, i32) {
    %c0_i32 = arith.constant 0 : i32
    %c0_i32_0 = arith.constant 0 : i32
    %c0_i32_1 = arith.constant 0 : i32
    return %c0_i32, %c0_i32_0 : i32, i32
  }
  func.func @transform_1(%arg0: i32) -> (i32, i32) {
    %c0_i32 = arith.constant 0 : i32
    %c0_i32_0 = arith.constant 0 : i32
    %c0_i32_1 = arith.constant 0 : i32
    return %c0_i32, %c0_i32_0 : i32, i32
  }
  func.func @transform_2(%arg0: i32) -> (i32, i32) {
    %c0_i32 = arith.constant 0 : i32
    %c0_i32_0 = arith.constant 0 : i32
    %c0_i32_1 = arith.constant 0 : i32
    return %c0_i32, %c0_i32_0 : i32, i32
  }
  func.func @transform_3(%arg0: i32) -> (i32, i32) {
    %c0_i32 = arith.constant 0 : i32
    %c0_i32_0 = arith.constant 0 : i32
    %c0_i32_1 = arith.constant 0 : i32
    return %c0_i32, %c0_i32_0 : i32, i32
  }
  func.func @transform_4(%arg0: i32) -> (i32, i32) {
    %c0_i32 = arith.constant 0 : i32
    %c0_i32_0 = arith.constant 0 : i32
    %c0_i32_1 = arith.constant 0 : i32
    return %c0_i32, %c0_i32_0 : i32, i32
  }
  func.func @transform_5(%arg0: i32) -> (i32, i32) {
    %c0_i32 = arith.constant 0 : i32
    %c0_i32_0 = arith.constant 0 : i32
    %c0_i32_1 = arith.constant 0 : i32
    return %c0_i32, %c0_i32_0 : i32, i32
  }
}

module attributes {stable_mosaic.version = 11 : i64} {
  func.func @_conv_head_kernel(%arg0: i32, %arg1: memref<32x7744xbf16, #tpu.memory_space<vmem>>, %arg2: memref<7744x96xbf16, #tpu.memory_space<vmem>>, %arg3: memref<1x96xf32, #tpu.memory_space<vmem>>, %arg4: memref<1x96xf32, #tpu.memory_space<vmem>>, %arg5: memref<1x96xf32, #tpu.memory_space<vmem>>, %arg6: memref<96x256xbf16, #tpu.memory_space<vmem>>, %arg7: memref<1x256xf32, #tpu.memory_space<vmem>>, %arg8: memref<1x256xf32, #tpu.memory_space<vmem>>, %arg9: memref<256x128xbf16, #tpu.memory_space<vmem>>, %arg10: memref<1x128xf32, #tpu.memory_space<vmem>>, %arg11: memref<8x128xf32, #tpu.memory_space<vmem>>) attributes {dimension_semantics = [#tpu.dimension_semantics<arbitrary>], iteration_bounds = array<i64: 1>, scalar_prefetch = 0 : i64, scratch_operands = 0 : i64, tpu.core_type = #tpu.core_type<tc>, window_params = [{pipeline_mode = #tpu.pipeline_mode<synchronous>, transform_indices = @transform_0, window_bounds = array<i64: 32, 7744>}, {pipeline_mode = #tpu.pipeline_mode<synchronous>, transform_indices = @transform_1, window_bounds = array<i64: 7744, 96>}, {pipeline_mode = #tpu.pipeline_mode<synchronous>, transform_indices = @transform_2, window_bounds = array<i64: 1, 96>}, {pipeline_mode = #tpu.pipeline_mode<synchronous>, transform_indices = @transform_3, window_bounds = array<i64: 1, 96>}, {pipeline_mode = #tpu.pipeline_mode<synchronous>, transform_indices = @transform_4, window_bounds = array<i64: 1, 96>}, {pipeline_mode = #tpu.pipeline_mode<synchronous>, transform_indices = @transform_5, window_bounds = array<i64: 96, 256>}, {pipeline_mode = #tpu.pipeline_mode<synchronous>, transform_indices = @transform_6, window_bounds = array<i64: 1, 256>}, {pipeline_mode = #tpu.pipeline_mode<synchronous>, transform_indices = @transform_7, window_bounds = array<i64: 1, 256>}, {pipeline_mode = #tpu.pipeline_mode<synchronous>, transform_indices = @transform_8, window_bounds = array<i64: 256, 128>}, {pipeline_mode = #tpu.pipeline_mode<synchronous>, transform_indices = @transform_9, window_bounds = array<i64: 1, 128>}, {pipeline_mode = #tpu.pipeline_mode<synchronous>, transform_indices = @transform_10, window_bounds = array<i64: 8, 128>}]} {
    %c0 = arith.constant 0 : index
    %c0_0 = arith.constant 0 : index
    %0 = vector.load %arg1[%c0, %c0_0] : memref<32x7744xbf16, #tpu.memory_space<vmem>>, vector<32x7744xbf16>
    %c0_1 = arith.constant 0 : index
    %c0_2 = arith.constant 0 : index
    %1 = vector.load %arg2[%c0_1, %c0_2] : memref<7744x96xbf16, #tpu.memory_space<vmem>>, vector<7744x96xbf16>
    %cst = arith.constant dense<0.000000e+00> : vector<32x96xf32>
    %2 = tpu.matmul %0, %1, %cst {dimension_numbers = #tpu.dot_dimension_numbers<[1], [0], [0], [1], [0, 0, 1, 1], [], []>} : vector<32x7744xbf16>, vector<7744x96xbf16>, vector<32x96xf32> -> vector<32x96xf32>
    %3 = vector.extract_strided_slice %2 {offsets = [0, 0], sizes = [8, 96], strides = [1, 1]} : vector<32x96xf32> to vector<8x96xf32>
    %4 = vector.extract_strided_slice %2 {offsets = [8, 0], sizes = [8, 96], strides = [1, 1]} : vector<32x96xf32> to vector<8x96xf32>
    %5 = vector.extract_strided_slice %2 {offsets = [16, 0], sizes = [8, 96], strides = [1, 1]} : vector<32x96xf32> to vector<8x96xf32>
    %6 = vector.extract_strided_slice %2 {offsets = [24, 0], sizes = [8, 96], strides = [1, 1]} : vector<32x96xf32> to vector<8x96xf32>
    %7 = arith.maximumf %3, %4 : vector<8x96xf32>
    %8 = arith.maximumf %5, %6 : vector<8x96xf32>
    %9 = arith.maximumf %7, %8 : vector<8x96xf32>
    %c0_3 = arith.constant 0 : index
    %c0_4 = arith.constant 0 : index
    %10 = vector.load %arg3[%c0_3, %c0_4] : memref<1x96xf32, #tpu.memory_space<vmem>>, vector<1x96xf32>
    %11 = vector.broadcast %10 : vector<1x96xf32> to vector<8x96xf32>
    %12 = arith.addf %9, %11 : vector<8x96xf32>
    %cst_5 = arith.constant 0.000000e+00 : f32
    %13 = vector.broadcast %cst_5 : f32 to vector<8x96xf32>
    %14 = arith.maximumf %12, %13 : vector<8x96xf32>
    %c0_6 = arith.constant 0 : index
    %c0_7 = arith.constant 0 : index
    %15 = vector.load %arg4[%c0_6, %c0_7] : memref<1x96xf32, #tpu.memory_space<vmem>>, vector<1x96xf32>
    %16 = vector.broadcast %15 : vector<1x96xf32> to vector<8x96xf32>
    %17 = arith.mulf %14, %16 : vector<8x96xf32>
    %c0_8 = arith.constant 0 : index
    %c0_9 = arith.constant 0 : index
    %18 = vector.load %arg5[%c0_8, %c0_9] : memref<1x96xf32, #tpu.memory_space<vmem>>, vector<1x96xf32>
    %19 = vector.broadcast %18 : vector<1x96xf32> to vector<8x96xf32>
    %20 = arith.addf %17, %19 : vector<8x96xf32>
    %21 = arith.truncf %20 : vector<8x96xf32> to vector<8x96xbf16>
    %c0_10 = arith.constant 0 : index
    %c0_11 = arith.constant 0 : index
    %22 = vector.load %arg6[%c0_10, %c0_11] : memref<96x256xbf16, #tpu.memory_space<vmem>>, vector<96x256xbf16>
    %cst_12 = arith.constant dense<0.000000e+00> : vector<8x256xf32>
    %23 = tpu.matmul %21, %22, %cst_12 {dimension_numbers = #tpu.dot_dimension_numbers<[1], [0], [0], [1], [0, 0, 1, 1], [], []>} : vector<8x96xbf16>, vector<96x256xbf16>, vector<8x256xf32> -> vector<8x256xf32>
    %c0_13 = arith.constant 0 : index
    %c0_14 = arith.constant 0 : index
    %24 = vector.load %arg7[%c0_13, %c0_14] : memref<1x256xf32, #tpu.memory_space<vmem>>, vector<1x256xf32>
    %25 = vector.broadcast %24 : vector<1x256xf32> to vector<8x256xf32>
    %26 = arith.mulf %23, %25 : vector<8x256xf32>
    %c0_15 = arith.constant 0 : index
    %c0_16 = arith.constant 0 : index
    %27 = vector.load %arg8[%c0_15, %c0_16] : memref<1x256xf32, #tpu.memory_space<vmem>>, vector<1x256xf32>
    %28 = vector.broadcast %27 : vector<1x256xf32> to vector<8x256xf32>
    %29 = arith.addf %26, %28 : vector<8x256xf32>
    %cst_17 = arith.constant 0.000000e+00 : f32
    %30 = vector.broadcast %cst_17 : f32 to vector<8x256xf32>
    %31 = arith.maximumf %29, %30 : vector<8x256xf32>
    %32 = arith.truncf %31 : vector<8x256xf32> to vector<8x256xbf16>
    %c0_18 = arith.constant 0 : index
    %c0_19 = arith.constant 0 : index
    %33 = vector.load %arg9[%c0_18, %c0_19] : memref<256x128xbf16, #tpu.memory_space<vmem>>, vector<256x128xbf16>
    %cst_20 = arith.constant dense<0.000000e+00> : vector<8x128xf32>
    %34 = tpu.matmul %32, %33, %cst_20 {dimension_numbers = #tpu.dot_dimension_numbers<[1], [0], [0], [1], [0, 0, 1, 1], [], []>} : vector<8x256xbf16>, vector<256x128xbf16>, vector<8x128xf32> -> vector<8x128xf32>
    %c0_21 = arith.constant 0 : index
    %c0_22 = arith.constant 0 : index
    %35 = vector.load %arg10[%c0_21, %c0_22] : memref<1x128xf32, #tpu.memory_space<vmem>>, vector<1x128xf32>
    %36 = vector.broadcast %35 : vector<1x128xf32> to vector<8x128xf32>
    %37 = arith.addf %34, %36 : vector<8x128xf32>
    %c0_23 = arith.constant 0 : index
    %c0_24 = arith.constant 0 : index
    %38 = vector.load %arg11[%c0_23, %c0_24] : memref<8x128xf32, #tpu.memory_space<vmem>>, vector<8x128xf32>
    tpu.vector_store %arg11[%c0_23, %c0_24], %37 {strides = array<i32>} : memref<8x128xf32, #tpu.memory_space<vmem>>, vector<8x128xf32>,
    return
  }
  func.func @transform_0(%arg0: i32) -> (i32, i32) {
    %c0_i32 = arith.constant 0 : i32
    %c0_i32_0 = arith.constant 0 : i32
    %c0_i32_1 = arith.constant 0 : i32
    return %c0_i32, %c0_i32_0 : i32, i32
  }
  func.func @transform_1(%arg0: i32) -> (i32, i32) {
    %c0_i32 = arith.constant 0 : i32
    %c0_i32_0 = arith.constant 0 : i32
    %c0_i32_1 = arith.constant 0 : i32
    return %c0_i32, %c0_i32_0 : i32, i32
  }
  func.func @transform_2(%arg0: i32) -> (i32, i32) {
    %c0_i32 = arith.constant 0 : i32
    %c0_i32_0 = arith.constant 0 : i32
    %c0_i32_1 = arith.constant 0 : i32
    return %c0_i32, %c0_i32_0 : i32, i32
  }
  func.func @transform_3(%arg0: i32) -> (i32, i32) {
    %c0_i32 = arith.constant 0 : i32
    %c0_i32_0 = arith.constant 0 : i32
    %c0_i32_1 = arith.constant 0 : i32
    return %c0_i32, %c0_i32_0 : i32, i32
  }
  func.func @transform_4(%arg0: i32) -> (i32, i32) {
    %c0_i32 = arith.constant 0 : i32
    %c0_i32_0 = arith.constant 0 : i32
    %c0_i32_1 = arith.constant 0 : i32
    return %c0_i32, %c0_i32_0 : i32, i32
  }
  func.func @transform_5(%arg0: i32) -> (i32, i32) {
    %c0_i32 = arith.constant 0 : i32
    %c0_i32_0 = arith.constant 0 : i32
    %c0_i32_1 = arith.constant 0 : i32
    return %c0_i32, %c0_i32_0 : i32, i32
  }
  func.func @transform_6(%arg0: i32) -> (i32, i32) {
    %c0_i32 = arith.constant 0 : i32
    %c0_i32_0 = arith.constant 0 : i32
    %c0_i32_1 = arith.constant 0 : i32
    return %c0_i32, %c0_i32_0 : i32, i32
  }
  func.func @transform_7(%arg0: i32) -> (i32, i32) {
    %c0_i32 = arith.constant 0 : i32
    %c0_i32_0 = arith.constant 0 : i32
    %c0_i32_1 = arith.constant 0 : i32
    return %c0_i32, %c0_i32_0 : i32, i32
  }
  func.func @transform_8(%arg0: i32) -> (i32, i32) {
    %c0_i32 = arith.constant 0 : i32
    %c0_i32_0 = arith.constant 0 : i32
    %c0_i32_1 = arith.constant 0 : i32
    return %c0_i32, %c0_i32_0 : i32, i32
  }
  func.func @transform_9(%arg0: i32) -> (i32, i32) {
    %c0_i32 = arith.constant 0 : i32
    %c0_i32_0 = arith.constant 0 : i32
    %c0_i32_1 = arith.constant 0 : i32
    return %c0_i32, %c0_i32_0 : i32, i32
  }
  func.func @transform_10(%arg0: i32) -> (i32, i32) {
    %c0_i32 = arith.constant 0 : i32
    %c0_i32_0 = arith.constant 0 : i32
    %c0_i32_1 = arith.constant 0 : i32
    return %c0_i32, %c0_i32_0 : i32, i32
  }
}

</mosaic_0001>

<bundles_post_ra>
// kernel: forward.3
= control target key start
LH: loop header
LB: loop body
LE: loop exit
PB: predicated region body
PF: predicated region fallthrough
CT: control target
= control target key end

     0   :  { %vm210_vm0 = vcmask 990208   ;;  %vm265_vm1 = vcmask 1043456   ;;  %vm266_vm2 = vcmask 1044480   ;;  %v770_v8 = vmov 65535   ;;  %s1005_s1 = inlined_call_operand.vmem [shape: bf16[121,32], index: 1, kind: input, shape index: {}]   ;;  %s1006_s0 = inlined_call_operand.vmem [shape: bf16[288,121], index: 0, kind: input, shape index: {}]   ;;  %s1007_s2 = inlined_call_operand.vmem [shape: f32[1,32], index: 2, kind: input, shape index: {}]   ;;  %s1008_s3 = inlined_call_operand.vmem [shape: f32[1,32], index: 3, kind: input, shape index: {}]   ;;  %s1009_s4 = inlined_call_operand.vmem [shape: f32[1,32], index: 4, kind: input, shape index: {}]   ;;  %s1010_s5 = inlined_call_operand.vmem [shape: bf16[72,32], index: 5, kind: output, shape index: {}]  }
   0x1   :  { %v744_v0 = vld [vmem:[%s1005_s1] sm:$0xff]   ;;  %v745_v1 = vld [vmem:[%s1005_s1 + $0x8] sm:$0xff]   ;;  %v746_v2 = vld [vmem:[%s1005_s1 + $0x10] sm:$0xff]   ;;  %v267_v9 = vsel %vm265_vm1, 4294967295, %v770_v8  ;;  %vm570_vm3 = vcmask 257024  }
   0x2   :  { %675 = vmatprep.subr.bf16.mxu0 %v744_v0  ;;  %727 = vmatprep.subr.bf16.mxu1 %v744_v0  ;;  %v747_v3 = vld [vmem:[%s1005_s1 + $0x18] sm:$0xff]   ;;  %v752_v4 = vld [vmem:[%s1006_s0] sm:$0xff]   ;;  %v753_v5 = vld [vmem:[%s1006_s0 + $0x50] sm:$0xff]   ;;  %v268_v12 = vsel %vm266_vm2, %v267_v9, 0 }
   0x3   :  { %676 = vmatpush3.bf16.msra.mxu0 %v744_v0  ;;  %735 = vmatpush3.bf16.msra.mxu1 %v744_v0  ;;  %v748_v6 = vld [vmem:[%s1005_s1 + $0x20] sm:$0xff]   ;;  %v749_v7 = vld [vmem:[%s1005_s1 + $0x28] sm:$0xff]   ;;  %v750_v10 = vld [vmem:[%s1005_s1 + $0x30] sm:$0xff]  }
   0x4   :  { %677 = vmatprep.subr.bf16.mxu0 %v745_v1  ;;  %728 = vmatprep.subr.bf16.mxu1 %v745_v1  ;;  %v751_v11 = vld [vmem:[%s1005_s1 + $0x38] sm:$0x1f]   ;;  %v754_v14 = vld [vmem:[%s1006_s0 + $0x8] sm:$0xff]   ;;  %v756_v16 = vld [vmem:[%s1006_s0 + $0x10] sm:$0xff]  }
   0x5   :  { %691 = vmatprep.mubr.msk.bf16.mxu0 %vm210_vm0, %v752_v4  ;;  %711 = vmatprep.mubr.msk.bf16.mxu1 %vm210_vm0, %v753_v5  ;;  %v270_v13 = vand.u32 %v751_v11, %v268_v12  ;;  %v755_v15 = vld [vmem:[%s1006_s0 + $0x58] sm:$0xff]   ;;  %v757_v17 = vld [vmem:[%s1006_s0 + $0x60] sm:$0xff]   ;;  %v759_v19 = vld [vmem:[%s1006_s0 + $0x68] sm:$0xff]  }
   0x6   :  { %v758_v18 = vld [vmem:[%s1006_s0 + $0x18] sm:$0xff]   ;;  %v760_v20 = vld [vmem:[%s1006_s0 + $0x20] sm:$0xff]   ;;  %v761_v21 = vld [vmem:[%s1006_s0 + $0x70] sm:$0xff]  }
   0x7   :  { %678 = vmatpush3.bf16.msra.mxu0 %v745_v1  ;;  %736 = vmatpush3.bf16.msra.mxu1 %v745_v1  ;;  %v762_v22 = vld [vmem:[%s1006_s0 + $0x28] sm:$0xff]   ;;  %v763_v23 = vld [vmem:[%s1006_s0 + $0x78] sm:$0xff]   ;;  %v764_v24 = vld [vmem:[%s1006_s0 + $0x30] sm:$0xff]  }
   0x8   :  { %679 = vmatprep.subr.bf16.mxu0 %v746_v2  ;;  %729 = vmatprep.subr.bf16.mxu1 %v746_v2  ;;  %v765_v25 = vld [vmem:[%s1006_s0 + $0x80] sm:$0xff]   ;;  %v766_v26 = vld [vmem:[%s1006_s0 + $0x38] sm:$0xff]   ;;  %v767_v27 = vld [vmem:[%s1006_s0 + $0x88] sm:$0xff]  }
   0x9   :  { %v768_v28 = vld [vmem:[%s1006_s0 + $0x40] sm:$0xff]   ;;  %v769_v29 = vld [vmem:[%s1006_s0 + $0x48] sm:$0xff]  }
   0xa   :  { %v921_v60 = vld [vmem:[%s1007_s2] ss:$0 sm:$0xff] }
   0xb   :  { %680 = vmatpush3.bf16.msra.mxu0 %v746_v2  ;;  %737 = vmatpush3.bf16.msra.mxu1 %v746_v2  ;;  %v927_v1 = vld [vmem:[%s1008_s3] ss:$0 sm:$0xff] }
   0xc   :  { %681 = vmatprep.subr.bf16.mxu0 %v747_v3  ;;  %730 = vmatprep.subr.bf16.mxu1 %v747_v3  ;;  %v933_v11 = vld [vmem:[%s1009_s4] ss:$0 sm:$0xff] }
   0xf   :  { %682 = vmatpush3.bf16.msra.mxu0 %v747_v3  ;;  %738 = vmatpush3.bf16.msra.mxu1 %v747_v3 }
  0x10   :  { %683 = vmatprep.subr.bf16.mxu0 %v748_v6  ;;  %731 = vmatprep.subr.bf16.mxu1 %v748_v6 }
  0x13   :  { %684 = vmatpush3.bf16.msra.mxu0 %v748_v6  ;;  %739 = vmatpush3.bf16.msra.mxu1 %v748_v6 }
  0x14   :  { %685 = vmatprep.subr.bf16.mxu0 %v749_v7  ;;  %732 = vmatprep.subr.bf16.mxu1 %v749_v7 }
  0x17   :  { %686 = vmatpush3.bf16.msra.mxu0 %v749_v7  ;;  %740 = vmatpush3.bf16.msra.mxu1 %v749_v7 }
  0x18   :  { %687 = vmatprep.subr.bf16.mxu0 %v750_v10  ;;  %733 = vmatprep.subr.bf16.mxu1 %v750_v10 }
  0x1b   :  { %688 = vmatpush3.bf16.msra.mxu0 %v750_v10  ;;  %741 = vmatpush3.bf16.msra.mxu1 %v750_v10 }
  0x1c   :  { %689 = vmatprep.subr.bf16.mxu0 %v270_v13  ;;  %734 = vmatprep.subr.bf16.mxu1 %v270_v13 }
  0x1f   :  { %690 = vmatpush3.bf16.msra.mxu0 %v270_v13  ;;  %742 = vmatpush3.bf16.msra.mxu1 %v270_v13 }
  0x22   :  { %692 = vmatmul.mubr.msk.bf16.vlgmr.msra.gmra.mrb[0].mxu0 %vm210_vm0, %v754_v14  ;;  %712 = vmatmul.mubr.msk.bf16.vlgmr.msra.gmra.mrb[0].mxu1 %vm210_vm0, %v755_v15 }
  0x23   :  { %695 = vmatprep.mubr.msk.bf16.mxu0 %vm210_vm0, %v756_v16  ;;  %715 = vmatprep.mubr.msk.bf16.mxu1 %vm210_vm0, %v757_v17 }
  0x2a   :  { %696 = vmatmul.mubr.msk.bf16.gmra.mrb[4].mxu0 %vm210_vm0, %v758_v18  ;;  %716 = vmatmul.mubr.msk.bf16.gmra.mrb[4].mxu1 %vm210_vm0, %v759_v19 }
  0x2b   :  { %699 = vmatprep.mubr.msk.bf16.mxu0 %vm210_vm0, %v760_v20  ;;  %719 = vmatprep.mubr.msk.bf16.mxu1 %vm210_vm0, %v761_v21 }
  0x32   :  { %700 = vmatmul.mubr.msk.bf16.gmra.mrb[8].mxu0 %vm210_vm0, %v762_v22  ;;  %720 = vmatmul.mubr.msk.bf16.gmra.mrb[8].mxu1 %vm210_vm0, %v763_v23 }
  0x33   :  { %703 = vmatprep.mubr.msk.bf16.mxu0 %vm210_vm0, %v764_v24  ;;  %723 = vmatprep.mubr.msk.bf16.mxu1 %vm210_vm0, %v765_v25 }
  0x3a   :  { %704 = vmatmul.mubr.msk.bf16.gmra.mrb[12].mxu0 %vm210_vm0, %v766_v26  ;;  %724 = vmatmul.mubr.msk.bf16.gmra.mrb[12].mxu1 %vm210_vm0, %v767_v27 }
  0x3b   :  { %707 = vmatprep.mubr.msk.bf16.mxu0 %vm210_vm0, %v768_v28 }
  0x42   :  { %708 = vmatmul.mubr.msk.bf16.gmra.mrb[16].mxu0 %vm210_vm0, %v769_v29 }
  0xf5   :  { %v693_v30 = vpop.f32.mrb[0].mxu0  ;;  %v713_v31 = vpop.f32.mrb[0].mxu1 }
  0xf6   :  { %v897_v32 = vpop.f32.mrb[1].mxu0  ;;  %v386_v33 = vpop.f32.mrb[1].mxu1 }
  0xf7   :  { %v694_v34 = vpop.f32.mrb[2].mxu0  ;;  %v714_v35 = vpop.f32.mrb[2].mxu1 }
  0xf8   :  { %v899_v36 = vpop.f32.mrb[3].mxu0  ;;  %v389_v37 = vpop.f32.mrb[3].mxu1 }
  0xfd   :  { %v697_v38 = vpop.f32.mrb[4].mxu0  ;;  %v901_v39 = vpop.f32.mrb[4].mxu1 }
  0xfe   :  { %v322_v40 = vpop.f32.mrb[5].mxu0  ;;  %v402_v41 = vpop.f32.mrb[5].mxu1 }
  0xff   :  { %v903_v42 = vpop.f32.mrb[6].mxu0  ;;  %v905_v43 = vpop.f32.mrb[6].mxu1 }
 0x100   :  { %v325_v44 = vpop.f32.mrb[7].mxu0  ;;  %v907_v45 = vpop.f32.mrb[7].mxu1 }
 0x105   :  { %v909_v46 = vpop.f32.mrb[8].mxu0  ;;  %v721_v47 = vpop.f32.mrb[8].mxu1 }
 0x106   :  { %v450_v48 = vmax.f32 %v899_v36, %v909_v46  ;;  %v461_v49 = vmax.f32 %v389_v37, %v721_v47  ;;  %v913_v50 = vpop.f32.mrb[9].mxu0  ;;  %v915_v51 = vpop.f32.mrb[9].mxu1 }
 0x107   :  { %v702_v52 = vpop.f32.mrb[10].mxu0  ;;  %v722_v53 = vpop.f32.mrb[10].mxu1 }
 0x108   :  { %v451_v54 = vmax.f32 %v693_v30, %v702_v52  ;;  %v462_v55 = vmax.f32 %v713_v31, %v722_v53  ;;  %v341_v56 = vpop.f32.mrb[11].mxu0  ;;  %v421_v57 = vpop.f32.mrb[11].mxu1 }
 0x109   :  { %v449_v58 = vmax.f32 %v897_v32, %v341_v56  ;;  %v460_v59 = vmax.f32 %v386_v33, %v421_v57 }
 0x10b   :  { %v469_v61 = vmax.f32 %v451_v54, %v460_v59 }
 0x10d   :  { %v485_v62 = vadd.f32 %v921_v60, %v469_v61  ;;  %v705_v63 = vpop.f32.mrb[12].mxu0  ;;  %v725_v0 = vpop.f32.mrb[12].mxu1 }
 0x10e   :  { %v454_v2 = vmax.f32 %v325_v44, %v705_v63  ;;  %v465_v3 = vmax.f32 %v907_v45, %v725_v0  ;;  %v354_v4 = vpop.f32.mrb[13].mxu0  ;;  %v434_v5 = vpop.f32.mrb[13].mxu1 }
 0x10f   :  { %v494_v6 = vmax.f32 %v485_v62, 0.0  ;;  %v452_v7 = vmax.f32 %v694_v34, %v354_v4  ;;  %v463_v8 = vmax.f32 %v714_v35, %v434_v5  ;;  %v706_v9 = vpop.f32.mrb[14].mxu0  ;;  %v726_v10 = vpop.f32.mrb[14].mxu1 }
 0x110   :  { %v455_v12 = vmax.f32 %v697_v38, %v706_v9  ;;  %v466_v13 = vmax.f32 %v901_v39, %v726_v10  ;;  %v357_v14 = vpop.f32.mrb[15].mxu0  ;;  %v437_v15 = vpop.f32.mrb[15].mxu1 }
 0x111   :  { %v510_v16 = vmul.f32 %v927_v1, %v494_v6  ;;  %v470_v17 = vmax.f32 %v452_v7, %v461_v49  ;;  %v472_v18 = vmax.f32 %v454_v2, %v463_v8  ;;  %v453_v19 = vmax.f32 %v322_v40, %v357_v14 }
 0x112   :  { %v464_v20 = vmax.f32 %v402_v41, %v437_v15 }
 0x113   :  { %v526_v21 = vadd.f32 %v933_v11, %v510_v16  ;;  %v486_v22 = vadd.f32 %v921_v60, %v470_v17  ;;  %v488_v23 = vadd.f32 %v921_v60, %v472_v18  ;;  %v471_v24 = vmax.f32 %v453_v19, %v462_v55 }
 0x114   :  { %v473_v25 = vmax.f32 %v455_v12, %v464_v20 }
 0x115   :  { %v642_v26 = vpack.c.bf16 %v526_v21, %v526_v21  ;;  %v495_v27 = vmax.f32 %v486_v22, 0.0  ;;  %v497_v28 = vmax.f32 %v488_v23, 0.0  ;;  %v487_v29 = vadd.f32 %v921_v60, %v471_v24  ;;  %v709_v30 = vpop.f32.mrb[16].mxu0 }
 0x116   :  { %v489_v31 = vadd.f32 %v921_v60, %v473_v25  ;;  %v458_v32 = vmax.f32 %v709_v30, %v905_v43  ;;  %v370_v33 = vpop.f32.mrb[17].mxu0 }
 0x117   :  { %573 = vst.msk [vmem:[%s1010_s5 + $0x8] sm:$0xf] %vm570_vm3, %v642_v26  ;;  %v511_v34 = vmul.f32 %v927_v1, %v495_v27  ;;  %v513_v35 = vmul.f32 %v927_v1, %v497_v28  ;;  %v496_v37 = vmax.f32 %v487_v29, 0.0  ;;  %v456_v38 = vmax.f32 %v903_v42, %v370_v33  ;;  %v710_v39 = vpop.f32.mrb[18].mxu0 }
 0x118   :  { %v498_v40 = vmax.f32 %v489_v31, 0.0  ;;  %v467_v41 = vmax.f32 %v449_v58, %v458_v32  ;;  %v459_v44 = vmax.f32 %v710_v39, %v915_v51  ;;  %v373_v45 = vpop.f32.mrb[19].mxu0 }
 0x119   :  { %v527_v43 = vadd.f32 %v933_v11, %v511_v34  ;;  %v529_v47 = vadd.f32 %v933_v11, %v513_v35  ;;  %v512_v49 = vmul.f32 %v927_v1, %v496_v37  ;;  %v474_v52 = vmax.f32 %v456_v38, %v465_v3 }
 0x11a   :  { %v514_v53 = vmul.f32 %v927_v1, %v498_v40  ;;  %v483_v54 = vadd.f32 %v921_v60, %v467_v41  ;;  %v468_v42 = vmax.f32 %v450_v48, %v459_v44  ;;  %v457_v55 = vmax.f32 %v913_v50, %v373_v45 }
 0x11b   :  { %v643_v56 = vpack.c.bf16 %v527_v43, %v527_v43  ;;  %v645_v51 = vpack.c.bf16 %v529_v47, %v529_v47  ;;  %v528_v57 = vadd.f32 %v933_v11, %v512_v49  ;;  %v490_v58 = vadd.f32 %v921_v60, %v474_v52 }
 0x11c   :  { %v530_v59 = vadd.f32 %v933_v11, %v514_v53  ;;  %v492_v61 = vmax.f32 %v483_v54, 0.0  ;;  %v484_v62 = vadd.f32 %v921_v60, %v468_v42  ;;  %v475_v63 = vmax.f32 %v457_v55, %v466_v13 }
 0x11d   :  { %574 = vst.msk [vmem:[%s1010_s5 + $0xc] sm:$0xf] %vm570_vm3, %v643_v56  ;;  %576 = vst.msk [vmem:[%s1010_s5 + $0x14] sm:$0xf] %vm570_vm3, %v645_v51  ;;  %v644_v36 = vpack.c.bf16 %v528_v57, %v528_v57  ;;  %v499_v46 = vmax.f32 %v490_v58, 0.0 }
 0x11e   :  { %v646_v48 = vpack.c.bf16 %v530_v59, %v530_v59  ;;  %v508_v50 = vmul.f32 %v927_v1, %v492_v61  ;;  %v493_v0 = vmax.f32 %v484_v62, 0.0  ;;  %v491_v2 = vadd.f32 %v921_v60, %v475_v63 }
 0x11f   :  { %575 = vst.msk [vmem:[%s1010_s5 + $0x10] sm:$0xf] %vm570_vm3, %v644_v36  ;;  %v515_v3 = vmul.f32 %v927_v1, %v499_v46 }
 0x120   :  { %577 = vst.msk [vmem:[%s1010_s5 + $0x18] sm:$0xf] %vm570_vm3, %v646_v48  ;;  %v524_v4 = vadd.f32 %v933_v11, %v508_v50  ;;  %v509_v5 = vmul.f32 %v927_v1, %v493_v0  ;;  %v500_v6 = vmax.f32 %v491_v2, 0.0 }
 0x121   :  { %v531_v7 = vadd.f32 %v933_v11, %v515_v3 }
 0x122   :  { %v640_v60 = vpack.c.bf16 %v524_v4, %v524_v4  ;;  %v525_v8 = vadd.f32 %v933_v11, %v509_v5  ;;  %v516_v9 = vmul.f32 %v927_v1, %v500_v6 }
 0x123   :  { %v647_v10 = vpack.c.bf16 %v531_v7, %v531_v7 }
 0x124   :  { %571 = vst.msk [vmem:[%s1010_s5] sm:$0xf] %vm570_vm3, %v640_v60  ;;  %v641_v12 = vpack.c.bf16 %v525_v8, %v525_v8  ;;  %v532_v13 = vadd.f32 %v933_v11, %v516_v9 }
 0x125   :  { %578 = vst.msk [vmem:[%s1010_s5 + $0x1c] sm:$0xf] %vm570_vm3, %v647_v10 }
 0x126   :  { %572 = vst.msk [vmem:[%s1010_s5 + $0x4] sm:$0xf] %vm570_vm3, %v641_v12  ;;  %v648_v1 = vpack.c.bf16 %v532_v13, %v532_v13 }
 0x128   :  { %579 = vst.msk [vmem:[%s1010_s5 + $0x20] sm:$0xf] %vm570_vm3, %v648_v1 }

// kernel: forward.4
= control target key start
LH: loop header
LB: loop body
LE: loop exit
PB: predicated region body
PF: predicated region fallthrough
CT: control target
= control target key end

     0   :  { %vm3079_vm0 = vcmask 261120   ;;  %vm4449_vm1 = vcmask 519168   ;;  %s7825_s1 = inlined_call_operand.vmem [shape: bf16[3872,64], index: 1, kind: input, shape index: {}]   ;;  %s7826_s0 = inlined_call_operand.vmem [shape: bf16[96,3872], index: 0, kind: input, shape index: {}]   ;;  %s7827_s2 = inlined_call_operand.vmem [shape: f32[1,64], index: 2, kind: input, shape index: {}]   ;;  %s7828_s3 = inlined_call_operand.vmem [shape: f32[1,64], index: 3, kind: input, shape index: {}]   ;;  %s7829_s4 = inlined_call_operand.vmem [shape: f32[1,64], index: 4, kind: input, shape index: {}]   ;;  %s7830_s5 = inlined_call_operand.vmem [shape: bf16[24,64], index: 5, kind: output, shape index: {}]  }
   0x1   :  { %v5720_v0 = vld [vmem:[%s7825_s1 + $0x40] sm:$0xff]   ;;  %v5724_v4 = vld [vmem:[%s7825_s1 + $0x48] sm:$0xff]   ;;  %v5728_v8 = vld [vmem:[%s7825_s1 + $0x50] sm:$0xff]  }
   0x2   :  { %v5721_v1 = vld [vmem:[%s7825_s1 + $0xc0] sm:$0xff]   ;;  %4900 = vmatprep.subr.bf16.mxu0 %v5720_v0  ;;  %v5725_v5 = vld [vmem:[%s7825_s1 + $0xc8] sm:$0xff]   ;;  %v5729_v9 = vld [vmem:[%s7825_s1 + $0xd0] sm:$0xff]  }
   0x3   :  { %v5722_v2 = vld [vmem:[%s7825_s1] sm:$0xff]   ;;  %4952 = vmatprep.subr.bf16.mxu1 %v5721_v1  ;;  %v5726_v6 = vld [vmem:[%s7825_s1 + $0x8] sm:$0xff]   ;;  %v5730_v10 = vld [vmem:[%s7825_s1 + $0x10] sm:$0xff]  }
   0x4   :  { %v5723_v3 = vld [vmem:[%s7825_s1 + $0x80] sm:$0xff]   ;;  %4901 = vmatpush3.bf16.msra.mxu0 %v5722_v2  ;;  %v5727_v7 = vld [vmem:[%s7825_s1 + $0x88] sm:$0xff]   ;;  %v5731_v11 = vld [vmem:[%s7825_s1 + $0x90] sm:$0xff]  }
   0x5   :  { %4953 = vmatpush3.bf16.msra.mxu1 %v5723_v3  ;;  %4902 = vmatprep.subr.bf16.mxu0 %v5724_v4  ;;  %v5732_v12 = vld [vmem:[%s7825_s1 + $0x58] sm:$0xff]   ;;  %v5736_v16 = vld [vmem:[%s7825_s1 + $0x60] sm:$0xff]   ;;  %v5740_v20 = vld [vmem:[%s7825_s1 + $0x68] sm:$0xff]  }
   0x6   :  { %4954 = vmatprep.subr.bf16.mxu1 %v5725_v5  ;;  %v5733_v13 = vld [vmem:[%s7825_s1 + $0xd8] sm:$0xff]   ;;  %v5737_v17 = vld [vmem:[%s7825_s1 + $0xe0] sm:$0xff]   ;;  %v5741_v21 = vld [vmem:[%s7825_s1 + $0xe8] sm:$0xff]  }
   0x7   :  { %v5734_v14 = vld [vmem:[%s7825_s1 + $0x18] sm:$0xff]   ;;  %v5738_v18 = vld [vmem:[%s7825_s1 + $0x20] sm:$0xff]   ;;  %v5742_v22 = vld [vmem:[%s7825_s1 + $0x28] sm:$0xff]  }
   0x8   :  { %4903 = vmatpush3.bf16.msra.mxu0 %v5726_v6  ;;  %v5735_v15 = vld [vmem:[%s7825_s1 + $0x98] sm:$0xff]   ;;  %v5739_v19 = vld [vmem:[%s7825_s1 + $0xa0] sm:$0xff]   ;;  %v5743_v23 = vld [vmem:[%s7825_s1 + $0xa8] sm:$0xff]  }
   0x9   :  { %4955 = vmatpush3.bf16.msra.mxu1 %v5727_v7  ;;  %4904 = vmatprep.subr.bf16.mxu0 %v5728_v8  ;;  %v5744_v24 = vld [vmem:[%s7825_s1 + $0x70] sm:$0xff]   ;;  %v5748_v28 = vld [vmem:[%s7825_s1 + $0x78] sm:$0xff]   ;;  %v5754_v33 = vld [vmem:[%s7826_s0 + $0x4] ss:$124 sps:$4 sm:$0xff]  }
   0xa   :  { %4956 = vmatprep.subr.bf16.mxu1 %v5729_v9  ;;  %v5745_v25 = vld [vmem:[%s7825_s1 + $0xf0] sm:$0xff]   ;;  %v5749_v29 = vld [vmem:[%s7825_s1 + $0xf8] sm:$0xff]   ;;  %v5755_v34 = vld [vmem:[%s7826_s0 + $0x8] ss:$124 sps:$4 sm:$0xff]   ;;  %3130 = vmatprep.mubr.bf16.mxu0 %v5754_v33 }
   0xb   :  { %v5746_v26 = vld [vmem:[%s7825_s1 + $0x30] sm:$0xff]   ;;  %v5750_v30 = vld [vmem:[%s7825_s1 + $0x38] sm:$0xff]   ;;  %v5757_v35 = vld [vmem:[%s7826_s0 + $0xc] ss:$124 sps:$4 sm:$0xff]  }
   0xc   :  { %4905 = vmatpush3.bf16.msra.mxu0 %v5730_v10  ;;  %v5747_v27 = vld [vmem:[%s7825_s1 + $0xb0] sm:$0xff]   ;;  %v5751_v31 = vld [vmem:[%s7825_s1 + $0xb8] sm:$0xff]   ;;  %v5758_v36 = vld [vmem:[%s7825_s1 + $0x140] sm:$0xff]   ;;  %3211 = vmatprep.mubr.bf16.mxu1 %v5757_v35 }
   0xd   :  { %4957 = vmatpush3.bf16.msra.mxu1 %v5731_v11  ;;  %4906 = vmatprep.subr.bf16.mxu0 %v5732_v12  ;;  %v5752_v32 = vld [vmem:[%s7826_s0] ss:$124 sps:$4 sm:$0xff]   ;;  %v5760_v38 = vld [vmem:[%s7825_s1 + $0x148] sm:$0xff]   ;;  %v5766_v42 = vld [vmem:[%s7826_s0 + $0xf8] ss:$124 sps:$4 sm:$0xff]  }
   0xe   :  { %4958 = vmatprep.subr.bf16.mxu1 %v5733_v13  ;;  %v5759_v37 = vld [vmem:[%s7825_s1 + $0x100] sm:$0xff]   ;;  %v5761_v39 = vld [vmem:[%s7826_s0 + $0xfc] ss:$124 sps:$4 sm:$0xff]   ;;  %v5765_v41 = vld [vmem:[%s7825_s1 + $0x108] sm:$0xff]  }
   0xf   :  { %v5763_v40 = vld [vmem:[%s7826_s0 + $0x104] ss:$124 sps:$4 sm:$0xff]   ;;  %v5768_v44 = vld [vmem:[%s7825_s1 + $0x150] sm:$0xff]   ;;  %v5774_v49 = vld [vmem:[%s7826_s0 + $0x1fc] ss:$124 sps:$4 sm:$0xff]  }
  0x10   :  { %4907 = vmatpush3.bf16.msra.mxu0 %v5734_v14  ;;  %v5767_v43 = vld [vmem:[%s7826_s0 + $0x100] ss:$124 sps:$4 sm:$0xff]   ;;  %v5770_v46 = vld [vmem:[%s7825_s1 + $0x110] sm:$0xff]   ;;  %v5779_v53 = vld [vmem:[%s7825_s1 + $0x1c8] sm:$0xff]  }
  0x11   :  { %4959 = vmatpush3.bf16.msra.mxu1 %v5735_v15  ;;  %4908 = vmatprep.subr.bf16.mxu0 %v5736_v16  ;;  %v5769_v45 = vld [vmem:[%s7825_s1 + $0x1c0] sm:$0xff]   ;;  %v5772_v48 = vld [vmem:[%s7826_s0 + $0x1f4] ss:$124 sps:$4 sm:$0xff]   ;;  %v5778_v52 = vld [vmem:[%s7825_s1 + $0x158] sm:$0xff]  }
  0x12   :  { %4960 = vmatprep.subr.bf16.mxu1 %v5737_v17  ;;  %v5771_v47 = vld [vmem:[%s7825_s1 + $0x180] sm:$0xff]   ;;  %v5776_v50 = vld [vmem:[%s7826_s0 + $0x1f0] ss:$124 sps:$4 sm:$0xff]   ;;  %v5777_v51 = vld [vmem:[%s7826_s0 + $0x1f8] ss:$124 sps:$4 sm:$0xff]  }
  0x13   :  { %v5780_v54 = vld [vmem:[%s7825_s1 + $0x118] sm:$0xff]   ;;  %v5781_v55 = vld [vmem:[%s7825_s1 + $0x188] sm:$0xff]   ;;  %v5784_v57 = vld [vmem:[%s7826_s0 + $0x2f4] ss:$124 sps:$4 sm:$0xff]  }
  0x14   :  { %4909 = vmatpush3.bf16.msra.mxu0 %v5738_v18  ;;  %v5782_v56 = vld [vmem:[%s7826_s0 + $0x2ec] ss:$124 sps:$4 sm:$0xff]   ;;  %v5788_v60 = vld [vmem:[%s7825_s1 + $0x160] sm:$0xff]   ;;  %v5789_v61 = vld [vmem:[%s7825_s1 + $0x1d0] sm:$0xff]  }
  0x15   :  { %4961 = vmatpush3.bf16.msra.mxu1 %v5739_v19  ;;  %4910 = vmatprep.subr.bf16.mxu0 %v5740_v20  ;;  %v5786_v58 = vld [vmem:[%s7826_s0 + $0x2e8] ss:$124 sps:$4 sm:$0xff]   ;;  %v5787_v59 = vld [vmem:[%s7826_s0 + $0x2f0] ss:$124 sps:$4 sm:$0xff]   ;;  %v5792_v0 = vld [vmem:[%s7825_s1 + $0x1d8] sm:$0xff]  }
  0x16   :  { %4962 = vmatprep.subr.bf16.mxu1 %v5741_v21  ;;  %v5790_v62 = vld [vmem:[%s7825_s1 + $0x120] sm:$0xff]   ;;  %v5791_v63 = vld [vmem:[%s7825_s1 + $0x190] sm:$0xff]   ;;  %v5793_v1 = vld [vmem:[%s7825_s1 + $0x198] sm:$0xff]  }
  0x17   :  { %v5794_v2 = vld [vmem:[%s7825_s1 + $0x168] sm:$0xff]   ;;  %v5795_v3 = vld [vmem:[%s7826_s0 + $0x3e4] ss:$124 sps:$4 sm:$0xff]   ;;  %v5804_v10 = vld [vmem:[%s7825_s1 + $0x170] sm:$0xff]  }
  0x18   :  { %4911 = vmatpush3.bf16.msra.mxu0 %v5742_v22  ;;  %v5797_v4 = vld [vmem:[%s7826_s0 + $0x3ec] ss:$124 sps:$4 sm:$0xff]   ;;  %v5800_v6 = vld [vmem:[%s7826_s0 + $0x3e0] ss:$124 sps:$4 sm:$0xff]   ;;  %v5806_v12 = vld [vmem:[%s7825_s1 + $0x130] sm:$0xff]  }
  0x19   :  { %4963 = vmatpush3.bf16.msra.mxu1 %v5743_v23  ;;  %4912 = vmatprep.subr.bf16.mxu0 %v5744_v24  ;;  %v5799_v5 = vld [vmem:[%s7825_s1 + $0x128] sm:$0xff]   ;;  %v5802_v8 = vld [vmem:[%s7825_s1 + $0x1e0] sm:$0xff]   ;;  %v5808_v14 = vld [vmem:[%s7826_s0 + $0x4dc] ss:$124 sps:$4 sm:$0xff]  }
  0x1a   :  { %4964 = vmatprep.subr.bf16.mxu1 %v5745_v25  ;;  %v5801_v7 = vld [vmem:[%s7826_s0 + $0x3e8] ss:$124 sps:$4 sm:$0xff]   ;;  %v5812_v16 = vld [vmem:[%s7826_s0 + $0x4d8] ss:$124 sps:$4 sm:$0xff]   ;;  %v5813_v17 = vld [vmem:[%s7826_s0 + $0x4e0] ss:$124 sps:$4 sm:$0xff]  }
  0x1b   :  { %v5803_v9 = vld [vmem:[%s7825_s1 + $0x1a0] sm:$0xff]   ;;  %v5805_v11 = vld [vmem:[%s7825_s1 + $0x1e8] sm:$0xff]   ;;  %v5814_v18 = vld [vmem:[%s7825_s1 + $0x1f0] sm:$0xff]  }
  0x1c   :  { %4913 = vmatpush3.bf16.msra.mxu0 %v5746_v26  ;;  %v5807_v13 = vld [vmem:[%s7825_s1 + $0x1a8] sm:$0xff]   ;;  %v5810_v15 = vld [vmem:[%s7826_s0 + $0x4e4] ss:$124 sps:$4 sm:$0xff]   ;;  %v5815_v19 = vld [vmem:[%s7825_s1 + $0x1b0] sm:$0xff]  }
  0x1d   :  { %4965 = vmatpush3.bf16.msra.mxu1 %v5747_v27  ;;  %4914 = vmatprep.subr.bf16.mxu0 %v5748_v28  ;;  %v5816_v20 = vld [vmem:[%s7825_s1 + $0x178] sm:$0xff]   ;;  %v5820_v24 = vld [vmem:[%s7826_s0 + $0x10] ss:$124 sps:$4 sm:$0xff]   ;;  %v5826_v28 = vld [vmem:[%s7825_s1 + $0x240] sm:$0xff]  }
  0x1e   :  { %4966 = vmatprep.subr.bf16.mxu1 %v5749_v29  ;;  %v5817_v21 = vld [vmem:[%s7825_s1 + $0x138] sm:$0xff]   ;;  %v5822_v25 = vld [vmem:[%s7826_s0 + $0x14] ss:$124 sps:$4 sm:$0xff]   ;;  %v5827_v29 = vld [vmem:[%s7825_s1 + $0x200] sm:$0xff]  }
  0x1f   :  { %v5818_v22 = vld [vmem:[%s7825_s1 + $0x1f8] sm:$0xff]   ;;  %v5833_v33 = vld [vmem:[%s7825_s1 + $0x208] sm:$0xff]  }
  0x20   :  { %4915 = vmatpush3.bf16.msra.mxu0 %v5750_v30  ;;  %v5819_v23 = vld [vmem:[%s7825_s1 + $0x1b8] sm:$0xff]   ;;  %v5828_v30 = vld [vmem:[%s7825_s1 + $0x248] sm:$0xff]  }
  0x21   :  { %4967 = vmatpush3.bf16.msra.mxu1 %v5751_v31  ;;  %5004 = vmatprep.subr.bf16.mxu0 %v5758_v36  ;;  %v5823_v26 = vld [vmem:[%s7826_s0 + $0x18] ss:$124 sps:$4 sm:$0xff]   ;;  %v5829_v31 = vld [vmem:[%s7826_s0 + $0x10c] ss:$124 sps:$4 sm:$0xff]  }
  0x22   :  { %5056 = vmatprep.subr.bf16.mxu1 %v5769_v45  ;;  %v5825_v27 = vld [vmem:[%s7826_s0 + $0x1c] ss:$124 sps:$4 sm:$0xff]   ;;  %v5835_v35 = vld [vmem:[%s7826_s0 + $0x110] ss:$124 sps:$4 sm:$0xff]  }
  0x23   :  { %3131 = vmatmul.mubr.bf16.vlgmr.msra.gmra.mrb[0].mxu0 %v5752_v32  ;;  %v5831_v32 = vld [vmem:[%s7826_s0 + $0x114] ss:$124 sps:$4 sm:$0xff]   ;;  %v5847_v45 = vld [vmem:[%s7825_s1 + $0x2c8] sm:$0xff]  }
  0x24   :  { %3212 = vmatmul.mubr.bf16.vlgmr.msra.gmra.mrb[0].mxu1 %v5755_v34  ;;  %5005 = vmatpush3.bf16.msra.mxu0 %v5759_v37  ;;  %v5834_v34 = vld [vmem:[%s7826_s0 + $0x108] ss:$124 sps:$4 sm:$0xff]   ;;  %v5836_v36 = vld [vmem:[%s7825_s1 + $0x250] sm:$0xff]  }
  0x25   :  { %5006 = vmatprep.subr.bf16.mxu0 %v5760_v38  ;;  %3138 = vmatprep.mubr.bf16.mxu0 %v5761_v39  ;;  %v5837_v37 = vld [vmem:[%s7825_s1 + $0x2c0] sm:$0xff]   ;;  %v5838_v38 = vld [vmem:[%s7825_s1 + $0x210] sm:$0xff]  }
  0x26   :  { %3219 = vmatprep.mubr.bf16.mxu1 %v5763_v40  ;;  %5057 = vmatpush3.bf16.msra.mxu1 %v5771_v47  ;;  %v5839_v39 = vld [vmem:[%s7825_s1 + $0x280] sm:$0xff]   ;;  %v5849_v47 = vld [vmem:[%s7825_s1 + $0x288] sm:$0xff]  }
  0x27   :  { %5058 = vmatprep.subr.bf16.mxu1 %v5779_v53  ;;  %v5840_v40 = vld [vmem:[%s7826_s0 + $0x204] ss:$124 sps:$4 sm:$0xff]   ;;  %v5857_v53 = vld [vmem:[%s7825_s1 + $0x2d0] sm:$0xff]  }
  0x28   :  { %5007 = vmatpush3.bf16.msra.mxu0 %v5765_v41  ;;  %v5842_v41 = vld [vmem:[%s7826_s0 + $0x20c] ss:$124 sps:$4 sm:$0xff]  }
  0x29   :  { %5008 = vmatprep.subr.bf16.mxu0 %v5768_v44  ;;  %v5846_v44 = vld [vmem:[%s7825_s1 + $0x258] sm:$0xff]  }
  0x2a   :  { %5059 = vmatpush3.bf16.msra.mxu1 %v5781_v55  ;;  %v5859_v55 = vld [vmem:[%s7825_s1 + $0x290] sm:$0xff]  }
  0x2b   :  { %3139 = vmatmul.mubr.bf16.gmra.mrb[4].mxu0 %v5766_v42  ;;  %5060 = vmatprep.subr.bf16.mxu1 %v5789_v61  ;;  %v5844_v42 = vld [vmem:[%s7826_s0 + $0x200] ss:$124 sps:$4 sm:$0xff]   ;;  %v5867_v61 = vld [vmem:[%s7825_s1 + $0x228] sm:$0xff]  }
  0x2c   :  { %3220 = vmatmul.mubr.bf16.gmra.mrb[4].mxu1 %v5767_v43  ;;  %5009 = vmatpush3.bf16.msra.mxu0 %v5770_v46  ;;  %v5845_v43 = vld [vmem:[%s7826_s0 + $0x208] ss:$124 sps:$4 sm:$0xff]   ;;  %v5848_v46 = vld [vmem:[%s7825_s1 + $0x218] sm:$0xff]  }
  0x2d   :  { %3146 = vmatprep.mubr.bf16.mxu0 %v5772_v48  ;;  %3227 = vmatprep.mubr.bf16.mxu1 %v5774_v49  ;;  %v5850_v48 = vld [vmem:[%s7826_s0 + $0x2fc] ss:$124 sps:$4 sm:$0xff]   ;;  %v5852_v49 = vld [vmem:[%s7826_s0 + $0x304] ss:$124 sps:$4 sm:$0xff]  }
  0x2e   :  { %5010 = vmatprep.subr.bf16.mxu0 %v5778_v52  ;;  %5061 = vmatpush3.bf16.msra.mxu1 %v5791_v63  ;;  %v5856_v52 = vld [vmem:[%s7825_s1 + $0x260] sm:$0xff]   ;;  %v5869_v63 = vld [vmem:[%s7826_s0 + $0x3f8] ss:$124 sps:$4 sm:$0xff]  }
  0x2f   :  { %5062 = vmatprep.subr.bf16.mxu1 %v5792_v0  ;;  %v5870_v0 = vld [vmem:[%s7825_s1 + $0x2e0] sm:$0xff]  }
  0x30   :  { %5011 = vmatpush3.bf16.msra.mxu0 %v5780_v54  ;;  %v5858_v54 = vld [vmem:[%s7825_s1 + $0x220] sm:$0xff]  }
  0x31   :  { %5012 = vmatprep.subr.bf16.mxu0 %v5788_v60  ;;  %v5865_v60 = vld [vmem:[%s7826_s0 + $0x3fc] ss:$124 sps:$4 sm:$0xff]  }
  0x32   :  { %5063 = vmatpush3.bf16.msra.mxu1 %v5793_v1  ;;  %v5871_v1 = vld [vmem:[%s7825_s1 + $0x2a0] sm:$0xff]  }
  0x33   :  { %3147 = vmatmul.mubr.bf16.gmra.mrb[8].mxu0 %v5776_v50  ;;  %5064 = vmatprep.subr.bf16.mxu1 %v5802_v8  ;;  %v5854_v50 = vld [vmem:[%s7826_s0 + $0x2f8] ss:$124 sps:$4 sm:$0xff]   ;;  %v5880_v8 = vld [vmem:[%s7826_s0 + $0x4e8] ss:$124 sps:$4 sm:$0xff]  }
  0x34   :  { %3228 = vmatmul.mubr.bf16.gmra.mrb[8].mxu1 %v5777_v51  ;;  %3154 = vmatprep.mubr.bf16.mxu0 %v5782_v56  ;;  %v5855_v51 = vld [vmem:[%s7826_s0 + $0x300] ss:$124 sps:$4 sm:$0xff]  }
  0x35   :  { %3235 = vmatprep.mubr.bf16.mxu1 %v5784_v57  ;;  %5013 = vmatpush3.bf16.msra.mxu0 %v5790_v62  ;;  %v5860_v56 = vld [vmem:[%s7825_s1 + $0x2d8] sm:$0xff]   ;;  %v5868_v62 = vld [vmem:[%s7826_s0 + $0x3f0] ss:$124 sps:$4 sm:$0xff]  }
  0x36   :  { %5014 = vmatprep.subr.bf16.mxu0 %v5794_v2  ;;  %5065 = vmatpush3.bf16.msra.mxu1 %v5803_v9  ;;  %v5861_v57 = vld [vmem:[%s7825_s1 + $0x298] sm:$0xff]   ;;  %v5872_v2 = vld [vmem:[%s7825_s1 + $0x270] sm:$0xff]  }
  0x37   :  { %5066 = vmatprep.subr.bf16.mxu1 %v5805_v11  ;;  %v5881_v9 = vld [vmem:[%s7826_s0 + $0x4f0] ss:$124 sps:$4 sm:$0xff]  }
  0x38   :  { %v5883_v11 = vld [vmem:[%s7825_s1 + $0x2b0] sm:$0xff]  }
  0x39   :  { %5015 = vmatpush3.bf16.msra.mxu0 %v5799_v5  ;;  %v5875_v5 = vld [vmem:[%s7825_s1 + $0x2a8] sm:$0xff]  }
  0x3a   :  { %5016 = vmatprep.subr.bf16.mxu0 %v5804_v10  ;;  %5067 = vmatpush3.bf16.msra.mxu1 %v5807_v13  ;;  %v5882_v10 = vld [vmem:[%s7825_s1 + $0x2f0] sm:$0xff]   ;;  %v5885_v13 = vld [vmem:[%s7825_s1 + $0x238] sm:$0xff]  }
  0x3b   :  { %3155 = vmatmul.mubr.bf16.gmra.mrb[12].mxu0 %v5786_v58  ;;  %5068 = vmatprep.subr.bf16.mxu1 %v5814_v18  ;;  %v5862_v58 = vld [vmem:[%s7825_s1 + $0x268] sm:$0xff]  }
  0x3c   :  { %3236 = vmatmul.mubr.bf16.gmra.mrb[12].mxu1 %v5787_v59  ;;  %3162 = vmatprep.mubr.bf16.mxu0 %v5795_v3  ;;  %v5863_v59 = vld [vmem:[%s7826_s0 + $0x3f4] ss:$124 sps:$4 sm:$0xff]   ;;  %v5873_v3 = vld [vmem:[%s7825_s1 + $0x2e8] sm:$0xff]  }
  0x3d   :  { %3243 = vmatprep.mubr.bf16.mxu1 %v5797_v4  ;;  %5017 = vmatpush3.bf16.msra.mxu0 %v5806_v12  ;;  %v5874_v4 = vld [vmem:[%s7825_s1 + $0x230] sm:$0xff]   ;;  %v5884_v12 = vld [vmem:[%s7825_s1 + $0x278] sm:$0xff]   ;;  %v5891_v18 = vld [vmem:[%s7826_s0 + $0x28] ss:$124 sps:$4 sm:$0xff]  }
  0x3e   :  { %5069 = vmatpush3.bf16.msra.mxu1 %v5815_v19  ;;  %5018 = vmatprep.subr.bf16.mxu0 %v5816_v20  ;;  %v5893_v19 = vld [vmem:[%s7826_s0 + $0x2c] ss:$124 sps:$4 sm:$0xff]   ;;  %v5894_v20 = vld [vmem:[%s7825_s1 + $0x340] sm:$0xff]  }
  0x3f   :  { %5070 = vmatprep.subr.bf16.mxu1 %v5818_v22  ;;  %v5896_v22 = vld [vmem:[%s7825_s1 + $0x348] sm:$0xff]  }
  0x41   :  { %5019 = vmatpush3.bf16.msra.mxu0 %v5817_v21  ;;  %v5895_v21 = vld [vmem:[%s7825_s1 + $0x300] sm:$0xff]  }
  0x42   :  { %5071 = vmatpush3.bf16.msra.mxu1 %v5819_v23  ;;  %5108 = vmatprep.subr.bf16.mxu0 %v5826_v28  ;;  %v5897_v23 = vld [vmem:[%s7826_s0 + $0x11c] ss:$124 sps:$4 sm:$0xff]   ;;  %v5904_v28 = vld [vmem:[%s7825_s1 + $0x350] sm:$0xff]  }
  0x43   :  { %3163 = vmatmul.mubr.bf16.gmra.mrb[16].mxu0 %v5800_v6  ;;  %5160 = vmatprep.subr.bf16.mxu1 %v5837_v37  ;;  %v5876_v6 = vld [vmem:[%s7826_s0 + $0x4ec] ss:$124 sps:$4 sm:$0xff]  }
  0x44   :  { %3244 = vmatmul.mubr.bf16.gmra.mrb[16].mxu1 %v5801_v7  ;;  %3170 = vmatprep.mubr.bf16.mxu0 %v5808_v14  ;;  %v5878_v7 = vld [vmem:[%s7826_s0 + $0x4f4] ss:$124 sps:$4 sm:$0xff]   ;;  %v5886_v14 = vld [vmem:[%s7825_s1 + $0x2f8] sm:$0xff]   ;;  %v5915_v37 = vld [vmem:[%s7825_s1 + $0x3c8] sm:$0xff]  }
  0x45   :  { %3251 = vmatprep.mubr.bf16.mxu1 %v5810_v15  ;;  %v5887_v15 = vld [vmem:[%s7825_s1 + $0x2b8] sm:$0xff]  }
  0x4b   :  { %3171 = vmatmul.mubr.bf16.gmra.mrb[20].mxu0 %v5812_v16  ;;  %v5888_v16 = vld [vmem:[%s7826_s0 + $0x20] ss:$124 sps:$4 sm:$0xff]  }
  0x4c   :  { %3252 = vmatmul.mubr.bf16.gmra.mrb[20].mxu1 %v5813_v17  ;;  %3292 = vmatprep.mubr.bf16.mxu0 %v5822_v25  ;;  %v5890_v17 = vld [vmem:[%s7826_s0 + $0x24] ss:$124 sps:$4 sm:$0xff]   ;;  %v5901_v25 = vld [vmem:[%s7825_s1 + $0x308] sm:$0xff]  }
  0x4d   :  { %3373 = vmatprep.mubr.bf16.mxu1 %v5825_v27  ;;  %v5903_v27 = vld [vmem:[%s7826_s0 + $0x120] ss:$124 sps:$4 sm:$0xff]  }
  0x53   :  { %3293 = vmatmul.mubr.bf16.vlgmr.msra.gmra.mrb[24].mxu0 %v5820_v24  ;;  %v5899_v24 = vld [vmem:[%s7826_s0 + $0x124] ss:$124 sps:$4 sm:$0xff]  }
  0x54   :  { %3374 = vmatmul.mubr.bf16.vlgmr.msra.gmra.mrb[24].mxu1 %v5823_v26  ;;  %5109 = vmatpush3.bf16.msra.mxu0 %v5827_v29  ;;  %v5902_v26 = vld [vmem:[%s7826_s0 + $0x118] ss:$124 sps:$4 sm:$0xff]   ;;  %v5905_v29 = vld [vmem:[%s7825_s1 + $0x3c0] sm:$0xff]  }
  0x55   :  { %5110 = vmatprep.subr.bf16.mxu0 %v5828_v30  ;;  %3300 = vmatprep.mubr.bf16.mxu0 %v5829_v31  ;;  %v5906_v30 = vld [vmem:[%s7825_s1 + $0x310] sm:$0xff]   ;;  %v5907_v31 = vld [vmem:[%s7825_s1 + $0x380] sm:$0xff]  }
  0x56   :  { %3381 = vmatprep.mubr.bf16.mxu1 %v5831_v32  ;;  %5161 = vmatpush3.bf16.msra.mxu1 %v5839_v39  ;;  %v5908_v32 = vld [vmem:[%s7826_s0 + $0x214] ss:$124 sps:$4 sm:$0xff]   ;;  %v5917_v39 = vld [vmem:[%s7825_s1 + $0x388] sm:$0xff]  }
  0x57   :  { %5162 = vmatprep.subr.bf16.mxu1 %v5847_v45  ;;  %v5925_v45 = vld [vmem:[%s7825_s1 + $0x3d0] sm:$0xff]  }
  0x58   :  { %5111 = vmatpush3.bf16.msra.mxu0 %v5833_v33  ;;  %v5910_v33 = vld [vmem:[%s7826_s0 + $0x21c] ss:$124 sps:$4 sm:$0xff]  }
  0x59   :  { %5112 = vmatprep.subr.bf16.mxu0 %v5836_v36  ;;  %v5914_v36 = vld [vmem:[%s7825_s1 + $0x358] sm:$0xff]  }
  0x5a   :  { %5163 = vmatpush3.bf16.msra.mxu1 %v5849_v47  ;;  %v5927_v47 = vld [vmem:[%s7825_s1 + $0x390] sm:$0xff]  }
  0x5b   :  { %3301 = vmatmul.mubr.bf16.gmra.mrb[28].mxu0 %v5834_v34  ;;  %5164 = vmatprep.subr.bf16.mxu1 %v5857_v53  ;;  %v5912_v34 = vld [vmem:[%s7826_s0 + $0x210] ss:$124 sps:$4 sm:$0xff]  }
  0x5c   :  { %3382 = vmatmul.mubr.bf16.gmra.mrb[28].mxu1 %v5835_v35  ;;  %5113 = vmatpush3.bf16.msra.mxu0 %v5838_v38  ;;  %v5913_v35 = vld [vmem:[%s7826_s0 + $0x218] ss:$124 sps:$4 sm:$0xff]   ;;  %v5935_v53 = vld [vmem:[%s7825_s1 + $0x328] sm:$0xff]  }
  0x5d   :  { %3308 = vmatprep.mubr.bf16.mxu0 %v5840_v40  ;;  %3389 = vmatprep.mubr.bf16.mxu1 %v5842_v41  ;;  %v5916_v38 = vld [vmem:[%s7825_s1 + $0x318] sm:$0xff]   ;;  %v5918_v40 = vld [vmem:[%s7826_s0 + $0x30c] ss:$124 sps:$4 sm:$0xff]   ;;  %v5920_v41 = vld [vmem:[%s7826_s0 + $0x314] ss:$124 sps:$4 sm:$0xff]  }
  0x5e   :  { %5114 = vmatprep.subr.bf16.mxu0 %v5846_v44  ;;  %5165 = vmatpush3.bf16.msra.mxu1 %v5859_v55  ;;  %v5924_v44 = vld [vmem:[%s7825_s1 + $0x360] sm:$0xff]  }
  0x5f   :  { %5166 = vmatprep.subr.bf16.mxu1 %v5860_v56  ;;  %v5937_v55 = vld [vmem:[%s7826_s0 + $0x408] ss:$124 sps:$4 sm:$0xff]  }
  0x60   :  { %5115 = vmatpush3.bf16.msra.mxu0 %v5848_v46  ;;  %v5926_v46 = vld [vmem:[%s7825_s1 + $0x320] sm:$0xff]  }
  0x61   :  { %5116 = vmatprep.subr.bf16.mxu0 %v5856_v52  ;;  %v5933_v52 = vld [vmem:[%s7826_s0 + $0x40c] ss:$124 sps:$4 sm:$0xff]   ;;  %v5938_v56 = vld [vmem:[%s7825_s1 + $0x3e0] sm:$0xff]  }
  0x62   :  { %5167 = vmatpush3.bf16.msra.mxu1 %v5861_v57  ;;  %v5939_v57 = vld [vmem:[%s7825_s1 + $0x3a0] sm:$0xff]  }
  0x63   :  { %3309 = vmatmul.mubr.bf16.gmra.mrb[32].mxu0 %v5844_v42  ;;  %5168 = vmatprep.subr.bf16.mxu1 %v5870_v0  ;;  %v5922_v42 = vld [vmem:[%s7826_s0 + $0x308] ss:$124 sps:$4 sm:$0xff]   ;;  %v5948_v0 = vld [vmem:[%s7826_s0 + $0x4f8] ss:$124 sps:$4 sm:$0xff]  }
  0x64   :  { %3390 = vmatmul.mubr.bf16.gmra.mrb[32].mxu1 %v5845_v43  ;;  %3316 = vmatprep.mubr.bf16.mxu0 %v5850_v48  ;;  %v5923_v43 = vld [vmem:[%s7826_s0 + $0x310] ss:$124 sps:$4 sm:$0xff]   ;;  %v5928_v48 = vld [vmem:[%s7825_s1 + $0x3d8] sm:$0xff]  }
  0x65   :  { %3397 = vmatprep.mubr.bf16.mxu1 %v5852_v49  ;;  %5117 = vmatpush3.bf16.msra.mxu0 %v5858_v54  ;;  %v5929_v49 = vld [vmem:[%s7825_s1 + $0x398] sm:$0xff]  }
  0x66   :  { %5118 = vmatprep.subr.bf16.mxu0 %v5862_v58  ;;  %5169 = vmatpush3.bf16.msra.mxu1 %v5871_v1  ;;  %v5936_v54 = vld [vmem:[%s7826_s0 + $0x400] ss:$124 sps:$4 sm:$0xff]   ;;  %v5940_v58 = vld [vmem:[%s7825_s1 + $0x370] sm:$0xff]  }
  0x67   :  { %5170 = vmatprep.subr.bf16.mxu1 %v5873_v3  ;;  %v5949_v1 = vld [vmem:[%s7826_s0 + $0x500] ss:$124 sps:$4 sm:$0xff]   ;;  %v5951_v3 = vld [vmem:[%s7825_s1 + $0x3b0] sm:$0xff]  }
  0x69   :  { %5119 = vmatpush3.bf16.msra.mxu0 %v5867_v61  ;;  %v5943_v61 = vld [vmem:[%s7825_s1 + $0x3a8] sm:$0xff]  }
  0x6a   :  { %5120 = vmatprep.subr.bf16.mxu0 %v5872_v2  ;;  %5171 = vmatpush3.bf16.msra.mxu1 %v5875_v5  ;;  %v5950_v2 = vld [vmem:[%s7825_s1 + $0x3f0] sm:$0xff]   ;;  %v5953_v5 = vld [vmem:[%s7825_s1 + $0x338] sm:$0xff]  }
  0x6b   :  { %3317 = vmatmul.mubr.bf16.gmra.mrb[36].mxu0 %v5854_v50  ;;  %5172 = vmatprep.subr.bf16.mxu1 %v5882_v10  ;;  %v5930_v50 = vld [vmem:[%s7825_s1 + $0x368] sm:$0xff]   ;;  %v5959_v10 = vld [vmem:[%s7826_s0 + $0x38] ss:$124 sps:$4 sm:$0xff]  }
  0x6c   :  { %3398 = vmatmul.mubr.bf16.gmra.mrb[36].mxu1 %v5855_v51  ;;  %3324 = vmatprep.mubr.bf16.mxu0 %v5863_v59  ;;  %v5931_v51 = vld [vmem:[%s7826_s0 + $0x404] ss:$124 sps:$4 sm:$0xff]   ;;  %v5941_v59 = vld [vmem:[%s7825_s1 + $0x3e8] sm:$0xff]  }
  0x6d   :  { %3405 = vmatprep.mubr.bf16.mxu1 %v5865_v60  ;;  %5121 = vmatpush3.bf16.msra.mxu0 %v5874_v4  ;;  %v5942_v60 = vld [vmem:[%s7825_s1 + $0x330] sm:$0xff]   ;;  %v5952_v4 = vld [vmem:[%s7825_s1 + $0x378] sm:$0xff]  }
  0x6e   :  { %5173 = vmatpush3.bf16.msra.mxu1 %v5883_v11  ;;  %5122 = vmatprep.subr.bf16.mxu0 %v5884_v12  ;;  %v5961_v11 = vld [vmem:[%s7826_s0 + $0x3c] ss:$124 sps:$4 sm:$0xff]   ;;  %v5962_v12 = vld [vmem:[%s7825_s1 + $0x440] sm:$0xff]  }
  0x6f   :  { %5174 = vmatprep.subr.bf16.mxu1 %v5886_v14  ;;  %v5964_v14 = vld [vmem:[%s7825_s1 + $0x448] sm:$0xff]  }
  0x71   :  { %5123 = vmatpush3.bf16.msra.mxu0 %v5885_v13  ;;  %v5963_v13 = vld [vmem:[%s7825_s1 + $0x400] sm:$0xff]  }
  0x72   :  { %5175 = vmatpush3.bf16.msra.mxu1 %v5887_v15  ;;  %5212 = vmatprep.subr.bf16.mxu0 %v5894_v20  ;;  %v5965_v15 = vld [vmem:[%s7826_s0 + $0x12c] ss:$124 sps:$4 sm:$0xff]   ;;  %v5972_v20 = vld [vmem:[%s7825_s1 + $0x450] sm:$0xff]  }
  0x73   :  { %3325 = vmatmul.mubr.bf16.gmra.mrb[40].mxu0 %v5868_v62  ;;  %5264 = vmatprep.subr.bf16.mxu1 %v5905_v29  ;;  %v5944_v62 = vld [vmem:[%s7826_s0 + $0x4fc] ss:$124 sps:$4 sm:$0xff]   ;;  %v5983_v29 = vld [vmem:[%s7825_s1 + $0x4c8] sm:$0xff]  }
  0x74   :  { %3406 = vmatmul.mubr.bf16.gmra.mrb[40].mxu1 %v5869_v63  ;;  %3332 = vmatprep.mubr.bf16.mxu0 %v5876_v6  ;;  %v5946_v63 = vld [vmem:[%s7826_s0 + $0x504] ss:$124 sps:$4 sm:$0xff]   ;;  %v5954_v6 = vld [vmem:[%s7825_s1 + $0x3f8] sm:$0xff]  }
  0x75   :  { %3413 = vmatprep.mubr.bf16.mxu1 %v5878_v7  ;;  %v5955_v7 = vld [vmem:[%s7825_s1 + $0x3b8] sm:$0xff]  }
  0x7b   :  { %3333 = vmatmul.mubr.bf16.gmra.mrb[44].mxu0 %v5880_v8  ;;  %v5956_v8 = vld [vmem:[%s7826_s0 + $0x30] ss:$124 sps:$4 sm:$0xff]  }
  0x7c   :  { %3414 = vmatmul.mubr.bf16.gmra.mrb[44].mxu1 %v5881_v9  ;;  %3454 = vmatprep.mubr.bf16.mxu0 %v5890_v17  ;;  %v5958_v9 = vld [vmem:[%s7826_s0 + $0x34] ss:$124 sps:$4 sm:$0xff]   ;;  %v5969_v17 = vld [vmem:[%s7825_s1 + $0x408] sm:$0xff]  }
  0x7d   :  { %3535 = vmatprep.mubr.bf16.mxu1 %v5893_v19  ;;  %v5971_v19 = vld [vmem:[%s7826_s0 + $0x130] ss:$124 sps:$4 sm:$0xff]  }
  0x83   :  { %3455 = vmatmul.mubr.bf16.vlgmr.msra.gmra.mrb[48].mxu0 %v5888_v16  ;;  %v5967_v16 = vld [vmem:[%s7826_s0 + $0x134] ss:$124 sps:$4 sm:$0xff]  }
  0x84   :  { %3536 = vmatmul.mubr.bf16.vlgmr.msra.gmra.mrb[48].mxu1 %v5891_v18  ;;  %5213 = vmatpush3.bf16.msra.mxu0 %v5895_v21  ;;  %v5970_v18 = vld [vmem:[%s7826_s0 + $0x128] ss:$124 sps:$4 sm:$0xff]  }
  0x85   :  { %5214 = vmatprep.subr.bf16.mxu0 %v5896_v22  ;;  %3462 = vmatprep.mubr.bf16.mxu0 %v5897_v23  ;;  %v5973_v21 = vld [vmem:[%s7825_s1 + $0x4c0] sm:$0xff]   ;;  %v5974_v22 = vld [vmem:[%s7825_s1 + $0x410] sm:$0xff]  }
  0x86   :  { %3543 = vmatprep.mubr.bf16.mxu1 %v5899_v24  ;;  %5265 = vmatpush3.bf16.msra.mxu1 %v5907_v31  ;;  %v5975_v23 = vld [vmem:[%s7825_s1 + $0x480] sm:$0xff]   ;;  %v5985_v31 = vld [vmem:[%s7825_s1 + $0x488] sm:$0xff]  }
  0x87   :  { %5266 = vmatprep.subr.bf16.mxu1 %v5915_v37  ;;  %v5976_v24 = vld [vmem:[%s7826_s0 + $0x224] ss:$124 sps:$4 sm:$0xff]   ;;  %v5993_v37 = vld [vmem:[%s7825_s1 + $0x4d0] sm:$0xff]  }
  0x88   :  { %5215 = vmatpush3.bf16.msra.mxu0 %v5901_v25  ;;  %v5978_v25 = vld [vmem:[%s7826_s0 + $0x22c] ss:$124 sps:$4 sm:$0xff]  }
  0x89   :  { %5216 = vmatprep.subr.bf16.mxu0 %v5904_v28  ;;  %v5982_v28 = vld [vmem:[%s7825_s1 + $0x458] sm:$0xff]  }
  0x8a   :  { %5267 = vmatpush3.bf16.msra.mxu1 %v5917_v39  ;;  %v5995_v39 = vld [vmem:[%s7825_s1 + $0x490] sm:$0xff]  }
  0x8b   :  { %3463 = vmatmul.mubr.bf16.gmra.mrb[52].mxu0 %v5902_v26  ;;  %5268 = vmatprep.subr.bf16.mxu1 %v5925_v45  ;;  %v5980_v26 = vld [vmem:[%s7826_s0 + $0x220] ss:$124 sps:$4 sm:$0xff]   ;;  %v6003_v45 = vld [vmem:[%s7825_s1 + $0x428] sm:$0xff]  }
  0x8c   :  { %3544 = vmatmul.mubr.bf16.gmra.mrb[52].mxu1 %v5903_v27  ;;  %5217 = vmatpush3.bf16.msra.mxu0 %v5906_v30  ;;  %v5981_v27 = vld [vmem:[%s7826_s0 + $0x228] ss:$124 sps:$4 sm:$0xff]   ;;  %v5984_v30 = vld [vmem:[%s7825_s1 + $0x418] sm:$0xff]  }
  0x8d   :  { %3470 = vmatprep.mubr.bf16.mxu0 %v5908_v32  ;;  %3551 = vmatprep.mubr.bf16.mxu1 %v5910_v33  ;;  %v5986_v32 = vld [vmem:[%s7826_s0 + $0x31c] ss:$124 sps:$4 sm:$0xff]   ;;  %v5988_v33 = vld [vmem:[%s7826_s0 + $0x324] ss:$124 sps:$4 sm:$0xff]  }
  0x8e   :  { %5218 = vmatprep.subr.bf16.mxu0 %v5914_v36  ;;  %5269 = vmatpush3.bf16.msra.mxu1 %v5927_v47  ;;  %v5992_v36 = vld [vmem:[%s7825_s1 + $0x460] sm:$0xff]   ;;  %v6005_v47 = vld [vmem:[%s7826_s0 + $0x418] ss:$124 sps:$4 sm:$0xff]  }
  0x8f   :  { %5270 = vmatprep.subr.bf16.mxu1 %v5928_v48  ;;  %v6006_v48 = vld [vmem:[%s7825_s1 + $0x4e0] sm:$0xff]  }
  0x90   :  { %5219 = vmatpush3.bf16.msra.mxu0 %v5916_v38  ;;  %v5994_v38 = vld [vmem:[%s7825_s1 + $0x420] sm:$0xff]  }
  0x91   :  { %5220 = vmatprep.subr.bf16.mxu0 %v5924_v44  ;;  %v6001_v44 = vld [vmem:[%s7826_s0 + $0x41c] ss:$124 sps:$4 sm:$0xff]  }
  0x92   :  { %5271 = vmatpush3.bf16.msra.mxu1 %v5929_v49  ;;  %v6007_v49 = vld [vmem:[%s7825_s1 + $0x4a0] sm:$0xff]  }
  0x93   :  { %3471 = vmatmul.mubr.bf16.gmra.mrb[56].mxu0 %v5912_v34  ;;  %5272 = vmatprep.subr.bf16.mxu1 %v5938_v56  ;;  %v5990_v34 = vld [vmem:[%s7826_s0 + $0x318] ss:$124 sps:$4 sm:$0xff]   ;;  %v6016_v56 = vld [vmem:[%s7826_s0 + $0x508] ss:$124 sps:$4 sm:$0xff]  }
  0x94   :  { %3552 = vmatmul.mubr.bf16.gmra.mrb[56].mxu1 %v5913_v35  ;;  %3478 = vmatprep.mubr.bf16.mxu0 %v5918_v40  ;;  %v5991_v35 = vld [vmem:[%s7826_s0 + $0x320] ss:$124 sps:$4 sm:$0xff]  }
  0x95   :  { %3559 = vmatprep.mubr.bf16.mxu1 %v5920_v41  ;;  %5221 = vmatpush3.bf16.msra.mxu0 %v5926_v46  ;;  %v5996_v40 = vld [vmem:[%s7825_s1 + $0x4d8] sm:$0xff]   ;;  %v6004_v46 = vld [vmem:[%s7826_s0 + $0x410] ss:$124 sps:$4 sm:$0xff]  }
  0x96   :  { %5222 = vmatprep.subr.bf16.mxu0 %v5930_v50  ;;  %5273 = vmatpush3.bf16.msra.mxu1 %v5939_v57  ;;  %v5997_v41 = vld [vmem:[%s7825_s1 + $0x498] sm:$0xff]   ;;  %v6008_v50 = vld [vmem:[%s7825_s1 + $0x470] sm:$0xff]  }
  0x97   :  { %5274 = vmatprep.subr.bf16.mxu1 %v5941_v59  ;;  %v6017_v57 = vld [vmem:[%s7826_s0 + $0x510] ss:$124 sps:$4 sm:$0xff]  }
  0x98   :  { %v6019_v59 = vld [vmem:[%s7825_s1 + $0x4b0] sm:$0xff]  }
  0x99   :  { %5223 = vmatpush3.bf16.msra.mxu0 %v5935_v53  ;;  %v6011_v53 = vld [vmem:[%s7825_s1 + $0x4a8] sm:$0xff]  }
  0x9a   :  { %5224 = vmatprep.subr.bf16.mxu0 %v5940_v58  ;;  %5275 = vmatpush3.bf16.msra.mxu1 %v5943_v61  ;;  %v6018_v58 = vld [vmem:[%s7825_s1 + $0x4f0] sm:$0xff]   ;;  %v6021_v61 = vld [vmem:[%s7825_s1 + $0x438] sm:$0xff]  }
  0x9b   :  { %3479 = vmatmul.mubr.bf16.gmra.mrb[60].mxu0 %v5922_v42  ;;  %5276 = vmatprep.subr.bf16.mxu1 %v5950_v2  ;;  %v5998_v42 = vld [vmem:[%s7825_s1 + $0x468] sm:$0xff]  }
  0x9c   :  { %3560 = vmatmul.mubr.bf16.gmra.mrb[60].mxu1 %v5923_v43  ;;  %3486 = vmatprep.mubr.bf16.mxu0 %v5931_v51  ;;  %v5999_v43 = vld [vmem:[%s7826_s0 + $0x414] ss:$124 sps:$4 sm:$0xff]   ;;  %v6009_v51 = vld [vmem:[%s7825_s1 + $0x4e8] sm:$0xff]  }
  0x9d   :  { %3567 = vmatprep.mubr.bf16.mxu1 %v5933_v52  ;;  %5225 = vmatpush3.bf16.msra.mxu0 %v5942_v60  ;;  %v6010_v52 = vld [vmem:[%s7825_s1 + $0x430] sm:$0xff]   ;;  %v6020_v60 = vld [vmem:[%s7825_s1 + $0x478] sm:$0xff]   ;;  %v6027_v2 = vld [vmem:[%s7826_s0 + $0x48] ss:$124 sps:$4 sm:$0xff]  }
  0x9e   :  { %5277 = vmatpush3.bf16.msra.mxu1 %v5951_v3  ;;  %5226 = vmatprep.subr.bf16.mxu0 %v5952_v4  ;;  %v6029_v3 = vld [vmem:[%s7826_s0 + $0x4c] ss:$124 sps:$4 sm:$0xff]   ;;  %v6030_v4 = vld [vmem:[%s7825_s1 + $0x540] sm:$0xff]  }
  0x9f   :  { %5278 = vmatprep.subr.bf16.mxu1 %v5954_v6  ;;  %v6032_v6 = vld [vmem:[%s7825_s1 + $0x548] sm:$0xff]  }
  0xa1   :  { %5227 = vmatpush3.bf16.msra.mxu0 %v5953_v5  ;;  %v6031_v5 = vld [vmem:[%s7825_s1 + $0x500] sm:$0xff]  }
  0xa2   :  { %5279 = vmatpush3.bf16.msra.mxu1 %v5955_v7  ;;  %5316 = vmatprep.subr.bf16.mxu0 %v5962_v12  ;;  %v6033_v7 = vld [vmem:[%s7826_s0 + $0x13c] ss:$124 sps:$4 sm:$0xff]   ;;  %v6040_v12 = vld [vmem:[%s7825_s1 + $0x550] sm:$0xff]  }
  0xa3   :  { %3487 = vmatmul.mubr.bf16.gmra.mrb[64].mxu0 %v5936_v54  ;;  %5368 = vmatprep.subr.bf16.mxu1 %v5973_v21  ;;  %v6012_v54 = vld [vmem:[%s7826_s0 + $0x50c] ss:$124 sps:$4 sm:$0xff]  }
  0xa4   :  { %3568 = vmatmul.mubr.bf16.gmra.mrb[64].mxu1 %v5937_v55  ;;  %3494 = vmatprep.mubr.bf16.mxu0 %v5944_v62  ;;  %v6014_v55 = vld [vmem:[%s7826_s0 + $0x514] ss:$124 sps:$4 sm:$0xff]   ;;  %v6022_v62 = vld [vmem:[%s7825_s1 + $0x4f8] sm:$0xff]   ;;  %v6051_v21 = vld [vmem:[%s7825_s1 + $0x5c8] sm:$0xff]  }
  0xa5   :  { %3575 = vmatprep.mubr.bf16.mxu1 %v5946_v63  ;;  %v6023_v63 = vld [vmem:[%s7825_s1 + $0x4b8] sm:$0xff]  }
  0xab   :  { %3495 = vmatmul.mubr.bf16.gmra.mrb[68].mxu0 %v5948_v0  ;;  %v6024_v0 = vld [vmem:[%s7826_s0 + $0x40] ss:$124 sps:$4 sm:$0xff]  }
  0xac   :  { %3576 = vmatmul.mubr.bf16.gmra.mrb[68].mxu1 %v5949_v1  ;;  %3616 = vmatprep.mubr.bf16.mxu0 %v5958_v9  ;;  %v6026_v1 = vld [vmem:[%s7826_s0 + $0x44] ss:$124 sps:$4 sm:$0xff]   ;;  %v6037_v9 = vld [vmem:[%s7825_s1 + $0x508] sm:$0xff]  }
  0xad   :  { %3697 = vmatprep.mubr.bf16.mxu1 %v5961_v11  ;;  %v6039_v11 = vld [vmem:[%s7826_s0 + $0x140] ss:$124 sps:$4 sm:$0xff]  }
  0xb3   :  { %3617 = vmatmul.mubr.bf16.vlgmr.msra.gmra.mrb[72].mxu0 %v5956_v8  ;;  %v6035_v8 = vld [vmem:[%s7826_s0 + $0x144] ss:$124 sps:$4 sm:$0xff]  }
  0xb4   :  { %3698 = vmatmul.mubr.bf16.vlgmr.msra.gmra.mrb[72].mxu1 %v5959_v10  ;;  %5317 = vmatpush3.bf16.msra.mxu0 %v5963_v13  ;;  %v6038_v10 = vld [vmem:[%s7826_s0 + $0x138] ss:$124 sps:$4 sm:$0xff]   ;;  %v6041_v13 = vld [vmem:[%s7825_s1 + $0x5c0] sm:$0xff]  }
  0xb5   :  { %5318 = vmatprep.subr.bf16.mxu0 %v5964_v14  ;;  %3624 = vmatprep.mubr.bf16.mxu0 %v5965_v15  ;;  %v6042_v14 = vld [vmem:[%s7825_s1 + $0x510] sm:$0xff]   ;;  %v6043_v15 = vld [vmem:[%s7825_s1 + $0x580] sm:$0xff]  }
  0xb6   :  { %3705 = vmatprep.mubr.bf16.mxu1 %v5967_v16  ;;  %5369 = vmatpush3.bf16.msra.mxu1 %v5975_v23  ;;  %v6044_v16 = vld [vmem:[%s7826_s0 + $0x234] ss:$124 sps:$4 sm:$0xff]   ;;  %v6053_v23 = vld [vmem:[%s7825_s1 + $0x588] sm:$0xff]  }
  0xb7   :  { %5370 = vmatprep.subr.bf16.mxu1 %v5983_v29  ;;  %v6060_v29 = vld [vmem:[%s7825_s1 + $0x560] sm:$0xff]  }
  0xb8   :  { %5319 = vmatpush3.bf16.msra.mxu0 %v5969_v17  ;;  %v6046_v17 = vld [vmem:[%s7826_s0 + $0x23c] ss:$124 sps:$4 sm:$0xff]  }
  0xb9   :  { %5320 = vmatprep.subr.bf16.mxu0 %v5972_v20  ;;  %v6050_v20 = vld [vmem:[%s7825_s1 + $0x558] sm:$0xff]  }
  0xba   :  { %5371 = vmatpush3.bf16.msra.mxu1 %v5985_v31 }
  0xbb   :  { %3625 = vmatmul.mubr.bf16.gmra.mrb[76].mxu0 %v5970_v18  ;;  %5372 = vmatprep.subr.bf16.mxu1 %v5993_v37  ;;  %v6048_v18 = vld [vmem:[%s7826_s0 + $0x230] ss:$124 sps:$4 sm:$0xff]  }
  0xbc   :  { %3706 = vmatmul.mubr.bf16.gmra.mrb[76].mxu1 %v5971_v19  ;;  %5321 = vmatpush3.bf16.msra.mxu0 %v5974_v22  ;;  %v6049_v19 = vld [vmem:[%s7826_s0 + $0x238] ss:$124 sps:$4 sm:$0xff]  }
  0xbd   :  { %3632 = vmatprep.mubr.bf16.mxu0 %v5976_v24  ;;  %3713 = vmatprep.mubr.bf16.mxu1 %v5978_v25  ;;  %v6052_v22 = vld [vmem:[%s7825_s1 + $0x518] sm:$0xff]   ;;  %v6054_v24 = vld [vmem:[%s7826_s0 + $0x32c] ss:$124 sps:$4 sm:$0xff]   ;;  %v6056_v25 = vld [vmem:[%s7826_s0 + $0x334] ss:$124 sps:$4 sm:$0xff]  }
  0xbe   :  { %5322 = vmatprep.subr.bf16.mxu0 %v5982_v28  ;;  %5373 = vmatpush3.bf16.msra.mxu1 %v5995_v39  ;;  %v6059_v28 = vld [vmem:[%s7826_s0 + $0x330] ss:$124 sps:$4 sm:$0xff]  }
  0xbf   :  { %5374 = vmatprep.subr.bf16.mxu1 %v5996_v40 }
  0xc0   :  { %5323 = vmatpush3.bf16.msra.mxu0 %v5984_v30 }
  0xc1   :  { %5324 = vmatprep.subr.bf16.mxu0 %v5992_v36 }
  0xc2   :  { %5375 = vmatpush3.bf16.msra.mxu1 %v5997_v41 }
  0xc3   :  { %3633 = vmatmul.mubr.bf16.gmra.mrb[80].mxu0 %v5980_v26  ;;  %5376 = vmatprep.subr.bf16.mxu1 %v6006_v48  ;;  %v6058_v26 = vld [vmem:[%s7826_s0 + $0x328] ss:$124 sps:$4 sm:$0xff]  }
  0xc4   :  { %3714 = vmatmul.mubr.bf16.gmra.mrb[80].mxu1 %v5981_v27  ;;  %3640 = vmatprep.mubr.bf16.mxu0 %v5986_v32  ;;  %v6061_v32 = vld [vmem:[%s7825_s1 + $0x5d0] sm:$0xff]   ;;  %v6066_v48 = vld [vmem:[%s7825_s1 + $0x568] sm:$0xff]  }
  0xc5   :  { %3721 = vmatprep.mubr.bf16.mxu1 %v5988_v33  ;;  %5325 = vmatpush3.bf16.msra.mxu0 %v5994_v38  ;;  %v6062_v33 = vld [vmem:[%s7825_s1 + $0x520] sm:$0xff]  }
  0xc6   :  { %5326 = vmatprep.subr.bf16.mxu0 %v5998_v42  ;;  %5377 = vmatpush3.bf16.msra.mxu1 %v6007_v49  ;;  %v6063_v42 = vld [vmem:[%s7825_s1 + $0x590] sm:$0xff]  }
  0xc7   :  { %5378 = vmatprep.subr.bf16.mxu1 %v6009_v51 }
  0xc9   :  { %5327 = vmatpush3.bf16.msra.mxu0 %v6003_v45  ;;  %v6064_v45 = vld [vmem:[%s7825_s1 + $0x5d8] sm:$0xff]  }
  0xca   :  { %5328 = vmatprep.subr.bf16.mxu0 %v6008_v50  ;;  %5379 = vmatpush3.bf16.msra.mxu1 %v6011_v53  ;;  %v6067_v50 = vld [vmem:[%s7826_s0 + $0x424] ss:$124 sps:$4 sm:$0xff]   ;;  %v6069_v53 = vld [vmem:[%s7826_s0 + $0x42c] ss:$124 sps:$4 sm:$0xff]  }
  0xcb   :  { %3641 = vmatmul.mubr.bf16.gmra.mrb[84].mxu0 %v5990_v34  ;;  %5380 = vmatprep.subr.bf16.mxu1 %v6018_v58  ;;  %v6074_v58 = vld [vmem:[%s7825_s1 + $0x5e0] sm:$0xff]  }
  0xcc   :  { %3722 = vmatmul.mubr.bf16.gmra.mrb[84].mxu1 %v5991_v35  ;;  %3648 = vmatprep.mubr.bf16.mxu0 %v5999_v43 }
  0xcd   :  { %3729 = vmatprep.mubr.bf16.mxu1 %v6001_v44  ;;  %5329 = vmatpush3.bf16.msra.mxu0 %v6010_v52 }
  0xce   :  { %5381 = vmatpush3.bf16.msra.mxu1 %v6019_v59  ;;  %5330 = vmatprep.subr.bf16.mxu0 %v6020_v60 }
  0xcf   :  { %5382 = vmatprep.subr.bf16.mxu1 %v6022_v62  ;;  %v6072_v62 = vld [vmem:[%s7826_s0 + $0x420] ss:$124 sps:$4 sm:$0xff]  }
  0xd1   :  { %5331 = vmatpush3.bf16.msra.mxu0 %v6021_v61 }
  0xd2   :  { %5383 = vmatpush3.bf16.msra.mxu1 %v6023_v63  ;;  %5420 = vmatprep.subr.bf16.mxu0 %v6030_v4  ;;  %v6073_v63 = vld [vmem:[%s7826_s0 + $0x428] ss:$124 sps:$4 sm:$0xff]  }
  0xd3   :  { %3649 = vmatmul.mubr.bf16.gmra.mrb[88].mxu0 %v6004_v46  ;;  %5472 = vmatprep.subr.bf16.mxu1 %v6041_v13  ;;  %v6065_v46 = vld [vmem:[%s7825_s1 + $0x598] sm:$0xff]  }
  0xd4   :  { %3730 = vmatmul.mubr.bf16.gmra.mrb[88].mxu1 %v6005_v47  ;;  %3656 = vmatprep.mubr.bf16.mxu0 %v6012_v54 }
  0xd5   :  { %3737 = vmatprep.mubr.bf16.mxu1 %v6014_v55 }
  0xdb   :  { %3657 = vmatmul.mubr.bf16.gmra.mrb[92].mxu0 %v6016_v56 }
  0xdc   :  { %3738 = vmatmul.mubr.bf16.gmra.mrb[92].mxu1 %v6017_v57  ;;  %3778 = vmatprep.mubr.bf16.mxu0 %v6026_v1  ;;  %v6071_v57 = vld [vmem:[%s7825_s1 + $0x528] sm:$0xff]  }
  0xdd   :  { %3859 = vmatprep.mubr.bf16.mxu1 %v6029_v3 }
  0xe3   :  { %3779 = vmatmul.mubr.bf16.vlgmr.msra.gmra.mrb[96].mxu0 %v6024_v0 }
  0xe4   :  { %3860 = vmatmul.mubr.bf16.vlgmr.msra.gmra.mrb[96].mxu1 %v6027_v2  ;;  %5421 = vmatpush3.bf16.msra.mxu0 %v6031_v5  ;;  %v6075_v2 = vld [vmem:[%s7825_s1 + $0x5a0] sm:$0xff]   ;;  %v6076_v5 = vld [vmem:[%s7825_s1 + $0x570] sm:$0xff]  }
  0xe5   :  { %5422 = vmatprep.subr.bf16.mxu0 %v6032_v6  ;;  %3786 = vmatprep.mubr.bf16.mxu0 %v6033_v7  ;;  %v6077_v7 = vld [vmem:[%s7825_s1 + $0x5e8] sm:$0xff]  }
  0xe6   :  { %3867 = vmatprep.mubr.bf16.mxu1 %v6035_v8  ;;  %5473 = vmatpush3.bf16.msra.mxu1 %v6043_v15 }
  0xe7   :  { %5474 = vmatprep.subr.bf16.mxu1 %v6051_v21  ;;  %v6086_v21 = vld [vmem:[%s7825_s1 + $0x5f0] sm:$0xff]  }
  0xe8   :  { %5423 = vmatpush3.bf16.msra.mxu0 %v6037_v9  ;;  %v6078_v9 = vld [vmem:[%s7825_s1 + $0x530] sm:$0xff]  }
  0xe9   :  { %5424 = vmatprep.subr.bf16.mxu0 %v6040_v12  ;;  %v6079_v12 = vld [vmem:[%s7825_s1 + $0x5a8] sm:$0xff]  }
  0xea   :  { %5475 = vmatpush3.bf16.msra.mxu1 %v6053_v23 }
  0xeb   :  { %3787 = vmatmul.mubr.bf16.gmra.mrb[100].mxu0 %v6038_v10  ;;  %5476 = vmatprep.subr.bf16.mxu1 %v6061_v32  ;;  %v6089_v32 = vld [vmem:[%s7825_s1 + $0x538] sm:$0xff]  }
  0xec   :  { %3868 = vmatmul.mubr.bf16.gmra.mrb[100].mxu1 %v6039_v11  ;;  %5425 = vmatpush3.bf16.msra.mxu0 %v6042_v14 }
  0xed   :  { %3794 = vmatprep.mubr.bf16.mxu0 %v6044_v16  ;;  %3875 = vmatprep.mubr.bf16.mxu1 %v6046_v17  ;;  %v6080_v16 = vld [vmem:[%s7826_s0 + $0x51c] ss:$124 sps:$4 sm:$0xff]  }
  0xee   :  { %5426 = vmatprep.subr.bf16.mxu0 %v6050_v20  ;;  %5477 = vmatpush3.bf16.msra.mxu1 %v6063_v42  ;;  %v6082_v20 = vld [vmem:[%s7826_s0 + $0x524] ss:$124 sps:$4 sm:$0xff]  }
  0xef   :  { %5478 = vmatprep.subr.bf16.mxu1 %v6064_v45  ;;  %v6094_v45 = vld [vmem:[%s7826_s0 + $0x54] ss:$124 sps:$4 sm:$0xff]  }
  0xf0   :  { %5427 = vmatpush3.bf16.msra.mxu0 %v6052_v22 }
  0xf1   :  { %5428 = vmatprep.subr.bf16.mxu0 %v6060_v29 }
  0xf2   :  { %5479 = vmatpush3.bf16.msra.mxu1 %v6065_v46 }
  0xf3   :  { %3795 = vmatmul.mubr.bf16.gmra.mrb[104].mxu0 %v6048_v18  ;;  %5480 = vmatprep.subr.bf16.mxu1 %v6074_v58 }
  0xf4   :  { %3876 = vmatmul.mubr.bf16.gmra.mrb[104].mxu1 %v6049_v19  ;;  %3802 = vmatprep.mubr.bf16.mxu0 %v6054_v24  ;;  %v6084_v24 = vld [vmem:[%s7826_s0 + $0x518] ss:$124 sps:$4 sm:$0xff]  }
  0xf5   :  { %3883 = vmatprep.mubr.bf16.mxu1 %v6056_v25  ;;  %5429 = vmatpush3.bf16.msra.mxu0 %v6062_v33  ;;  %v6085_v25 = vld [vmem:[%s7826_s0 + $0x520] ss:$124 sps:$4 sm:$0xff]  }
  0xf6   :  { %v4916_v27 = vpop.f32.mrb[0].mxu0  ;;  %5430 = vmatprep.subr.bf16.mxu0 %v6066_v48  ;;  %5481 = vmatpush3.bf16.msra.mxu1 %v6075_v2 }
  0xf7   :  { %v4968_v30 = vpop.f32.mrb[0].mxu1  ;;  %v4917_v31 = vpop.f32.mrb[1].mxu0  ;;  %5482 = vmatprep.subr.bf16.mxu1 %v6077_v7  ;;  %v6108_v7 = vld [vmem:[%s7825_s1 + $0x650] sm:$0xff]  }
  0xf8   :  { %v4918_v34 = vadd.f32 %v4917_v31, %v4916_v27  ;;  %v4969_v35 = vpop.f32.mrb[1].mxu1  ;;  %v4919_v36 = vpop.f32.mrb[2].mxu0 }
  0xf9   :  { %v4970_v37 = vadd.f32 %v4969_v35, %v4968_v30  ;;  %v4971_v38 = vpop.f32.mrb[2].mxu1  ;;  %v4920_v39 = vpop.f32.mrb[3].mxu0  ;;  %5431 = vmatpush3.bf16.msra.mxu0 %v6071_v57  ;;  %v6088_v30 = vld [vmem:[%s7825_s1 + $0x578] sm:$0xff]   ;;  %v6100_v57 = vld [vmem:[%s7825_s1 + $0x648] sm:$0xff]  }
  0xfa   :  { %v4921_v40 = vadd.f32 %v4920_v39, %v4919_v36  ;;  %v4972_v41 = vpop.f32.mrb[3].mxu1  ;;  %5432 = vmatprep.subr.bf16.mxu0 %v6076_v5  ;;  %5483 = vmatpush3.bf16.msra.mxu1 %v6079_v12  ;;  %v6090_v35 = vld [vmem:[%s7825_s1 + $0x5f8] sm:$0xff]   ;;  %v6105_v5 = vld [vmem:[%s7825_s1 + $0x608] sm:$0xff]   ;;  %v6109_v12 = vld [vmem:[%s7825_s1 + $0x6c0] sm:$0xff]  }
  0xfb   :  { %v7132_v43 = vadd.f32 %v4970_v37, %v4918_v34  ;;  %v4973_v44 = vadd.f32 %v4972_v41, %v4971_v38  ;;  %3803 = vmatmul.mubr.bf16.gmra.mrb[108].mxu0 %v6058_v26  ;;  %v6087_v26 = vld [vmem:[%s7825_s1 + $0x5b0] sm:$0xff]   ;;  %5484 = vmatprep.subr.bf16.mxu1 %v6086_v21  ;;  %v6091_v36 = vld [vmem:[%s7825_s1 + $0x5b8] sm:$0xff]   ;;  %v6112_v21 = vld [vmem:[%s7826_s0 + $0x244] ss:$124 sps:$4 sm:$0xff]  }
  0xfc   :  { %3884 = vmatmul.mubr.bf16.gmra.mrb[108].mxu1 %v6059_v28  ;;  %3810 = vmatprep.mubr.bf16.mxu0 %v6067_v50 }
  0xfd   :  { %v7140_v47 = vadd.f32 %v4973_v44, %v4921_v40  ;;  %3891 = vmatprep.mubr.bf16.mxu1 %v6069_v53  ;;  %5433 = vmatpush3.bf16.msra.mxu0 %v6078_v9  ;;  %v6092_v44 = vld [vmem:[%s7826_s0 + $0x50] ss:$124 sps:$4 sm:$0xff]   ;;  %v6098_v53 = vld [vmem:[%s7825_s1 + $0x640] sm:$0xff]  }
  0xfe   :  { %v4922_v49 = vpop.f32.mrb[4].mxu0  ;;  %5485 = vmatpush3.bf16.msra.mxu1 %v6087_v26  ;;  %5434 = vmatprep.subr.bf16.mxu0 %v6088_v30  ;;  %v6116_v26 = vld [vmem:[%s7826_s0 + $0x240] ss:$124 sps:$4 sm:$0xff]  }
  0xff   :  { %v4974_v51 = vpop.f32.mrb[4].mxu1  ;;  %v4923_v52 = vpop.f32.mrb[5].mxu0  ;;  %5486 = vmatprep.subr.bf16.mxu1 %v6090_v35  ;;  %v6118_v35 = vld [vmem:[%s7825_s1 + $0x658] sm:$0xff]  }
 0x100   :  { %v4924_v54 = vadd.f32 %v4923_v52, %v4922_v49  ;;  %v4975_v55 = vpop.f32.mrb[5].mxu1  ;;  %v4925_v56 = vpop.f32.mrb[6].mxu0  ;;  %v6095_v49 = vld [vmem:[%s7826_s0 + $0x58] ss:$124 sps:$4 sm:$0xff]  }
 0x101   :  { %v4976_v59 = vadd.f32 %v4975_v55, %v4974_v51  ;;  %v4977_v60 = vpop.f32.mrb[6].mxu1  ;;  %v4926_v61 = vpop.f32.mrb[7].mxu0  ;;  %5435 = vmatpush3.bf16.msra.mxu0 %v6089_v32  ;;  %v6097_v52 = vld [vmem:[%s7826_s0 + $0x5c] ss:$124 sps:$4 sm:$0xff]   ;;  %v6099_v55 = vld [vmem:[%s7825_s1 + $0x600] sm:$0xff]  }
 0x102   :  { %v4927_v0 = vadd.f32 %v4926_v61, %v4925_v56  ;;  %v4978_v1 = vpop.f32.mrb[7].mxu1  ;;  %5487 = vmatpush3.bf16.msra.mxu1 %v6091_v36  ;;  %5524 = vmatprep.subr.bf16.mxu0 %v6098_v53  ;;  %v6117_v32 = vld [vmem:[%s7826_s0 + $0x248] ss:$124 sps:$4 sm:$0xff]  }
 0x103   :  { %v7166_v3 = vadd.f32 %v4976_v59, %v4924_v54  ;;  %v4979_v4 = vadd.f32 %v4978_v1, %v4977_v60  ;;  %3811 = vmatmul.mubr.bf16.gmra.mrb[112].mxu0 %v6072_v62  ;;  %v6101_v60 = vld [vmem:[%s7826_s0 + $0x14c] ss:$124 sps:$4 sm:$0xff]   ;;  %5576 = vmatprep.subr.bf16.mxu1 %v6109_v12 }
 0x104   :  { %3892 = vmatmul.mubr.bf16.gmra.mrb[112].mxu1 %v6073_v63  ;;  %3818 = vmatprep.mubr.bf16.mxu0 %v6080_v16  ;;  %v6110_v16 = vld [vmem:[%s7825_s1 + $0x610] sm:$0xff]  }
 0x105   :  { %v7171_v6 = vadd.f32 %v4979_v4, %v4927_v0  ;;  %3899 = vmatprep.mubr.bf16.mxu1 %v6082_v20  ;;  %v6103_v0 = vld [vmem:[%s7826_s0 + $0x154] ss:$124 sps:$4 sm:$0xff]  }
 0x106   :  { %v4928_v8 = vpop.f32.mrb[8].mxu0 }
 0x107   :  { %v4980_v10 = vpop.f32.mrb[8].mxu1  ;;  %v4929_v11 = vpop.f32.mrb[9].mxu0 }
 0x108   :  { %v4930_v13 = vadd.f32 %v4929_v11, %v4928_v8  ;;  %v4981_v14 = vpop.f32.mrb[9].mxu1  ;;  %v4931_v15 = vpop.f32.mrb[10].mxu0  ;;  %v6107_v11 = vld [vmem:[%s7826_s0 + $0x150] ss:$124 sps:$4 sm:$0xff]  }
 0x109   :  { %v4982_v17 = vadd.f32 %v4981_v14, %v4980_v10  ;;  %v4983_v18 = vpop.f32.mrb[10].mxu1  ;;  %v4932_v19 = vpop.f32.mrb[11].mxu0  ;;  %v6106_v10 = vld [vmem:[%s7826_s0 + $0x148] ss:$124 sps:$4 sm:$0xff]  }
 0x10a   :  { %v4933_v22 = vadd.f32 %v4932_v19, %v4931_v15  ;;  %v4984_v23 = vpop.f32.mrb[11].mxu1 }
 0x10b   :  { %v7200_v27 = vadd.f32 %v4982_v17, %v4930_v13  ;;  %v4985_v28 = vadd.f32 %v4984_v23, %v4983_v18  ;;  %3819 = vmatmul.mubr.bf16.gmra.mrb[116].mxu0 %v6084_v24  ;;  %v6111_v18 = vld [vmem:[%s7825_s1 + $0x680] sm:$0xff]  }
 0x10c   :  { %3900 = vmatmul.mubr.bf16.gmra.mrb[116].mxu1 %v6085_v25  ;;  %3940 = vmatprep.mubr.bf16.mxu0 %v6094_v45  ;;  %v6114_v25 = vld [vmem:[%s7826_s0 + $0x24c] ss:$124 sps:$4 sm:$0xff]  }
 0x10d   :  { %v7202_v29 = vadd.f32 %v4985_v28, %v4933_v22  ;;  %4021 = vmatprep.mubr.bf16.mxu1 %v6097_v52 }
 0x10e   :  { %v4934_v31 = vpop.f32.mrb[12].mxu0 }
 0x10f   :  { %v4986_v33 = vpop.f32.mrb[12].mxu1  ;;  %v4935_v34 = vpop.f32.mrb[13].mxu0 }
 0x110   :  { %v4936_v37 = vadd.f32 %v4935_v34, %v4934_v31  ;;  %v4987_v38 = vpop.f32.mrb[13].mxu1  ;;  %v4937_v39 = vpop.f32.mrb[14].mxu0 }
 0x111   :  { %v4988_v40 = vadd.f32 %v4987_v38, %v4986_v33  ;;  %v4989_v41 = vpop.f32.mrb[14].mxu1  ;;  %v4938_v42 = vpop.f32.mrb[15].mxu0  ;;  %v6119_v38 = vld [vmem:[%s7825_s1 + $0x6c8] sm:$0xff]  }
 0x112   :  { %v4939_v46 = vadd.f32 %v4938_v42, %v4937_v39  ;;  %v4990_v48 = vpop.f32.mrb[15].mxu1  ;;  %v6120_v39 = vld [vmem:[%s7825_s1 + $0x618] sm:$0xff]  }
 0x113   :  { %v7225_v50 = vadd.f32 %v4988_v40, %v4936_v37  ;;  %v4991_v51 = vadd.f32 %v4990_v48, %v4989_v41  ;;  %3941 = vmatmul.mubr.bf16.vlgmr.msra.gmra.mrb[120].mxu0 %v6092_v44  ;;  %v6121_v41 = vld [vmem:[%s7825_s1 + $0x688] sm:$0xff]   ;;  %v6122_v44 = vld [vmem:[%s7826_s0 + $0x33c] ss:$124 sps:$4 sm:$0xff]   ;;  %v6124_v48 = vld [vmem:[%s7826_s0 + $0x344] ss:$124 sps:$4 sm:$0xff]  }
 0x114   :  { %4022 = vmatmul.mubr.bf16.vlgmr.msra.gmra.mrb[120].mxu1 %v6095_v49  ;;  %5525 = vmatpush3.bf16.msra.mxu0 %v6099_v55  ;;  %v6128_v49 = vld [vmem:[%s7825_s1 + $0x660] sm:$0xff]   ;;  %v6126_v55 = vld [vmem:[%s7826_s0 + $0x338] ss:$124 sps:$4 sm:$0xff]  }
 0x115   :  { %v7233_v54 = vadd.f32 %v4991_v51, %v4939_v46  ;;  %5526 = vmatprep.subr.bf16.mxu0 %v6100_v57  ;;  %3948 = vmatprep.mubr.bf16.mxu0 %v6101_v60 }
 0x116   :  { %v4940_v56 = vpop.f32.mrb[16].mxu0  ;;  %4029 = vmatprep.mubr.bf16.mxu1 %v6103_v0  ;;  %5577 = vmatpush3.bf16.msra.mxu1 %v6111_v18 }
 0x117   :  { %v4992_v58 = vpop.f32.mrb[16].mxu1  ;;  %v4941_v59 = vpop.f32.mrb[17].mxu0  ;;  %5578 = vmatprep.subr.bf16.mxu1 %v6119_v38  ;;  %v6145_v38 = vld [vmem:[%s7825_s1 + $0x6e8] sm:$0xff]  }
 0x118   :  { %v4942_v61 = vadd.f32 %v4941_v59, %v4940_v56  ;;  %v4993_v62 = vpop.f32.mrb[17].mxu1  ;;  %v4943_v63 = vpop.f32.mrb[18].mxu0  ;;  %5527 = vmatpush3.bf16.msra.mxu0 %v6105_v5  ;;  %v6127_v56 = vld [vmem:[%s7826_s0 + $0x340] ss:$124 sps:$4 sm:$0xff]  }
 0x119   :  { %v4994_v1 = vadd.f32 %v4993_v62, %v4992_v58  ;;  %v4995_v2 = vpop.f32.mrb[18].mxu1  ;;  %v4944_v4 = vpop.f32.mrb[19].mxu0  ;;  %5528 = vmatprep.subr.bf16.mxu0 %v6108_v7  ;;  %v6132_v5 = vld [vmem:[%s7825_s1 + $0x6d8] sm:$0xff]  }
 0x11a   :  { %v4945_v8 = vadd.f32 %v4944_v4, %v4943_v63  ;;  %v4996_v9 = vpop.f32.mrb[19].mxu1  ;;  %5579 = vmatpush3.bf16.msra.mxu1 %v6121_v41  ;;  %v6129_v63 = vld [vmem:[%s7825_s1 + $0x6d0] sm:$0xff]  }
 0x11b   :  { %v7262_v13 = vadd.f32 %v4994_v1, %v4942_v61  ;;  %v4997_v14 = vadd.f32 %v4996_v9, %v4995_v2  ;;  %3949 = vmatmul.mubr.bf16.gmra.mrb[124].mxu0 %v6106_v10  ;;  %v6130_v1 = vld [vmem:[%s7825_s1 + $0x620] sm:$0xff]   ;;  %5580 = vmatprep.subr.bf16.mxu1 %v6129_v63 }
 0x11c   :  { %4030 = vmatmul.mubr.bf16.gmra.mrb[124].mxu1 %v6107_v11  ;;  %5529 = vmatpush3.bf16.msra.mxu0 %v6110_v16  ;;  %v6134_v16 = vld [vmem:[%s7825_s1 + $0x668] sm:$0xff]  }
 0x11d   :  { %v7264_v15 = vadd.f32 %v4997_v14, %v4945_v8  ;;  %3956 = vmatprep.mubr.bf16.mxu0 %v6112_v21  ;;  %4037 = vmatprep.mubr.bf16.mxu1 %v6114_v25 }
 0x11e   :  { %v4946_v17 = vpop.f32.mrb[20].mxu0  ;;  %5530 = vmatprep.subr.bf16.mxu0 %v6118_v35 }
 0x11f   :  { %v4998_v19 = vpop.f32.mrb[20].mxu1  ;;  %v4947_v20 = vpop.f32.mrb[21].mxu0 }
 0x120   :  { %v4948_v22 = vadd.f32 %v4947_v20, %v4946_v17  ;;  %v4999_v23 = vpop.f32.mrb[21].mxu1  ;;  %v4949_v24 = vpop.f32.mrb[22].mxu0  ;;  %5531 = vmatpush3.bf16.msra.mxu0 %v6120_v39  ;;  %v6135_v20 = vld [vmem:[%s7826_s0 + $0x434] ss:$124 sps:$4 sm:$0xff]  }
 0x121   :  { %v5000_v28 = vadd.f32 %v4999_v23, %v4998_v19  ;;  %v5001_v30 = vpop.f32.mrb[22].mxu1  ;;  %v4950_v31 = vpop.f32.mrb[23].mxu0  ;;  %5532 = vmatprep.subr.bf16.mxu0 %v6128_v49  ;;  %v6137_v23 = vld [vmem:[%s7826_s0 + $0x43c] ss:$124 sps:$4 sm:$0xff]  }
 0x122   :  { %v4951_v33 = vadd.f32 %v4950_v31, %v4949_v24  ;;  %v5002_v34 = vpop.f32.mrb[23].mxu1  ;;  %v6139_v24 = vld [vmem:[%s7825_s1 + $0x628] sm:$0xff]  }
 0x123   :  { %v7287_v36 = vadd.f32 %v5000_v28, %v4948_v22  ;;  %v5003_v37 = vadd.f32 %v5002_v34, %v5001_v30  ;;  %3957 = vmatmul.mubr.bf16.gmra.mrb[128].mxu0 %v6116_v26  ;;  %v6140_v26 = vld [vmem:[%s7826_s0 + $0x430] ss:$124 sps:$4 sm:$0xff]  }
 0x124   :  { %4038 = vmatmul.mubr.bf16.gmra.mrb[128].mxu1 %v6117_v32  ;;  %3964 = vmatprep.mubr.bf16.mxu0 %v6122_v44  ;;  %v6142_v32 = vld [vmem:[%s7825_s1 + $0x6e0] sm:$0xff]   ;;  %v6146_v44 = vld [vmem:[%s7825_s1 + $0x630] sm:$0xff]  }
 0x125   :  { %v7295_v40 = vadd.f32 %v5003_v37, %v4951_v33  ;;  %4045 = vmatprep.mubr.bf16.mxu1 %v6124_v48  ;;  %5533 = vmatpush3.bf16.msra.mxu0 %v6130_v1  ;;  %v6143_v33 = vld [vmem:[%s7825_s1 + $0x6a0] sm:$0xff]   ;;  %v6147_v48 = vld [vmem:[%s7825_s1 + $0x6a8] sm:$0xff]   ;;  %v6156_v1 = vld [vmem:[%s7825_s1 + $0x678] sm:$0xff]  }
 0x126   :  { %v5020_v42 = vpop.f32.mrb[24].mxu0  ;;  %5534 = vmatprep.subr.bf16.mxu0 %v6134_v16 }
 0x127   :  { %v5021_v45 = vpop.f32.mrb[25].mxu0  ;;  %v5072_v46 = vpop.f32.mrb[24].mxu1 }
 0x128   :  { %v5022_v51 = vadd.f32 %v5021_v45, %v5020_v42  ;;  %v5023_v52 = vpop.f32.mrb[26].mxu0  ;;  %v5073_v53 = vpop.f32.mrb[25].mxu1 }
 0x129   :  { %v5024_v57 = vpop.f32.mrb[27].mxu0  ;;  %v5074_v58 = vadd.f32 %v5073_v53, %v5072_v46  ;;  %v5075_v59 = vpop.f32.mrb[26].mxu1  ;;  %5535 = vmatpush3.bf16.msra.mxu0 %v6139_v24  ;;  %v6166_v24 = vld [vmem:[%s7825_s1 + $0x740] sm:$0xff]  }
 0x12a   :  { %v3295_v60 = vadd.f32 %v5022_v51, %v7132_v43  ;;  %v5025_v61 = vadd.f32 %v5024_v57, %v5023_v52  ;;  %v5076_v62 = vpop.f32.mrb[27].mxu1  ;;  %v6131_v43 = vld [vmem:[%s7825_s1 + $0x690] sm:$0xff]  }
 0x12b   :  { %v5077_v0 = vadd.f32 %v5076_v62, %v5075_v59  ;;  %3965 = vmatmul.mubr.bf16.gmra.mrb[132].mxu0 %v6126_v55  ;;  %5581 = vmatpush3.bf16.msra.mxu1 %v6131_v43  ;;  %v6148_v55 = vld [vmem:[%s7826_s0 + $0x52c] ss:$124 sps:$4 sm:$0xff]   ;;  %v6154_v59 = vld [vmem:[%s7825_s1 + $0x6f0] sm:$0xff]   ;;  %v6157_v43 = vld [vmem:[%s7825_s1 + $0x638] sm:$0xff]  }
 0x12c   :  { %v3298_v2 = vadd.f32 %v5025_v61, %v7140_v47  ;;  %v7323_v4 = vadd.f32 %v5074_v58, %v3295_v60  ;;  %4046 = vmatmul.mubr.bf16.gmra.mrb[132].mxu1 %v6127_v56  ;;  %v6133_v47 = vld [vmem:[%s7825_s1 + $0x698] sm:$0xff]   ;;  %5582 = vmatprep.subr.bf16.mxu1 %v6132_v5  ;;  %v6152_v58 = vld [vmem:[%s7826_s0 + $0x528] ss:$124 sps:$4 sm:$0xff]   ;;  %v6155_v62 = vld [vmem:[%s7825_s1 + $0x6b0] sm:$0xff]  }
 0x12d   :  { %3972 = vmatprep.mubr.bf16.mxu0 %v6135_v20  ;;  %4053 = vmatprep.mubr.bf16.mxu1 %v6137_v23  ;;  %v6162_v20 = vld [vmem:[%s7826_s0 + $0x64] ss:$124 sps:$4 sm:$0xff]  }
 0x12e   :  { %v7331_v7 = vadd.f32 %v5077_v0, %v3298_v2  ;;  %v5026_v8 = vpop.f32.mrb[28].mxu0 }
 0x12f   :  { %v5027_v9 = vpop.f32.mrb[29].mxu0  ;;  %v5078_v10 = vpop.f32.mrb[28].mxu1  ;;  %5583 = vmatpush3.bf16.msra.mxu1 %v6133_v47  ;;  %v6158_v47 = vld [vmem:[%s7825_s1 + $0x6f8] sm:$0xff]  }
 0x130   :  { %v5028_v11 = vadd.f32 %v5027_v9, %v5026_v8  ;;  %v5029_v12 = vpop.f32.mrb[30].mxu0  ;;  %v5079_v14 = vpop.f32.mrb[29].mxu1  ;;  %5584 = vmatprep.subr.bf16.mxu1 %v6142_v32 }
 0x131   :  { %v5030_v17 = vpop.f32.mrb[31].mxu0  ;;  %v5080_v18 = vadd.f32 %v5079_v14, %v5078_v10  ;;  %v5081_v19 = vpop.f32.mrb[30].mxu1 }
 0x132   :  { %v3303_v21 = vadd.f32 %v5028_v11, %v7166_v3  ;;  %v5031_v22 = vadd.f32 %v5030_v17, %v5029_v12  ;;  %v5082_v25 = vpop.f32.mrb[31].mxu1  ;;  %v6141_v3 = vld [vmem:[%s7826_s0 + $0x438] ss:$124 sps:$4 sm:$0xff]   ;;  %v6160_v17 = vld [vmem:[%s7826_s0 + $0x60] ss:$124 sps:$4 sm:$0xff]  }
 0x133   :  { %v5083_v31 = vadd.f32 %v5082_v25, %v5081_v19  ;;  %3973 = vmatmul.mubr.bf16.gmra.mrb[136].mxu0 %v6140_v26  ;;  %5585 = vmatpush3.bf16.msra.mxu1 %v6143_v33  ;;  %v6159_v11 = vld [vmem:[%s7825_s1 + $0x6b8] sm:$0xff]  }
 0x134   :  { %v3306_v28 = vadd.f32 %v5031_v22, %v7171_v6  ;;  %v7356_v30 = vadd.f32 %v5080_v18, %v3303_v21  ;;  %4054 = vmatmul.mubr.bf16.gmra.mrb[136].mxu1 %v6141_v3  ;;  %v6144_v6 = vld [vmem:[%s7825_s1 + $0x670] sm:$0xff]   ;;  %5586 = vmatprep.subr.bf16.mxu1 %v6145_v38  ;;  %v6163_v21 = vld [vmem:[%s7826_s0 + $0x68] ss:$124 sps:$4 sm:$0xff]  }
 0x135   :  { %5536 = vmatprep.subr.bf16.mxu0 %v6144_v6  ;;  %3980 = vmatprep.mubr.bf16.mxu0 %v6148_v55  ;;  %v6165_v22 = vld [vmem:[%s7826_s0 + $0x6c] ss:$124 sps:$4 sm:$0xff]  }
 0x136   :  { %v7364_v34 = vadd.f32 %v5083_v31, %v3306_v28  ;;  %v5032_v35 = vpop.f32.mrb[32].mxu0  ;;  %5537 = vmatpush3.bf16.msra.mxu0 %v6146_v44  ;;  %v6168_v31 = vld [vmem:[%s7825_s1 + $0x748] sm:$0xff]   ;;  %v6171_v44 = vld [vmem:[%s7826_s0 + $0x164] ss:$124 sps:$4 sm:$0xff]  }
 0x137   :  { %v5033_v37 = vpop.f32.mrb[33].mxu0  ;;  %v5084_v42 = vpop.f32.mrb[32].mxu1  ;;  %5587 = vmatpush3.bf16.msra.mxu1 %v6147_v48  ;;  %5538 = vmatprep.subr.bf16.mxu0 %v6156_v1  ;;  %v6180_v1 = vld [vmem:[%s7826_s0 + $0x25c] ss:$124 sps:$4 sm:$0xff]  }
 0x138   :  { %v5034_v39 = vadd.f32 %v5033_v37, %v5032_v35  ;;  %v5035_v41 = vpop.f32.mrb[34].mxu0  ;;  %v5085_v51 = vpop.f32.mrb[33].mxu1  ;;  %5588 = vmatprep.subr.bf16.mxu1 %v6154_v59 }
 0x139   :  { %v5036_v45 = vpop.f32.mrb[35].mxu0  ;;  %v5086_v52 = vadd.f32 %v5085_v51, %v5084_v42  ;;  %v5087_v53 = vpop.f32.mrb[34].mxu1 }
 0x13a   :  { %v3311_v46 = vadd.f32 %v5034_v39, %v7200_v27  ;;  %v5037_v49 = vadd.f32 %v5036_v45, %v5035_v41  ;;  %v6150_v27 = vld [vmem:[%s7826_s0 + $0x534] ss:$124 sps:$4 sm:$0xff]   ;;  %v5088_v57 = vpop.f32.mrb[35].mxu1  ;;  %5539 = vmatpush3.bf16.msra.mxu0 %v6157_v43  ;;  %v6169_v41 = vld [vmem:[%s7826_s0 + $0x15c] ss:$124 sps:$4 sm:$0xff]  }
 0x13b   :  { %v5089_v61 = vadd.f32 %v5088_v57, %v5087_v53  ;;  %4061 = vmatprep.mubr.bf16.mxu1 %v6150_v27  ;;  %3981 = vmatmul.mubr.bf16.gmra.mrb[140].mxu0 %v6152_v58  ;;  %v6175_v53 = vld [vmem:[%s7826_s0 + $0x160] ss:$124 sps:$4 sm:$0xff]   ;;  %v6177_v57 = vld [vmem:[%s7825_s1 + $0x710] sm:$0xff]  }
 0x13c   :  { %v3314_v56 = vadd.f32 %v5037_v49, %v7202_v29  ;;  %v7392_v60 = vadd.f32 %v5086_v52, %v3311_v46  ;;  %v6153_v29 = vld [vmem:[%s7826_s0 + $0x530] ss:$124 sps:$4 sm:$0xff]   ;;  %5589 = vmatpush3.bf16.msra.mxu1 %v6155_v62  ;;  %4102 = vmatprep.mubr.bf16.mxu0 %v6162_v20  ;;  %v6174_v52 = vld [vmem:[%s7826_s0 + $0x158] ss:$124 sps:$4 sm:$0xff]  }
 0x13d   :  { %4062 = vmatmul.mubr.bf16.gmra.mrb[140].mxu1 %v6153_v29  ;;  %5590 = vmatprep.subr.bf16.mxu1 %v6158_v47  ;;  %v6173_v49 = vld [vmem:[%s7825_s1 + $0x708] sm:$0xff]  }
 0x13e   :  { %v5038_v63 = vpop.f32.mrb[36].mxu0  ;;  %v7400_v0 = vadd.f32 %v5089_v61, %v3314_v56  ;;  %4183 = vmatprep.mubr.bf16.mxu1 %v6165_v22  ;;  %5628 = vmatprep.subr.bf16.mxu0 %v6166_v24  ;;  %v6176_v56 = vld [vmem:[%s7825_s1 + $0x750] sm:$0xff]  }
 0x13f   :  { %v5039_v2 = vpop.f32.mrb[37].mxu0  ;;  %v5090_v9 = vpop.f32.mrb[36].mxu1  ;;  %v6182_v47 = vld [vmem:[%s7826_s0 + $0x250] ss:$124 sps:$4 sm:$0xff]  }
 0x140   :  { %v5040_v5 = vadd.f32 %v5039_v2, %v5038_v63  ;;  %v5041_v8 = vpop.f32.mrb[38].mxu0  ;;  %v5091_v16 = vpop.f32.mrb[37].mxu1  ;;  %5591 = vmatpush3.bf16.msra.mxu1 %v6159_v11  ;;  %v6184_v2 = vld [vmem:[%s7825_s1 + $0x758] sm:$0xff]  }
 0x141   :  { %v5042_v12 = vpop.f32.mrb[39].mxu0  ;;  %v5092_v18 = vadd.f32 %v5091_v16, %v5090_v9  ;;  %v5093_v19 = vpop.f32.mrb[38].mxu1  ;;  %5704 = vmatprep.subr.bf16.mxu1 %v6166_v24 }
 0x142   :  { %v3319_v10 = vadd.f32 %v5040_v5, %v7225_v50  ;;  %v5043_v14 = vadd.f32 %v5042_v12, %v5041_v8  ;;  %v5094_v23 = vpop.f32.mrb[39].mxu1  ;;  %v6183_v12 = vld [vmem:[%s7826_s0 + $0x258] ss:$124 sps:$4 sm:$0xff]  }
 0x143   :  { %v5095_v26 = vadd.f32 %v5094_v23, %v5093_v19  ;;  %4103 = vmatmul.mubr.bf16.vlgmr.msra.gmra.mrb[144].mxu0 %v6160_v17  ;;  %v6188_v19 = vld [vmem:[%s7826_s0 + $0x354] ss:$124 sps:$4 sm:$0xff]  }
 0x144   :  { %v3322_v50 = vadd.f32 %v5043_v14, %v7233_v54  ;;  %v7431_v25 = vadd.f32 %v5092_v18, %v3319_v10  ;;  %v6167_v54 = vld [vmem:[%s7825_s1 + $0x700] sm:$0xff]   ;;  %4110 = vmatprep.mubr.bf16.mxu0 %v6169_v41  ;;  %v6185_v14 = vld [vmem:[%s7825_s1 + $0x718] sm:$0xff]  }
 0x145   :  { %4184 = vmatmul.mubr.bf16.vlgmr.msra.gmra.mrb[144].mxu1 %v6163_v21  ;;  %5629 = vmatpush3.bf16.msra.mxu0 %v6167_v54  ;;  %v6192_v21 = vld [vmem:[%s7825_s1 + $0x760] sm:$0xff]  }
 0x146   :  { %v5044_v3 = vpop.f32.mrb[40].mxu0  ;;  %v7439_v32 = vadd.f32 %v5095_v26, %v3322_v50  ;;  %5630 = vmatprep.subr.bf16.mxu0 %v6168_v31  ;;  %5712 = vmatpush3.bf16.msra.mxu1 %v6167_v54  ;;  %v6193_v54 = vld [vmem:[%s7825_s1 + $0x720] sm:$0xff]  }
 0x147   :  { %v5096_v28 = vpop.f32.mrb[40].mxu1  ;;  %v5045_v33 = vpop.f32.mrb[41].mxu0  ;;  %5705 = vmatprep.subr.bf16.mxu1 %v6168_v31  ;;  %4191 = vmatprep.mubr.bf16.mxu1 %v6171_v44 }
 0x148   :  { %v5097_v35 = vpop.f32.mrb[41].mxu1  ;;  %v5046_v6 = vadd.f32 %v5045_v33, %v5044_v3  ;;  %v5047_v37 = vpop.f32.mrb[42].mxu0  ;;  %v6194_v3 = vld [vmem:[%s7825_s1 + $0x768] sm:$0xff]  }
 0x149   :  { %v5098_v38 = vadd.f32 %v5097_v35, %v5096_v28  ;;  %v5099_v39 = vpop.f32.mrb[42].mxu1  ;;  %v5048_v42 = vpop.f32.mrb[43].mxu0  ;;  %5631 = vmatpush3.bf16.msra.mxu0 %v6173_v49  ;;  %v6190_v35 = vld [vmem:[%s7826_s0 + $0x348] ss:$124 sps:$4 sm:$0xff]  }
 0x14a   :  { %v5100_v45 = vpop.f32.mrb[43].mxu1  ;;  %v3327_v46 = vadd.f32 %v5046_v6, %v7262_v13  ;;  %v5049_v48 = vadd.f32 %v5048_v42, %v5047_v37  ;;  %5713 = vmatpush3.bf16.msra.mxu1 %v6173_v49  ;;  %5632 = vmatprep.subr.bf16.mxu0 %v6176_v56  ;;  %v6195_v42 = vld [vmem:[%s7826_s0 + $0x444] ss:$124 sps:$4 sm:$0xff]  }
 0x14b   :  { %v5101_v51 = vadd.f32 %v5100_v45, %v5099_v39  ;;  %4111 = vmatmul.mubr.bf16.gmra.mrb[148].mxu0 %v6174_v52  ;;  %5706 = vmatprep.subr.bf16.mxu1 %v6176_v56  ;;  %v6191_v39 = vld [vmem:[%s7826_s0 + $0x350] ss:$124 sps:$4 sm:$0xff]  }
 0x14c   :  { %v3330_v55 = vadd.f32 %v5049_v48, %v7264_v15  ;;  %v7458_v13 = vadd.f32 %v5098_v38, %v3327_v46  ;;  %v6178_v15 = vld [vmem:[%s7826_s0 + $0x254] ss:$124 sps:$4 sm:$0xff]   ;;  %v6197_v46 = vld [vmem:[%s7826_s0 + $0x44c] ss:$124 sps:$4 sm:$0xff]  }
 0x14d   :  { %4192 = vmatmul.mubr.bf16.gmra.mrb[148].mxu1 %v6175_v53  ;;  %5633 = vmatpush3.bf16.msra.mxu0 %v6177_v57  ;;  %v6203_v53 = vld [vmem:[%s7825_s1 + $0x730] sm:$0xff]  }
 0x14e   :  { %v5050_v27 = vpop.f32.mrb[44].mxu0  ;;  %v7466_v58 = vadd.f32 %v5101_v51, %v3330_v55  ;;  %4118 = vmatprep.mubr.bf16.mxu0 %v6178_v15  ;;  %4199 = vmatprep.mubr.bf16.mxu1 %v6180_v1  ;;  %v6202_v51 = vld [vmem:[%s7825_s1 + $0x770] sm:$0xff]   ;;  %v6200_v15 = vld [vmem:[%s7826_s0 + $0x440] ss:$124 sps:$4 sm:$0xff]  }
 0x14f   :  { %v5051_v59 = vpop.f32.mrb[45].mxu0  ;;  %v5102_v61 = vpop.f32.mrb[44].mxu1  ;;  %5634 = vmatprep.subr.bf16.mxu0 %v6184_v2  ;;  %5714 = vmatpush3.bf16.msra.mxu1 %v6177_v57 }
 0x150   :  { %v5052_v29 = vadd.f32 %v5051_v59, %v5050_v27  ;;  %v5053_v62 = vpop.f32.mrb[46].mxu0  ;;  %v5103_v63 = vpop.f32.mrb[45].mxu1  ;;  %5707 = vmatprep.subr.bf16.mxu1 %v6184_v2  ;;  %v6201_v2 = vld [vmem:[%s7826_s0 + $0x448] ss:$124 sps:$4 sm:$0xff]  }
 0x151   :  { %v5054_v43 = vpop.f32.mrb[47].mxu0  ;;  %v5104_v5 = vadd.f32 %v5103_v63, %v5102_v61  ;;  %v5105_v8 = vpop.f32.mrb[46].mxu1  ;;  %5635 = vmatpush3.bf16.msra.mxu0 %v6185_v14 }
 0x152   :  { %v3335_v9 = vadd.f32 %v5052_v29, %v7287_v36  ;;  %v5055_v10 = vadd.f32 %v5054_v43, %v5053_v62  ;;  %v5106_v11 = vpop.f32.mrb[47].mxu1  ;;  %v6186_v36 = vld [vmem:[%s7826_s0 + $0x34c] ss:$124 sps:$4 sm:$0xff]   ;;  %5636 = vmatprep.subr.bf16.mxu0 %v6192_v21  ;;  %v6210_v29 = vld [vmem:[%s7825_s1 + $0x778] sm:$0xff]  }
 0x153   :  { %v5107_v16 = vadd.f32 %v5106_v11, %v5105_v8  ;;  %4119 = vmatmul.mubr.bf16.gmra.mrb[152].mxu0 %v6182_v47  ;;  %5715 = vmatpush3.bf16.msra.mxu1 %v6185_v14  ;;  %v6204_v43 = vld [vmem:[%s7826_s0 + $0x53c] ss:$124 sps:$4 sm:$0xff]  }
 0x154   :  { %v3338_v17 = vadd.f32 %v5055_v10, %v7295_v40  ;;  %v7488_v18 = vadd.f32 %v5104_v5, %v3335_v9  ;;  %4126 = vmatprep.mubr.bf16.mxu0 %v6186_v36  ;;  %5708 = vmatprep.subr.bf16.mxu1 %v6192_v21  ;;  %v6211_v5 = vld [vmem:[%s7825_s1 + $0x738] sm:$0xff]   ;;  %v6206_v9 = vld [vmem:[%s7826_s0 + $0x544] ss:$124 sps:$4 sm:$0xff]  }
 0x155   :  { %4200 = vmatmul.mubr.bf16.gmra.mrb[152].mxu1 %v6183_v12  ;;  %5637 = vmatpush3.bf16.msra.mxu0 %v6193_v54 }
 0x156   :  { %v7496_v20 = vadd.f32 %v5107_v16, %v3338_v17  ;;  %v5124_v50 = vpop.f32.mrb[48].mxu0  ;;  %4207 = vmatprep.mubr.bf16.mxu1 %v6188_v19  ;;  %5638 = vmatprep.subr.bf16.mxu0 %v6194_v3 }
 0x157   :  { %v5125_v40 = vpop.f32.mrb[49].mxu0  ;;  %v5176_v22 = vpop.f32.mrb[48].mxu1  ;;  %5716 = vmatpush3.bf16.msra.mxu1 %v6193_v54  ;;  %v6209_v54 = vld [vmem:[%s7826_s0 + $0x540] ss:$124 sps:$4 sm:$0xff]  }
 0x158   :  { %v5126_v23 = vadd.f32 %v5125_v40, %v5124_v50  ;;  %v5127_v24 = vpop.f32.mrb[50].mxu0  ;;  %v5177_v26 = vpop.f32.mrb[49].mxu1  ;;  %5709 = vmatprep.subr.bf16.mxu1 %v6194_v3 }
 0x159   :  { %v5128_v28 = vpop.f32.mrb[51].mxu0  ;;  %v5178_v31 = vadd.f32 %v5177_v26, %v5176_v22  ;;  %v5179_v33 = vpop.f32.mrb[50].mxu1  ;;  %v6208_v26 = vld [vmem:[%s7826_s0 + $0x538] ss:$124 sps:$4 sm:$0xff]  }
 0x15a   :  { %v3457_v6 = vadd.f32 %v5126_v23, %v7323_v4  ;;  %v5129_v37 = vadd.f32 %v5128_v28, %v5127_v24  ;;  %v5180_v38 = vpop.f32.mrb[51].mxu1  ;;  %v6199_v4 = vld [vmem:[%s7825_s1 + $0x728] sm:$0xff]  }
 0x15b   :  { %v5181_v41 = vadd.f32 %v5180_v38, %v5179_v33  ;;  %5639 = vmatpush3.bf16.msra.mxu0 %v6199_v4  ;;  %5717 = vmatpush3.bf16.msra.mxu1 %v6199_v4 }
 0x15c   :  { %v3460_v44 = vadd.f32 %v5129_v37, %v7331_v7  ;;  %v7518_v45 = vadd.f32 %v5178_v31, %v3457_v6  ;;  %4127 = vmatmul.mubr.bf16.gmra.mrb[156].mxu0 %v6190_v35  ;;  %5640 = vmatprep.subr.bf16.mxu0 %v6202_v51  ;;  %v6217_v31 = vld [vmem:[%s7826_s0 + $0x54c] ss:$124 sps:$4 sm:$0xff]  }
 0x15d   :  { %4208 = vmatmul.mubr.bf16.gmra.mrb[156].mxu1 %v6191_v39  ;;  %4134 = vmatprep.mubr.bf16.mxu0 %v6195_v42 }
 0x15e   :  { %v7526_v48 = vadd.f32 %v5181_v41, %v3460_v44  ;;  %v5130_v49 = vpop.f32.mrb[52].mxu0  ;;  %4215 = vmatprep.mubr.bf16.mxu1 %v6197_v46  ;;  %5710 = vmatprep.subr.bf16.mxu1 %v6202_v51  ;;  %v6212_v51 = vld [vmem:[%s7826_s0 + $0x70] ss:$124 sps:$4 sm:$0xff]  }
 0x15f   :  { %v5131_v7 = vpop.f32.mrb[53].mxu0  ;;  %v5182_v52 = vpop.f32.mrb[52].mxu1  ;;  %5641 = vmatpush3.bf16.msra.mxu0 %v6203_v53  ;;  %5718 = vmatpush3.bf16.msra.mxu1 %v6203_v53 }
 0x160   :  { %v5132_v55 = vadd.f32 %v5131_v7, %v5130_v49  ;;  %v5133_v56 = vpop.f32.mrb[54].mxu0  ;;  %v5183_v27 = vpop.f32.mrb[53].mxu1  ;;  %5642 = vmatprep.subr.bf16.mxu0 %v6210_v29  ;;  %5711 = vmatprep.subr.bf16.mxu1 %v6210_v29 }
 0x161   :  { %v5134_v57 = vpop.f32.mrb[55].mxu0  ;;  %v5184_v59 = vadd.f32 %v5183_v27, %v5182_v52  ;;  %v5185_v61 = vpop.f32.mrb[54].mxu1 }
 0x162   :  { %v3465_v62 = vadd.f32 %v5132_v55, %v7356_v30  ;;  %v5135_v63 = vadd.f32 %v5134_v57, %v5133_v56  ;;  %v5186_v1 = vpop.f32.mrb[55].mxu1  ;;  %v6215_v55 = vld [vmem:[%s7826_s0 + $0x548] ss:$124 sps:$4 sm:$0xff]  }
 0x163   :  { %v5187_v8 = vadd.f32 %v5186_v1, %v5185_v61  ;;  %5643 = vmatpush3.bf16.msra.mxu0 %v6211_v5  ;;  %5719 = vmatpush3.bf16.msra.mxu1 %v6211_v5  ;;  %v6220_v56 = vld [vmem:[%s7826_s0 + $0x16c] ss:$124 sps:$4 sm:$0xff]  }
 0x164   :  { %v3468_v30 = vadd.f32 %v5135_v63, %v7364_v34  ;;  %v7551_v47 = vadd.f32 %v5184_v59, %v3465_v62  ;;  %4135 = vmatmul.mubr.bf16.gmra.mrb[160].mxu0 %v6200_v15  ;;  %v6218_v34 = vld [vmem:[%s7825_s1 + $0x780] sm:$0xff]  }
 0x165   :  { %4216 = vmatmul.mubr.bf16.gmra.mrb[160].mxu1 %v6201_v2  ;;  %4142 = vmatprep.mubr.bf16.mxu0 %v6204_v43 }
 0x166   :  { %v7556_v10 = vadd.f32 %v5187_v8, %v3468_v30  ;;  %v5136_v11 = vpop.f32.mrb[56].mxu0  ;;  %4223 = vmatprep.mubr.bf16.mxu1 %v6206_v9  ;;  %5688 = vmatprep.subr.bf16.mxu1 %v6218_v34  ;;  %v6223_v9 = vld [vmem:[%s7826_s0 + $0x168] ss:$124 sps:$4 sm:$0xff]  }
 0x167   :  { %v5137_v12 = vpop.f32.mrb[57].mxu0  ;;  %v5188_v14 = vpop.f32.mrb[56].mxu1 }
 0x168   :  { %v5138_v16 = vadd.f32 %v5137_v12, %v5136_v11  ;;  %v5139_v17 = vpop.f32.mrb[58].mxu0  ;;  %v5189_v36 = vpop.f32.mrb[57].mxu1 }
 0x169   :  { %v5140_v19 = vpop.f32.mrb[59].mxu0  ;;  %v5190_v50 = vadd.f32 %v5189_v36, %v5188_v14  ;;  %v5191_v21 = vpop.f32.mrb[58].mxu1  ;;  %v6224_v14 = vld [vmem:[%s7826_s0 + $0x170] ss:$124 sps:$4 sm:$0xff]  }
 0x16a   :  { %v3473_v40 = vadd.f32 %v5138_v16, %v7392_v60  ;;  %v5141_v22 = vadd.f32 %v5140_v19, %v5139_v17  ;;  %v5192_v23 = vpop.f32.mrb[59].mxu1  ;;  %v6214_v60 = vld [vmem:[%s7826_s0 + $0x74] ss:$124 sps:$4 sm:$0xff]   ;;  %v6227_v16 = vld [vmem:[%s7826_s0 + $0x268] ss:$124 sps:$4 sm:$0xff]  }
 0x16b   :  { %v5193_v24 = vadd.f32 %v5192_v23, %v5191_v21 }
 0x16c   :  { %v3476_v3 = vadd.f32 %v5141_v22, %v7400_v0  ;;  %v7569_v28 = vadd.f32 %v5190_v50, %v3473_v40  ;;  %4143 = vmatmul.mubr.bf16.gmra.mrb[164].mxu0 %v6208_v26 }
 0x16d   :  { %4224 = vmatmul.mubr.bf16.gmra.mrb[164].mxu1 %v6209_v54  ;;  %4264 = vmatprep.mubr.bf16.mxu0 %v6214_v60  ;;  %v6228_v60 = vld [vmem:[%s7826_s0 + $0x260] ss:$124 sps:$4 sm:$0xff]  }
 0x16e   :  { %v7577_v33 = vadd.f32 %v5193_v24, %v3476_v3  ;;  %v5142_v35 = vpop.f32.mrb[60].mxu0  ;;  %4304 = vmatprep.mubr.bf16.mxu1 %v6217_v31 }
 0x16f   :  { %v5143_v6 = vpop.f32.mrb[61].mxu0  ;;  %v5194_v37 = vpop.f32.mrb[60].mxu1 }
 0x170   :  { %v5144_v38 = vadd.f32 %v5143_v6, %v5142_v35  ;;  %v5145_v39 = vpop.f32.mrb[62].mxu0  ;;  %v5195_v0 = vpop.f32.mrb[61].mxu1  ;;  %v6229_v6 = vld [vmem:[%s7826_s0 + $0x360] ss:$124 sps:$4 sm:$0xff]  }
 0x171   :  { %v5146_v41 = vpop.f32.mrb[63].mxu0  ;;  %v5196_v42 = vadd.f32 %v5195_v0, %v5194_v37  ;;  %v5197_v44 = vpop.f32.mrb[62].mxu1  ;;  %v6230_v37 = vld [vmem:[%s7826_s0 + $0x35c] ss:$124 sps:$4 sm:$0xff]  }
 0x172   :  { %v3481_v4 = vadd.f32 %v5144_v38, %v7431_v25  ;;  %v5147_v46 = vadd.f32 %v5146_v41, %v5145_v39  ;;  %v5198_v49 = vpop.f32.mrb[63].mxu1  ;;  %v6222_v25 = vld [vmem:[%s7826_s0 + $0x78] ss:$124 sps:$4 sm:$0xff]  }
 0x173   :  { %v5199_v7 = vadd.f32 %v5198_v49, %v5197_v44 }
 0x174   :  { %v3484_v52 = vadd.f32 %v5147_v46, %v7439_v32  ;;  %v7584_v53 = vadd.f32 %v5196_v42, %v3481_v4  ;;  %v6219_v32 = vld [vmem:[%s7825_s1 + $0x788] sm:$0xff]   ;;  %4265 = vmatmul.mubr.bf16.vlgmr.msra.gmra.mrb[168].mxu0 %v6212_v51 }
 0x175   :  { %4305 = vmatmul.mubr.bf16.vlgmr.msra.gmra.mrb[168].mxu1 %v6215_v55  ;;  %4272 = vmatprep.mubr.bf16.mxu0 %v6220_v56  ;;  %v6233_v56 = vld [vmem:[%s7826_s0 + $0x358] ss:$124 sps:$4 sm:$0xff]  }
 0x176   :  { %v7595_v27 = vadd.f32 %v5199_v7, %v3484_v52  ;;  %v5148_v57 = vpop.f32.mrb[64].mxu0  ;;  %5689 = vmatpush3.bf16.msra.mxu1 %v6218_v34  ;;  %5692 = vmatprep.mubr.msk.bf16.mxu1 %vm3079_vm0, %v6222_v25 }
 0x177   :  { %v5149_v59 = vpop.f32.mrb[65].mxu0  ;;  %v5200_v61 = vpop.f32.mrb[64].mxu1  ;;  %5690 = vmatprep.subr.bf16.mxu1 %v6219_v32 }
 0x178   :  { %v5150_v15 = vadd.f32 %v5149_v59, %v5148_v57  ;;  %v5151_v29 = vpop.f32.mrb[66].mxu0  ;;  %v5201_v62 = vpop.f32.mrb[65].mxu1  ;;  %v6235_v59 = vld [vmem:[%s7826_s0 + $0x454] ss:$124 sps:$4 sm:$0xff]  }
 0x179   :  { %v5152_v63 = vpop.f32.mrb[67].mxu0  ;;  %v5202_v1 = vadd.f32 %v5201_v62, %v5200_v61  ;;  %v5203_v2 = vpop.f32.mrb[66].mxu1 }
 0x17a   :  { %v3489_v43 = vadd.f32 %v5150_v15, %v7458_v13  ;;  %v5153_v5 = vadd.f32 %v5152_v63, %v5151_v29  ;;  %v5204_v8 = vpop.f32.mrb[67].mxu1  ;;  %v6225_v13 = vld [vmem:[%s7826_s0 + $0x264] ss:$124 sps:$4 sm:$0xff]   ;;  %5691 = vmatpush3.bf16.msra.mxu1 %v6219_v32  ;;  %v6234_v32 = vld [vmem:[%s7826_s0 + $0x550] ss:$124 sps:$4 sm:$0xff]  }
 0x17b   :  { %v5205_v30 = vadd.f32 %v5204_v8, %v5203_v2 }
 0x17c   :  { %v3492_v11 = vadd.f32 %v5153_v5, %v7466_v58  ;;  %v7606_v12 = vadd.f32 %v5202_v1, %v3489_v43  ;;  %4273 = vmatmul.mubr.bf16.gmra.mrb[172].mxu0 %v6223_v9 }
 0x17d   :  { %5693 = vmatmul.mubr.msk.bf16.vlgmr.msra.gmra.mrb[172].mxu1 %vm3079_vm0, %v6224_v14  ;;  %4280 = vmatprep.mubr.bf16.mxu0 %v6225_v13 }
 0x17e   :  { %v7617_v17 = vadd.f32 %v5205_v30, %v3492_v11  ;;  %v5154_v36 = vpop.f32.mrb[68].mxu0  ;;  %5696 = vmatprep.mubr.msk.bf16.mxu1 %vm3079_vm0, %v6227_v16  ;;  %v6237_v11 = vld [vmem:[%s7826_s0 + $0x450] ss:$124 sps:$4 sm:$0xff]  }
 0x17f   :  { %v5155_v58 = vpop.f32.mrb[69].mxu0  ;;  %v5206_v34 = vpop.f32.mrb[68].mxu1 }
 0x180   :  { %v5156_v19 = vadd.f32 %v5155_v58, %v5154_v36  ;;  %v5157_v50 = vpop.f32.mrb[70].mxu0  ;;  %v5207_v21 = vpop.f32.mrb[69].mxu1 }
 0x181   :  { %v5158_v40 = vpop.f32.mrb[71].mxu0  ;;  %v5208_v22 = vadd.f32 %v5207_v21, %v5206_v34  ;;  %v5209_v23 = vpop.f32.mrb[70].mxu1 }
 0x182   :  { %v3497_v24 = vadd.f32 %v5156_v19, %v7488_v18  ;;  %v5159_v26 = vadd.f32 %v5158_v40, %v5157_v50  ;;  %v5210_v54 = vpop.f32.mrb[71].mxu1  ;;  %v6232_v18 = vld [vmem:[%s7826_s0 + $0x458] ss:$124 sps:$4 sm:$0xff]  }
 0x183   :  { %v5211_v3 = vadd.f32 %v5210_v54, %v5209_v23 }
 0x184   :  { %v3500_v31 = vadd.f32 %v5159_v26, %v7496_v20  ;;  %v7626_v35 = vadd.f32 %v5208_v22, %v3497_v24  ;;  %4281 = vmatmul.mubr.bf16.gmra.mrb[176].mxu0 %v6228_v60 }
 0x185   :  { %5697 = vmatmul.mubr.msk.bf16.gmra.mrb[176].mxu1 %vm3079_vm0, %v6229_v6  ;;  %4288 = vmatprep.mubr.bf16.mxu0 %v6230_v37 }
 0x186   :  { %v7637_v38 = vadd.f32 %v5211_v3, %v3500_v31  ;;  %v5228_v39 = vpop.f32.mrb[72].mxu0  ;;  %5700 = vmatprep.mubr.msk.bf16.mxu1 %vm3079_vm0, %v6232_v18 }
 0x187   :  { %v5229_v0 = vpop.f32.mrb[73].mxu0  ;;  %v5280_v20 = vpop.f32.mrb[72].mxu1 }
 0x188   :  { %v5230_v41 = vadd.f32 %v5229_v0, %v5228_v39  ;;  %v5231_v42 = vpop.f32.mrb[74].mxu0  ;;  %v5281_v44 = vpop.f32.mrb[73].mxu1 }
 0x189   :  { %v5232_v4 = vpop.f32.mrb[75].mxu0  ;;  %v5282_v46 = vadd.f32 %v5281_v44, %v5280_v20  ;;  %v5283_v49 = vpop.f32.mrb[74].mxu1 }
 0x18a   :  { %v3619_v51 = vadd.f32 %v5230_v41, %v7518_v45  ;;  %v5233_v7 = vadd.f32 %v5232_v4, %v5231_v42  ;;  %v5284_v52 = vpop.f32.mrb[75].mxu1 }
 0x18b   :  { %v5285_v55 = vadd.f32 %v5284_v52, %v5283_v49 }
 0x18c   :  { %v3622_v25 = vadd.f32 %v5233_v7, %v7526_v48  ;;  %v7646_v57 = vadd.f32 %v5282_v46, %v3619_v51  ;;  %4289 = vmatmul.mubr.bf16.gmra.mrb[180].mxu0 %v6233_v56 }
 0x18d   :  { %5701 = vmatmul.mubr.msk.bf16.gmra.mrb[180].mxu1 %vm3079_vm0, %v6234_v32  ;;  %4296 = vmatprep.mubr.bf16.mxu0 %v6235_v59 }
 0x18e   :  { %v7654_v45 = vadd.f32 %v5285_v55, %v3622_v25  ;;  %v5234_v61 = vpop.f32.mrb[76].mxu0 }
 0x18f   :  { %v5235_v15 = vpop.f32.mrb[77].mxu0  ;;  %v5286_v29 = vpop.f32.mrb[76].mxu1 }
 0x190   :  { %v5236_v62 = vadd.f32 %v5235_v15, %v5234_v61  ;;  %v5237_v48 = vpop.f32.mrb[78].mxu0  ;;  %v5287_v63 = vpop.f32.mrb[77].mxu1 }
 0x191   :  { %v5238_v1 = vpop.f32.mrb[79].mxu0  ;;  %v5288_v2 = vadd.f32 %v5287_v63, %v5286_v29  ;;  %v5289_v43 = vpop.f32.mrb[78].mxu1 }
 0x192   :  { %v3627_v5 = vadd.f32 %v5236_v62, %v7551_v47  ;;  %v5239_v8 = vadd.f32 %v5238_v1, %v5237_v48  ;;  %v5290_v30 = vpop.f32.mrb[79].mxu1 }
 0x193   :  { %v5291_v9 = vadd.f32 %v5290_v30, %v5289_v43 }
 0x194   :  { %v3630_v14 = vadd.f32 %v5239_v8, %v7556_v10  ;;  %v7662_v13 = vadd.f32 %v5288_v2, %v3627_v5  ;;  %4297 = vmatmul.mubr.bf16.gmra.mrb[184].mxu0 %v6237_v11 }
 0x196   :  { %v7664_v16 = vadd.f32 %v5291_v9, %v3630_v14  ;;  %v5240_v36 = vpop.f32.mrb[80].mxu0 }
 0x197   :  { %v5241_v58 = vpop.f32.mrb[81].mxu0  ;;  %v5292_v34 = vpop.f32.mrb[80].mxu1 }
 0x198   :  { %v5242_v19 = vadd.f32 %v5241_v58, %v5240_v36  ;;  %v5243_v50 = vpop.f32.mrb[82].mxu0  ;;  %v5293_v47 = vpop.f32.mrb[81].mxu1 }
 0x199   :  { %v5244_v21 = vpop.f32.mrb[83].mxu0  ;;  %v5294_v40 = vadd.f32 %v5293_v47, %v5292_v34  ;;  %v5295_v22 = vpop.f32.mrb[82].mxu1 }
 0x19a   :  { %v3635_v23 = vadd.f32 %v5242_v19, %v7569_v28  ;;  %v5245_v24 = vadd.f32 %v5244_v21, %v5243_v50  ;;  %v5296_v26 = vpop.f32.mrb[83].mxu1 }
 0x19b   :  { %v5297_v54 = vadd.f32 %v5296_v26, %v5295_v22 }
 0x19c   :  { %v3638_v10 = vadd.f32 %v5245_v24, %v7577_v33  ;;  %v7668_v3 = vadd.f32 %v5294_v40, %v3635_v23 }
 0x19e   :  { %v7670_v60 = vadd.f32 %v5297_v54, %v3638_v10  ;;  %v5246_v31 = vpop.f32.mrb[84].mxu0 }
 0x19f   :  { %v5247_v6 = vpop.f32.mrb[85].mxu0  ;;  %v5298_v37 = vpop.f32.mrb[84].mxu1 }
 0x1a0   :  { %v5248_v18 = vadd.f32 %v5247_v6, %v5246_v31  ;;  %v5249_v39 = vpop.f32.mrb[86].mxu0  ;;  %v5299_v0 = vpop.f32.mrb[85].mxu1 }
 0x1a1   :  { %v5250_v20 = vpop.f32.mrb[87].mxu0  ;;  %v5300_v41 = vadd.f32 %v5299_v0, %v5298_v37  ;;  %v5301_v42 = vpop.f32.mrb[86].mxu1 }
 0x1a2   :  { %v3643_v28 = vadd.f32 %v5248_v18, %v7584_v53  ;;  %v5251_v44 = vadd.f32 %v5250_v20, %v5249_v39  ;;  %v5302_v4 = vpop.f32.mrb[87].mxu1 }
 0x1a3   :  { %v5303_v46 = vadd.f32 %v5302_v4, %v5301_v42 }
 0x1a4   :  { %v3646_v33 = vadd.f32 %v5251_v44, %v7595_v27  ;;  %v7674_v49 = vadd.f32 %v5300_v41, %v3643_v28 }
 0x1a6   :  { %v7676_v51 = vadd.f32 %v5303_v46, %v3646_v33  ;;  %v5252_v7 = vpop.f32.mrb[88].mxu0 }
 0x1a7   :  { %v5253_v52 = vpop.f32.mrb[89].mxu0  ;;  %v5304_v55 = vpop.f32.mrb[88].mxu1 }
 0x1a8   :  { %v5254_v56 = vadd.f32 %v5253_v52, %v5252_v7  ;;  %v5255_v25 = vpop.f32.mrb[90].mxu0  ;;  %v5305_v32 = vpop.f32.mrb[89].mxu1 }
 0x1a9   :  { %v5256_v59 = vpop.f32.mrb[91].mxu0  ;;  %v5306_v61 = vadd.f32 %v5305_v32, %v5304_v55  ;;  %v5307_v15 = vpop.f32.mrb[90].mxu1 }
 0x1aa   :  { %v3651_v53 = vadd.f32 %v5254_v56, %v7606_v12  ;;  %v5257_v29 = vadd.f32 %v5256_v59, %v5255_v25  ;;  %v5308_v62 = vpop.f32.mrb[91].mxu1 }
 0x1ab   :  { %v5309_v48 = vadd.f32 %v5308_v62, %v5307_v15 }
 0x1ac   :  { %v3654_v27 = vadd.f32 %v5257_v29, %v7617_v17  ;;  %v7680_v63 = vadd.f32 %v5306_v61, %v3651_v53 }
 0x1ae   :  { %v7682_v1 = vadd.f32 %v5309_v48, %v3654_v27  ;;  %v5258_v2 = vpop.f32.mrb[92].mxu0 }
 0x1af   :  { %v5259_v43 = vpop.f32.mrb[93].mxu0  ;;  %v5310_v5 = vpop.f32.mrb[92].mxu1 }
 0x1b0   :  { %v5260_v8 = vadd.f32 %v5259_v43, %v5258_v2  ;;  %v5261_v30 = vpop.f32.mrb[94].mxu0  ;;  %v5311_v9 = vpop.f32.mrb[93].mxu1 }
 0x1b1   :  { %v5262_v11 = vpop.f32.mrb[95].mxu0  ;;  %v5312_v14 = vadd.f32 %v5311_v9, %v5310_v5  ;;  %v5313_v36 = vpop.f32.mrb[94].mxu1 }
 0x1b2   :  { %v3659_v12 = vadd.f32 %v5260_v8, %v7626_v35  ;;  %v5263_v58 = vadd.f32 %v5262_v11, %v5261_v30  ;;  %v5314_v34 = vpop.f32.mrb[95].mxu1 }
 0x1b3   :  { %v5315_v19 = vadd.f32 %v5314_v34, %v5313_v36 }
 0x1b4   :  { %v3662_v17 = vadd.f32 %v5263_v58, %v7637_v38  ;;  %v7686_v50 = vadd.f32 %v5312_v14, %v3659_v12 }
 0x1b6   :  { %v7688_v47 = vadd.f32 %v5315_v19, %v3662_v17  ;;  %v5332_v21 = vpop.f32.mrb[96].mxu0 }
 0x1b7   :  { %v5333_v40 = vpop.f32.mrb[97].mxu0  ;;  %v5384_v22 = vpop.f32.mrb[96].mxu1 }
 0x1b8   :  { %v5334_v23 = vadd.f32 %v5333_v40, %v5332_v21  ;;  %v5335_v24 = vpop.f32.mrb[98].mxu0  ;;  %v5385_v26 = vpop.f32.mrb[97].mxu1 }
 0x1b9   :  { %v5336_v54 = vpop.f32.mrb[99].mxu0  ;;  %v5386_v10 = vadd.f32 %v5385_v26, %v5384_v22  ;;  %v5387_v31 = vpop.f32.mrb[98].mxu1 }
 0x1ba   :  { %v3781_v35 = vadd.f32 %v5334_v23, %v7646_v57  ;;  %v5337_v6 = vadd.f32 %v5336_v54, %v5335_v24  ;;  %v5388_v37 = vpop.f32.mrb[99].mxu1 }
 0x1bb   :  { %v5389_v18 = vadd.f32 %v5388_v37, %v5387_v31 }
 0x1bc   :  { %v3784_v38 = vadd.f32 %v5337_v6, %v7654_v45  ;;  %v7692_v39 = vadd.f32 %v5386_v10, %v3781_v35 }
 0x1be   :  { %v7694_v0 = vadd.f32 %v5389_v18, %v3784_v38  ;;  %v5338_v20 = vpop.f32.mrb[100].mxu0 }
 0x1bf   :  { %v5339_v41 = vpop.f32.mrb[101].mxu0  ;;  %v5390_v42 = vpop.f32.mrb[100].mxu1 }
 0x1c0   :  { %v5340_v28 = vadd.f32 %v5339_v41, %v5338_v20  ;;  %v5341_v44 = vpop.f32.mrb[102].mxu0  ;;  %v5391_v4 = vpop.f32.mrb[101].mxu1 }
 0x1c1   :  { %v5342_v46 = vpop.f32.mrb[103].mxu0  ;;  %v5392_v33 = vadd.f32 %v5391_v4, %v5390_v42  ;;  %v5393_v7 = vpop.f32.mrb[102].mxu1 }
 0x1c2   :  { %v3789_v57 = vadd.f32 %v5340_v28, %v7662_v13  ;;  %v5343_v52 = vadd.f32 %v5342_v46, %v5341_v44  ;;  %v5394_v55 = vpop.f32.mrb[103].mxu1 }
 0x1c3   :  { %v5395_v56 = vadd.f32 %v5394_v55, %v5393_v7 }
 0x1c4   :  { %v3792_v45 = vadd.f32 %v5343_v52, %v7664_v16  ;;  %v7698_v25 = vadd.f32 %v5392_v33, %v3789_v57 }
 0x1c6   :  { %v7700_v32 = vadd.f32 %v5395_v56, %v3792_v45  ;;  %v5344_v59 = vpop.f32.mrb[104].mxu0 }
 0x1c7   :  { %v5345_v61 = vpop.f32.mrb[105].mxu0  ;;  %v5396_v15 = vpop.f32.mrb[104].mxu1 }
 0x1c8   :  { %v5346_v53 = vadd.f32 %v5345_v61, %v5344_v59  ;;  %v5347_v29 = vpop.f32.mrb[106].mxu0  ;;  %v5397_v62 = vpop.f32.mrb[105].mxu1 }
 0x1c9   :  { %v5348_v48 = vpop.f32.mrb[107].mxu0  ;;  %v5398_v27 = vadd.f32 %v5397_v62, %v5396_v15  ;;  %v5399_v2 = vpop.f32.mrb[106].mxu1 }
 0x1ca   :  { %v3797_v13 = vadd.f32 %v5346_v53, %v7668_v3  ;;  %v5349_v43 = vadd.f32 %v5348_v48, %v5347_v29  ;;  %v5400_v5 = vpop.f32.mrb[107].mxu1 }
 0x1cb   :  { %v5401_v8 = vadd.f32 %v5400_v5, %v5399_v2 }
 0x1cc   :  { %v3800_v16 = vadd.f32 %v5349_v43, %v7670_v60  ;;  %v7704_v30 = vadd.f32 %v5398_v27, %v3797_v13 }
 0x1ce   :  { %v7706_v9 = vadd.f32 %v5401_v8, %v3800_v16  ;;  %v5350_v11 = vpop.f32.mrb[108].mxu0 }
 0x1cf   :  { %v5351_v14 = vpop.f32.mrb[109].mxu0  ;;  %v5402_v36 = vpop.f32.mrb[108].mxu1 }
 0x1d0   :  { %v5352_v12 = vadd.f32 %v5351_v14, %v5350_v11  ;;  %v5353_v58 = vpop.f32.mrb[110].mxu0  ;;  %v5403_v34 = vpop.f32.mrb[109].mxu1 }
 0x1d1   :  { %v5354_v19 = vpop.f32.mrb[111].mxu0  ;;  %v5404_v17 = vadd.f32 %v5403_v34, %v5402_v36  ;;  %v5405_v21 = vpop.f32.mrb[110].mxu1 }
 0x1d2   :  { %v3805_v3 = vadd.f32 %v5352_v12, %v7674_v49  ;;  %v5355_v40 = vadd.f32 %v5354_v19, %v5353_v58  ;;  %v5406_v22 = vpop.f32.mrb[111].mxu1 }
 0x1d3   :  { %v5407_v23 = vadd.f32 %v5406_v22, %v5405_v21 }
 0x1d4   :  { %v3808_v60 = vadd.f32 %v5355_v40, %v7676_v51  ;;  %v7710_v24 = vadd.f32 %v5404_v17, %v3805_v3 }
 0x1d6   :  { %v7712_v26 = vadd.f32 %v5407_v23, %v3808_v60  ;;  %v5356_v54 = vpop.f32.mrb[112].mxu0 }
 0x1d7   :  { %v5357_v10 = vpop.f32.mrb[113].mxu0  ;;  %v5408_v31 = vpop.f32.mrb[112].mxu1 }
 0x1d8   :  { %v5358_v35 = vadd.f32 %v5357_v10, %v5356_v54  ;;  %v5359_v6 = vpop.f32.mrb[114].mxu0  ;;  %v5409_v37 = vpop.f32.mrb[113].mxu1 }
 0x1d9   :  { %v5360_v18 = vpop.f32.mrb[115].mxu0  ;;  %v5410_v38 = vadd.f32 %v5409_v37, %v5408_v31  ;;  %v5411_v20 = vpop.f32.mrb[114].mxu1 }
 0x1da   :  { %v3813_v49 = vadd.f32 %v5358_v35, %v7680_v63  ;;  %v5361_v41 = vadd.f32 %v5360_v18, %v5359_v6  ;;  %v5412_v42 = vpop.f32.mrb[115].mxu1 }
 0x1db   :  { %v5413_v28 = vadd.f32 %v5412_v42, %v5411_v20 }
 0x1dc   :  { %v3816_v51 = vadd.f32 %v5361_v41, %v7682_v1  ;;  %v7716_v44 = vadd.f32 %v5410_v38, %v3813_v49 }
 0x1de   :  { %v7718_v4 = vadd.f32 %v5413_v28, %v3816_v51  ;;  %v5362_v46 = vpop.f32.mrb[116].mxu0 }
 0x1df   :  { %v5414_v33 = vpop.f32.mrb[116].mxu1  ;;  %v5363_v7 = vpop.f32.mrb[117].mxu0 }
 0x1e0   :  { %v5415_v57 = vpop.f32.mrb[117].mxu1  ;;  %v5364_v52 = vadd.f32 %v5363_v7, %v5362_v46  ;;  %v5365_v55 = vpop.f32.mrb[118].mxu0 }
 0x1e1   :  { %v5416_v56 = vadd.f32 %v5415_v57, %v5414_v33  ;;  %v5417_v45 = vpop.f32.mrb[118].mxu1  ;;  %v5366_v59 = vpop.f32.mrb[119].mxu0 }
 0x1e2   :  { %v5418_v61 = vpop.f32.mrb[119].mxu1  ;;  %v3821_v63 = vadd.f32 %v5364_v52, %v7686_v50  ;;  %v5367_v15 = vadd.f32 %v5366_v59, %v5365_v55 }
 0x1e3   :  { %v5419_v53 = vadd.f32 %v5418_v61, %v5417_v45 }
 0x1e4   :  { %v3824_v1 = vadd.f32 %v5367_v15, %v7688_v47  ;;  %v7722_v29 = vadd.f32 %v5416_v56, %v3821_v63 }
 0x1e6   :  { %v7724_v62 = vadd.f32 %v5419_v53, %v3824_v1  ;;  %v5436_v48 = vpop.f32.mrb[120].mxu0 }
 0x1e7   :  { %v5437_v27 = vpop.f32.mrb[121].mxu0  ;;  %v5488_v43 = vpop.f32.mrb[120].mxu1 }
 0x1e8   :  { %v5438_v2 = vadd.f32 %v5437_v27, %v5436_v48  ;;  %v5439_v13 = vpop.f32.mrb[122].mxu0  ;;  %v5489_v8 = vpop.f32.mrb[121].mxu1 }
 0x1e9   :  { %v5440_v5 = vpop.f32.mrb[123].mxu0  ;;  %v5490_v14 = vadd.f32 %v5489_v8, %v5488_v43  ;;  %v5491_v50 = vpop.f32.mrb[122].mxu1 }
 0x1ea   :  { %v3943_v16 = vadd.f32 %v5438_v2, %v7692_v39  ;;  %v5441_v11 = vadd.f32 %v5440_v5, %v5439_v13  ;;  %v5492_v36 = vpop.f32.mrb[123].mxu1 }
 0x1eb   :  { %v5493_v58 = vadd.f32 %v5492_v36, %v5491_v50 }
 0x1ec   :  { %v3946_v12 = vadd.f32 %v5441_v11, %v7694_v0  ;;  %v7728_v47 = vadd.f32 %v5490_v14, %v3943_v16 }
 0x1ee   :  { %v7730_v34 = vadd.f32 %v5493_v58, %v3946_v12  ;;  %v5442_v19 = vpop.f32.mrb[124].mxu0 }
 0x1ef   :  { %v5443_v17 = vpop.f32.mrb[125].mxu0  ;;  %v5494_v40 = vpop.f32.mrb[124].mxu1 }
 0x1f0   :  { %v5444_v21 = vadd.f32 %v5443_v17, %v5442_v19  ;;  %v5445_v3 = vpop.f32.mrb[126].mxu0  ;;  %v5495_v23 = vpop.f32.mrb[125].mxu1 }
 0x1f1   :  { %v5446_v22 = vpop.f32.mrb[127].mxu0  ;;  %v5496_v54 = vadd.f32 %v5495_v23, %v5494_v40  ;;  %v5497_v10 = vpop.f32.mrb[126].mxu1 }
 0x1f2   :  { %v3951_v39 = vadd.f32 %v5444_v21, %v7698_v25  ;;  %v5447_v60 = vadd.f32 %v5446_v22, %v5445_v3  ;;  %v5498_v31 = vpop.f32.mrb[127].mxu1 }
 0x1f3   :  { %v5499_v6 = vadd.f32 %v5498_v31, %v5497_v10 }
 0x1f4   :  { %v3954_v0 = vadd.f32 %v5447_v60, %v7700_v32  ;;  %v7734_v35 = vadd.f32 %v5496_v54, %v3951_v39 }
 0x1f6   :  { %v7736_v37 = vadd.f32 %v5499_v6, %v3954_v0  ;;  %v5448_v18 = vpop.f32.mrb[128].mxu0 }
 0x1f7   :  { %v5449_v38 = vpop.f32.mrb[129].mxu0  ;;  %v5500_v41 = vpop.f32.mrb[128].mxu1 }
 0x1f8   :  { %v5450_v20 = vadd.f32 %v5449_v38, %v5448_v18  ;;  %v5451_v49 = vpop.f32.mrb[130].mxu0  ;;  %v5501_v28 = vpop.f32.mrb[129].mxu1 }
 0x1f9   :  { %v5452_v42 = vpop.f32.mrb[131].mxu0  ;;  %v5502_v46 = vadd.f32 %v5501_v28, %v5500_v41  ;;  %v5503_v33 = vpop.f32.mrb[130].mxu1 }
 0x1fa   :  { %v3959_v25 = vadd.f32 %v5450_v20, %v7704_v30  ;;  %v5453_v51 = vadd.f32 %v5452_v42, %v5451_v49  ;;  %v5504_v7 = vpop.f32.mrb[131].mxu1 }
 0x1fb   :  { %v5505_v52 = vadd.f32 %v5504_v7, %v5503_v33 }
 0x1fc   :  { %v3962_v32 = vadd.f32 %v5453_v51, %v7706_v9  ;;  %v7740_v57 = vadd.f32 %v5502_v46, %v3959_v25 }
 0x1fe   :  { %v7742_v55 = vadd.f32 %v5505_v52, %v3962_v32  ;;  %v5454_v56 = vpop.f32.mrb[132].mxu0 }
 0x1ff   :  { %v5455_v45 = vpop.f32.mrb[133].mxu0  ;;  %v5506_v63 = vpop.f32.mrb[132].mxu1 }
 0x200   :  { %v5456_v59 = vadd.f32 %v5455_v45, %v5454_v56  ;;  %v5457_v61 = vpop.f32.mrb[134].mxu0  ;;  %v5507_v53 = vpop.f32.mrb[133].mxu1 }
 0x201   :  { %v5458_v15 = vpop.f32.mrb[135].mxu0  ;;  %v5508_v48 = vadd.f32 %v5507_v53, %v5506_v63  ;;  %v5509_v27 = vpop.f32.mrb[134].mxu1 }
 0x202   :  { %v3967_v30 = vadd.f32 %v5456_v59, %v7710_v24  ;;  %v5459_v1 = vadd.f32 %v5458_v15, %v5457_v61  ;;  %v5510_v2 = vpop.f32.mrb[135].mxu1 }
 0x203   :  { %v5511_v43 = vadd.f32 %v5510_v2, %v5509_v27 }
 0x204   :  { %v3970_v9 = vadd.f32 %v5459_v1, %v7712_v26  ;;  %v7746_v13 = vadd.f32 %v5508_v48, %v3967_v30 }
 0x206   :  { %v7748_v5 = vadd.f32 %v5511_v43, %v3970_v9  ;;  %v5460_v8 = vpop.f32.mrb[136].mxu0 }
 0x207   :  { %v5512_v16 = vpop.f32.mrb[136].mxu1  ;;  %v5461_v11 = vpop.f32.mrb[137].mxu0 }
 0x208   :  { %v5513_v14 = vpop.f32.mrb[137].mxu1  ;;  %v5462_v50 = vadd.f32 %v5461_v11, %v5460_v8  ;;  %v5463_v36 = vpop.f32.mrb[138].mxu0 }
 0x209   :  { %v5514_v12 = vadd.f32 %v5513_v14, %v5512_v16  ;;  %v5515_v58 = vpop.f32.mrb[138].mxu1  ;;  %v5464_v24 = vpop.f32.mrb[139].mxu0 }
 0x20a   :  { %v5516_v19 = vpop.f32.mrb[139].mxu1  ;;  %v3975_v17 = vadd.f32 %v5462_v50, %v7716_v44  ;;  %v5465_v21 = vadd.f32 %v5464_v24, %v5463_v36 }
 0x20b   :  { %v5517_v3 = vadd.f32 %v5516_v19, %v5515_v58 }
 0x20c   :  { %v3978_v26 = vadd.f32 %v5465_v21, %v7718_v4  ;;  %v7752_v40 = vadd.f32 %v5514_v12, %v3975_v17 }
 0x20e   :  { %v7754_v22 = vadd.f32 %v5517_v3, %v3978_v26  ;;  %v5466_v23 = vpop.f32.mrb[140].mxu0 }
 0x20f   :  { %v5467_v39 = vpop.f32.mrb[141].mxu0 }
 0x210   :  { %v5518_v60 = vpop.f32.mrb[140].mxu1  ;;  %v5468_v54 = vadd.f32 %v5467_v39, %v5466_v23  ;;  %v5469_v10 = vpop.f32.mrb[142].mxu0 }
 0x211   :  { %v5519_v31 = vpop.f32.mrb[141].mxu1  ;;  %v5470_v0 = vpop.f32.mrb[143].mxu0 }
 0x212   :  { %v5520_v6 = vadd.f32 %v5519_v31, %v5518_v60  ;;  %v5521_v18 = vpop.f32.mrb[142].mxu1  ;;  %v3983_v38 = vadd.f32 %v5468_v54, %v7722_v29  ;;  %v5471_v44 = vadd.f32 %v5470_v0, %v5469_v10 }
 0x213   :  { %v5522_v20 = vpop.f32.mrb[143].mxu1 }
 0x214   :  { %v5523_v49 = vadd.f32 %v5522_v20, %v5521_v18  ;;  %v3986_v4 = vadd.f32 %v5471_v44, %v7724_v62  ;;  %v7758_v41 = vadd.f32 %v5520_v6, %v3983_v38 }
 0x216   :  { %v7760_v42 = vadd.f32 %v5523_v49, %v3986_v4  ;;  %v5540_v28 = vpop.f32.mrb[144].mxu0 }
 0x217   :  { %v5541_v25 = vpop.f32.mrb[145].mxu0 }
 0x218   :  { %v5592_v51 = vpop.f32.mrb[144].mxu1  ;;  %v5542_v46 = vadd.f32 %v5541_v25, %v5540_v28  ;;  %v5543_v33 = vpop.f32.mrb[146].mxu0 }
 0x219   :  { %v5593_v7 = vpop.f32.mrb[145].mxu1  ;;  %v5544_v32 = vpop.f32.mrb[147].mxu0 }
 0x21a   :  { %v5594_v52 = vadd.f32 %v5593_v7, %v5592_v51  ;;  %v5595_v56 = vpop.f32.mrb[146].mxu1  ;;  %v4105_v29 = vadd.f32 %v5542_v46, %v7728_v47  ;;  %v5545_v45 = vadd.f32 %v5544_v32, %v5543_v33 }
 0x21b   :  { %v5596_v59 = vpop.f32.mrb[147].mxu1 }
 0x21c   :  { %v5597_v61 = vadd.f32 %v5596_v59, %v5595_v56  ;;  %v4108_v62 = vadd.f32 %v5545_v45, %v7730_v34  ;;  %v7764_v63 = vadd.f32 %v5594_v52, %v4105_v29 }
 0x21e   :  { %v7766_v15 = vadd.f32 %v5597_v61, %v4108_v62  ;;  %v5546_v53 = vpop.f32.mrb[148].mxu0 }
 0x21f   :  { %v5547_v30 = vpop.f32.mrb[149].mxu0 }
 0x220   :  { %v5598_v1 = vpop.f32.mrb[148].mxu1  ;;  %v5548_v48 = vadd.f32 %v5547_v30, %v5546_v53  ;;  %v5549_v27 = vpop.f32.mrb[150].mxu0 }
 0x221   :  { %v5599_v2 = vpop.f32.mrb[149].mxu1  ;;  %v5550_v9 = vpop.f32.mrb[151].mxu0 }
 0x222   :  { %v5600_v43 = vadd.f32 %v5599_v2, %v5598_v1  ;;  %v5601_v8 = vpop.f32.mrb[150].mxu1  ;;  %v4113_v47 = vadd.f32 %v5548_v48, %v7734_v35  ;;  %v5551_v16 = vadd.f32 %v5550_v9, %v5549_v27 }
 0x223   :  { %v5602_v11 = vpop.f32.mrb[151].mxu1 }
 0x224   :  { %v5603_v14 = vadd.f32 %v5602_v11, %v5601_v8  ;;  %v4116_v34 = vadd.f32 %v5551_v16, %v7736_v37  ;;  %v7770_v50 = vadd.f32 %v5600_v43, %v4113_v47 }
 0x226   :  { %v7772_v36 = vadd.f32 %v5603_v14, %v4116_v34  ;;  %v5552_v12 = vpop.f32.mrb[152].mxu0 }
 0x227   :  { %v5553_v58 = vpop.f32.mrb[153].mxu0 }
 0x228   :  { %v5604_v24 = vpop.f32.mrb[152].mxu1  ;;  %v5554_v19 = vadd.f32 %v5553_v58, %v5552_v12  ;;  %v5555_v17 = vpop.f32.mrb[154].mxu0 }
 0x229   :  { %v5605_v21 = vpop.f32.mrb[153].mxu1  ;;  %v5556_v3 = vpop.f32.mrb[155].mxu0 }
 0x22a   :  { %v5606_v26 = vadd.f32 %v5605_v21, %v5604_v24  ;;  %v5607_v23 = vpop.f32.mrb[154].mxu1  ;;  %v4121_v35 = vadd.f32 %v5554_v19, %v7740_v57  ;;  %v5557_v39 = vadd.f32 %v5556_v3, %v5555_v17 }
 0x22b   :  { %v5608_v60 = vpop.f32.mrb[155].mxu1 }
 0x22c   :  { %v5609_v54 = vadd.f32 %v5608_v60, %v5607_v23  ;;  %v4124_v37 = vadd.f32 %v5557_v39, %v7742_v55  ;;  %v7776_v10 = vadd.f32 %v5606_v26, %v4121_v35 }
 0x22e   :  { %v7778_v31 = vadd.f32 %v5609_v54, %v4124_v37 }
 0x22f   :  { %v5558_v0 = vpop.f32.mrb[156].mxu0 }
 0x230   :  { %v5559_v6 = vpop.f32.mrb[157].mxu0  ;;  %v5610_v18 = vpop.f32.mrb[156].mxu1 }
 0x231   :  { %v5560_v38 = vadd.f32 %v5559_v6, %v5558_v0  ;;  %v5561_v44 = vpop.f32.mrb[158].mxu0  ;;  %v5611_v20 = vpop.f32.mrb[157].mxu1 }
 0x232   :  { %v5562_v49 = vpop.f32.mrb[159].mxu0  ;;  %v5612_v4 = vadd.f32 %v5611_v20, %v5610_v18  ;;  %v5613_v28 = vpop.f32.mrb[158].mxu1 }
 0x233   :  { %v4129_v57 = vadd.f32 %v5560_v38, %v7746_v13  ;;  %v5563_v25 = vadd.f32 %v5562_v49, %v5561_v44  ;;  %v5614_v51 = vpop.f32.mrb[159].mxu1 }
 0x234   :  { %v5615_v46 = vadd.f32 %v5614_v51, %v5613_v28 }
 0x235   :  { %v4132_v55 = vadd.f32 %v5563_v25, %v7748_v5  ;;  %v7782_v33 = vadd.f32 %v5612_v4, %v4129_v57 }
 0x237   :  { %v7784_v7 = vadd.f32 %v5615_v46, %v4132_v55  ;;  %v5564_v32 = vpop.f32.mrb[160].mxu0 }
 0x238   :  { %v5565_v52 = vpop.f32.mrb[161].mxu0  ;;  %v5616_v56 = vpop.f32.mrb[160].mxu1 }
 0x239   :  { %v5566_v29 = vadd.f32 %v5565_v52, %v5564_v32  ;;  %v5567_v45 = vpop.f32.mrb[162].mxu0  ;;  %v5617_v59 = vpop.f32.mrb[161].mxu1 }
 0x23a   :  { %v5568_v61 = vpop.f32.mrb[163].mxu0  ;;  %v5618_v62 = vadd.f32 %v5617_v59, %v5616_v56  ;;  %v5619_v53 = vpop.f32.mrb[162].mxu1 }
 0x23b   :  { %v4137_v13 = vadd.f32 %v5566_v29, %v7752_v40  ;;  %v5569_v30 = vadd.f32 %v5568_v61, %v5567_v45  ;;  %v5620_v1 = vpop.f32.mrb[163].mxu1 }
 0x23c   :  { %v5621_v48 = vadd.f32 %v5620_v1, %v5619_v53 }
 0x23d   :  { %v4140_v5 = vadd.f32 %v5569_v30, %v7754_v22  ;;  %v7788_v27 = vadd.f32 %v5618_v62, %v4137_v13 }
 0x23f   :  { %v7790_v2 = vadd.f32 %v5621_v48, %v4140_v5  ;;  %v5570_v9 = vpop.f32.mrb[164].mxu0 }
 0x240   :  { %v5571_v43 = vpop.f32.mrb[165].mxu0  ;;  %v5622_v8 = vpop.f32.mrb[164].mxu1 }
 0x241   :  { %v5572_v47 = vadd.f32 %v5571_v43, %v5570_v9  ;;  %v5573_v16 = vpop.f32.mrb[166].mxu0  ;;  %v5623_v11 = vpop.f32.mrb[165].mxu1 }
 0x242   :  { %v5574_v14 = vpop.f32.mrb[167].mxu0  ;;  %v5624_v34 = vadd.f32 %v5623_v11, %v5622_v8  ;;  %v5625_v12 = vpop.f32.mrb[166].mxu1 }
 0x243   :  { %v4145_v40 = vadd.f32 %v5572_v47, %v7758_v41  ;;  %v5575_v58 = vadd.f32 %v5574_v14, %v5573_v16  ;;  %v5626_v24 = vpop.f32.mrb[167].mxu1 }
 0x244   :  { %v5627_v19 = vadd.f32 %v5626_v24, %v5625_v12 }
 0x245   :  { %v4148_v22 = vadd.f32 %v5575_v58, %v7760_v42  ;;  %v4226_v17 = vadd.f32 %v5624_v34, %v4145_v40 }
 0x247   :  { %v4229_v21 = vadd.f32 %v5627_v19, %v4148_v22  ;;  %v5644_v3 = vpop.f32.mrb[168].mxu0 }
 0x248   :  { %v5674_v26 = vpop.f32.mrb[168].mxu1  ;;  %v5645_v23 = vpop.f32.mrb[169].mxu0 }
 0x249   :  { %v5646_v35 = vadd.f32 %v5645_v23, %v5644_v3  ;;  %v5675_v39 = vpop.f32.mrb[169].mxu1  ;;  %v5647_v60 = vpop.f32.mrb[170].mxu0 }
 0x24a   :  { %v5676_v54 = vadd.f32 %v5675_v39, %v5674_v26  ;;  %v5677_v37 = vpop.f32.mrb[170].mxu1  ;;  %v5648_v0 = vpop.f32.mrb[171].mxu0 }
 0x24b   :  { %v5649_v6 = vadd.f32 %v5648_v0, %v5647_v60  ;;  %v5678_v18 = vpop.f32.mrb[171].mxu1  ;;  %v4267_v41 = vadd.f32 %v5646_v35, %v7764_v63 }
 0x24c   :  { %v5679_v38 = vadd.f32 %v5678_v18, %v5677_v37  ;;  %v4307_v44 = vadd.f32 %v5676_v54, %v4226_v17 }
 0x24d   :  { %v4270_v20 = vadd.f32 %v5649_v6, %v7766_v15 }
 0x24e   :  { %v4310_v42 = vadd.f32 %v5679_v38, %v4229_v21 }
 0x24f   :  { %v5650_v49 = vpop.f32.mrb[172].mxu0 }
 0x250   :  { %v5694_v4 = vpop.f32.mrb[172].mxu1  ;;  %v5651_v28 = vpop.f32.mrb[173].mxu0 }
 0x251   :  { %v5652_v57 = vadd.f32 %v5651_v28, %v5650_v49  ;;  %v4347_v25 = vpop.f32.mrb[173].mxu1  ;;  %v5653_v51 = vpop.f32.mrb[174].mxu0  ;;  %v4892_v49 = vld [vmem:[%s7828_s3] ss:$0 sm:$0xff] }
 0x252   :  { %v7796_v46 = vadd.f32 %v4347_v25, %v4267_v41  ;;  %v5695_v55 = vpop.f32.mrb[174].mxu1  ;;  %v5654_v32 = vpop.f32.mrb[175].mxu0  ;;  %v4891_v41 = vld [vmem:[%s7827_s2] ss:$0 sm:$0xff] }
 0x253   :  { %v4275_v52 = vadd.f32 %v5652_v57, %v7770_v50  ;;  %v5655_v56 = vadd.f32 %v5654_v32, %v5653_v51  ;;  %v4350_v29 = vpop.f32.mrb[175].mxu1  ;;  %v4893_v25 = vld [vmem:[%s7829_s4] ss:$0 sm:$0xff] }
 0x254   :  { %v4351_v63 = vadd.f32 %v4350_v29, %v4270_v20 }
 0x255   :  { %v4278_v45 = vadd.f32 %v5655_v56, %v7772_v36  ;;  %v4356_v59 = vadd.f32 %v5694_v4, %v4275_v52 }
 0x257   :  { %v4359_v15 = vadd.f32 %v5695_v55, %v4278_v45  ;;  %v5656_v61 = vpop.f32.mrb[176].mxu0 }
 0x258   :  { %v5657_v62 = vpop.f32.mrb[177].mxu0  ;;  %v5698_v53 = vpop.f32.mrb[176].mxu1 }
 0x259   :  { %v5658_v13 = vadd.f32 %v5657_v62, %v5656_v61  ;;  %v5659_v30 = vpop.f32.mrb[178].mxu0  ;;  %v4363_v1 = vpop.f32.mrb[177].mxu1  ;;  %v4394_v48 = vmax.f32 %v7796_v46, %v4359_v15 }
 0x25a   :  { %v5660_v5 = vpop.f32.mrb[179].mxu0  ;;  %v5699_v9 = vpop.f32.mrb[178].mxu1 }
 0x25b   :  { %v5661_v43 = vadd.f32 %v5660_v5, %v5659_v30  ;;  %v4283_v50 = vadd.f32 %v5658_v13, %v7776_v10  ;;  %v4366_v8 = vpop.f32.mrb[179].mxu1 }
 0x25d   :  { %v4364_v47 = vadd.f32 %v4363_v1, %v4283_v50  ;;  %v4286_v16 = vadd.f32 %v5661_v43, %v7778_v31 }
 0x25f   :  { %v4395_v36 = vmax.f32 %v4351_v63, %v4364_v47  ;;  %v4367_v11 = vadd.f32 %v4366_v8, %v4286_v16  ;;  %v5662_v14 = vpop.f32.mrb[180].mxu0 }
 0x260   :  { %v5702_v34 = vpop.f32.mrb[180].mxu1  ;;  %v5663_v12 = vpop.f32.mrb[181].mxu0 }
 0x261   :  { %v4396_v40 = vmax.f32 %v4356_v59, %v4367_v11  ;;  %v4388_v58 = vadd.f32 %v5702_v34, %v4307_v44  ;;  %v5664_v24 = vadd.f32 %v5663_v12, %v5662_v14  ;;  %v4379_v19 = vpop.f32.mrb[181].mxu1  ;;  %v5665_v22 = vpop.f32.mrb[182].mxu0 }
 0x262   :  { %v5703_v17 = vpop.f32.mrb[182].mxu1  ;;  %v5666_v21 = vpop.f32.mrb[183].mxu0 }
 0x263   :  { %v4291_v3 = vadd.f32 %v5664_v24, %v7782_v33  ;;  %v4391_v26 = vadd.f32 %v5703_v17, %v4310_v42  ;;  %v5667_v10 = vadd.f32 %v5666_v21, %v5665_v22  ;;  %v4382_v23 = vpop.f32.mrb[183].mxu1 }
 0x265   :  { %v4294_v35 = vadd.f32 %v5667_v10, %v7784_v7  ;;  %v4372_v31 = vadd.f32 %v5698_v53, %v4291_v3 }
 0x267   :  { %v4375_v39 = vadd.f32 %v5699_v9, %v4294_v35  ;;  %v5668_v60 = vpop.f32.mrb[184].mxu0 }
 0x268   :  { %v5669_v54 = vpop.f32.mrb[185].mxu0 }
 0x269   :  { %v4398_v37 = vmax.f32 %v4375_v39, %v4388_v58  ;;  %v5670_v0 = vadd.f32 %v5669_v54, %v5668_v60  ;;  %v5671_v6 = vpop.f32.mrb[186].mxu0 }
 0x26a   :  { %v5672_v18 = vpop.f32.mrb[187].mxu0 }
 0x26b   :  { %v4401_v38 = vmax.f32 %v4395_v36, %v4398_v37  ;;  %v4299_v33 = vadd.f32 %v5670_v0, %v7788_v27  ;;  %v5673_v44 = vadd.f32 %v5672_v18, %v5671_v6 }
 0x26d   :  { %v4380_v20 = vadd.f32 %v4379_v19, %v4299_v33  ;;  %v4302_v42 = vadd.f32 %v5673_v44, %v7790_v2  ;;  %v4411_v7 = vadd.f32 %v4891_v41, %v4401_v38 }
 0x26f   :  { %v4399_v4 = vmax.f32 %v4380_v20, %v4391_v26  ;;  %v4383_v28 = vadd.f32 %v4382_v23, %v4302_v42  ;;  %v4414_v57 = vmax.f32 %v4411_v7, 0.0 }
 0x271   :  { %v4402_v51 = vmax.f32 %v4396_v40, %v4399_v4  ;;  %v4397_v46 = vmax.f32 %v4372_v31, %v4383_v28  ;;  %v4424_v55 = vmul.f32 %v4892_v49, %v4414_v57 }
 0x273   :  { %v4400_v27 = vmax.f32 %v4394_v48, %v4397_v46  ;;  %v4412_v32 = vadd.f32 %v4891_v41, %v4402_v51  ;;  %v4434_v52 = vadd.f32 %v4893_v25, %v4424_v55 }
 0x275   :  { %v4410_v2 = vadd.f32 %v4891_v41, %v4400_v27  ;;  %v4415_v56 = vmax.f32 %v4412_v32, 0.0  ;;  %v4898_v29 = vpack.c.bf16 %v4434_v52, %v4434_v52 }
 0x277   :  { %v4413_v63 = vmax.f32 %v4410_v2, 0.0  ;;  %v4425_v45 = vmul.f32 %v4892_v49, %v4415_v56  ;;  %4451 = vst.msk [vmem:[%s7830_s5 + $0x4] sm:$0xf] %vm4449_vm1, %v4898_v29 }
 0x279   :  { %v4423_v59 = vmul.f32 %v4892_v49, %v4413_v63  ;;  %v4435_v15 = vadd.f32 %v4893_v25, %v4425_v45 }
 0x27b   :  { %v4433_v61 = vadd.f32 %v4893_v25, %v4423_v59  ;;  %v4899_v62 = vpack.c.bf16 %v4435_v15, %v4435_v15 }
 0x27d   :  { %v4897_v53 = vpack.c.bf16 %v4433_v61, %v4433_v61  ;;  %4452 = vst.msk [vmem:[%s7830_s5 + $0x8] sm:$0xf] %vm4449_vm1, %v4899_v62 }
 0x27f   :  { %4450 = vst.msk [vmem:[%s7830_s5] sm:$0xf] %vm4449_vm1, %v4897_v53 }

// kernel: forward.5
= control target key start
LH: loop header
LB: loop body
LE: loop exit
PB: predicated region body
PF: predicated region fallthrough
CT: control target
= control target key end

     0   :  { %vm4642_vm0 = vcmask 523264   ;;  %vm6269_vm1 = vcmask 785408   ;;  %s10829_s1 = inlined_call_operand.vmem [shape: bf16[7744,96], index: 1, kind: input, shape index: {}]   ;;  %s10830_s0 = inlined_call_operand.vmem [shape: bf16[32,7744], index: 0, kind: input, shape index: {}]   ;;  %s10831_s5 = inlined_call_operand.vmem [shape: bf16[96,256], index: 5, kind: input, shape index: {}]   ;;  %s10832_s8 = inlined_call_operand.vmem [shape: bf16[256,128], index: 8, kind: input, shape index: {}]   ;;  %s10833_s2 = inlined_call_operand.vmem [shape: f32[1,96], index: 2, kind: input, shape index: {}]   ;;  %s10834_s3 = inlined_call_operand.vmem [shape: f32[1,96], index: 3, kind: input, shape index: {}]   ;;  %s10835_s4 = inlined_call_operand.vmem [shape: f32[1,96], index: 4, kind: input, shape index: {}]   ;;  %s10836_s6 = inlined_call_operand.vmem [shape: f32[1,256], index: 6, kind: input, shape index: {}]   ;;  %s10837_s7 = inlined_call_operand.vmem [shape: f32[1,256], index: 7, kind: input, shape index: {}]   ;;  %s10838_s9 = inlined_call_operand.vmem [shape: f32[1,128], index: 9, kind: input, shape index: {}]   ;;  %s10839_s10 = inlined_call_operand.vmem [shape: f32[8,128], index: 10, kind: output, shape index: {}]  }
   0x1   :  { %v8048_v0 = vld [vmem:[%s10829_s1 + $0x40] sm:$0xff]   ;;  %v8052_v4 = vld [vmem:[%s10829_s1 + $0x48] sm:$0xff]   ;;  %v8056_v8 = vld [vmem:[%s10829_s1 + $0x50] sm:$0xff]  }
   0x2   :  { %v8049_v1 = vld [vmem:[%s10829_s1 + $0xc0] sm:$0xff]   ;;  %7167 = vmatprep.subr.bf16.mxu0 %v8048_v0  ;;  %v8053_v5 = vld [vmem:[%s10829_s1 + $0xc8] sm:$0xff]   ;;  %v8057_v9 = vld [vmem:[%s10829_s1 + $0xd0] sm:$0xff]  }
   0x3   :  { %v8050_v2 = vld [vmem:[%s10829_s1] sm:$0xff]   ;;  %7195 = vmatprep.subr.bf16.mxu1 %v8049_v1  ;;  %v8054_v6 = vld [vmem:[%s10829_s1 + $0x8] sm:$0xff]   ;;  %v8058_v10 = vld [vmem:[%s10829_s1 + $0x10] sm:$0xff]  }
   0x4   :  { %v8051_v3 = vld [vmem:[%s10829_s1 + $0x80] sm:$0xff]   ;;  %7168 = vmatpush3.bf16.msra.mxu0 %v8050_v2  ;;  %v8055_v7 = vld [vmem:[%s10829_s1 + $0x88] sm:$0xff]   ;;  %v8059_v11 = vld [vmem:[%s10829_s1 + $0x90] sm:$0xff]  }
   0x5   :  { %7196 = vmatpush3.bf16.msra.mxu1 %v8051_v3  ;;  %7169 = vmatprep.subr.bf16.mxu0 %v8052_v4  ;;  %v8060_v12 = vld [vmem:[%s10829_s1 + $0x58] sm:$0xff]   ;;  %v8064_v16 = vld [vmem:[%s10829_s1 + $0x60] sm:$0xff]   ;;  %v8068_v20 = vld [vmem:[%s10829_s1 + $0x68] sm:$0xff]  }
   0x6   :  { %7197 = vmatprep.subr.bf16.mxu1 %v8053_v5  ;;  %v8061_v13 = vld [vmem:[%s10829_s1 + $0xd8] sm:$0xff]   ;;  %v8065_v17 = vld [vmem:[%s10829_s1 + $0xe0] sm:$0xff]   ;;  %v8069_v21 = vld [vmem:[%s10829_s1 + $0xe8] sm:$0xff]  }
   0x7   :  { %v8062_v14 = vld [vmem:[%s10829_s1 + $0x18] sm:$0xff]   ;;  %v8066_v18 = vld [vmem:[%s10829_s1 + $0x20] sm:$0xff]   ;;  %v8070_v22 = vld [vmem:[%s10829_s1 + $0x28] sm:$0xff]  }
   0x8   :  { %7170 = vmatpush3.bf16.msra.mxu0 %v8054_v6  ;;  %v8063_v15 = vld [vmem:[%s10829_s1 + $0x98] sm:$0xff]   ;;  %v8067_v19 = vld [vmem:[%s10829_s1 + $0xa0] sm:$0xff]   ;;  %v8071_v23 = vld [vmem:[%s10829_s1 + $0xa8] sm:$0xff]  }
   0x9   :  { %7198 = vmatpush3.bf16.msra.mxu1 %v8055_v7  ;;  %7171 = vmatprep.subr.bf16.mxu0 %v8056_v8  ;;  %v8072_v24 = vld [vmem:[%s10829_s1 + $0x70] sm:$0xff]   ;;  %v8076_v28 = vld [vmem:[%s10829_s1 + $0x78] sm:$0xff]   ;;  %v8085_v35 = vld [vmem:[%s10830_s0 + $0xc] ss:$244 sps:$4 sm:$0xff]  }
   0xa   :  { %7199 = vmatprep.subr.bf16.mxu1 %v8057_v9  ;;  %v8073_v25 = vld [vmem:[%s10829_s1 + $0xf0] sm:$0xff]   ;;  %v8077_v29 = vld [vmem:[%s10829_s1 + $0xf8] sm:$0xff]   ;;  %v8086_v36 = vld [vmem:[%s10829_s1 + $0x140] sm:$0xff]   ;;  %4730 = vmatprep.mubr.bf16.mxu1 %v8085_v35 }
   0xb   :  { %v8074_v26 = vld [vmem:[%s10829_s1 + $0x30] sm:$0xff]   ;;  %v8078_v30 = vld [vmem:[%s10829_s1 + $0x38] sm:$0xff]   ;;  %v8087_v37 = vld [vmem:[%s10829_s1 + $0x1c0] sm:$0xff]  }
   0xc   :  { %7172 = vmatpush3.bf16.msra.mxu0 %v8058_v10  ;;  %v8075_v27 = vld [vmem:[%s10829_s1 + $0xb0] sm:$0xff]   ;;  %v8079_v31 = vld [vmem:[%s10829_s1 + $0xb8] sm:$0xff]   ;;  %v8088_v38 = vld [vmem:[%s10829_s1 + $0x100] sm:$0xff]  }
   0xd   :  { %7200 = vmatpush3.bf16.msra.mxu1 %v8059_v11  ;;  %7173 = vmatprep.subr.bf16.mxu0 %v8060_v12  ;;  %v8080_v32 = vld [vmem:[%s10830_s0] ss:$244 sps:$4 sm:$0xff]   ;;  %v8082_v33 = vld [vmem:[%s10830_s0 + $0x4] ss:$244 sps:$4 sm:$0xff]   ;;  %v8083_v34 = vld [vmem:[%s10830_s0 + $0x8] ss:$244 sps:$4 sm:$0xff]  }
   0xe   :  { %7201 = vmatprep.subr.bf16.mxu1 %v8061_v13  ;;  %4681 = vmatprep.mubr.bf16.mxu0 %v8082_v33  ;;  %v8089_v39 = vld [vmem:[%s10829_s1 + $0x180] sm:$0xff]   ;;  %v8090_v40 = vld [vmem:[%s10829_s1 + $0x148] sm:$0xff]   ;;  %v8094_v44 = vld [vmem:[%s10829_s1 + $0x150] sm:$0xff]  }
   0xf   :  { %v8091_v41 = vld [vmem:[%s10829_s1 + $0x1c8] sm:$0xff]   ;;  %v8095_v45 = vld [vmem:[%s10829_s1 + $0x1d0] sm:$0xff]   ;;  %v8098_v48 = vld [vmem:[%s10829_s1 + $0x158] sm:$0xff]  }
  0x10   :  { %7174 = vmatpush3.bf16.msra.mxu0 %v8062_v14  ;;  %v8092_v42 = vld [vmem:[%s10829_s1 + $0x108] sm:$0xff]   ;;  %v8096_v46 = vld [vmem:[%s10829_s1 + $0x110] sm:$0xff]   ;;  %v8099_v49 = vld [vmem:[%s10829_s1 + $0x1d8] sm:$0xff]  }
  0x11   :  { %7202 = vmatpush3.bf16.msra.mxu1 %v8063_v15  ;;  %7175 = vmatprep.subr.bf16.mxu0 %v8064_v16  ;;  %v8093_v43 = vld [vmem:[%s10829_s1 + $0x188] sm:$0xff]   ;;  %v8097_v47 = vld [vmem:[%s10829_s1 + $0x190] sm:$0xff]   ;;  %v8100_v50 = vld [vmem:[%s10829_s1 + $0x118] sm:$0xff]  }
  0x12   :  { %7203 = vmatprep.subr.bf16.mxu1 %v8065_v17  ;;  %v8101_v51 = vld [vmem:[%s10829_s1 + $0x198] sm:$0xff]   ;;  %v8102_v52 = vld [vmem:[%s10829_s1 + $0x160] sm:$0xff]   ;;  %v8106_v56 = vld [vmem:[%s10829_s1 + $0x168] sm:$0xff]  }
  0x13   :  { %v8103_v53 = vld [vmem:[%s10829_s1 + $0x1e0] sm:$0xff]   ;;  %v8107_v57 = vld [vmem:[%s10829_s1 + $0x1e8] sm:$0xff]   ;;  %v8116_v0 = vld [vmem:[%s10829_s1 + $0x170] sm:$0xff]  }
  0x14   :  { %7176 = vmatpush3.bf16.msra.mxu0 %v8066_v18  ;;  %v8104_v54 = vld [vmem:[%s10829_s1 + $0x120] sm:$0xff]   ;;  %v8110_v59 = vld [vmem:[%s10830_s0 + $0x1f4] ss:$244 sps:$4 sm:$0xff]   ;;  %v8120_v4 = vld [vmem:[%s10829_s1 + $0x178] sm:$0xff]  }
  0x15   :  { %7204 = vmatpush3.bf16.msra.mxu1 %v8067_v19  ;;  %7177 = vmatprep.subr.bf16.mxu0 %v8068_v20  ;;  %v8105_v55 = vld [vmem:[%s10829_s1 + $0x1a0] sm:$0xff]   ;;  %v8112_v60 = vld [vmem:[%s10829_s1 + $0x128] sm:$0xff]   ;;  %v8117_v1 = vld [vmem:[%s10829_s1 + $0x1f0] sm:$0xff]  }
  0x16   :  { %7205 = vmatprep.subr.bf16.mxu1 %v8069_v21  ;;  %v8108_v58 = vld [vmem:[%s10830_s0 + $0x1ec] ss:$244 sps:$4 sm:$0xff]   ;;  %v8114_v62 = vld [vmem:[%s10830_s0 + $0x1e8] ss:$244 sps:$4 sm:$0xff]   ;;  %v8115_v63 = vld [vmem:[%s10830_s0 + $0x1f0] ss:$244 sps:$4 sm:$0xff]  }
  0x17   :  { %v8113_v61 = vld [vmem:[%s10829_s1 + $0x1a8] sm:$0xff]   ;;  %v8118_v2 = vld [vmem:[%s10829_s1 + $0x130] sm:$0xff]   ;;  %v8121_v5 = vld [vmem:[%s10829_s1 + $0x1f8] sm:$0xff]  }
  0x18   :  { %7178 = vmatpush3.bf16.msra.mxu0 %v8070_v22  ;;  %v8119_v3 = vld [vmem:[%s10829_s1 + $0x1b0] sm:$0xff]   ;;  %v8122_v6 = vld [vmem:[%s10829_s1 + $0x138] sm:$0xff]   ;;  %v8130_v12 = vld [vmem:[%s10829_s1 + $0x240] sm:$0xff]  }
  0x19   :  { %7206 = vmatpush3.bf16.msra.mxu1 %v8071_v23  ;;  %7179 = vmatprep.subr.bf16.mxu0 %v8072_v24  ;;  %v8123_v7 = vld [vmem:[%s10829_s1 + $0x1b8] sm:$0xff]   ;;  %v8124_v8 = vld [vmem:[%s10830_s0 + $0x10] ss:$244 sps:$4 sm:$0xff]   ;;  %v8126_v9 = vld [vmem:[%s10830_s0 + $0x14] ss:$244 sps:$4 sm:$0xff]  }
  0x1a   :  { %7207 = vmatprep.subr.bf16.mxu1 %v8073_v25  ;;  %v8127_v10 = vld [vmem:[%s10830_s0 + $0x18] ss:$244 sps:$4 sm:$0xff]   ;;  %v8129_v11 = vld [vmem:[%s10830_s0 + $0x1c] ss:$244 sps:$4 sm:$0xff]   ;;  %v8131_v13 = vld [vmem:[%s10829_s1 + $0x2c0] sm:$0xff]  }
  0x1b   :  { %v8132_v14 = vld [vmem:[%s10829_s1 + $0x200] sm:$0xff]   ;;  %v8134_v16 = vld [vmem:[%s10829_s1 + $0x248] sm:$0xff]   ;;  %v8138_v20 = vld [vmem:[%s10830_s0 + $0x1fc] ss:$244 sps:$4 sm:$0xff]  }
  0x1c   :  { %7180 = vmatpush3.bf16.msra.mxu0 %v8074_v26  ;;  %v8133_v15 = vld [vmem:[%s10829_s1 + $0x280] sm:$0xff]   ;;  %v8135_v17 = vld [vmem:[%s10829_s1 + $0x2c8] sm:$0xff]   ;;  %v8141_v22 = vld [vmem:[%s10829_s1 + $0x250] sm:$0xff]  }
  0x1d   :  { %7208 = vmatpush3.bf16.msra.mxu1 %v8075_v27  ;;  %7181 = vmatprep.subr.bf16.mxu0 %v8076_v28  ;;  %v8136_v18 = vld [vmem:[%s10829_s1 + $0x208] sm:$0xff]   ;;  %v8142_v23 = vld [vmem:[%s10829_s1 + $0x2d0] sm:$0xff]   ;;  %v8143_v24 = vld [vmem:[%s10830_s0 + $0x204] ss:$244 sps:$4 sm:$0xff]  }
  0x1e   :  { %7209 = vmatprep.subr.bf16.mxu1 %v8077_v29  ;;  %v8137_v19 = vld [vmem:[%s10829_s1 + $0x288] sm:$0xff]   ;;  %v8145_v25 = vld [vmem:[%s10829_s1 + $0x210] sm:$0xff]   ;;  %v8148_v28 = vld [vmem:[%s10829_s1 + $0x258] sm:$0xff]  }
  0x1f   :  { %v8140_v21 = vld [vmem:[%s10830_s0 + $0x1f8] ss:$244 sps:$4 sm:$0xff]   ;;  %v8146_v26 = vld [vmem:[%s10829_s1 + $0x290] sm:$0xff]   ;;  %v8153_v33 = vld [vmem:[%s10829_s1 + $0x2e0] sm:$0xff]  }
  0x20   :  { %7182 = vmatpush3.bf16.msra.mxu0 %v8078_v30  ;;  %v8147_v27 = vld [vmem:[%s10830_s0 + $0x200] ss:$244 sps:$4 sm:$0xff]   ;;  %v8149_v29 = vld [vmem:[%s10829_s1 + $0x2d8] sm:$0xff]  }
  0x21   :  { %7210 = vmatpush3.bf16.msra.mxu1 %v8079_v31  ;;  %7223 = vmatprep.subr.bf16.mxu0 %v8086_v36  ;;  %v8150_v30 = vld [vmem:[%s10829_s1 + $0x218] sm:$0xff]   ;;  %v8155_v35 = vld [vmem:[%s10829_s1 + $0x2a0] sm:$0xff]   ;;  %v8156_v36 = vld [vmem:[%s10829_s1 + $0x268] sm:$0xff]  }
  0x22   :  { %7251 = vmatprep.subr.bf16.mxu1 %v8087_v37  ;;  %v8151_v31 = vld [vmem:[%s10829_s1 + $0x298] sm:$0xff]   ;;  %v8157_v37 = vld [vmem:[%s10829_s1 + $0x2e8] sm:$0xff]  }
  0x23   :  { %4682 = vmatmul.mubr.bf16.vlgmr.msra.gmra.mrb[0].mxu0 %v8080_v32  ;;  %v8152_v32 = vld [vmem:[%s10829_s1 + $0x260] sm:$0xff]  }
  0x24   :  { %4731 = vmatmul.mubr.bf16.vlgmr.msra.gmra.mrb[0].mxu1 %v8083_v34  ;;  %7224 = vmatpush3.bf16.msra.mxu0 %v8088_v38  ;;  %v8154_v34 = vld [vmem:[%s10829_s1 + $0x220] sm:$0xff]   ;;  %v8158_v38 = vld [vmem:[%s10829_s1 + $0x228] sm:$0xff]  }
  0x25   :  { %7252 = vmatpush3.bf16.msra.mxu1 %v8089_v39  ;;  %7225 = vmatprep.subr.bf16.mxu0 %v8090_v40  ;;  %v8159_v39 = vld [vmem:[%s10829_s1 + $0x2a8] sm:$0xff]   ;;  %v8160_v40 = vld [vmem:[%s10829_s1 + $0x270] sm:$0xff]  }
  0x26   :  { %7253 = vmatprep.subr.bf16.mxu1 %v8091_v41  ;;  %4689 = vmatprep.mubr.bf16.mxu0 %v8108_v58  ;;  %v8161_v41 = vld [vmem:[%s10829_s1 + $0x2f0] sm:$0xff]   ;;  %v8180_v58 = vld [vmem:[%s10829_s1 + $0x308] sm:$0xff]  }
  0x27   :  { %4738 = vmatprep.mubr.bf16.mxu1 %v8110_v59  ;;  %v8181_v59 = vld [vmem:[%s10829_s1 + $0x388] sm:$0xff]  }
  0x28   :  { %7226 = vmatpush3.bf16.msra.mxu0 %v8092_v42  ;;  %v8162_v42 = vld [vmem:[%s10829_s1 + $0x230] sm:$0xff]  }
  0x29   :  { %7254 = vmatpush3.bf16.msra.mxu1 %v8093_v43  ;;  %7227 = vmatprep.subr.bf16.mxu0 %v8094_v44  ;;  %v8163_v43 = vld [vmem:[%s10829_s1 + $0x2b0] sm:$0xff]   ;;  %v8164_v44 = vld [vmem:[%s10829_s1 + $0x278] sm:$0xff]  }
  0x2a   :  { %7255 = vmatprep.subr.bf16.mxu1 %v8095_v45  ;;  %v8165_v45 = vld [vmem:[%s10829_s1 + $0x2f8] sm:$0xff]  }
  0x2b   :  { %4690 = vmatmul.mubr.bf16.gmra.mrb[4].mxu0 %v8114_v62  ;;  %v8185_v62 = vld [vmem:[%s10829_s1 + $0x350] sm:$0xff]  }
  0x2c   :  { %7228 = vmatpush3.bf16.msra.mxu0 %v8096_v46  ;;  %4739 = vmatmul.mubr.bf16.gmra.mrb[4].mxu1 %v8115_v63  ;;  %v8166_v46 = vld [vmem:[%s10829_s1 + $0x238] sm:$0xff]   ;;  %v8186_v63 = vld [vmem:[%s10829_s1 + $0x3d0] sm:$0xff]  }
  0x2d   :  { %7256 = vmatpush3.bf16.msra.mxu1 %v8097_v47  ;;  %7229 = vmatprep.subr.bf16.mxu0 %v8098_v48  ;;  %v8167_v47 = vld [vmem:[%s10829_s1 + $0x2b8] sm:$0xff]   ;;  %v8168_v48 = vld [vmem:[%s10830_s0 + $0x20] ss:$244 sps:$4 sm:$0xff]  }
  0x2e   :  { %7257 = vmatprep.subr.bf16.mxu1 %v8099_v49  ;;  %4779 = vmatprep.mubr.bf16.mxu0 %v8126_v9  ;;  %v8170_v49 = vld [vmem:[%s10830_s0 + $0x24] ss:$244 sps:$4 sm:$0xff]  }
  0x2f   :  { %4828 = vmatprep.mubr.bf16.mxu1 %v8129_v11  ;;  %v8197_v9 = vld [vmem:[%s10829_s1 + $0x3e0] sm:$0xff]  }
  0x30   :  { %7230 = vmatpush3.bf16.msra.mxu0 %v8100_v50  ;;  %v8171_v50 = vld [vmem:[%s10830_s0 + $0x28] ss:$244 sps:$4 sm:$0xff]   ;;  %v8199_v11 = vld [vmem:[%s10829_s1 + $0x3a0] sm:$0xff]  }
  0x31   :  { %7258 = vmatpush3.bf16.msra.mxu1 %v8101_v51  ;;  %7231 = vmatprep.subr.bf16.mxu0 %v8102_v52  ;;  %v8173_v51 = vld [vmem:[%s10830_s0 + $0x2c] ss:$244 sps:$4 sm:$0xff]  }
  0x32   :  { %7259 = vmatprep.subr.bf16.mxu1 %v8103_v53  ;;  %v8174_v52 = vld [vmem:[%s10829_s1 + $0x340] sm:$0xff]  }
  0x33   :  { %v8175_v53 = vld [vmem:[%s10829_s1 + $0x3c0] sm:$0xff]  }
  0x34   :  { %7232 = vmatpush3.bf16.msra.mxu0 %v8104_v54  ;;  %v8176_v54 = vld [vmem:[%s10829_s1 + $0x300] sm:$0xff]  }
  0x35   :  { %7260 = vmatpush3.bf16.msra.mxu1 %v8105_v55  ;;  %7233 = vmatprep.subr.bf16.mxu0 %v8106_v56  ;;  %v8177_v55 = vld [vmem:[%s10829_s1 + $0x380] sm:$0xff]   ;;  %v8178_v56 = vld [vmem:[%s10829_s1 + $0x348] sm:$0xff]  }
  0x36   :  { %7261 = vmatprep.subr.bf16.mxu1 %v8107_v57  ;;  %v8179_v57 = vld [vmem:[%s10829_s1 + $0x3c8] sm:$0xff]  }
  0x38   :  { %7234 = vmatpush3.bf16.msra.mxu0 %v8112_v60  ;;  %v8182_v60 = vld [vmem:[%s10830_s0 + $0x20c] ss:$244 sps:$4 sm:$0xff]  }
  0x39   :  { %7262 = vmatpush3.bf16.msra.mxu1 %v8113_v61  ;;  %7235 = vmatprep.subr.bf16.mxu0 %v8116_v0  ;;  %v8184_v61 = vld [vmem:[%s10830_s0 + $0x208] ss:$244 sps:$4 sm:$0xff]  }
  0x3a   :  { %7263 = vmatprep.subr.bf16.mxu1 %v8117_v1  ;;  %v8187_v0 = vld [vmem:[%s10830_s0 + $0x214] ss:$244 sps:$4 sm:$0xff]  }
  0x3b   :  { %v8189_v1 = vld [vmem:[%s10829_s1 + $0x310] sm:$0xff]  }
  0x3c   :  { %7236 = vmatpush3.bf16.msra.mxu0 %v8118_v2  ;;  %v8190_v2 = vld [vmem:[%s10829_s1 + $0x390] sm:$0xff]  }
  0x3d   :  { %7264 = vmatpush3.bf16.msra.mxu1 %v8119_v3  ;;  %7237 = vmatprep.subr.bf16.mxu0 %v8120_v4  ;;  %v8191_v3 = vld [vmem:[%s10830_s0 + $0x210] ss:$244 sps:$4 sm:$0xff]   ;;  %v8192_v4 = vld [vmem:[%s10829_s1 + $0x358] sm:$0xff]  }
  0x3e   :  { %7265 = vmatprep.subr.bf16.mxu1 %v8121_v5  ;;  %v8193_v5 = vld [vmem:[%s10829_s1 + $0x3d8] sm:$0xff]  }
  0x40   :  { %7238 = vmatpush3.bf16.msra.mxu0 %v8122_v6  ;;  %v8194_v6 = vld [vmem:[%s10829_s1 + $0x318] sm:$0xff]  }
  0x41   :  { %7266 = vmatpush3.bf16.msra.mxu1 %v8123_v7  ;;  %7279 = vmatprep.subr.bf16.mxu0 %v8130_v12  ;;  %v8195_v7 = vld [vmem:[%s10829_s1 + $0x398] sm:$0xff]   ;;  %v8200_v12 = vld [vmem:[%s10829_s1 + $0x368] sm:$0xff]  }
  0x42   :  { %7307 = vmatprep.subr.bf16.mxu1 %v8131_v13  ;;  %v8201_v13 = vld [vmem:[%s10829_s1 + $0x3e8] sm:$0xff]  }
  0x43   :  { %4780 = vmatmul.mubr.bf16.vlgmr.msra.gmra.mrb[8].mxu0 %v8124_v8  ;;  %v8196_v8 = vld [vmem:[%s10829_s1 + $0x360] sm:$0xff]  }
  0x44   :  { %4829 = vmatmul.mubr.bf16.vlgmr.msra.gmra.mrb[8].mxu1 %v8127_v10  ;;  %7280 = vmatpush3.bf16.msra.mxu0 %v8132_v14  ;;  %v8198_v10 = vld [vmem:[%s10829_s1 + $0x320] sm:$0xff]   ;;  %v8202_v14 = vld [vmem:[%s10829_s1 + $0x328] sm:$0xff]  }
  0x45   :  { %7308 = vmatpush3.bf16.msra.mxu1 %v8133_v15  ;;  %7281 = vmatprep.subr.bf16.mxu0 %v8134_v16  ;;  %v8203_v15 = vld [vmem:[%s10829_s1 + $0x3a8] sm:$0xff]   ;;  %v8204_v16 = vld [vmem:[%s10829_s1 + $0x370] sm:$0xff]  }
  0x46   :  { %7309 = vmatprep.subr.bf16.mxu1 %v8135_v17  ;;  %4787 = vmatprep.mubr.bf16.mxu0 %v8138_v20  ;;  %v8205_v17 = vld [vmem:[%s10829_s1 + $0x3f0] sm:$0xff]   ;;  %v8208_v20 = vld [vmem:[%s10829_s1 + $0x378] sm:$0xff]  }
  0x47   :  { %4836 = vmatprep.mubr.bf16.mxu1 %v8143_v24  ;;  %v8212_v24 = vld [vmem:[%s10830_s0 + $0x30] ss:$244 sps:$4 sm:$0xff]  }
  0x48   :  { %7282 = vmatpush3.bf16.msra.mxu0 %v8136_v18  ;;  %v8206_v18 = vld [vmem:[%s10829_s1 + $0x330] sm:$0xff]  }
  0x49   :  { %7310 = vmatpush3.bf16.msra.mxu1 %v8137_v19  ;;  %7283 = vmatprep.subr.bf16.mxu0 %v8141_v22  ;;  %v8207_v19 = vld [vmem:[%s10829_s1 + $0x3b0] sm:$0xff]   ;;  %v8210_v22 = vld [vmem:[%s10829_s1 + $0x338] sm:$0xff]  }
  0x4a   :  { %7311 = vmatprep.subr.bf16.mxu1 %v8142_v23  ;;  %v8211_v23 = vld [vmem:[%s10829_s1 + $0x3b8] sm:$0xff]  }
  0x4b   :  { %4788 = vmatmul.mubr.bf16.gmra.mrb[12].mxu0 %v8140_v21  ;;  %v8209_v21 = vld [vmem:[%s10829_s1 + $0x3f8] sm:$0xff]  }
  0x4c   :  { %7284 = vmatpush3.bf16.msra.mxu0 %v8145_v25  ;;  %4837 = vmatmul.mubr.bf16.gmra.mrb[12].mxu1 %v8147_v27  ;;  %v8214_v25 = vld [vmem:[%s10830_s0 + $0x34] ss:$244 sps:$4 sm:$0xff]   ;;  %v8217_v27 = vld [vmem:[%s10830_s0 + $0x3c] ss:$244 sps:$4 sm:$0xff]  }
  0x4d   :  { %7312 = vmatpush3.bf16.msra.mxu1 %v8146_v26  ;;  %7285 = vmatprep.subr.bf16.mxu0 %v8148_v28  ;;  %v8215_v26 = vld [vmem:[%s10830_s0 + $0x38] ss:$244 sps:$4 sm:$0xff]   ;;  %v8218_v28 = vld [vmem:[%s10829_s1 + $0x440] sm:$0xff]  }
  0x4e   :  { %7313 = vmatprep.subr.bf16.mxu1 %v8149_v29  ;;  %4877 = vmatprep.mubr.bf16.mxu0 %v8170_v49  ;;  %v8219_v29 = vld [vmem:[%s10829_s1 + $0x4c0] sm:$0xff]  }
  0x4f   :  { %4926 = vmatprep.mubr.bf16.mxu1 %v8173_v51  ;;  %v8241_v49 = vld [vmem:[%s10829_s1 + $0x4e0] sm:$0xff]  }
  0x50   :  { %7286 = vmatpush3.bf16.msra.mxu0 %v8150_v30  ;;  %v8220_v30 = vld [vmem:[%s10829_s1 + $0x400] sm:$0xff]  }
  0x51   :  { %7314 = vmatpush3.bf16.msra.mxu1 %v8151_v31  ;;  %7287 = vmatprep.subr.bf16.mxu0 %v8152_v32  ;;  %v8221_v31 = vld [vmem:[%s10829_s1 + $0x480] sm:$0xff]   ;;  %v8222_v32 = vld [vmem:[%s10829_s1 + $0x448] sm:$0xff]  }
  0x52   :  { %7315 = vmatprep.subr.bf16.mxu1 %v8153_v33  ;;  %v8223_v33 = vld [vmem:[%s10829_s1 + $0x4c8] sm:$0xff]   ;;  %v8243_v51 = vld [vmem:[%s10829_s1 + $0x4a0] sm:$0xff]  }
  0x54   :  { %7288 = vmatpush3.bf16.msra.mxu0 %v8154_v34  ;;  %v8224_v34 = vld [vmem:[%s10829_s1 + $0x408] sm:$0xff]  }
  0x55   :  { %7316 = vmatpush3.bf16.msra.mxu1 %v8155_v35  ;;  %7289 = vmatprep.subr.bf16.mxu0 %v8156_v36  ;;  %v8225_v35 = vld [vmem:[%s10829_s1 + $0x488] sm:$0xff]   ;;  %v8226_v36 = vld [vmem:[%s10830_s0 + $0x21c] ss:$244 sps:$4 sm:$0xff]  }
  0x56   :  { %7317 = vmatprep.subr.bf16.mxu1 %v8157_v37  ;;  %v8228_v37 = vld [vmem:[%s10830_s0 + $0x218] ss:$244 sps:$4 sm:$0xff]  }
  0x58   :  { %7290 = vmatpush3.bf16.msra.mxu0 %v8158_v38  ;;  %v8229_v38 = vld [vmem:[%s10829_s1 + $0x450] sm:$0xff]  }
  0x59   :  { %7318 = vmatpush3.bf16.msra.mxu1 %v8159_v39  ;;  %7291 = vmatprep.subr.bf16.mxu0 %v8160_v40  ;;  %v8230_v39 = vld [vmem:[%s10829_s1 + $0x4d0] sm:$0xff]   ;;  %v8231_v40 = vld [vmem:[%s10830_s0 + $0x224] ss:$244 sps:$4 sm:$0xff]  }
  0x5a   :  { %7319 = vmatprep.subr.bf16.mxu1 %v8161_v41  ;;  %v8233_v41 = vld [vmem:[%s10829_s1 + $0x410] sm:$0xff]  }
  0x5c   :  { %7292 = vmatpush3.bf16.msra.mxu0 %v8162_v42  ;;  %v8234_v42 = vld [vmem:[%s10829_s1 + $0x490] sm:$0xff]  }
  0x5d   :  { %7320 = vmatpush3.bf16.msra.mxu1 %v8163_v43  ;;  %7293 = vmatprep.subr.bf16.mxu0 %v8164_v44  ;;  %v8235_v43 = vld [vmem:[%s10830_s0 + $0x220] ss:$244 sps:$4 sm:$0xff]   ;;  %v8236_v44 = vld [vmem:[%s10829_s1 + $0x458] sm:$0xff]  }
  0x5e   :  { %7321 = vmatprep.subr.bf16.mxu1 %v8165_v45  ;;  %v8237_v45 = vld [vmem:[%s10829_s1 + $0x4d8] sm:$0xff]  }
  0x60   :  { %7294 = vmatpush3.bf16.msra.mxu0 %v8166_v46  ;;  %v8238_v46 = vld [vmem:[%s10829_s1 + $0x418] sm:$0xff]  }
  0x61   :  { %7322 = vmatpush3.bf16.msra.mxu1 %v8167_v47  ;;  %7335 = vmatprep.subr.bf16.mxu0 %v8174_v52  ;;  %v8239_v47 = vld [vmem:[%s10829_s1 + $0x498] sm:$0xff]   ;;  %v8244_v52 = vld [vmem:[%s10829_s1 + $0x468] sm:$0xff]  }
  0x62   :  { %7363 = vmatprep.subr.bf16.mxu1 %v8175_v53  ;;  %v8245_v53 = vld [vmem:[%s10829_s1 + $0x4e8] sm:$0xff]  }
  0x63   :  { %4878 = vmatmul.mubr.bf16.vlgmr.msra.gmra.mrb[16].mxu0 %v8168_v48  ;;  %v8240_v48 = vld [vmem:[%s10829_s1 + $0x460] sm:$0xff]  }
  0x64   :  { %4927 = vmatmul.mubr.bf16.vlgmr.msra.gmra.mrb[16].mxu1 %v8171_v50  ;;  %7336 = vmatpush3.bf16.msra.mxu0 %v8176_v54  ;;  %v8242_v50 = vld [vmem:[%s10829_s1 + $0x420] sm:$0xff]   ;;  %v8246_v54 = vld [vmem:[%s10829_s1 + $0x428] sm:$0xff]  }
  0x65   :  { %7364 = vmatpush3.bf16.msra.mxu1 %v8177_v55  ;;  %7337 = vmatprep.subr.bf16.mxu0 %v8178_v56  ;;  %v8247_v55 = vld [vmem:[%s10829_s1 + $0x4a8] sm:$0xff]   ;;  %v8248_v56 = vld [vmem:[%s10829_s1 + $0x470] sm:$0xff]  }
  0x66   :  { %7365 = vmatprep.subr.bf16.mxu1 %v8179_v57  ;;  %4885 = vmatprep.mubr.bf16.mxu0 %v8182_v60  ;;  %v8249_v57 = vld [vmem:[%s10829_s1 + $0x4f0] sm:$0xff]   ;;  %v8252_v60 = vld [vmem:[%s10829_s1 + $0x478] sm:$0xff]  }
  0x67   :  { %4934 = vmatprep.mubr.bf16.mxu1 %v8187_v0  ;;  %v8256_v0 = vld [vmem:[%s10830_s0 + $0x40] ss:$244 sps:$4 sm:$0xff]  }
  0x68   :  { %7338 = vmatpush3.bf16.msra.mxu0 %v8180_v58  ;;  %v8250_v58 = vld [vmem:[%s10829_s1 + $0x430] sm:$0xff]  }
  0x69   :  { %7366 = vmatpush3.bf16.msra.mxu1 %v8181_v59  ;;  %7339 = vmatprep.subr.bf16.mxu0 %v8185_v62  ;;  %v8251_v59 = vld [vmem:[%s10829_s1 + $0x4b0] sm:$0xff]   ;;  %v8254_v62 = vld [vmem:[%s10829_s1 + $0x438] sm:$0xff]  }
  0x6a   :  { %7367 = vmatprep.subr.bf16.mxu1 %v8186_v63  ;;  %v8255_v63 = vld [vmem:[%s10829_s1 + $0x4b8] sm:$0xff]  }
  0x6b   :  { %4886 = vmatmul.mubr.bf16.gmra.mrb[20].mxu0 %v8184_v61  ;;  %v8253_v61 = vld [vmem:[%s10829_s1 + $0x4f8] sm:$0xff]  }
  0x6c   :  { %7340 = vmatpush3.bf16.msra.mxu0 %v8189_v1  ;;  %4935 = vmatmul.mubr.bf16.gmra.mrb[20].mxu1 %v8191_v3  ;;  %v8258_v1 = vld [vmem:[%s10830_s0 + $0x44] ss:$244 sps:$4 sm:$0xff]   ;;  %v8261_v3 = vld [vmem:[%s10830_s0 + $0x4c] ss:$244 sps:$4 sm:$0xff]  }
  0x6d   :  { %7368 = vmatpush3.bf16.msra.mxu1 %v8190_v2  ;;  %7341 = vmatprep.subr.bf16.mxu0 %v8192_v4  ;;  %v8259_v2 = vld [vmem:[%s10830_s0 + $0x48] ss:$244 sps:$4 sm:$0xff]   ;;  %v8262_v4 = vld [vmem:[%s10829_s1 + $0x540] sm:$0xff]  }
  0x6e   :  { %7369 = vmatprep.subr.bf16.mxu1 %v8193_v5  ;;  %4975 = vmatprep.mubr.bf16.mxu0 %v8214_v25  ;;  %v8263_v5 = vld [vmem:[%s10829_s1 + $0x5c0] sm:$0xff]  }
  0x6f   :  { %5024 = vmatprep.mubr.bf16.mxu1 %v8217_v27  ;;  %v8285_v25 = vld [vmem:[%s10829_s1 + $0x5e0] sm:$0xff]  }
  0x70   :  { %7342 = vmatpush3.bf16.msra.mxu0 %v8194_v6  ;;  %v8264_v6 = vld [vmem:[%s10829_s1 + $0x500] sm:$0xff]  }
  0x71   :  { %7370 = vmatpush3.bf16.msra.mxu1 %v8195_v7  ;;  %7343 = vmatprep.subr.bf16.mxu0 %v8196_v8  ;;  %v8265_v7 = vld [vmem:[%s10829_s1 + $0x580] sm:$0xff]   ;;  %v8266_v8 = vld [vmem:[%s10829_s1 + $0x548] sm:$0xff]  }
  0x72   :  { %7371 = vmatprep.subr.bf16.mxu1 %v8197_v9  ;;  %v8267_v9 = vld [vmem:[%s10829_s1 + $0x5c8] sm:$0xff]   ;;  %v8287_v27 = vld [vmem:[%s10829_s1 + $0x5a0] sm:$0xff]  }
  0x74   :  { %7344 = vmatpush3.bf16.msra.mxu0 %v8198_v10  ;;  %v8268_v10 = vld [vmem:[%s10829_s1 + $0x508] sm:$0xff]  }
  0x75   :  { %7372 = vmatpush3.bf16.msra.mxu1 %v8199_v11  ;;  %7345 = vmatprep.subr.bf16.mxu0 %v8200_v12  ;;  %v8269_v11 = vld [vmem:[%s10829_s1 + $0x588] sm:$0xff]  }
  0x76   :  { %7373 = vmatprep.subr.bf16.mxu1 %v8201_v13  ;;  %v8270_v12 = vld [vmem:[%s10830_s0 + $0x22c] ss:$244 sps:$4 sm:$0xff]   ;;  %v8272_v13 = vld [vmem:[%s10830_s0 + $0x228] ss:$244 sps:$4 sm:$0xff]  }
  0x78   :  { %7346 = vmatpush3.bf16.msra.mxu0 %v8202_v14  ;;  %v8273_v14 = vld [vmem:[%s10829_s1 + $0x550] sm:$0xff]  }
  0x79   :  { %7374 = vmatpush3.bf16.msra.mxu1 %v8203_v15  ;;  %7347 = vmatprep.subr.bf16.mxu0 %v8204_v16  ;;  %v8274_v15 = vld [vmem:[%s10829_s1 + $0x5d0] sm:$0xff]  }
  0x7a   :  { %7375 = vmatprep.subr.bf16.mxu1 %v8205_v17  ;;  %v8275_v16 = vld [vmem:[%s10830_s0 + $0x234] ss:$244 sps:$4 sm:$0xff]  }
  0x7b   :  { %v8277_v17 = vld [vmem:[%s10829_s1 + $0x510] sm:$0xff]  }
  0x7c   :  { %7348 = vmatpush3.bf16.msra.mxu0 %v8206_v18  ;;  %v8278_v18 = vld [vmem:[%s10829_s1 + $0x590] sm:$0xff]  }
  0x7d   :  { %7376 = vmatpush3.bf16.msra.mxu1 %v8207_v19  ;;  %7349 = vmatprep.subr.bf16.mxu0 %v8208_v20  ;;  %v8279_v19 = vld [vmem:[%s10830_s0 + $0x230] ss:$244 sps:$4 sm:$0xff]   ;;  %v8280_v20 = vld [vmem:[%s10829_s1 + $0x558] sm:$0xff]  }
  0x7e   :  { %7377 = vmatprep.subr.bf16.mxu1 %v8209_v21  ;;  %v8281_v21 = vld [vmem:[%s10829_s1 + $0x5d8] sm:$0xff]  }
  0x80   :  { %7350 = vmatpush3.bf16.msra.mxu0 %v8210_v22  ;;  %v8282_v22 = vld [vmem:[%s10829_s1 + $0x518] sm:$0xff]  }
  0x81   :  { %7378 = vmatpush3.bf16.msra.mxu1 %v8211_v23  ;;  %7391 = vmatprep.subr.bf16.mxu0 %v8218_v28  ;;  %v8283_v23 = vld [vmem:[%s10829_s1 + $0x598] sm:$0xff]   ;;  %v8288_v28 = vld [vmem:[%s10829_s1 + $0x568] sm:$0xff]  }
  0x82   :  { %7419 = vmatprep.subr.bf16.mxu1 %v8219_v29  ;;  %v8289_v29 = vld [vmem:[%s10829_s1 + $0x5e8] sm:$0xff]  }
  0x83   :  { %4976 = vmatmul.mubr.bf16.vlgmr.msra.gmra.mrb[24].mxu0 %v8212_v24  ;;  %v8284_v24 = vld [vmem:[%s10829_s1 + $0x560] sm:$0xff]  }
  0x84   :  { %5025 = vmatmul.mubr.bf16.vlgmr.msra.gmra.mrb[24].mxu1 %v8215_v26  ;;  %7392 = vmatpush3.bf16.msra.mxu0 %v8220_v30  ;;  %v8286_v26 = vld [vmem:[%s10829_s1 + $0x520] sm:$0xff]   ;;  %v8290_v30 = vld [vmem:[%s10829_s1 + $0x528] sm:$0xff]  }
  0x85   :  { %7420 = vmatpush3.bf16.msra.mxu1 %v8221_v31  ;;  %7393 = vmatprep.subr.bf16.mxu0 %v8222_v32  ;;  %v8291_v31 = vld [vmem:[%s10829_s1 + $0x5a8] sm:$0xff]   ;;  %v8292_v32 = vld [vmem:[%s10829_s1 + $0x570] sm:$0xff]  }
  0x86   :  { %7421 = vmatprep.subr.bf16.mxu1 %v8223_v33  ;;  %4983 = vmatprep.mubr.bf16.mxu0 %v8226_v36  ;;  %v8293_v33 = vld [vmem:[%s10829_s1 + $0x5f0] sm:$0xff]   ;;  %v8296_v36 = vld [vmem:[%s10829_s1 + $0x578] sm:$0xff]  }
  0x87   :  { %5032 = vmatprep.mubr.bf16.mxu1 %v8231_v40  ;;  %v8300_v40 = vld [vmem:[%s10830_s0 + $0x50] ss:$244 sps:$4 sm:$0xff]  }
  0x88   :  { %7394 = vmatpush3.bf16.msra.mxu0 %v8224_v34  ;;  %v8294_v34 = vld [vmem:[%s10829_s1 + $0x530] sm:$0xff]  }
  0x89   :  { %7422 = vmatpush3.bf16.msra.mxu1 %v8225_v35  ;;  %7395 = vmatprep.subr.bf16.mxu0 %v8229_v38  ;;  %v8295_v35 = vld [vmem:[%s10829_s1 + $0x5b0] sm:$0xff]   ;;  %v8298_v38 = vld [vmem:[%s10829_s1 + $0x538] sm:$0xff]  }
  0x8a   :  { %7423 = vmatprep.subr.bf16.mxu1 %v8230_v39  ;;  %v8299_v39 = vld [vmem:[%s10829_s1 + $0x5b8] sm:$0xff]  }
  0x8b   :  { %4984 = vmatmul.mubr.bf16.gmra.mrb[28].mxu0 %v8228_v37  ;;  %v8297_v37 = vld [vmem:[%s10829_s1 + $0x5f8] sm:$0xff]  }
  0x8c   :  { %7396 = vmatpush3.bf16.msra.mxu0 %v8233_v41  ;;  %5033 = vmatmul.mubr.bf16.gmra.mrb[28].mxu1 %v8235_v43  ;;  %v8302_v41 = vld [vmem:[%s10830_s0 + $0x54] ss:$244 sps:$4 sm:$0xff]   ;;  %v8305_v43 = vld [vmem:[%s10830_s0 + $0x5c] ss:$244 sps:$4 sm:$0xff]  }
  0x8d   :  { %7424 = vmatpush3.bf16.msra.mxu1 %v8234_v42  ;;  %7397 = vmatprep.subr.bf16.mxu0 %v8236_v44  ;;  %v8303_v42 = vld [vmem:[%s10830_s0 + $0x58] ss:$244 sps:$4 sm:$0xff]   ;;  %v8306_v44 = vld [vmem:[%s10829_s1 + $0x640] sm:$0xff]  }
  0x8e   :  { %7425 = vmatprep.subr.bf16.mxu1 %v8237_v45  ;;  %5073 = vmatprep.mubr.bf16.mxu0 %v8258_v1  ;;  %v8307_v45 = vld [vmem:[%s10829_s1 + $0x6c0] sm:$0xff]  }
  0x8f   :  { %5122 = vmatprep.mubr.bf16.mxu1 %v8261_v3  ;;  %v8329_v1 = vld [vmem:[%s10829_s1 + $0x6e0] sm:$0xff]  }
  0x90   :  { %7398 = vmatpush3.bf16.msra.mxu0 %v8238_v46  ;;  %v8308_v46 = vld [vmem:[%s10829_s1 + $0x600] sm:$0xff]  }
  0x91   :  { %7426 = vmatpush3.bf16.msra.mxu1 %v8239_v47  ;;  %7399 = vmatprep.subr.bf16.mxu0 %v8240_v48  ;;  %v8309_v47 = vld [vmem:[%s10829_s1 + $0x680] sm:$0xff]   ;;  %v8310_v48 = vld [vmem:[%s10829_s1 + $0x648] sm:$0xff]  }
  0x92   :  { %7427 = vmatprep.subr.bf16.mxu1 %v8241_v49  ;;  %v8311_v49 = vld [vmem:[%s10829_s1 + $0x6c8] sm:$0xff]   ;;  %v8331_v3 = vld [vmem:[%s10829_s1 + $0x6a0] sm:$0xff]  }
  0x94   :  { %7400 = vmatpush3.bf16.msra.mxu0 %v8242_v50  ;;  %v8312_v50 = vld [vmem:[%s10829_s1 + $0x608] sm:$0xff]  }
  0x95   :  { %7428 = vmatpush3.bf16.msra.mxu1 %v8243_v51  ;;  %7401 = vmatprep.subr.bf16.mxu0 %v8244_v52  ;;  %v8313_v51 = vld [vmem:[%s10829_s1 + $0x688] sm:$0xff]   ;;  %v8314_v52 = vld [vmem:[%s10830_s0 + $0x23c] ss:$244 sps:$4 sm:$0xff]  }
  0x96   :  { %7429 = vmatprep.subr.bf16.mxu1 %v8245_v53  ;;  %v8316_v53 = vld [vmem:[%s10830_s0 + $0x238] ss:$244 sps:$4 sm:$0xff]  }
  0x98   :  { %7402 = vmatpush3.bf16.msra.mxu0 %v8246_v54  ;;  %v8317_v54 = vld [vmem:[%s10829_s1 + $0x650] sm:$0xff]  }
  0x99   :  { %7430 = vmatpush3.bf16.msra.mxu1 %v8247_v55  ;;  %7403 = vmatprep.subr.bf16.mxu0 %v8248_v56  ;;  %v8318_v55 = vld [vmem:[%s10829_s1 + $0x6d0] sm:$0xff]   ;;  %v8319_v56 = vld [vmem:[%s10830_s0 + $0x244] ss:$244 sps:$4 sm:$0xff]  }
  0x9a   :  { %7431 = vmatprep.subr.bf16.mxu1 %v8249_v57  ;;  %v8321_v57 = vld [vmem:[%s10829_s1 + $0x610] sm:$0xff]  }
  0x9c   :  { %7404 = vmatpush3.bf16.msra.mxu0 %v8250_v58  ;;  %v8322_v58 = vld [vmem:[%s10829_s1 + $0x690] sm:$0xff]  }
  0x9d   :  { %7432 = vmatpush3.bf16.msra.mxu1 %v8251_v59  ;;  %7405 = vmatprep.subr.bf16.mxu0 %v8252_v60  ;;  %v8323_v59 = vld [vmem:[%s10830_s0 + $0x240] ss:$244 sps:$4 sm:$0xff]   ;;  %v8324_v60 = vld [vmem:[%s10829_s1 + $0x658] sm:$0xff]  }
  0x9e   :  { %7433 = vmatprep.subr.bf16.mxu1 %v8253_v61  ;;  %v8325_v61 = vld [vmem:[%s10829_s1 + $0x6d8] sm:$0xff]  }
  0xa0   :  { %7406 = vmatpush3.bf16.msra.mxu0 %v8254_v62  ;;  %v8326_v62 = vld [vmem:[%s10829_s1 + $0x618] sm:$0xff]  }
  0xa1   :  { %7434 = vmatpush3.bf16.msra.mxu1 %v8255_v63  ;;  %7447 = vmatprep.subr.bf16.mxu0 %v8262_v4  ;;  %v8327_v63 = vld [vmem:[%s10829_s1 + $0x698] sm:$0xff]   ;;  %v8332_v4 = vld [vmem:[%s10829_s1 + $0x668] sm:$0xff]  }
  0xa2   :  { %7475 = vmatprep.subr.bf16.mxu1 %v8263_v5  ;;  %v8333_v5 = vld [vmem:[%s10829_s1 + $0x6e8] sm:$0xff]  }
  0xa3   :  { %5074 = vmatmul.mubr.bf16.vlgmr.msra.gmra.mrb[32].mxu0 %v8256_v0  ;;  %v8328_v0 = vld [vmem:[%s10829_s1 + $0x660] sm:$0xff]  }
  0xa4   :  { %5123 = vmatmul.mubr.bf16.vlgmr.msra.gmra.mrb[32].mxu1 %v8259_v2  ;;  %7448 = vmatpush3.bf16.msra.mxu0 %v8264_v6  ;;  %v8330_v2 = vld [vmem:[%s10829_s1 + $0x620] sm:$0xff]   ;;  %v8334_v6 = vld [vmem:[%s10829_s1 + $0x628] sm:$0xff]  }
  0xa5   :  { %7476 = vmatpush3.bf16.msra.mxu1 %v8265_v7  ;;  %7449 = vmatprep.subr.bf16.mxu0 %v8266_v8  ;;  %v8335_v7 = vld [vmem:[%s10829_s1 + $0x6a8] sm:$0xff]  }
  0xa6   :  { %7477 = vmatprep.subr.bf16.mxu1 %v8267_v9  ;;  %5081 = vmatprep.mubr.bf16.mxu0 %v8270_v12  ;;  %v8336_v9 = vld [vmem:[%s10829_s1 + $0x670] sm:$0xff]  }
  0xa7   :  { %5130 = vmatprep.mubr.bf16.mxu1 %v8275_v16  ;;  %v8339_v16 = vld [vmem:[%s10829_s1 + $0x6b0] sm:$0xff]  }
  0xa8   :  { %7450 = vmatpush3.bf16.msra.mxu0 %v8268_v10 }
  0xa9   :  { %7478 = vmatpush3.bf16.msra.mxu1 %v8269_v11  ;;  %7451 = vmatprep.subr.bf16.mxu0 %v8273_v14  ;;  %v8337_v11 = vld [vmem:[%s10829_s1 + $0x6f0] sm:$0xff]  }
  0xaa   :  { %7479 = vmatprep.subr.bf16.mxu1 %v8274_v15 }
  0xab   :  { %5082 = vmatmul.mubr.bf16.gmra.mrb[36].mxu0 %v8272_v13  ;;  %v8338_v13 = vld [vmem:[%s10829_s1 + $0x630] sm:$0xff]  }
  0xac   :  { %7452 = vmatpush3.bf16.msra.mxu0 %v8277_v17  ;;  %5131 = vmatmul.mubr.bf16.gmra.mrb[36].mxu1 %v8279_v19  ;;  %v8340_v19 = vld [vmem:[%s10829_s1 + $0x678] sm:$0xff]  }
  0xad   :  { %7480 = vmatpush3.bf16.msra.mxu1 %v8278_v18  ;;  %7453 = vmatprep.subr.bf16.mxu0 %v8280_v20 }
  0xae   :  { %7481 = vmatprep.subr.bf16.mxu1 %v8281_v21  ;;  %5171 = vmatprep.mubr.bf16.mxu0 %v8302_v41  ;;  %v8341_v21 = vld [vmem:[%s10829_s1 + $0x6f8] sm:$0xff]   ;;  %v8357_v41 = vld [vmem:[%s10829_s1 + $0x788] sm:$0xff]  }
  0xaf   :  { %5220 = vmatprep.mubr.bf16.mxu1 %v8305_v43  ;;  %v8360_v43 = vld [vmem:[%s10830_s0 + $0x248] ss:$244 sps:$4 sm:$0xff]  }
  0xb0   :  { %7454 = vmatpush3.bf16.msra.mxu0 %v8282_v22 }
  0xb1   :  { %7482 = vmatpush3.bf16.msra.mxu1 %v8283_v23  ;;  %7455 = vmatprep.subr.bf16.mxu0 %v8284_v24  ;;  %v8342_v24 = vld [vmem:[%s10829_s1 + $0x638] sm:$0xff]  }
  0xb2   :  { %7483 = vmatprep.subr.bf16.mxu1 %v8285_v25 }
  0xb4   :  { %7456 = vmatpush3.bf16.msra.mxu0 %v8286_v26 }
  0xb5   :  { %7484 = vmatpush3.bf16.msra.mxu1 %v8287_v27  ;;  %7457 = vmatprep.subr.bf16.mxu0 %v8288_v28  ;;  %v8343_v27 = vld [vmem:[%s10829_s1 + $0x6b8] sm:$0xff]  }
  0xb6   :  { %7485 = vmatprep.subr.bf16.mxu1 %v8289_v29  ;;  %v8344_v29 = vld [vmem:[%s10830_s0 + $0x60] ss:$244 sps:$4 sm:$0xff]  }
  0xb8   :  { %7458 = vmatpush3.bf16.msra.mxu0 %v8290_v30  ;;  %v8346_v30 = vld [vmem:[%s10830_s0 + $0x64] ss:$244 sps:$4 sm:$0xff]  }
  0xb9   :  { %7486 = vmatpush3.bf16.msra.mxu1 %v8291_v31  ;;  %7459 = vmatprep.subr.bf16.mxu0 %v8292_v32  ;;  %v8347_v32 = vld [vmem:[%s10830_s0 + $0x68] ss:$244 sps:$4 sm:$0xff]  }
  0xba   :  { %7487 = vmatprep.subr.bf16.mxu1 %v8293_v33  ;;  %v8349_v33 = vld [vmem:[%s10830_s0 + $0x6c] ss:$244 sps:$4 sm:$0xff]  }
  0xbc   :  { %7460 = vmatpush3.bf16.msra.mxu0 %v8294_v34  ;;  %v8350_v34 = vld [vmem:[%s10829_s1 + $0x740] sm:$0xff]  }
  0xbd   :  { %7488 = vmatpush3.bf16.msra.mxu1 %v8295_v35  ;;  %7461 = vmatprep.subr.bf16.mxu0 %v8296_v36  ;;  %v8351_v35 = vld [vmem:[%s10829_s1 + $0x7c0] sm:$0xff]  }
  0xbe   :  { %7489 = vmatprep.subr.bf16.mxu1 %v8297_v37  ;;  %v8352_v36 = vld [vmem:[%s10829_s1 + $0x700] sm:$0xff]  }
  0xbf   :  { %v8353_v37 = vld [vmem:[%s10829_s1 + $0x780] sm:$0xff]  }
  0xc0   :  { %7462 = vmatpush3.bf16.msra.mxu0 %v8298_v38  ;;  %v8354_v38 = vld [vmem:[%s10829_s1 + $0x748] sm:$0xff]  }
  0xc1   :  { %7490 = vmatpush3.bf16.msra.mxu1 %v8299_v39  ;;  %7503 = vmatprep.subr.bf16.mxu0 %v8306_v44  ;;  %v8355_v39 = vld [vmem:[%s10829_s1 + $0x7c8] sm:$0xff]   ;;  %v8361_v44 = vld [vmem:[%s10829_s1 + $0x750] sm:$0xff]  }
  0xc2   :  { %7531 = vmatprep.subr.bf16.mxu1 %v8307_v45  ;;  %v8362_v45 = vld [vmem:[%s10829_s1 + $0x7d0] sm:$0xff]  }
  0xc3   :  { %5172 = vmatmul.mubr.bf16.vlgmr.msra.gmra.mrb[40].mxu0 %v8300_v40  ;;  %v8356_v40 = vld [vmem:[%s10829_s1 + $0x708] sm:$0xff]  }
  0xc4   :  { %5221 = vmatmul.mubr.bf16.vlgmr.msra.gmra.mrb[40].mxu1 %v8303_v42  ;;  %7504 = vmatpush3.bf16.msra.mxu0 %v8308_v46  ;;  %v8358_v42 = vld [vmem:[%s10830_s0 + $0x24c] ss:$244 sps:$4 sm:$0xff]   ;;  %v8363_v46 = vld [vmem:[%s10830_s0 + $0x254] ss:$244 sps:$4 sm:$0xff]  }
  0xc5   :  { %7532 = vmatpush3.bf16.msra.mxu1 %v8309_v47  ;;  %7505 = vmatprep.subr.bf16.mxu0 %v8310_v48  ;;  %v8365_v47 = vld [vmem:[%s10829_s1 + $0x710] sm:$0xff]  }
  0xc6   :  { %7533 = vmatprep.subr.bf16.mxu1 %v8311_v49  ;;  %5179 = vmatprep.mubr.bf16.mxu0 %v8314_v52  ;;  %v8366_v48 = vld [vmem:[%s10829_s1 + $0x790] sm:$0xff]   ;;  %v8369_v52 = vld [vmem:[%s10829_s1 + $0x7d8] sm:$0xff]  }
  0xc7   :  { %5228 = vmatprep.mubr.bf16.mxu1 %v8319_v56  ;;  %v8367_v49 = vld [vmem:[%s10830_s0 + $0x250] ss:$244 sps:$4 sm:$0xff]   ;;  %v8371_v56 = vld [vmem:[%s10829_s1 + $0x798] sm:$0xff]  }
  0xc8   :  { %7506 = vmatpush3.bf16.msra.mxu0 %v8312_v50  ;;  %v8368_v50 = vld [vmem:[%s10829_s1 + $0x758] sm:$0xff]  }
  0xc9   :  { %7534 = vmatpush3.bf16.msra.mxu1 %v8313_v51  ;;  %7507 = vmatprep.subr.bf16.mxu0 %v8317_v54  ;;  %v8370_v54 = vld [vmem:[%s10829_s1 + $0x718] sm:$0xff]  }
  0xca   :  { %7535 = vmatprep.subr.bf16.mxu1 %v8318_v55 }
  0xcb   :  { %5180 = vmatmul.mubr.bf16.gmra.mrb[44].mxu0 %v8316_v53 }
  0xcc   :  { %7508 = vmatpush3.bf16.msra.mxu0 %v8321_v57  ;;  %5229 = vmatmul.mubr.bf16.gmra.mrb[44].mxu1 %v8323_v59  ;;  %v8372_v59 = vld [vmem:[%s10829_s1 + $0x760] sm:$0xff]  }
  0xcd   :  { %7536 = vmatpush3.bf16.msra.mxu1 %v8322_v58  ;;  %7509 = vmatprep.subr.bf16.mxu0 %v8324_v60 }
  0xce   :  { %7537 = vmatprep.subr.bf16.mxu1 %v8325_v61  ;;  %5269 = vmatprep.mubr.bf16.mxu0 %v8346_v30 }
  0xcf   :  { %5318 = vmatprep.mubr.bf16.mxu1 %v8349_v33 }
  0xd0   :  { %7510 = vmatpush3.bf16.msra.mxu0 %v8326_v62  ;;  %v8373_v62 = vld [vmem:[%s10829_s1 + $0x7e0] sm:$0xff]  }
  0xd1   :  { %7538 = vmatpush3.bf16.msra.mxu1 %v8327_v63  ;;  %7511 = vmatprep.subr.bf16.mxu0 %v8328_v0  ;;  %v8374_v0 = vld [vmem:[%s10829_s1 + $0x720] sm:$0xff]  }
  0xd2   :  { %7539 = vmatprep.subr.bf16.mxu1 %v8329_v1 }
  0xd4   :  { %7512 = vmatpush3.bf16.msra.mxu0 %v8330_v2 }
  0xd5   :  { %7540 = vmatpush3.bf16.msra.mxu1 %v8331_v3  ;;  %7513 = vmatprep.subr.bf16.mxu0 %v8332_v4  ;;  %v8375_v3 = vld [vmem:[%s10829_s1 + $0x7a0] sm:$0xff]  }
  0xd6   :  { %7541 = vmatprep.subr.bf16.mxu1 %v8333_v5 }
  0xd8   :  { %7514 = vmatpush3.bf16.msra.mxu0 %v8334_v6  ;;  %v8376_v6 = vld [vmem:[%s10829_s1 + $0x768] sm:$0xff]  }
  0xd9   :  { %7542 = vmatpush3.bf16.msra.mxu1 %v8335_v7  ;;  %7515 = vmatprep.subr.bf16.mxu0 %v8336_v9  ;;  %v8378_v9 = vld [vmem:[%s10829_s1 + $0x728] sm:$0xff]  }
  0xda   :  { %7543 = vmatprep.subr.bf16.mxu1 %v8337_v11 }
  0xdc   :  { %7516 = vmatpush3.bf16.msra.mxu0 %v8338_v13 }
  0xdd   :  { %7544 = vmatpush3.bf16.msra.mxu1 %v8339_v16  ;;  %7517 = vmatprep.subr.bf16.mxu0 %v8340_v19  ;;  %v8381_v16 = vld [vmem:[%s10829_s1 + $0x7f0] sm:$0xff]  }
  0xde   :  { %7545 = vmatprep.subr.bf16.mxu1 %v8341_v21  ;;  %v8382_v19 = vld [vmem:[%s10829_s1 + $0x730] sm:$0xff]  }
  0xe0   :  { %7518 = vmatpush3.bf16.msra.mxu0 %v8342_v24 }
  0xe1   :  { %7546 = vmatpush3.bf16.msra.mxu1 %v8343_v27  ;;  %7559 = vmatprep.subr.bf16.mxu0 %v8350_v34  ;;  %v8387_v34 = vld [vmem:[%s10829_s1 + $0x7b8] sm:$0xff]  }
  0xe2   :  { %7587 = vmatprep.subr.bf16.mxu1 %v8351_v35 }
  0xe3   :  { %5270 = vmatmul.mubr.bf16.vlgmr.msra.gmra.mrb[48].mxu0 %v8344_v29 }
  0xe4   :  { %5319 = vmatmul.mubr.bf16.vlgmr.msra.gmra.mrb[48].mxu1 %v8347_v32  ;;  %7560 = vmatpush3.bf16.msra.mxu0 %v8352_v36  ;;  %v8388_v36 = vld [vmem:[%s10830_s0 + $0x70] ss:$244 sps:$4 sm:$0xff]  }
  0xe5   :  { %7588 = vmatpush3.bf16.msra.mxu1 %v8353_v37  ;;  %7561 = vmatprep.subr.bf16.mxu0 %v8354_v38  ;;  %v8390_v37 = vld [vmem:[%s10830_s0 + $0x74] ss:$244 sps:$4 sm:$0xff]  }
  0xe6   :  { %7589 = vmatprep.subr.bf16.mxu1 %v8355_v39  ;;  %5277 = vmatprep.mubr.bf16.mxu0 %v8358_v42  ;;  %v8391_v39 = vld [vmem:[%s10830_s0 + $0x78] ss:$244 sps:$4 sm:$0xff]   ;;  %v8394_v42 = vld [vmem:[%s10829_s1 + $0x840] sm:$0xff]  }
  0xe7   :  { %5326 = vmatprep.mubr.bf16.mxu1 %v8363_v46 }
  0xe8   :  { %7562 = vmatpush3.bf16.msra.mxu0 %v8356_v40  ;;  %v8393_v40 = vld [vmem:[%s10830_s0 + $0x7c] ss:$244 sps:$4 sm:$0xff]  }
  0xe9   :  { %7590 = vmatpush3.bf16.msra.mxu1 %v8357_v41  ;;  %7563 = vmatprep.subr.bf16.mxu0 %v8361_v44 }
  0xea   :  { %7591 = vmatprep.subr.bf16.mxu1 %v8362_v45  ;;  %v8395_v45 = vld [vmem:[%s10829_s1 + $0x8c0] sm:$0xff]  }
  0xeb   :  { %5278 = vmatmul.mubr.bf16.gmra.mrb[52].mxu0 %v8360_v43 }
  0xec   :  { %7564 = vmatpush3.bf16.msra.mxu0 %v8365_v47  ;;  %5327 = vmatmul.mubr.bf16.gmra.mrb[52].mxu1 %v8367_v49  ;;  %v8396_v47 = vld [vmem:[%s10829_s1 + $0x800] sm:$0xff]  }
  0xed   :  { %7592 = vmatpush3.bf16.msra.mxu1 %v8366_v48  ;;  %7565 = vmatprep.subr.bf16.mxu0 %v8368_v50  ;;  %v8397_v50 = vld [vmem:[%s10829_s1 + $0x880] sm:$0xff]  }
  0xee   :  { %7593 = vmatprep.subr.bf16.mxu1 %v8369_v52  ;;  %5367 = vmatprep.mubr.bf16.mxu0 %v8390_v37 }
  0xef   :  { %5416 = vmatprep.mubr.bf16.mxu1 %v8393_v40  ;;  %v8430_v40 = vld [vmem:[%s10829_s1 + $0x838] sm:$0xff]  }
  0xf0   :  { %7566 = vmatpush3.bf16.msra.mxu0 %v8370_v54  ;;  %v8399_v54 = vld [vmem:[%s10829_s1 + $0x8c8] sm:$0xff]  }
  0xf1   :  { %7594 = vmatpush3.bf16.msra.mxu1 %v8371_v56  ;;  %7567 = vmatprep.subr.bf16.mxu0 %v8372_v59  ;;  %v8400_v56 = vld [vmem:[%s10829_s1 + $0x808] sm:$0xff]  }
  0xf2   :  { %7595 = vmatprep.subr.bf16.mxu1 %v8373_v62  ;;  %v8401_v59 = vld [vmem:[%s10829_s1 + $0x888] sm:$0xff]  }
  0xf4   :  { %7568 = vmatpush3.bf16.msra.mxu0 %v8374_v0  ;;  %v8404_v0 = vld [vmem:[%s10830_s0 + $0x258] ss:$244 sps:$4 sm:$0xff]  }
  0xf5   :  { %7596 = vmatpush3.bf16.msra.mxu1 %v8375_v3  ;;  %7569 = vmatprep.subr.bf16.mxu0 %v8376_v6  ;;  %v8406_v3 = vld [vmem:[%s10829_s1 + $0x8d0] sm:$0xff]  }
  0xf6   :  { %v7183_v8 = vpop.f32.mrb[0].mxu0  ;;  %v8410_v6 = vld [vmem:[%s10829_s1 + $0x890] sm:$0xff]  }
  0xf7   :  { %v7211_v10 = vpop.f32.mrb[0].mxu1  ;;  %v7184_v12 = vpop.f32.mrb[1].mxu0 }
  0xf8   :  { %v7185_v14 = vadd.f32 %v7184_v12, %v7183_v8  ;;  %v7212_v15 = vpop.f32.mrb[1].mxu1  ;;  %v7186_v18 = vpop.f32.mrb[2].mxu0  ;;  %v8377_v8 = vld [vmem:[%s10829_s1 + $0x7e8] sm:$0xff]   ;;  %7570 = vmatpush3.bf16.msra.mxu0 %v8378_v9  ;;  %v8413_v9 = vld [vmem:[%s10829_s1 + $0x8d8] sm:$0xff]  }
  0xf9   :  { %v7213_v17 = vadd.f32 %v7212_v15, %v7211_v10  ;;  %v7214_v20 = vpop.f32.mrb[2].mxu1  ;;  %v7187_v23 = vpop.f32.mrb[3].mxu0  ;;  %7597 = vmatprep.subr.bf16.mxu1 %v8377_v8  ;;  %v8379_v12 = vld [vmem:[%s10829_s1 + $0x7a8] sm:$0xff]   ;;  %v8412_v8 = vld [vmem:[%s10829_s1 + $0x858] sm:$0xff]  }
  0xfa   :  { %v7188_v25 = vadd.f32 %v7187_v23, %v7186_v18  ;;  %v7215_v26 = vpop.f32.mrb[3].mxu1  ;;  %7598 = vmatpush3.bf16.msra.mxu1 %v8379_v12  ;;  %v8383_v23 = vld [vmem:[%s10829_s1 + $0x7b0] sm:$0xff]   ;;  %v8416_v12 = vld [vmem:[%s10829_s1 + $0x860] sm:$0xff]  }
  0xfb   :  { %v9614_v22 = vadd.f32 %v7213_v17, %v7185_v14  ;;  %v7216_v28 = vadd.f32 %v7215_v26, %v7214_v20  ;;  %v8380_v14 = vld [vmem:[%s10829_s1 + $0x770] sm:$0xff]   ;;  %7599 = vmatprep.subr.bf16.mxu1 %v8381_v16  ;;  %v8384_v26 = vld [vmem:[%s10829_s1 + $0x778] sm:$0xff]   ;;  %v8420_v16 = vld [vmem:[%s10829_s1 + $0x868] sm:$0xff]  }
  0xfc   :  { %7571 = vmatprep.subr.bf16.mxu0 %v8380_v14  ;;  %v8418_v14 = vld [vmem:[%s10829_s1 + $0x820] sm:$0xff]  }
  0xfd   :  { %v9628_v31 = vadd.f32 %v7216_v28, %v7188_v25  ;;  %7572 = vmatpush3.bf16.msra.mxu0 %v8382_v19  ;;  %v8385_v28 = vld [vmem:[%s10829_s1 + $0x7f8] sm:$0xff]  }
  0xfe   :  { %v7189_v51 = vpop.f32.mrb[4].mxu0  ;;  %7600 = vmatpush3.bf16.msra.mxu1 %v8383_v23  ;;  %7573 = vmatprep.subr.bf16.mxu0 %v8384_v26  ;;  %v8424_v23 = vld [vmem:[%s10829_s1 + $0x870] sm:$0xff]  }
  0xff   :  { %v7217_v53 = vpop.f32.mrb[4].mxu1  ;;  %v7190_v55 = vpop.f32.mrb[5].mxu0  ;;  %7601 = vmatprep.subr.bf16.mxu1 %v8385_v28  ;;  %v8425_v26 = vld [vmem:[%s10829_s1 + $0x8f0] sm:$0xff]  }
 0x100   :  { %v7191_v57 = vadd.f32 %v7190_v55, %v7189_v51  ;;  %v7218_v58 = vpop.f32.mrb[5].mxu1  ;;  %v7192_v61 = vpop.f32.mrb[6].mxu0  ;;  %v8398_v51 = vld [vmem:[%s10829_s1 + $0x848] sm:$0xff]   ;;  %v8426_v28 = vld [vmem:[%s10829_s1 + $0x830] sm:$0xff]  }
 0x101   :  { %v7219_v60 = vadd.f32 %v7218_v58, %v7217_v53  ;;  %v7220_v63 = vpop.f32.mrb[6].mxu1  ;;  %v7193_v2 = vpop.f32.mrb[7].mxu0 }
 0x102   :  { %v7194_v4 = vadd.f32 %v7193_v2, %v7192_v61  ;;  %v7221_v5 = vpop.f32.mrb[7].mxu1  ;;  %7602 = vmatpush3.bf16.msra.mxu1 %v8387_v34  ;;  %v8402_v61 = vld [vmem:[%s10830_s0 + $0x25c] ss:$244 sps:$4 sm:$0xff]  }
 0x103   :  { %v9705_v1 = vadd.f32 %v7219_v60, %v7191_v57  ;;  %v7222_v7 = vadd.f32 %v7221_v5, %v7220_v63  ;;  %7643 = vmatprep.subr.bf16.mxu1 %v8395_v45  ;;  %v8409_v5 = vld [vmem:[%s10829_s1 + $0x810] sm:$0xff]   ;;  %v8434_v45 = vld [vmem:[%s10830_s0 + $0x84] ss:$244 sps:$4 sm:$0xff]  }
 0x105   :  { %v4744_v10 = vadd.f32 %v7222_v7, %v7194_v4  ;;  %5417 = vmatmul.mubr.bf16.vlgmr.msra.gmra.mrb[56].mxu1 %v8391_v39  ;;  %v8407_v4 = vld [vmem:[%s10830_s0 + $0x264] ss:$244 sps:$4 sm:$0xff]   ;;  %v8411_v7 = vld [vmem:[%s10830_s0 + $0x260] ss:$244 sps:$4 sm:$0xff]  }
 0x106   :  { %7644 = vmatpush3.bf16.msra.mxu1 %v8397_v50  ;;  %5424 = vmatprep.mubr.bf16.mxu1 %v8407_v4 }
 0x107   :  { %7645 = vmatprep.subr.bf16.mxu1 %v8399_v54  ;;  %v8440_v54 = vld [vmem:[%s10829_s1 + $0x900] sm:$0xff]  }
 0x10a   :  { %7646 = vmatpush3.bf16.msra.mxu1 %v8401_v59 }
 0x10b   :  { %7647 = vmatprep.subr.bf16.mxu1 %v8406_v3 }
 0x10d   :  { %5425 = vmatmul.mubr.bf16.gmra.mrb[60].mxu1 %v8411_v7 }
 0x10e   :  { %7648 = vmatpush3.bf16.msra.mxu1 %v8410_v6 }
 0x10f   :  { %7649 = vmatprep.subr.bf16.mxu1 %v8413_v9  ;;  %v8449_v9 = vld [vmem:[%s10829_s1 + $0x950] sm:$0xff]  }
 0x116   :  { %v7239_v11 = vpop.f32.mrb[8].mxu0 }
 0x117   :  { %v7267_v13 = vpop.f32.mrb[8].mxu1  ;;  %v7240_v15 = vpop.f32.mrb[9].mxu0 }
 0x118   :  { %v7241_v17 = vadd.f32 %v7240_v15, %v7239_v11  ;;  %v7268_v18 = vpop.f32.mrb[9].mxu1  ;;  %v7242_v21 = vpop.f32.mrb[10].mxu0  ;;  %v8415_v11 = vld [vmem:[%s10829_s1 + $0x898] sm:$0xff]   ;;  %v8419_v15 = vld [vmem:[%s10829_s1 + $0x8a0] sm:$0xff]  }
 0x119   :  { %v7269_v20 = vadd.f32 %v7268_v18, %v7267_v13  ;;  %v7270_v25 = vpop.f32.mrb[10].mxu1  ;;  %v7243_v27 = vpop.f32.mrb[11].mxu0  ;;  %7650 = vmatpush3.bf16.msra.mxu1 %v8415_v11  ;;  %v8417_v13 = vld [vmem:[%s10829_s1 + $0x8e0] sm:$0xff]   ;;  %v8422_v18 = vld [vmem:[%s10829_s1 + $0x828] sm:$0xff]   ;;  %v8450_v11 = vld [vmem:[%s10829_s1 + $0x9d0] sm:$0xff]  }
 0x11a   :  { %v4782_v24 = vadd.f32 %v7241_v17, %v9614_v22  ;;  %v7244_v30 = vadd.f32 %v7243_v27, %v7242_v21  ;;  %v7271_v32 = vpop.f32.mrb[11].mxu1  ;;  %v8386_v22 = vld [vmem:[%s10829_s1 + $0x738] sm:$0xff]   ;;  %7651 = vmatprep.subr.bf16.mxu1 %v8417_v13  ;;  %v8421_v17 = vld [vmem:[%s10829_s1 + $0x8e8] sm:$0xff]   ;;  %v8453_v13 = vld [vmem:[%s10829_s1 + $0x910] sm:$0xff]  }
 0x11b   :  { %v7272_v33 = vadd.f32 %v7271_v32, %v7270_v25  ;;  %7574 = vmatpush3.bf16.msra.mxu0 %v8386_v22 }
 0x11c   :  { %v9741_v29 = vadd.f32 %v7269_v20, %v4782_v24  ;;  %v4785_v35 = vadd.f32 %v7244_v30, %v9628_v31  ;;  %7615 = vmatprep.subr.bf16.mxu0 %v8394_v42  ;;  %v8423_v20 = vld [vmem:[%s10829_s1 + $0x8a8] sm:$0xff]   ;;  %v8431_v42 = vld [vmem:[%s10829_s1 + $0x8b8] sm:$0xff]  }
 0x11d   :  { %7652 = vmatpush3.bf16.msra.mxu1 %v8419_v15  ;;  %v8455_v15 = vld [vmem:[%s10830_s0 + $0x270] ss:$244 sps:$4 sm:$0xff]  }
 0x11e   :  { %v7245_v38 = vpop.f32.mrb[12].mxu0  ;;  %v9762_v31 = vadd.f32 %v7272_v33, %v4785_v35  ;;  %5368 = vmatmul.mubr.bf16.vlgmr.msra.gmra.mrb[56].mxu0 %v8388_v36  ;;  %7653 = vmatprep.subr.bf16.mxu1 %v8421_v17  ;;  %v8427_v33 = vld [vmem:[%s10829_s1 + $0x8b0] sm:$0xff]   ;;  %v8428_v35 = vld [vmem:[%s10829_s1 + $0x878] sm:$0xff]  }
 0x11f   :  { %v7246_v41 = vpop.f32.mrb[13].mxu0  ;;  %7616 = vmatpush3.bf16.msra.mxu0 %v8396_v47  ;;  %v7273_v52 = vpop.f32.mrb[12].mxu1  ;;  %5375 = vmatprep.mubr.bf16.mxu0 %v8402_v61  ;;  %v8457_v17 = vld [vmem:[%s10829_s1 + $0x9d8] sm:$0xff]  }
 0x120   :  { %v7247_v43 = vadd.f32 %v7246_v41, %v7245_v38  ;;  %v7248_v44 = vpop.f32.mrb[14].mxu0  ;;  %v7274_v55 = vpop.f32.mrb[13].mxu1  ;;  %7617 = vmatprep.subr.bf16.mxu0 %v8398_v51  ;;  %v8439_v51 = vld [vmem:[%s10829_s1 + $0x9c0] sm:$0xff]  }
 0x121   :  { %v7249_v46 = vpop.f32.mrb[15].mxu0  ;;  %v7275_v57 = vadd.f32 %v7274_v55, %v7273_v52  ;;  %v7276_v58 = vpop.f32.mrb[14].mxu1  ;;  %7654 = vmatpush3.bf16.msra.mxu1 %v8423_v20  ;;  %v8460_v20 = vld [vmem:[%s10829_s1 + $0x960] sm:$0xff]  }
 0x122   :  { %v4790_v48 = vadd.f32 %v7247_v43, %v9705_v1  ;;  %v7250_v49 = vadd.f32 %v7249_v46, %v7248_v44  ;;  %v7277_v60 = vpop.f32.mrb[15].mxu1  ;;  %v8405_v1 = vld [vmem:[%s10829_s1 + $0x850] sm:$0xff]   ;;  %7655 = vmatprep.subr.bf16.mxu1 %v8425_v26  ;;  %v8435_v46 = vld [vmem:[%s10830_s0 + $0x88] ss:$244 sps:$4 sm:$0xff]  }
 0x123   :  { %7618 = vmatpush3.bf16.msra.mxu0 %v8400_v56  ;;  %v7278_v63 = vadd.f32 %v7277_v60, %v7276_v58  ;;  %v8432_v44 = vld [vmem:[%s10830_s0 + $0x80] ss:$244 sps:$4 sm:$0xff]   ;;  %v8442_v60 = vld [vmem:[%s10829_s1 + $0x948] sm:$0xff]  }
 0x124   :  { %v4793_v53 = vadd.f32 %v7250_v49, %v4744_v10  ;;  %v9792_v62 = vadd.f32 %v7275_v57, %v4790_v48  ;;  %7619 = vmatprep.subr.bf16.mxu0 %v8405_v1  ;;  %v8414_v10 = vld [vmem:[%s10829_s1 + $0x818] sm:$0xff]   ;;  %v8438_v49 = vld [vmem:[%s10829_s1 + $0x940] sm:$0xff]   ;;  %v8465_v26 = vld [vmem:[%s10829_s1 + $0x9e8] sm:$0xff]  }
 0x125   :  { %7656 = vmatpush3.bf16.msra.mxu1 %v8427_v33  ;;  %v8441_v56 = vld [vmem:[%s10829_s1 + $0x980] sm:$0xff]   ;;  %v8469_v33 = vld [vmem:[%s10829_s1 + $0x9f0] sm:$0xff]  }
 0x126   :  { %v9800_v2 = vadd.f32 %v7278_v63, %v4793_v53  ;;  %5376 = vmatmul.mubr.bf16.gmra.mrb[60].mxu0 %v8404_v0  ;;  %v8443_v63 = vld [vmem:[%s10829_s1 + $0x9c8] sm:$0xff]  }
 0x127   :  { %7620 = vmatpush3.bf16.msra.mxu0 %v8409_v5  ;;  %5465 = vmatprep.mubr.bf16.mxu0 %v8434_v45  ;;  %v8445_v5 = vld [vmem:[%s10829_s1 + $0x988] sm:$0xff]  }
 0x128   :  { %7621 = vmatprep.subr.bf16.mxu0 %v8412_v8  ;;  %v8448_v8 = vld [vmem:[%s10830_s0 + $0x268] ss:$244 sps:$4 sm:$0xff]  }
 0x12b   :  { %7622 = vmatpush3.bf16.msra.mxu0 %v8414_v10 }
 0x12c   :  { %7623 = vmatprep.subr.bf16.mxu0 %v8416_v12  ;;  %v8451_v12 = vld [vmem:[%s10830_s0 + $0x274] ss:$244 sps:$4 sm:$0xff]  }
 0x12f   :  { %7624 = vmatpush3.bf16.msra.mxu0 %v8418_v14  ;;  %v8454_v14 = vld [vmem:[%s10829_s1 + $0x990] sm:$0xff]  }
 0x130   :  { %7625 = vmatprep.subr.bf16.mxu0 %v8420_v16  ;;  %v8456_v16 = vld [vmem:[%s10829_s1 + $0x958] sm:$0xff]  }
 0x133   :  { %7626 = vmatpush3.bf16.msra.mxu0 %v8422_v18  ;;  %v8458_v18 = vld [vmem:[%s10829_s1 + $0x918] sm:$0xff]  }
 0x134   :  { %7627 = vmatprep.subr.bf16.mxu0 %v8424_v23  ;;  %v8462_v23 = vld [vmem:[%s10829_s1 + $0x920] sm:$0xff]  }
 0x136   :  { %v7295_v19 = vpop.f32.mrb[16].mxu0 }
 0x137   :  { %v7296_v21 = vpop.f32.mrb[17].mxu0  ;;  %v7323_v24 = vpop.f32.mrb[16].mxu1  ;;  %7628 = vmatpush3.bf16.msra.mxu0 %v8426_v28  ;;  %v8467_v28 = vld [vmem:[%s10829_s1 + $0x9a8] sm:$0xff]  }
 0x138   :  { %v7297_v25 = vadd.f32 %v7296_v21, %v7295_v19  ;;  %v7324_v27 = vpop.f32.mrb[17].mxu1  ;;  %v7298_v22 = vpop.f32.mrb[18].mxu0  ;;  %7629 = vmatprep.subr.bf16.mxu0 %v8428_v35  ;;  %v8459_v19 = vld [vmem:[%s10829_s1 + $0x998] sm:$0xff]   ;;  %v8461_v21 = vld [vmem:[%s10829_s1 + $0x9e0] sm:$0xff]   ;;  %v8470_v35 = vld [vmem:[%s10829_s1 + $0x930] sm:$0xff]  }
 0x139   :  { %v7325_v32 = vadd.f32 %v7324_v27, %v7323_v24  ;;  %v7326_v34 = vpop.f32.mrb[18].mxu1  ;;  %v7299_v37 = vpop.f32.mrb[19].mxu0  ;;  %v8463_v24 = vld [vmem:[%s10829_s1 + $0x9a0] sm:$0xff]   ;;  %v8466_v27 = vld [vmem:[%s10829_s1 + $0x928] sm:$0xff]  }
 0x13a   :  { %v4880_v30 = vadd.f32 %v7297_v25, %v9741_v29  ;;  %v8429_v29 = vld [vmem:[%s10829_s1 + $0x8f8] sm:$0xff]   ;;  %v7300_v38 = vadd.f32 %v7299_v37, %v7298_v22  ;;  %v7327_v39 = vpop.f32.mrb[19].mxu1  ;;  %v8464_v25 = vld [vmem:[%s10829_s1 + $0x968] sm:$0xff]  }
 0x13b   :  { %v7328_v41 = vadd.f32 %v7327_v39, %v7326_v34  ;;  %7657 = vmatprep.subr.bf16.mxu1 %v8429_v29  ;;  %7630 = vmatpush3.bf16.msra.mxu0 %v8430_v40 }
 0x13c   :  { %v9869_v36 = vadd.f32 %v7325_v32, %v4880_v30  ;;  %v4883_v43 = vadd.f32 %v7300_v38, %v9762_v31  ;;  %7658 = vmatpush3.bf16.msra.mxu1 %v8431_v42  ;;  %v8437_v31 = vld [vmem:[%s10830_s0 + $0x8c] ss:$244 sps:$4 sm:$0xff]   ;;  %7671 = vmatprep.subr.bf16.mxu0 %v8438_v49  ;;  %v8468_v32 = vld [vmem:[%s10829_s1 + $0x970] sm:$0xff]  }
 0x13d   :  { %5514 = vmatprep.mubr.bf16.mxu1 %v8437_v31  ;;  %7699 = vmatprep.subr.bf16.mxu1 %v8439_v51  ;;  %v8471_v38 = vld [vmem:[%s10829_s1 + $0x9b0] sm:$0xff]  }
 0x13e   :  { %v9890_v47 = vadd.f32 %v7328_v41, %v4883_v43  ;;  %v7301_v48 = vpop.f32.mrb[20].mxu0  ;;  %5466 = vmatmul.mubr.bf16.vlgmr.msra.gmra.mrb[64].mxu0 %v8432_v44  ;;  %v8472_v41 = vld [vmem:[%s10829_s1 + $0x978] sm:$0xff]   ;;  %v8476_v51 = vld [vmem:[%s10830_s0 + $0x90] ss:$244 sps:$4 sm:$0xff]  }
 0x13f   :  { %v7302_v50 = vpop.f32.mrb[21].mxu0  ;;  %5515 = vmatmul.mubr.bf16.vlgmr.msra.gmra.mrb[64].mxu1 %v8435_v46  ;;  %v7329_v58 = vpop.f32.mrb[20].mxu1  ;;  %7672 = vmatpush3.bf16.msra.mxu0 %v8440_v54  ;;  %v8473_v44 = vld [vmem:[%s10829_s1 + $0x9f8] sm:$0xff]  }
 0x140   :  { %v7303_v52 = vadd.f32 %v7302_v50, %v7301_v48  ;;  %v7304_v53 = vpop.f32.mrb[22].mxu0  ;;  %v7330_v61 = vpop.f32.mrb[21].mxu1  ;;  %7700 = vmatpush3.bf16.msra.mxu1 %v8441_v56  ;;  %7673 = vmatprep.subr.bf16.mxu0 %v8442_v60  ;;  %v8474_v46 = vld [vmem:[%s10829_s1 + $0x938] sm:$0xff]  }
 0x141   :  { %v7305_v55 = vpop.f32.mrb[23].mxu0  ;;  %v7331_v1 = vadd.f32 %v7330_v61, %v7329_v58  ;;  %v7332_v3 = vpop.f32.mrb[22].mxu1  ;;  %7701 = vmatprep.subr.bf16.mxu1 %v8443_v63  ;;  %5522 = vmatprep.mubr.bf16.mxu1 %v8451_v12  ;;  %v8481_v56 = vld [vmem:[%s10830_s0 + $0x9c] ss:$244 sps:$4 sm:$0xff]   ;;  %v8484_v63 = vld [vmem:[%s10829_s1 + $0xa00] sm:$0xff]  }
 0x142   :  { %v4888_v57 = vadd.f32 %v7303_v52, %v9792_v62  ;;  %v7306_v59 = vadd.f32 %v7305_v55, %v7304_v53  ;;  %v8444_v62 = vld [vmem:[%s10829_s1 + $0x908] sm:$0xff]   ;;  %v7333_v4 = vpop.f32.mrb[23].mxu1 }
 0x143   :  { %v7334_v7 = vadd.f32 %v7333_v4, %v7332_v3  ;;  %7674 = vmatpush3.bf16.msra.mxu0 %v8444_v62  ;;  %v8478_v53 = vld [vmem:[%s10830_s0 + $0x94] ss:$244 sps:$4 sm:$0xff]   ;;  %v8479_v55 = vld [vmem:[%s10830_s0 + $0x98] ss:$244 sps:$4 sm:$0xff]  }
 0x144   :  { %v4891_v0 = vadd.f32 %v7306_v59, %v9800_v2  ;;  %v9921_v6 = vadd.f32 %v7331_v1, %v4888_v57  ;;  %v8446_v2 = vld [vmem:[%s10830_s0 + $0x26c] ss:$244 sps:$4 sm:$0xff]   ;;  %7702 = vmatpush3.bf16.msra.mxu1 %v8445_v5  ;;  %7675 = vmatprep.subr.bf16.mxu0 %v8449_v9 }
 0x145   :  { %5473 = vmatprep.mubr.bf16.mxu0 %v8446_v2  ;;  %7703 = vmatprep.subr.bf16.mxu1 %v8450_v11  ;;  %v8483_v59 = vld [vmem:[%s10829_s1 + $0xac0] sm:$0xff]   ;;  %v8486_v5 = vld [vmem:[%s10829_s1 + $0xa48] sm:$0xff]  }
 0x146   :  { %v9932_v10 = vadd.f32 %v7334_v7, %v4891_v0  ;;  %5474 = vmatmul.mubr.bf16.gmra.mrb[68].mxu0 %v8448_v8  ;;  %v8485_v1 = vld [vmem:[%s10829_s1 + $0xa80] sm:$0xff]   ;;  %v8487_v2 = vld [vmem:[%s10829_s1 + $0xac8] sm:$0xff]  }
 0x147   :  { %7676 = vmatpush3.bf16.msra.mxu0 %v8453_v13  ;;  %5523 = vmatmul.mubr.bf16.gmra.mrb[68].mxu1 %v8455_v15  ;;  %v8489_v13 = vld [vmem:[%s10829_s1 + $0xa88] sm:$0xff]  }
 0x148   :  { %7704 = vmatpush3.bf16.msra.mxu1 %v8454_v14  ;;  %7677 = vmatprep.subr.bf16.mxu0 %v8456_v16  ;;  %v8492_v16 = vld [vmem:[%s10830_s0 + $0x278] ss:$244 sps:$4 sm:$0xff]  }
 0x149   :  { %7705 = vmatprep.subr.bf16.mxu1 %v8457_v17  ;;  %5563 = vmatprep.mubr.bf16.mxu0 %v8478_v53  ;;  %v8493_v17 = vld [vmem:[%s10829_s1 + $0xa50] sm:$0xff]   ;;  %v8517_v53 = vld [vmem:[%s10829_s1 + $0xaf8] sm:$0xff]  }
 0x14a   :  { %5612 = vmatprep.mubr.bf16.mxu1 %v8481_v56 }
 0x14b   :  { %7678 = vmatpush3.bf16.msra.mxu0 %v8458_v18 }
 0x14c   :  { %7706 = vmatpush3.bf16.msra.mxu1 %v8459_v19  ;;  %7679 = vmatprep.subr.bf16.mxu0 %v8460_v20  ;;  %v8494_v19 = vld [vmem:[%s10829_s1 + $0xad0] sm:$0xff]   ;;  %v8495_v20 = vld [vmem:[%s10830_s0 + $0x284] ss:$244 sps:$4 sm:$0xff]  }
 0x14d   :  { %7707 = vmatprep.subr.bf16.mxu1 %v8461_v21  ;;  %v8497_v21 = vld [vmem:[%s10829_s1 + $0xa10] sm:$0xff]  }
 0x14f   :  { %7680 = vmatpush3.bf16.msra.mxu0 %v8462_v23  ;;  %v8498_v23 = vld [vmem:[%s10829_s1 + $0xa90] sm:$0xff]  }
 0x150   :  { %7708 = vmatpush3.bf16.msra.mxu1 %v8463_v24  ;;  %7681 = vmatprep.subr.bf16.mxu0 %v8464_v25  ;;  %v8499_v24 = vld [vmem:[%s10830_s0 + $0x280] ss:$244 sps:$4 sm:$0xff]   ;;  %v8500_v25 = vld [vmem:[%s10829_s1 + $0xa58] sm:$0xff]  }
 0x151   :  { %7709 = vmatprep.subr.bf16.mxu1 %v8465_v26  ;;  %v8501_v26 = vld [vmem:[%s10829_s1 + $0xad8] sm:$0xff]  }
 0x153   :  { %7682 = vmatpush3.bf16.msra.mxu0 %v8466_v27  ;;  %v8502_v27 = vld [vmem:[%s10829_s1 + $0xa18] sm:$0xff]  }
 0x154   :  { %7710 = vmatpush3.bf16.msra.mxu1 %v8467_v28  ;;  %7683 = vmatprep.subr.bf16.mxu0 %v8468_v32  ;;  %v8503_v28 = vld [vmem:[%s10829_s1 + $0xa98] sm:$0xff]   ;;  %v8505_v32 = vld [vmem:[%s10829_s1 + $0xae0] sm:$0xff]  }
 0x155   :  { %7711 = vmatprep.subr.bf16.mxu1 %v8469_v33  ;;  %v8507_v33 = vld [vmem:[%s10829_s1 + $0xaa0] sm:$0xff]  }
 0x156   :  { %v7351_v30 = vpop.f32.mrb[24].mxu0 }
 0x157   :  { %v7379_v22 = vpop.f32.mrb[24].mxu1  ;;  %v7352_v34 = vpop.f32.mrb[25].mxu0  ;;  %7684 = vmatpush3.bf16.msra.mxu0 %v8470_v35  ;;  %v8509_v35 = vld [vmem:[%s10829_s1 + $0xae8] sm:$0xff]  }
 0x158   :  { %v7353_v37 = vadd.f32 %v7352_v34, %v7351_v30  ;;  %v7380_v29 = vpop.f32.mrb[25].mxu1  ;;  %v7354_v40 = vpop.f32.mrb[26].mxu0  ;;  %7712 = vmatpush3.bf16.msra.mxu1 %v8471_v38  ;;  %7685 = vmatprep.subr.bf16.mxu0 %v8472_v41  ;;  %v8504_v30 = vld [vmem:[%s10829_s1 + $0xa60] sm:$0xff]   ;;  %v8508_v34 = vld [vmem:[%s10829_s1 + $0xa68] sm:$0xff]  }
 0x159   :  { %v7381_v39 = vadd.f32 %v7380_v29, %v7379_v22  ;;  %v7382_v43 = vpop.f32.mrb[26].mxu1  ;;  %v7355_v45 = vpop.f32.mrb[27].mxu0  ;;  %7713 = vmatprep.subr.bf16.mxu1 %v8473_v44  ;;  %v8506_v22 = vld [vmem:[%s10829_s1 + $0xa20] sm:$0xff]   ;;  %v8511_v38 = vld [vmem:[%s10829_s1 + $0xaa8] sm:$0xff]  }
 0x15a   :  { %v4978_v42 = vadd.f32 %v7353_v37, %v9869_v36  ;;  %v7356_v31 = vadd.f32 %v7355_v45, %v7354_v40  ;;  %v7383_v49 = vpop.f32.mrb[27].mxu1  ;;  %v8475_v36 = vld [vmem:[%s10829_s1 + $0x9b8] sm:$0xff]   ;;  %v8510_v37 = vld [vmem:[%s10829_s1 + $0xa28] sm:$0xff]   ;;  %v8512_v40 = vld [vmem:[%s10829_s1 + $0xa70] sm:$0xff]  }
 0x15b   :  { %v7384_v50 = vadd.f32 %v7383_v49, %v7382_v43  ;;  %7686 = vmatpush3.bf16.msra.mxu0 %v8474_v46  ;;  %v8514_v45 = vld [vmem:[%s10829_s1 + $0xa30] sm:$0xff]  }
 0x15c   :  { %v10007_v48 = vadd.f32 %v7381_v39, %v4978_v42  ;;  %v4981_v52 = vadd.f32 %v7356_v31, %v9890_v47  ;;  %7714 = vmatpush3.bf16.msra.mxu1 %v8475_v36  ;;  %v8482_v47 = vld [vmem:[%s10829_s1 + $0xa40] sm:$0xff]   ;;  %v8513_v42 = vld [vmem:[%s10829_s1 + $0xaf0] sm:$0xff]  }
 0x15d   :  { %7727 = vmatprep.subr.bf16.mxu0 %v8482_v47  ;;  %7755 = vmatprep.subr.bf16.mxu1 %v8483_v59  ;;  %v8515_v49 = vld [vmem:[%s10829_s1 + $0xab0] sm:$0xff]  }
 0x15e   :  { %v7357_v54 = vpop.f32.mrb[28].mxu0  ;;  %v10025_v57 = vadd.f32 %v7384_v50, %v4981_v52  ;;  %5564 = vmatmul.mubr.bf16.vlgmr.msra.gmra.mrb[72].mxu0 %v8476_v51  ;;  %v8516_v51 = vld [vmem:[%s10829_s1 + $0xa78] sm:$0xff]  }
 0x15f   :  { %v7358_v58 = vpop.f32.mrb[29].mxu0  ;;  %5613 = vmatmul.mubr.bf16.vlgmr.msra.gmra.mrb[72].mxu1 %v8479_v55  ;;  %v7385_v62 = vpop.f32.mrb[28].mxu1  ;;  %7728 = vmatpush3.bf16.msra.mxu0 %v8484_v63 }
 0x160   :  { %v7359_v60 = vadd.f32 %v7358_v58, %v7357_v54  ;;  %v7360_v61 = vpop.f32.mrb[30].mxu0  ;;  %v7386_v7 = vpop.f32.mrb[29].mxu1  ;;  %7756 = vmatpush3.bf16.msra.mxu1 %v8485_v1  ;;  %7729 = vmatprep.subr.bf16.mxu0 %v8486_v5  ;;  %v8519_v58 = vld [vmem:[%s10829_s1 + $0xab8] sm:$0xff]   ;;  %v8525_v1 = vld [vmem:[%s10830_s0 + $0xac] ss:$244 sps:$4 sm:$0xff]  }
 0x161   :  { %v7361_v0 = vpop.f32.mrb[31].mxu0  ;;  %v7387_v9 = vadd.f32 %v7386_v7, %v7385_v62  ;;  %v7388_v11 = vpop.f32.mrb[30].mxu1  ;;  %7757 = vmatprep.subr.bf16.mxu1 %v8487_v2  ;;  %5620 = vmatprep.mubr.bf16.mxu1 %v8495_v20  ;;  %v8526_v62 = vld [vmem:[%s10829_s1 + $0xb40] sm:$0xff]   ;;  %v8533_v20 = vld [vmem:[%s10829_s1 + $0xb88] sm:$0xff]  }
 0x162   :  { %v4986_v3 = vadd.f32 %v7359_v60, %v9921_v6  ;;  %v7362_v4 = vadd.f32 %v7361_v0, %v7360_v61  ;;  %v8488_v6 = vld [vmem:[%s10829_s1 + $0xa08] sm:$0xff]   ;;  %v7389_v12 = vpop.f32.mrb[31].mxu1  ;;  %v8520_v60 = vld [vmem:[%s10830_s0 + $0xa0] ss:$244 sps:$4 sm:$0xff]   ;;  %v8522_v61 = vld [vmem:[%s10830_s0 + $0xa4] ss:$244 sps:$4 sm:$0xff]  }
 0x163   :  { %v7390_v15 = vadd.f32 %v7389_v12, %v7388_v11  ;;  %7730 = vmatpush3.bf16.msra.mxu0 %v8488_v6  ;;  %v8523_v0 = vld [vmem:[%s10830_s0 + $0xa8] ss:$244 sps:$4 sm:$0xff]   ;;  %v8527_v7 = vld [vmem:[%s10829_s1 + $0xbc0] sm:$0xff]  }
 0x164   :  { %v4989_v8 = vadd.f32 %v7362_v4, %v9932_v10  ;;  %v10053_v14 = vadd.f32 %v7387_v9, %v4986_v3  ;;  %v8490_v10 = vld [vmem:[%s10830_s0 + $0x27c] ss:$244 sps:$4 sm:$0xff]   ;;  %7758 = vmatpush3.bf16.msra.mxu1 %v8489_v13  ;;  %7731 = vmatprep.subr.bf16.mxu0 %v8493_v17  ;;  %v8529_v6 = vld [vmem:[%s10829_s1 + $0xb80] sm:$0xff]   ;;  %v8530_v12 = vld [vmem:[%s10829_s1 + $0xb48] sm:$0xff]  }
 0x165   :  { %5571 = vmatprep.mubr.bf16.mxu0 %v8490_v10  ;;  %7759 = vmatprep.subr.bf16.mxu1 %v8494_v19  ;;  %v8531_v10 = vld [vmem:[%s10829_s1 + $0xbc8] sm:$0xff]  }
 0x166   :  { %v10064_v18 = vadd.f32 %v7390_v15, %v4989_v8  ;;  %5572 = vmatmul.mubr.bf16.gmra.mrb[76].mxu0 %v8492_v16  ;;  %v8528_v8 = vld [vmem:[%s10829_s1 + $0xb00] sm:$0xff]   ;;  %v8532_v16 = vld [vmem:[%s10829_s1 + $0xb08] sm:$0xff]  }
 0x167   :  { %7732 = vmatpush3.bf16.msra.mxu0 %v8497_v21  ;;  %5621 = vmatmul.mubr.bf16.gmra.mrb[76].mxu1 %v8499_v24 }
 0x168   :  { %7760 = vmatpush3.bf16.msra.mxu1 %v8498_v23  ;;  %7733 = vmatprep.subr.bf16.mxu0 %v8500_v25  ;;  %v8536_v25 = vld [vmem:[%s10830_s0 + $0x288] ss:$244 sps:$4 sm:$0xff]  }
 0x169   :  { %7761 = vmatprep.subr.bf16.mxu1 %v8501_v26  ;;  %5661 = vmatprep.mubr.bf16.mxu0 %v8522_v61  ;;  %v8537_v26 = vld [vmem:[%s10829_s1 + $0xb50] sm:$0xff]  }
 0x16a   :  { %5710 = vmatprep.mubr.bf16.mxu1 %v8525_v1  ;;  %v8562_v1 = vld [vmem:[%s10829_s1 + $0xb38] sm:$0xff]  }
 0x16b   :  { %7734 = vmatpush3.bf16.msra.mxu0 %v8502_v27 }
 0x16c   :  { %7762 = vmatpush3.bf16.msra.mxu1 %v8503_v28  ;;  %7735 = vmatprep.subr.bf16.mxu0 %v8504_v30  ;;  %v8538_v28 = vld [vmem:[%s10829_s1 + $0xbd0] sm:$0xff]  }
 0x16d   :  { %7763 = vmatprep.subr.bf16.mxu1 %v8505_v32  ;;  %v8539_v30 = vld [vmem:[%s10830_s0 + $0x294] ss:$244 sps:$4 sm:$0xff]  }
 0x16e   :  { %v8541_v32 = vld [vmem:[%s10829_s1 + $0xb10] sm:$0xff]  }
 0x16f   :  { %7736 = vmatpush3.bf16.msra.mxu0 %v8506_v22  ;;  %v8542_v22 = vld [vmem:[%s10829_s1 + $0xb90] sm:$0xff]  }
 0x170   :  { %7764 = vmatpush3.bf16.msra.mxu1 %v8507_v33  ;;  %7737 = vmatprep.subr.bf16.mxu0 %v8508_v34  ;;  %v8543_v33 = vld [vmem:[%s10830_s0 + $0x290] ss:$244 sps:$4 sm:$0xff]   ;;  %v8544_v34 = vld [vmem:[%s10829_s1 + $0xb58] sm:$0xff]  }
 0x171   :  { %7765 = vmatprep.subr.bf16.mxu1 %v8509_v35  ;;  %v8545_v35 = vld [vmem:[%s10829_s1 + $0xbd8] sm:$0xff]  }
 0x173   :  { %7738 = vmatpush3.bf16.msra.mxu0 %v8510_v37  ;;  %v8546_v37 = vld [vmem:[%s10829_s1 + $0xb18] sm:$0xff]  }
 0x174   :  { %7766 = vmatpush3.bf16.msra.mxu1 %v8511_v38  ;;  %7739 = vmatprep.subr.bf16.mxu0 %v8512_v40  ;;  %v8548_v38 = vld [vmem:[%s10829_s1 + $0xb60] sm:$0xff]  }
 0x175   :  { %7767 = vmatprep.subr.bf16.mxu1 %v8513_v42  ;;  %v8550_v40 = vld [vmem:[%s10829_s1 + $0xb20] sm:$0xff]   ;;  %v8552_v42 = vld [vmem:[%s10829_s1 + $0xb68] sm:$0xff]  }
 0x176   :  { %v7407_v29 = vpop.f32.mrb[32].mxu0 }
 0x177   :  { %v7435_v39 = vpop.f32.mrb[32].mxu1  ;;  %v7408_v41 = vpop.f32.mrb[33].mxu0  ;;  %7740 = vmatpush3.bf16.msra.mxu0 %v8514_v45 }
 0x178   :  { %v7409_v43 = vadd.f32 %v7408_v41, %v7407_v29  ;;  %v7436_v44 = vpop.f32.mrb[33].mxu1  ;;  %v7410_v31 = vpop.f32.mrb[34].mxu0  ;;  %7768 = vmatpush3.bf16.msra.mxu1 %v8515_v49  ;;  %7741 = vmatprep.subr.bf16.mxu0 %v8516_v51  ;;  %v8547_v29 = vld [vmem:[%s10829_s1 + $0xb98] sm:$0xff]   ;;  %v8551_v41 = vld [vmem:[%s10829_s1 + $0xba0] sm:$0xff]   ;;  %v8556_v49 = vld [vmem:[%s10829_s1 + $0xb70] sm:$0xff]  }
 0x179   :  { %v7437_v46 = vadd.f32 %v7436_v44, %v7435_v39  ;;  %v7438_v50 = vpop.f32.mrb[34].mxu1  ;;  %v7411_v52 = vpop.f32.mrb[35].mxu0  ;;  %7769 = vmatprep.subr.bf16.mxu1 %v8517_v53  ;;  %v8549_v39 = vld [vmem:[%s10829_s1 + $0xbe0] sm:$0xff]   ;;  %v8554_v44 = vld [vmem:[%s10829_s1 + $0xb28] sm:$0xff]   ;;  %v8557_v51 = vld [vmem:[%s10829_s1 + $0xbf0] sm:$0xff]  }
 0x17a   :  { %v5076_v36 = vadd.f32 %v7409_v43, %v10007_v48  ;;  %v7412_v55 = vadd.f32 %v7411_v52, %v7410_v31  ;;  %v7439_v56 = vpop.f32.mrb[35].mxu1  ;;  %v8518_v48 = vld [vmem:[%s10829_s1 + $0xa38] sm:$0xff]   ;;  %v8553_v43 = vld [vmem:[%s10829_s1 + $0xbe8] sm:$0xff]   ;;  %v8558_v53 = vld [vmem:[%s10829_s1 + $0xb30] sm:$0xff]  }
 0x17b   :  { %v7440_v47 = vadd.f32 %v7439_v56, %v7438_v50  ;;  %7742 = vmatpush3.bf16.msra.mxu0 %v8518_v48 }
 0x17c   :  { %v10136_v54 = vadd.f32 %v7437_v46, %v5076_v36  ;;  %v5079_v59 = vadd.f32 %v7412_v55, %v10025_v57  ;;  %7770 = vmatpush3.bf16.msra.mxu1 %v8519_v58  ;;  %7783 = vmatprep.subr.bf16.mxu0 %v8526_v62  ;;  %v8555_v46 = vld [vmem:[%s10829_s1 + $0xba8] sm:$0xff]   ;;  %v8563_v62 = vld [vmem:[%s10829_s1 + $0xbb8] sm:$0xff]  }
 0x17d   :  { %7811 = vmatprep.subr.bf16.mxu1 %v8527_v7  ;;  %v8566_v7 = vld [vmem:[%s10830_s0 + $0xb4] ss:$244 sps:$4 sm:$0xff]  }
 0x17e   :  { %v7413_v63 = vpop.f32.mrb[36].mxu0  ;;  %v10157_v57 = vadd.f32 %v7440_v47, %v5079_v59  ;;  %5662 = vmatmul.mubr.bf16.vlgmr.msra.gmra.mrb[80].mxu0 %v8520_v60  ;;  %v8559_v47 = vld [vmem:[%s10829_s1 + $0xbb0] sm:$0xff]   ;;  %v8560_v59 = vld [vmem:[%s10829_s1 + $0xb78] sm:$0xff]  }
 0x17f   :  { %v7414_v3 = vpop.f32.mrb[37].mxu0  ;;  %5711 = vmatmul.mubr.bf16.vlgmr.msra.gmra.mrb[80].mxu1 %v8523_v0  ;;  %7784 = vmatpush3.bf16.msra.mxu0 %v8528_v8  ;;  %v7441_v13 = vpop.f32.mrb[36].mxu1 }
 0x180   :  { %v7415_v4 = vadd.f32 %v7414_v3, %v7413_v63  ;;  %v7416_v5 = vpop.f32.mrb[38].mxu0  ;;  %7812 = vmatpush3.bf16.msra.mxu1 %v8529_v6  ;;  %7785 = vmatprep.subr.bf16.mxu0 %v8530_v12  ;;  %v8571_v12 = vld [vmem:[%s10829_s1 + $0xcc0] sm:$0xff]  }
 0x181   :  { %v7417_v2 = vpop.f32.mrb[39].mxu0  ;;  %7813 = vmatprep.subr.bf16.mxu1 %v8531_v10  ;;  %5718 = vmatprep.mubr.bf16.mxu1 %v8539_v30  ;;  %v8572_v10 = vld [vmem:[%s10829_s1 + $0xc00] sm:$0xff]  }
 0x182   :  { %v5084_v9 = vadd.f32 %v7415_v4, %v10053_v14  ;;  %v7418_v11 = vadd.f32 %v7417_v2, %v7416_v5  ;;  %v7442_v14 = vpop.f32.mrb[37].mxu1  ;;  %v8564_v5 = vld [vmem:[%s10830_s0 + $0xb0] ss:$244 sps:$4 sm:$0xff]   ;;  %v8567_v2 = vld [vmem:[%s10830_s0 + $0xb8] ss:$244 sps:$4 sm:$0xff]  }
 0x183   :  { %v7443_v17 = vadd.f32 %v7442_v14, %v7441_v13  ;;  %v7444_v19 = vpop.f32.mrb[38].mxu1  ;;  %7786 = vmatpush3.bf16.msra.mxu0 %v8532_v16  ;;  %v8573_v16 = vld [vmem:[%s10829_s1 + $0xc80] sm:$0xff]  }
 0x184   :  { %v5087_v15 = vadd.f32 %v7418_v11, %v10064_v18  ;;  %v7445_v21 = vpop.f32.mrb[39].mxu1  ;;  %v8534_v18 = vld [vmem:[%s10830_s0 + $0x28c] ss:$244 sps:$4 sm:$0xff]   ;;  %7814 = vmatpush3.bf16.msra.mxu1 %v8533_v20  ;;  %7787 = vmatprep.subr.bf16.mxu0 %v8537_v26 }
 0x185   :  { %v10188_v23 = vadd.f32 %v7443_v17, %v5084_v9  ;;  %v7446_v24 = vadd.f32 %v7445_v21, %v7444_v19  ;;  %5669 = vmatprep.mubr.bf16.mxu0 %v8534_v18  ;;  %7815 = vmatprep.subr.bf16.mxu1 %v8538_v28  ;;  %v8570_v11 = vld [vmem:[%s10829_s1 + $0xc40] sm:$0xff]   ;;  %v8574_v21 = vld [vmem:[%s10829_s1 + $0xc48] sm:$0xff]  }
 0x186   :  { %5670 = vmatmul.mubr.bf16.gmra.mrb[84].mxu0 %v8536_v25 }
 0x187   :  { %v10196_v27 = vadd.f32 %v7446_v24, %v5087_v15  ;;  %7788 = vmatpush3.bf16.msra.mxu0 %v8541_v32  ;;  %5719 = vmatmul.mubr.bf16.gmra.mrb[84].mxu1 %v8543_v33  ;;  %v8575_v24 = vld [vmem:[%s10829_s1 + $0xcc8] sm:$0xff]  }
 0x188   :  { %7816 = vmatpush3.bf16.msra.mxu1 %v8542_v22  ;;  %7789 = vmatprep.subr.bf16.mxu0 %v8544_v34  ;;  %v8577_v32 = vld [vmem:[%s10829_s1 + $0xc88] sm:$0xff]  }
 0x189   :  { %7817 = vmatprep.subr.bf16.mxu1 %v8545_v35  ;;  %5759 = vmatprep.mubr.bf16.mxu0 %v8566_v7  ;;  %v8580_v34 = vld [vmem:[%s10830_s0 + $0x298] ss:$244 sps:$4 sm:$0xff]   ;;  %v8581_v35 = vld [vmem:[%s10829_s1 + $0xc50] sm:$0xff]  }
 0x18b   :  { %7790 = vmatpush3.bf16.msra.mxu0 %v8546_v37 }
 0x18c   :  { %7818 = vmatpush3.bf16.msra.mxu1 %v8547_v29  ;;  %7791 = vmatprep.subr.bf16.mxu0 %v8548_v38  ;;  %v8582_v29 = vld [vmem:[%s10829_s1 + $0xcd0] sm:$0xff]   ;;  %v8583_v38 = vld [vmem:[%s10830_s0 + $0x2a4] ss:$244 sps:$4 sm:$0xff]  }
 0x18d   :  { %7819 = vmatprep.subr.bf16.mxu1 %v8549_v39  ;;  %v8585_v39 = vld [vmem:[%s10829_s1 + $0xc10] sm:$0xff]  }
 0x18f   :  { %7792 = vmatpush3.bf16.msra.mxu0 %v8550_v40  ;;  %v8586_v40 = vld [vmem:[%s10829_s1 + $0xc90] sm:$0xff]  }
 0x190   :  { %7820 = vmatpush3.bf16.msra.mxu1 %v8551_v41  ;;  %7793 = vmatprep.subr.bf16.mxu0 %v8552_v42  ;;  %v8587_v41 = vld [vmem:[%s10830_s0 + $0x2a0] ss:$244 sps:$4 sm:$0xff]   ;;  %v8588_v42 = vld [vmem:[%s10829_s1 + $0xc58] sm:$0xff]  }
 0x191   :  { %7821 = vmatprep.subr.bf16.mxu1 %v8553_v43  ;;  %v8589_v43 = vld [vmem:[%s10829_s1 + $0xcd8] sm:$0xff]  }
 0x193   :  { %7794 = vmatpush3.bf16.msra.mxu0 %v8554_v44  ;;  %v8590_v44 = vld [vmem:[%s10829_s1 + $0xc18] sm:$0xff]  }
 0x194   :  { %7822 = vmatpush3.bf16.msra.mxu1 %v8555_v46  ;;  %7795 = vmatprep.subr.bf16.mxu0 %v8556_v49  ;;  %v8592_v46 = vld [vmem:[%s10829_s1 + $0xc60] sm:$0xff]  }
 0x195   :  { %7823 = vmatprep.subr.bf16.mxu1 %v8557_v51  ;;  %v8594_v49 = vld [vmem:[%s10829_s1 + $0xc20] sm:$0xff]   ;;  %v8597_v51 = vld [vmem:[%s10829_s1 + $0xce8] sm:$0xff]  }
 0x196   :  { %v7463_v45 = vpop.f32.mrb[40].mxu0 }
 0x197   :  { %v7464_v31 = vpop.f32.mrb[41].mxu0  ;;  %v7491_v36 = vpop.f32.mrb[40].mxu1  ;;  %7796 = vmatpush3.bf16.msra.mxu0 %v8558_v53  ;;  %v8599_v53 = vld [vmem:[%s10829_s1 + $0xca8] sm:$0xff]  }
 0x198   :  { %v7465_v50 = vadd.f32 %v7464_v31, %v7463_v45  ;;  %v7492_v52 = vpop.f32.mrb[41].mxu1  ;;  %v7466_v48 = vpop.f32.mrb[42].mxu0  ;;  %7824 = vmatpush3.bf16.msra.mxu1 %v8559_v47  ;;  %7797 = vmatprep.subr.bf16.mxu0 %v8560_v59  ;;  %v8591_v45 = vld [vmem:[%s10829_s1 + $0xc98] sm:$0xff]   ;;  %v8593_v31 = vld [vmem:[%s10829_s1 + $0xce0] sm:$0xff]   ;;  %v8601_v47 = vld [vmem:[%s10829_s1 + $0xcf0] sm:$0xff]  }
 0x199   :  { %v7493_v56 = vadd.f32 %v7492_v52, %v7491_v36  ;;  %v7494_v58 = vpop.f32.mrb[42].mxu1  ;;  %v7467_v61 = vpop.f32.mrb[43].mxu0  ;;  %v8595_v36 = vld [vmem:[%s10829_s1 + $0xca0] sm:$0xff]   ;;  %v8598_v52 = vld [vmem:[%s10829_s1 + $0xc28] sm:$0xff]   ;;  %v8602_v59 = vld [vmem:[%s10829_s1 + $0xc30] sm:$0xff]  }
 0x19a   :  { %v5174_v55 = vadd.f32 %v7465_v50, %v10136_v54  ;;  %v8561_v54 = vld [vmem:[%s10829_s1 + $0xbf8] sm:$0xff]   ;;  %v7468_v63 = vadd.f32 %v7467_v61, %v7466_v48  ;;  %v7495_v0 = vpop.f32.mrb[43].mxu1  ;;  %v8596_v50 = vld [vmem:[%s10829_s1 + $0xc68] sm:$0xff]  }
 0x19b   :  { %v7496_v3 = vadd.f32 %v7495_v0, %v7494_v58  ;;  %7825 = vmatprep.subr.bf16.mxu1 %v8561_v54  ;;  %7798 = vmatpush3.bf16.msra.mxu0 %v8562_v1 }
 0x19c   :  { %v10265_v60 = vadd.f32 %v7493_v56, %v5174_v55  ;;  %v5177_v4 = vadd.f32 %v7468_v63, %v10157_v57  ;;  %7826 = vmatpush3.bf16.msra.mxu1 %v8563_v62  ;;  %v8569_v57 = vld [vmem:[%s10830_s0 + $0xbc] ss:$244 sps:$4 sm:$0xff]   ;;  %7839 = vmatprep.subr.bf16.mxu0 %v8570_v11 }
 0x19d   :  { %5808 = vmatprep.mubr.bf16.mxu1 %v8569_v57  ;;  %7867 = vmatprep.subr.bf16.mxu1 %v8571_v12  ;;  %v8600_v56 = vld [vmem:[%s10829_s1 + $0xc70] sm:$0xff]  }
 0x19e   :  { %v10286_v8 = vadd.f32 %v7496_v3, %v5177_v4  ;;  %v7469_v9 = vpop.f32.mrb[44].mxu0  ;;  %5760 = vmatmul.mubr.bf16.vlgmr.msra.gmra.mrb[88].mxu0 %v8564_v5  ;;  %v8603_v63 = vld [vmem:[%s10829_s1 + $0xcb0] sm:$0xff]   ;;  %v8604_v3 = vld [vmem:[%s10829_s1 + $0xc78] sm:$0xff]  }
 0x19f   :  { %v7470_v6 = vpop.f32.mrb[45].mxu0  ;;  %5809 = vmatmul.mubr.bf16.vlgmr.msra.gmra.mrb[88].mxu1 %v8567_v2  ;;  %v7497_v19 = vpop.f32.mrb[44].mxu1  ;;  %7840 = vmatpush3.bf16.msra.mxu0 %v8572_v10  ;;  %v8605_v5 = vld [vmem:[%s10829_s1 + $0xcf8] sm:$0xff]   ;;  %v8608_v12 = vld [vmem:[%s10830_s0 + $0xc0] ss:$244 sps:$4 sm:$0xff]  }
 0x1a0   :  { %v7471_v13 = vadd.f32 %v7470_v6, %v7469_v9  ;;  %v7472_v15 = vpop.f32.mrb[46].mxu0  ;;  %v7498_v18 = vpop.f32.mrb[45].mxu1  ;;  %7868 = vmatpush3.bf16.msra.mxu1 %v8573_v16  ;;  %7841 = vmatprep.subr.bf16.mxu0 %v8574_v21  ;;  %v8606_v2 = vld [vmem:[%s10829_s1 + $0xc38] sm:$0xff]   ;;  %v8613_v16 = vld [vmem:[%s10830_s0 + $0xcc] ss:$244 sps:$4 sm:$0xff]  }
 0x1a1   :  { %v7473_v14 = vpop.f32.mrb[47].mxu0  ;;  %v7499_v26 = vadd.f32 %v7498_v18, %v7497_v19  ;;  %v7500_v28 = vpop.f32.mrb[46].mxu1  ;;  %7869 = vmatprep.subr.bf16.mxu1 %v8575_v24  ;;  %5816 = vmatprep.mubr.bf16.mxu1 %v8583_v38  ;;  %v8616_v24 = vld [vmem:[%s10829_s1 + $0xd00] sm:$0xff]  }
 0x1a2   :  { %v5182_v17 = vadd.f32 %v7471_v13, %v10188_v23  ;;  %v7474_v20 = vadd.f32 %v7473_v14, %v7472_v15  ;;  %v8576_v23 = vld [vmem:[%s10829_s1 + $0xc08] sm:$0xff]   ;;  %v7501_v30 = vpop.f32.mrb[47].mxu1  ;;  %v8610_v15 = vld [vmem:[%s10830_s0 + $0xc4] ss:$244 sps:$4 sm:$0xff]  }
 0x1a3   :  { %v7502_v33 = vadd.f32 %v7501_v30, %v7500_v28  ;;  %7842 = vmatpush3.bf16.msra.mxu0 %v8576_v23  ;;  %v8611_v14 = vld [vmem:[%s10830_s0 + $0xc8] ss:$244 sps:$4 sm:$0xff]  }
 0x1a4   :  { %v5185_v25 = vadd.f32 %v7474_v20, %v10196_v27  ;;  %v10317_v22 = vadd.f32 %v7499_v26, %v5182_v17  ;;  %v8578_v27 = vld [vmem:[%s10830_s0 + $0x29c] ss:$244 sps:$4 sm:$0xff]   ;;  %7870 = vmatpush3.bf16.msra.mxu1 %v8577_v32  ;;  %7843 = vmatprep.subr.bf16.mxu0 %v8581_v35  ;;  %v8615_v20 = vld [vmem:[%s10829_s1 + $0xdc0] sm:$0xff]   ;;  %v8618_v32 = vld [vmem:[%s10829_s1 + $0xd48] sm:$0xff]  }
 0x1a5   :  { %5767 = vmatprep.mubr.bf16.mxu0 %v8578_v27  ;;  %7871 = vmatprep.subr.bf16.mxu1 %v8582_v29  ;;  %v8617_v26 = vld [vmem:[%s10829_s1 + $0xd80] sm:$0xff]   ;;  %v8619_v27 = vld [vmem:[%s10829_s1 + $0xdc8] sm:$0xff]  }
 0x1a6   :  { %v10328_v37 = vadd.f32 %v7502_v33, %v5185_v25  ;;  %5768 = vmatmul.mubr.bf16.gmra.mrb[92].mxu0 %v8580_v34 }
 0x1a7   :  { %7844 = vmatpush3.bf16.msra.mxu0 %v8585_v39  ;;  %5817 = vmatmul.mubr.bf16.gmra.mrb[92].mxu1 %v8587_v41  ;;  %v8621_v39 = vld [vmem:[%s10829_s1 + $0xd88] sm:$0xff]  }
 0x1a8   :  { %7872 = vmatpush3.bf16.msra.mxu1 %v8586_v40  ;;  %7845 = vmatprep.subr.bf16.mxu0 %v8588_v42  ;;  %v8624_v42 = vld [vmem:[%s10830_s0 + $0x2a8] ss:$244 sps:$4 sm:$0xff]  }
 0x1a9   :  { %7873 = vmatprep.subr.bf16.mxu1 %v8589_v43  ;;  %5857 = vmatprep.mubr.bf16.mxu0 %v8610_v15  ;;  %v8625_v43 = vld [vmem:[%s10829_s1 + $0xd50] sm:$0xff]   ;;  %v8649_v15 = vld [vmem:[%s10829_s1 + $0xdf8] sm:$0xff]  }
 0x1aa   :  { %5906 = vmatprep.mubr.bf16.mxu1 %v8613_v16 }
 0x1ab   :  { %7846 = vmatpush3.bf16.msra.mxu0 %v8590_v44 }
 0x1ac   :  { %7874 = vmatpush3.bf16.msra.mxu1 %v8591_v45  ;;  %7847 = vmatprep.subr.bf16.mxu0 %v8592_v46  ;;  %v8626_v45 = vld [vmem:[%s10829_s1 + $0xdd0] sm:$0xff]  }
 0x1ad   :  { %7875 = vmatprep.subr.bf16.mxu1 %v8593_v31  ;;  %v8627_v46 = vld [vmem:[%s10830_s0 + $0x2b4] ss:$244 sps:$4 sm:$0xff]  }
 0x1ae   :  { %v8629_v31 = vld [vmem:[%s10829_s1 + $0xd10] sm:$0xff]  }
 0x1af   :  { %7848 = vmatpush3.bf16.msra.mxu0 %v8594_v49  ;;  %v8630_v49 = vld [vmem:[%s10829_s1 + $0xd90] sm:$0xff]  }
 0x1b0   :  { %7876 = vmatpush3.bf16.msra.mxu1 %v8595_v36  ;;  %7849 = vmatprep.subr.bf16.mxu0 %v8596_v50  ;;  %v8631_v36 = vld [vmem:[%s10830_s0 + $0x2b0] ss:$244 sps:$4 sm:$0xff]   ;;  %v8632_v50 = vld [vmem:[%s10829_s1 + $0xd58] sm:$0xff]  }
 0x1b1   :  { %7877 = vmatprep.subr.bf16.mxu1 %v8597_v51  ;;  %v8633_v51 = vld [vmem:[%s10829_s1 + $0xdd8] sm:$0xff]  }
 0x1b3   :  { %7850 = vmatpush3.bf16.msra.mxu0 %v8598_v52  ;;  %v8634_v52 = vld [vmem:[%s10829_s1 + $0xd18] sm:$0xff]  }
 0x1b4   :  { %7878 = vmatpush3.bf16.msra.mxu1 %v8599_v53  ;;  %7851 = vmatprep.subr.bf16.mxu0 %v8600_v56  ;;  %v8635_v53 = vld [vmem:[%s10829_s1 + $0xd98] sm:$0xff]   ;;  %v8637_v56 = vld [vmem:[%s10829_s1 + $0xde0] sm:$0xff]  }
 0x1b5   :  { %7879 = vmatprep.subr.bf16.mxu1 %v8601_v47  ;;  %v8639_v47 = vld [vmem:[%s10829_s1 + $0xda0] sm:$0xff]  }
 0x1b6   :  { %v7519_v55 = vpop.f32.mrb[48].mxu0 }
 0x1b7   :  { %v7547_v48 = vpop.f32.mrb[48].mxu1  ;;  %v7520_v58 = vpop.f32.mrb[49].mxu0  ;;  %7852 = vmatpush3.bf16.msra.mxu0 %v8602_v59  ;;  %v8641_v59 = vld [vmem:[%s10829_s1 + $0xde8] sm:$0xff]  }
 0x1b8   :  { %v7521_v61 = vadd.f32 %v7520_v58, %v7519_v55  ;;  %v7548_v54 = vpop.f32.mrb[49].mxu1  ;;  %v7522_v1 = vpop.f32.mrb[50].mxu0  ;;  %7880 = vmatpush3.bf16.msra.mxu1 %v8603_v63  ;;  %7853 = vmatprep.subr.bf16.mxu0 %v8604_v3  ;;  %v8636_v55 = vld [vmem:[%s10829_s1 + $0xd60] sm:$0xff]   ;;  %v8640_v58 = vld [vmem:[%s10829_s1 + $0xd68] sm:$0xff]  }
 0x1b9   :  { %v7549_v0 = vadd.f32 %v7548_v54, %v7547_v48  ;;  %v7550_v4 = vpop.f32.mrb[50].mxu1  ;;  %v7523_v7 = vpop.f32.mrb[51].mxu0  ;;  %7881 = vmatprep.subr.bf16.mxu1 %v8605_v5  ;;  %v8638_v48 = vld [vmem:[%s10829_s1 + $0xd20] sm:$0xff]   ;;  %v8643_v63 = vld [vmem:[%s10829_s1 + $0xda8] sm:$0xff]  }
 0x1ba   :  { %v5272_v62 = vadd.f32 %v7521_v61, %v10265_v60  ;;  %v7524_v57 = vadd.f32 %v7523_v7, %v7522_v1  ;;  %v7551_v11 = vpop.f32.mrb[51].mxu1  ;;  %v8607_v60 = vld [vmem:[%s10829_s1 + $0xcb8] sm:$0xff]   ;;  %v8642_v61 = vld [vmem:[%s10829_s1 + $0xd28] sm:$0xff]   ;;  %v8644_v1 = vld [vmem:[%s10829_s1 + $0xd70] sm:$0xff]  }
 0x1bb   :  { %v7552_v6 = vadd.f32 %v7551_v11, %v7550_v4  ;;  %7854 = vmatpush3.bf16.msra.mxu0 %v8606_v2  ;;  %v8646_v7 = vld [vmem:[%s10829_s1 + $0xd30] sm:$0xff]  }
 0x1bc   :  { %v10403_v9 = vadd.f32 %v7549_v0, %v5272_v62  ;;  %v5275_v13 = vadd.f32 %v7524_v57, %v10286_v8  ;;  %7882 = vmatpush3.bf16.msra.mxu1 %v8607_v60  ;;  %v8614_v8 = vld [vmem:[%s10829_s1 + $0xd40] sm:$0xff]   ;;  %v8645_v62 = vld [vmem:[%s10829_s1 + $0xdf0] sm:$0xff]  }
 0x1bd   :  { %7895 = vmatprep.subr.bf16.mxu0 %v8614_v8  ;;  %7923 = vmatprep.subr.bf16.mxu1 %v8615_v20  ;;  %v8647_v11 = vld [vmem:[%s10829_s1 + $0xdb0] sm:$0xff]  }
 0x1be   :  { %v7525_v10 = vpop.f32.mrb[52].mxu0  ;;  %v10421_v17 = vadd.f32 %v7552_v6, %v5275_v13  ;;  %5858 = vmatmul.mubr.bf16.vlgmr.msra.gmra.mrb[96].mxu0 %v8608_v12  ;;  %v8648_v12 = vld [vmem:[%s10829_s1 + $0xd78] sm:$0xff]  }
 0x1bf   :  { %v7526_v19 = vpop.f32.mrb[53].mxu0  ;;  %5907 = vmatmul.mubr.bf16.vlgmr.msra.gmra.mrb[96].mxu1 %v8611_v14  ;;  %v7553_v23 = vpop.f32.mrb[52].mxu1  ;;  %7896 = vmatpush3.bf16.msra.mxu0 %v8616_v24 }
 0x1c0   :  { %v7527_v21 = vadd.f32 %v7526_v19, %v7525_v10  ;;  %v7528_v18 = vpop.f32.mrb[54].mxu0  ;;  %v7554_v33 = vpop.f32.mrb[53].mxu1  ;;  %7924 = vmatpush3.bf16.msra.mxu1 %v8617_v26  ;;  %7897 = vmatprep.subr.bf16.mxu0 %v8618_v32  ;;  %v8651_v19 = vld [vmem:[%s10829_s1 + $0xdb8] sm:$0xff]  }
 0x1c1   :  { %v7529_v25 = vpop.f32.mrb[55].mxu0  ;;  %v7555_v35 = vadd.f32 %v7554_v33, %v7553_v23  ;;  %v7556_v29 = vpop.f32.mrb[54].mxu1  ;;  %7925 = vmatprep.subr.bf16.mxu1 %v8619_v27  ;;  %5914 = vmatprep.mubr.bf16.mxu1 %v8627_v46  ;;  %v8657_v26 = vld [vmem:[%s10830_s0 + $0xdc] ss:$244 sps:$4 sm:$0xff]   ;;  %v8658_v23 = vld [vmem:[%s10829_s1 + $0xe40] sm:$0xff]   ;;  %v8665_v46 = vld [vmem:[%s10829_s1 + $0xe88] sm:$0xff]  }
 0x1c2   :  { %v5280_v28 = vadd.f32 %v7527_v21, %v10317_v22  ;;  %v7530_v30 = vadd.f32 %v7529_v25, %v7528_v18  ;;  %v8620_v22 = vld [vmem:[%s10829_s1 + $0xd08] sm:$0xff]   ;;  %v7557_v38 = vpop.f32.mrb[55].mxu1  ;;  %v8652_v21 = vld [vmem:[%s10830_s0 + $0xd0] ss:$244 sps:$4 sm:$0xff]  }
 0x1c3   :  { %v7558_v41 = vadd.f32 %v7557_v38, %v7556_v29  ;;  %7898 = vmatpush3.bf16.msra.mxu0 %v8620_v22  ;;  %v8654_v18 = vld [vmem:[%s10830_s0 + $0xd4] ss:$244 sps:$4 sm:$0xff]   ;;  %v8655_v25 = vld [vmem:[%s10830_s0 + $0xd8] ss:$244 sps:$4 sm:$0xff]   ;;  %v8659_v33 = vld [vmem:[%s10829_s1 + $0xec0] sm:$0xff]  }
 0x1c4   :  { %v5283_v34 = vadd.f32 %v7530_v30, %v10328_v37  ;;  %v10449_v40 = vadd.f32 %v7555_v35, %v5280_v28  ;;  %v8622_v37 = vld [vmem:[%s10830_s0 + $0x2ac] ss:$244 sps:$4 sm:$0xff]   ;;  %7926 = vmatpush3.bf16.msra.mxu1 %v8621_v39  ;;  %7899 = vmatprep.subr.bf16.mxu0 %v8625_v43 }
 0x1c5   :  { %5865 = vmatprep.mubr.bf16.mxu0 %v8622_v37  ;;  %7927 = vmatprep.subr.bf16.mxu1 %v8626_v45  ;;  %v8661_v22 = vld [vmem:[%s10829_s1 + $0xe80] sm:$0xff]   ;;  %v8662_v38 = vld [vmem:[%s10829_s1 + $0xe48] sm:$0xff]  }
 0x1c6   :  { %v10460_v44 = vadd.f32 %v7558_v41, %v5283_v34  ;;  %5866 = vmatmul.mubr.bf16.gmra.mrb[100].mxu0 %v8624_v42  ;;  %v8660_v34 = vld [vmem:[%s10829_s1 + $0xe00] sm:$0xff]   ;;  %v8663_v37 = vld [vmem:[%s10829_s1 + $0xec8] sm:$0xff]  }
 0x1c7   :  { %7900 = vmatpush3.bf16.msra.mxu0 %v8629_v31  ;;  %5915 = vmatmul.mubr.bf16.gmra.mrb[100].mxu1 %v8631_v36  ;;  %v8664_v42 = vld [vmem:[%s10829_s1 + $0xe08] sm:$0xff]  }
 0x1c8   :  { %7928 = vmatpush3.bf16.msra.mxu1 %v8630_v49  ;;  %7901 = vmatprep.subr.bf16.mxu0 %v8632_v50  ;;  %v8668_v50 = vld [vmem:[%s10830_s0 + $0x2b8] ss:$244 sps:$4 sm:$0xff]  }
 0x1c9   :  { %7929 = vmatprep.subr.bf16.mxu1 %v8633_v51  ;;  %5955 = vmatprep.mubr.bf16.mxu0 %v8654_v18  ;;  %v8669_v51 = vld [vmem:[%s10829_s1 + $0xe50] sm:$0xff]  }
 0x1ca   :  { %6004 = vmatprep.mubr.bf16.mxu1 %v8657_v26  ;;  %v8694_v26 = vld [vmem:[%s10829_s1 + $0xe38] sm:$0xff]  }
 0x1cb   :  { %7902 = vmatpush3.bf16.msra.mxu0 %v8634_v52 }
 0x1cc   :  { %7930 = vmatpush3.bf16.msra.mxu1 %v8635_v53  ;;  %7903 = vmatprep.subr.bf16.mxu0 %v8636_v55  ;;  %v8670_v53 = vld [vmem:[%s10829_s1 + $0xed0] sm:$0xff]   ;;  %v8671_v55 = vld [vmem:[%s10830_s0 + $0x2c4] ss:$244 sps:$4 sm:$0xff]  }
 0x1cd   :  { %7931 = vmatprep.subr.bf16.mxu1 %v8637_v56  ;;  %v8673_v56 = vld [vmem:[%s10829_s1 + $0xe10] sm:$0xff]  }
 0x1cf   :  { %7904 = vmatpush3.bf16.msra.mxu0 %v8638_v48  ;;  %v8674_v48 = vld [vmem:[%s10829_s1 + $0xe90] sm:$0xff]  }
 0x1d0   :  { %7932 = vmatpush3.bf16.msra.mxu1 %v8639_v47  ;;  %7905 = vmatprep.subr.bf16.mxu0 %v8640_v58  ;;  %v8675_v47 = vld [vmem:[%s10830_s0 + $0x2c0] ss:$244 sps:$4 sm:$0xff]   ;;  %v8676_v58 = vld [vmem:[%s10829_s1 + $0xe58] sm:$0xff]  }
 0x1d1   :  { %7933 = vmatprep.subr.bf16.mxu1 %v8641_v59  ;;  %v8677_v59 = vld [vmem:[%s10829_s1 + $0xed8] sm:$0xff]  }
 0x1d3   :  { %7906 = vmatpush3.bf16.msra.mxu0 %v8642_v61  ;;  %v8678_v61 = vld [vmem:[%s10829_s1 + $0xe18] sm:$0xff]  }
 0x1d4   :  { %7934 = vmatpush3.bf16.msra.mxu1 %v8643_v63  ;;  %7907 = vmatprep.subr.bf16.mxu0 %v8644_v1  ;;  %v8680_v63 = vld [vmem:[%s10829_s1 + $0xe60] sm:$0xff]  }
 0x1d5   :  { %7935 = vmatprep.subr.bf16.mxu1 %v8645_v62  ;;  %v8682_v1 = vld [vmem:[%s10829_s1 + $0xe20] sm:$0xff]   ;;  %v8684_v62 = vld [vmem:[%s10829_s1 + $0xe68] sm:$0xff]  }
 0x1d7   :  { %7908 = vmatpush3.bf16.msra.mxu0 %v8646_v7 }
 0x1d8   :  { %v7603_v0 = vpop.f32.mrb[56].mxu1  ;;  %7936 = vmatpush3.bf16.msra.mxu1 %v8647_v11  ;;  %7909 = vmatprep.subr.bf16.mxu0 %v8648_v12  ;;  %v8688_v11 = vld [vmem:[%s10829_s1 + $0xe70] sm:$0xff]  }
 0x1d9   :  { %v7604_v5 = vpop.f32.mrb[57].mxu1  ;;  %7937 = vmatprep.subr.bf16.mxu1 %v8649_v15  ;;  %v8689_v12 = vld [vmem:[%s10829_s1 + $0xef0] sm:$0xff]  }
 0x1da   :  { %v7605_v2 = vadd.f32 %v7604_v5, %v7603_v0  ;;  %v7606_v6 = vpop.f32.mrb[58].mxu1  ;;  %v8681_v0 = vld [vmem:[%s10829_s1 + $0xee0] sm:$0xff]   ;;  %v8686_v5 = vld [vmem:[%s10829_s1 + $0xe28] sm:$0xff]   ;;  %v8690_v15 = vld [vmem:[%s10829_s1 + $0xe30] sm:$0xff]  }
 0x1db   :  { %v7607_v16 = vpop.f32.mrb[59].mxu1 }
 0x1dc   :  { %v7608_v8 = vadd.f32 %v7607_v16, %v7606_v6  ;;  %7938 = vmatpush3.bf16.msra.mxu1 %v8651_v19 }
 0x1dd   :  { %7979 = vmatprep.subr.bf16.mxu1 %v8659_v33  ;;  %v8698_v33 = vld [vmem:[%s10830_s0 + $0xe4] ss:$244 sps:$4 sm:$0xff]  }
 0x1df   :  { %6005 = vmatmul.mubr.bf16.vlgmr.msra.gmra.mrb[104].mxu1 %v8655_v25 }
 0x1e0   :  { %v7609_v39 = vpop.f32.mrb[60].mxu1  ;;  %7980 = vmatpush3.bf16.msra.mxu1 %v8661_v22  ;;  %6012 = vmatprep.mubr.bf16.mxu1 %v8671_v55  ;;  %v8711_v55 = vld [vmem:[%s10829_s1 + $0xf18] sm:$0xff]  }
 0x1e1   :  { %7981 = vmatprep.subr.bf16.mxu1 %v8663_v37  ;;  %v8704_v37 = vld [vmem:[%s10830_s0 + $0x2cc] ss:$244 sps:$4 sm:$0xff]  }
 0x1e4   :  { %7982 = vmatpush3.bf16.msra.mxu1 %v8665_v46 }
 0x1e5   :  { %7983 = vmatprep.subr.bf16.mxu1 %v8670_v53 }
 0x1e7   :  { %6013 = vmatmul.mubr.bf16.gmra.mrb[108].mxu1 %v8675_v47 }
 0x1e8   :  { %7984 = vmatpush3.bf16.msra.mxu1 %v8674_v48 }
 0x1e9   :  { %7985 = vmatprep.subr.bf16.mxu1 %v8677_v59  ;;  %v8713_v59 = vld [vmem:[%s10830_s0 + $0x2d8] ss:$244 sps:$4 sm:$0xff]  }
 0x1f1   :  { %v7575_v54 = vpop.f32.mrb[56].mxu0 }
 0x1f2   :  { %v7576_v3 = vpop.f32.mrb[57].mxu0 }
 0x1f3   :  { %v7577_v4 = vadd.f32 %v7576_v3, %v7575_v54  ;;  %v7578_v57 = vpop.f32.mrb[58].mxu0  ;;  %v8679_v54 = vld [vmem:[%s10829_s1 + $0xe98] sm:$0xff]   ;;  %v8683_v3 = vld [vmem:[%s10829_s1 + $0xea0] sm:$0xff]  }
 0x1f4   :  { %v7579_v13 = vpop.f32.mrb[59].mxu0  ;;  %7986 = vmatpush3.bf16.msra.mxu1 %v8679_v54 }
 0x1f5   :  { %v5370_v60 = vadd.f32 %v7577_v4, %v10403_v9  ;;  %v7580_v14 = vadd.f32 %v7579_v13, %v7578_v57  ;;  %v8650_v9 = vld [vmem:[%s10829_s1 + $0xd38] sm:$0xff]   ;;  %7987 = vmatprep.subr.bf16.mxu1 %v8681_v0  ;;  %v8685_v4 = vld [vmem:[%s10829_s1 + $0xee8] sm:$0xff]  }
 0x1f6   :  { %7910 = vmatpush3.bf16.msra.mxu0 %v8650_v9 }
 0x1f7   :  { %v10532_v10 = vadd.f32 %v7605_v2, %v5370_v60  ;;  %v5373_v20 = vadd.f32 %v7580_v14, %v10421_v17  ;;  %7951 = vmatprep.subr.bf16.mxu0 %v8658_v23  ;;  %v8687_v2 = vld [vmem:[%s10829_s1 + $0xea8] sm:$0xff]   ;;  %v8695_v23 = vld [vmem:[%s10829_s1 + $0xeb8] sm:$0xff]  }
 0x1f8   :  { %7988 = vmatpush3.bf16.msra.mxu1 %v8683_v3 }
 0x1f9   :  { %v7581_v24 = vpop.f32.mrb[60].mxu0  ;;  %v10553_v17 = vadd.f32 %v7608_v8, %v5373_v20  ;;  %5956 = vmatmul.mubr.bf16.vlgmr.msra.gmra.mrb[104].mxu0 %v8652_v21  ;;  %7989 = vmatprep.subr.bf16.mxu1 %v8685_v4  ;;  %v8691_v8 = vld [vmem:[%s10829_s1 + $0xeb0] sm:$0xff]   ;;  %v8692_v20 = vld [vmem:[%s10829_s1 + $0xe78] sm:$0xff]  }
 0x1fa   :  { %v7582_v28 = vpop.f32.mrb[61].mxu0  ;;  %7952 = vmatpush3.bf16.msra.mxu0 %v8660_v34 }
 0x1fb   :  { %v7583_v30 = vadd.f32 %v7582_v28, %v7581_v24  ;;  %v7584_v32 = vpop.f32.mrb[62].mxu0  ;;  %7953 = vmatprep.subr.bf16.mxu0 %v8662_v38  ;;  %v8703_v38 = vld [vmem:[%s10829_s1 + $0xf08] sm:$0xff]  }
 0x1fc   :  { %v7585_v27 = vpop.f32.mrb[63].mxu0  ;;  %7990 = vmatpush3.bf16.msra.mxu1 %v8687_v2 }
 0x1fd   :  { %v5378_v35 = vadd.f32 %v7583_v30, %v10449_v40  ;;  %v7586_v29 = vadd.f32 %v7585_v27, %v7584_v32  ;;  %v7610_v40 = vpop.f32.mrb[61].mxu1  ;;  %7991 = vmatprep.subr.bf16.mxu1 %v8689_v12  ;;  %v8696_v32 = vld [vmem:[%s10830_s0 + $0xe0] ss:$244 sps:$4 sm:$0xff]   ;;  %v8699_v27 = vld [vmem:[%s10830_s0 + $0xe8] ss:$244 sps:$4 sm:$0xff]  }
 0x1fe   :  { %v7611_v43 = vadd.f32 %v7610_v40, %v7609_v39  ;;  %v7612_v45 = vpop.f32.mrb[62].mxu1  ;;  %7954 = vmatpush3.bf16.msra.mxu0 %v8664_v42  ;;  %v8706_v42 = vld [vmem:[%s10830_s0 + $0x2d4] ss:$244 sps:$4 sm:$0xff]  }
 0x1ff   :  { %v5381_v41 = vadd.f32 %v7586_v29, %v10460_v44  ;;  %v7613_v31 = vpop.f32.mrb[63].mxu1  ;;  %v8666_v44 = vld [vmem:[%s10830_s0 + $0x2bc] ss:$244 sps:$4 sm:$0xff]   ;;  %7955 = vmatprep.subr.bf16.mxu0 %v8669_v51  ;;  %v8702_v29 = vld [vmem:[%s10829_s1 + $0xf00] sm:$0xff]  }
 0x200   :  { %v10584_v49 = vadd.f32 %v7611_v43, %v5378_v35  ;;  %v7614_v36 = vadd.f32 %v7613_v31, %v7612_v45  ;;  %5963 = vmatprep.mubr.bf16.mxu0 %v8666_v44  ;;  %7992 = vmatpush3.bf16.msra.mxu1 %v8691_v8  ;;  %v8708_v43 = vld [vmem:[%s10830_s0 + $0x2c8] ss:$244 sps:$4 sm:$0xff]   ;;  %v8710_v31 = vld [vmem:[%s10829_s1 + $0xf10] sm:$0xff]  }
 0x201   :  { %5964 = vmatmul.mubr.bf16.gmra.mrb[108].mxu0 %v8668_v50  ;;  %v8709_v51 = vld [vmem:[%s10830_s0 + $0x2d0] ss:$244 sps:$4 sm:$0xff]  }
 0x202   :  { %v10592_v52 = vadd.f32 %v7614_v36, %v5381_v41  ;;  %7956 = vmatpush3.bf16.msra.mxu0 %v8673_v56  ;;  %6053 = vmatprep.mubr.bf16.mxu0 %v8698_v33 }
 0x203   :  { %7957 = vmatprep.subr.bf16.mxu0 %v8676_v58 }
 0x206   :  { %7958 = vmatpush3.bf16.msra.mxu0 %v8678_v61 }
 0x207   :  { %7959 = vmatprep.subr.bf16.mxu0 %v8680_v63 }
 0x20a   :  { %7960 = vmatpush3.bf16.msra.mxu0 %v8682_v1 }
 0x20b   :  { %7961 = vmatprep.subr.bf16.mxu0 %v8684_v62 }
 0x20e   :  { %7962 = vmatpush3.bf16.msra.mxu0 %v8686_v5 }
 0x20f   :  { %7963 = vmatprep.subr.bf16.mxu0 %v8688_v11 }
 0x211   :  { %v7631_v7 = vpop.f32.mrb[64].mxu0 }
 0x212   :  { %v7632_v57 = vpop.f32.mrb[65].mxu0  ;;  %v7659_v60 = vpop.f32.mrb[64].mxu1  ;;  %7964 = vmatpush3.bf16.msra.mxu0 %v8690_v15 }
 0x213   :  { %v7633_v6 = vadd.f32 %v7632_v57, %v7631_v7  ;;  %v7660_v13 = vpop.f32.mrb[65].mxu1  ;;  %v7634_v9 = vpop.f32.mrb[66].mxu0  ;;  %7965 = vmatprep.subr.bf16.mxu0 %v8692_v20 }
 0x214   :  { %v7661_v16 = vadd.f32 %v7660_v13, %v7659_v60  ;;  %v7662_v19 = vpop.f32.mrb[66].mxu1  ;;  %v7635_v18 = vpop.f32.mrb[67].mxu0 }
 0x215   :  { %v5468_v14 = vadd.f32 %v7633_v6, %v10532_v10  ;;  %v8693_v10 = vld [vmem:[%s10829_s1 + $0xef8] sm:$0xff]   ;;  %v7636_v24 = vadd.f32 %v7635_v18, %v7634_v9  ;;  %v7663_v25 = vpop.f32.mrb[67].mxu1 }
 0x216   :  { %v7664_v28 = vadd.f32 %v7663_v25, %v7662_v19  ;;  %7993 = vmatprep.subr.bf16.mxu1 %v8693_v10  ;;  %7966 = vmatpush3.bf16.msra.mxu0 %v8694_v26 }
 0x217   :  { %v10661_v21 = vadd.f32 %v7661_v16, %v5468_v14  ;;  %v5471_v30 = vadd.f32 %v7636_v24, %v10553_v17  ;;  %7994 = vmatpush3.bf16.msra.mxu1 %v8695_v23  ;;  %v8701_v17 = vld [vmem:[%s10830_s0 + $0xec] ss:$244 sps:$4 sm:$0xff]  }
 0x218   :  { %6102 = vmatprep.mubr.bf16.mxu1 %v8701_v17  ;;  %8035 = vmatprep.subr.bf16.mxu1 %v8702_v29 }
 0x219   :  { %v5520_v34 = vadd.f32 %v7664_v28, %v5471_v30  ;;  %v7637_v35 = vpop.f32.mrb[68].mxu0  ;;  %6054 = vmatmul.mubr.bf16.vlgmr.msra.gmra.mrb[112].mxu0 %v8696_v32 }
 0x21a   :  { %v7638_v22 = vpop.f32.mrb[69].mxu0  ;;  %6103 = vmatmul.mubr.bf16.vlgmr.msra.gmra.mrb[112].mxu1 %v8699_v27  ;;  %6061 = vmatprep.mubr.bf16.mxu0 %v8704_v37  ;;  %v7665_v44 = vpop.f32.mrb[68].mxu1 }
 0x21b   :  { %v7639_v39 = vadd.f32 %v7638_v22, %v7637_v35  ;;  %v7640_v41 = vpop.f32.mrb[70].mxu0  ;;  %8036 = vmatpush3.bf16.msra.mxu1 %v8702_v29  ;;  %6110 = vmatprep.mubr.bf16.mxu1 %v8706_v42  ;;  %v7666_v50 = vpop.f32.mrb[69].mxu1 }
 0x21c   :  { %v7641_v40 = vpop.f32.mrb[71].mxu0  ;;  %8037 = vmatprep.subr.bf16.mxu1 %v8703_v38  ;;  %v7667_v53 = vadd.f32 %v7666_v50, %v7665_v44 }
 0x21d   :  { %v5476_v45 = vadd.f32 %v7639_v39, %v10584_v49  ;;  %v7642_v46 = vadd.f32 %v7641_v40, %v7640_v41  ;;  %v8712_v49 = vld [vmem:[%s10830_s0 + $0xf0] ss:$244 sps:$4 sm:$0xff]  }
 0x21f   :  { %v5479_v36 = vadd.f32 %v7642_v46, %v10592_v52  ;;  %8038 = vmatpush3.bf16.msra.mxu1 %v8703_v38  ;;  %v5525_v56 = vadd.f32 %v7667_v53, %v5476_v45  ;;  %v7668_v52 = vpop.f32.mrb[70].mxu1 }
 0x220   :  { %8039 = vmatprep.subr.bf16.mxu1 %v8710_v31  ;;  %v7669_v48 = vpop.f32.mrb[71].mxu1 }
 0x221   :  { %6062 = vmatmul.mubr.bf16.gmra.mrb[116].mxu0 %v8708_v43  ;;  %v7670_v47 = vadd.f32 %v7669_v48, %v7668_v52 }
 0x222   :  { %6111 = vmatmul.mubr.bf16.gmra.mrb[116].mxu1 %v8709_v51 }
 0x223   :  { %8040 = vmatpush3.bf16.msra.mxu1 %v8710_v31  ;;  %8043 = vmatprep.mubr.msk.bf16.mxu1 %vm4642_vm0, %v8712_v49  ;;  %v5528_v58 = vadd.f32 %v7670_v47, %v5479_v36 }
 0x224   :  { %8041 = vmatprep.subr.bf16.mxu1 %v8711_v55 }
 0x227   :  { %8042 = vmatpush3.bf16.msra.mxu1 %v8711_v55 }
 0x22a   :  { %8044 = vmatmul.mubr.msk.bf16.vlgmr.msra.gmra.mrb[120].mxu1 %vm4642_vm0, %v8713_v59 }
 0x231   :  { %v7687_v61 = vpop.f32.mrb[72].mxu0 }
 0x232   :  { %v7715_v54 = vpop.f32.mrb[72].mxu1  ;;  %v7688_v63 = vpop.f32.mrb[73].mxu0 }
 0x233   :  { %v7689_v0 = vadd.f32 %v7688_v63, %v7687_v61  ;;  %v7716_v1 = vpop.f32.mrb[73].mxu1  ;;  %v7690_v3 = vpop.f32.mrb[74].mxu0  ;;  %v8716_v61 = vld [vmem:[%s10831_s5 + $0x4] ss:$8 sps:$4 sm:$0xff]  }
 0x234   :  { %v7717_v62 = vadd.f32 %v7716_v1, %v7715_v54  ;;  %v7718_v4 = vpop.f32.mrb[74].mxu1  ;;  %v7691_v5 = vpop.f32.mrb[75].mxu0  ;;  %v8714_v54 = vld [vmem:[%s10831_s5] ss:$8 sps:$4 sm:$0xff]   ;;  %6273 = vmatprep.subr.bf16.mxu1 %v8716_v61 }
 0x235   :  { %v5566_v7 = vadd.f32 %v7689_v0, %v10661_v21  ;;  %v7692_v2 = vadd.f32 %v7691_v5, %v7690_v3  ;;  %v7719_v57 = vpop.f32.mrb[75].mxu1  ;;  %6274 = vmatpush1.bf16.msra.mxu1 %v8714_v54  ;;  %v8719_v0 = vld [vmem:[%s10831_s5 + $0x14] ss:$8 sps:$4 sm:$0xff]   ;;  %v8717_v3 = vld [vmem:[%s10831_s5 + $0x10] ss:$8 sps:$4 sm:$0xff]  }
 0x236   :  { %v7720_v11 = vadd.f32 %v7719_v57, %v7718_v4  ;;  %6275 = vmatprep.subr.bf16.mxu1 %v8719_v0 }
 0x237   :  { %v5615_v60 = vadd.f32 %v7717_v62, %v5566_v7  ;;  %v5569_v6 = vadd.f32 %v7692_v2, %v5520_v34 }
 0x239   :  { %v5618_v12 = vadd.f32 %v7720_v11, %v5569_v6  ;;  %v7693_v13 = vpop.f32.mrb[76].mxu0  ;;  %6276 = vmatpush1.bf16.msra.mxu1 %v8717_v3 }
 0x23a   :  { %v7694_v15 = vpop.f32.mrb[77].mxu0  ;;  %v7721_v20 = vpop.f32.mrb[76].mxu1 }
 0x23b   :  { %v7695_v14 = vadd.f32 %v7694_v15, %v7693_v13  ;;  %v7696_v16 = vpop.f32.mrb[78].mxu0  ;;  %v7722_v10 = vpop.f32.mrb[77].mxu1  ;;  %v8720_v15 = vld [vmem:[%s10831_s5 + $0x20] ss:$8 sps:$4 sm:$0xff]  }
 0x23c   :  { %v7697_v9 = vpop.f32.mrb[79].mxu0  ;;  %v7723_v24 = vadd.f32 %v7722_v10, %v7721_v20  ;;  %v7724_v25 = vpop.f32.mrb[78].mxu1  ;;  %v8723_v20 = vld [vmem:[%s10831_s5 + $0x30] ss:$8 sps:$4 sm:$0xff]  }
 0x23d   :  { %v5574_v8 = vadd.f32 %v7695_v14, %v5525_v56  ;;  %v7698_v19 = vadd.f32 %v7697_v9, %v7696_v16  ;;  %v7725_v26 = vpop.f32.mrb[79].mxu1 }
 0x23e   :  { %v7726_v28 = vadd.f32 %v7725_v26, %v7724_v25 }
 0x23f   :  { %v5577_v18 = vadd.f32 %v7698_v19, %v5528_v58  ;;  %v5623_v21 = vadd.f32 %v7723_v24, %v5574_v8  ;;  %v8725_v19 = vld [vmem:[%s10831_s5 + $0x34] ss:$8 sps:$4 sm:$0xff]   ;;  %v8728_v24 = vld [vmem:[%s10831_s5 + $0x44] ss:$8 sps:$4 sm:$0xff]  }
 0x241   :  { %v5626_v23 = vadd.f32 %v7726_v28, %v5577_v18 }
 0x251   :  { %v7743_v30 = vpop.f32.mrb[80].mxu0 }
 0x252   :  { %v7771_v32 = vpop.f32.mrb[80].mxu1  ;;  %v7744_v33 = vpop.f32.mrb[81].mxu0 }
 0x253   :  { %v7745_v27 = vadd.f32 %v7744_v33, %v7743_v30  ;;  %v7772_v34 = vpop.f32.mrb[81].mxu1  ;;  %v7746_v35 = vpop.f32.mrb[82].mxu0  ;;  %v8731_v33 = vld [vmem:[%s10831_s5 + $0x54] ss:$8 sps:$4 sm:$0xff]  }
 0x254   :  { %v7773_v17 = vadd.f32 %v7772_v34, %v7771_v32  ;;  %v7774_v29 = vpop.f32.mrb[82].mxu1  ;;  %v7747_v22 = vpop.f32.mrb[83].mxu0 }
 0x255   :  { %v5664_v38 = vadd.f32 %v7745_v27, %v5615_v60  ;;  %v7748_v39 = vadd.f32 %v7747_v22, %v7746_v35  ;;  %v7775_v41 = vpop.f32.mrb[83].mxu1  ;;  %v8729_v35 = vld [vmem:[%s10831_s5 + $0x50] ss:$8 sps:$4 sm:$0xff]  }
 0x256   :  { %v7776_v37 = vadd.f32 %v7775_v41, %v7774_v29  ;;  %v8748_v41 = vmov 0  }
 0x257   :  { %v5713_v40 = vadd.f32 %v7773_v17, %v5664_v38  ;;  %v5667_v42 = vadd.f32 %v7748_v39, %v5618_v12  ;;  %v8722_v12 = vld [vmem:[%s10831_s5 + $0x24] ss:$8 sps:$4 sm:$0xff]   ;;  %6305 = vmatprep.mubr.bf16.mxu1 %v8748_v41 }
 0x258   :  { %6277 = vmatprep.subr.bf16.mxu1 %v8722_v12 }
 0x259   :  { %v5716_v43 = vadd.f32 %v7776_v37, %v5667_v42  ;;  %v7749_v45 = vpop.f32.mrb[84].mxu0  ;;  %6278 = vmatpush1.bf16.msra.mxu1 %v8720_v15  ;;  %v8733_v42 = vld [vmem:[%s10832_s8] sm:$0xff]  }
 0x25a   :  { %v7750_v46 = vpop.f32.mrb[85].mxu0  ;;  %v7777_v53 = vpop.f32.mrb[84].mxu1  ;;  %6279 = vmatprep.subr.bf16.mxu1 %v8725_v19 }
 0x25b   :  { %v7751_v31 = vadd.f32 %v7750_v46, %v7749_v45  ;;  %v7752_v44 = vpop.f32.mrb[86].mxu0  ;;  %v7778_v55 = vpop.f32.mrb[85].mxu1  ;;  %v8735_v45 = vld [vmem:[%s10832_s8 + $0x8] sm:$0xff]   ;;  %v8736_v46 = vld [vmem:[%s10832_s8 + $0x50] sm:$0xff]  }
 0x25c   :  { %v7753_v36 = vpop.f32.mrb[87].mxu0  ;;  %v7779_v56 = vadd.f32 %v7778_v55, %v7777_v53  ;;  %v7780_v52 = vpop.f32.mrb[86].mxu1  ;;  %v8741_v53 = vld [vmem:[%s10832_s8 + $0x20] sm:$0xff]  }
 0x25d   :  { %v5672_v50 = vadd.f32 %v7751_v31, %v5623_v21  ;;  %v7754_v51 = vadd.f32 %v7753_v36, %v7752_v44  ;;  %v7781_v48 = vpop.f32.mrb[87].mxu1  ;;  %6280 = vmatpush1.bf16.msra.mxu1 %v8723_v20  ;;  %v8726_v21 = vld [vmem:[%s10831_s5 + $0x40] ss:$8 sps:$4 sm:$0xff]   ;;  %v8737_v31 = vld [vmem:[%s10832_s8 + $0x10] sm:$0xff]   ;;  %v8738_v44 = vld [vmem:[%s10832_s8 + $0x58] sm:$0xff]  }
 0x25e   :  { %v7782_v58 = vadd.f32 %v7781_v48, %v7780_v52  ;;  %6281 = vmatprep.subr.bf16.mxu1 %v8728_v24  ;;  %v8739_v36 = vld [vmem:[%s10832_s8 + $0x18] sm:$0xff]  }
 0x25f   :  { %v5675_v49 = vadd.f32 %v7754_v51, %v5626_v23  ;;  %v5721_v47 = vadd.f32 %v7779_v56, %v5672_v50  ;;  %v8740_v50 = vld [vmem:[%s10832_s8 + $0x60] sm:$0xff]   ;;  %v8742_v56 = vld [vmem:[%s10832_s8 + $0x68] sm:$0xff]  }
 0x261   :  { %v5724_v59 = vadd.f32 %v7782_v58, %v5675_v49  ;;  %6282 = vmatpush1.bf16.msra.mxu1 %v8726_v21 }
 0x262   :  { %6283 = vmatprep.subr.bf16.mxu1 %v8731_v33 }
 0x265   :  { %6284 = vmatpush1.bf16.msra.mxu1 %v8729_v35 }
 0x271   :  { %v7799_v63 = vpop.f32.mrb[88].mxu0 }
 0x272   :  { %v7800_v1 = vpop.f32.mrb[89].mxu0  ;;  %v7827_v62 = vpop.f32.mrb[88].mxu1 }
 0x273   :  { %v7801_v4 = vadd.f32 %v7800_v1, %v7799_v63  ;;  %v7802_v5 = vpop.f32.mrb[90].mxu0  ;;  %v7828_v7 = vpop.f32.mrb[89].mxu1 }
 0x274   :  { %v7803_v2 = vpop.f32.mrb[91].mxu0  ;;  %v7829_v11 = vadd.f32 %v7828_v7, %v7827_v62  ;;  %v7830_v60 = vpop.f32.mrb[90].mxu1 }
 0x275   :  { %v5762_v57 = vadd.f32 %v7801_v4, %v5713_v40  ;;  %v7804_v6 = vadd.f32 %v7803_v2, %v7802_v5  ;;  %v7831_v13 = vpop.f32.mrb[91].mxu1  ;;  %v8732_v40 = vld [vmem:[%s10832_s8 + $0x40] sm:$0xff]  }
 0x276   :  { %v7832_v9 = vadd.f32 %v7831_v13, %v7830_v60  ;;  %8013 = vmatprep.subr.bf16.mxu0 %v8732_v40 }
 0x277   :  { %v10736_v14 = vadd.f32 %v7829_v11, %v5762_v57  ;;  %v5765_v16 = vadd.f32 %v7804_v6, %v5716_v43  ;;  %v8734_v43 = vld [vmem:[%s10832_s8 + $0x48] sm:$0xff]   ;;  %8014 = vmatpush3.bf16.msra.mxu0 %v8733_v42 }
 0x278   :  { %8015 = vmatprep.subr.bf16.mxu0 %v8734_v43 }
 0x279   :  { %v10738_v8 = vadd.f32 %v7832_v9, %v5765_v16  ;;  %v7805_v18 = vpop.f32.mrb[92].mxu0 }
 0x27a   :  { %v7806_v10 = vpop.f32.mrb[93].mxu0  ;;  %v7833_v32 = vpop.f32.mrb[92].mxu1 }
 0x27b   :  { %v7807_v25 = vadd.f32 %v7806_v10, %v7805_v18  ;;  %v7808_v26 = vpop.f32.mrb[94].mxu0  ;;  %v7834_v34 = vpop.f32.mrb[93].mxu1  ;;  %8016 = vmatpush3.bf16.msra.mxu0 %v8735_v45 }
 0x27c   :  { %v7809_v28 = vpop.f32.mrb[95].mxu0  ;;  %v7835_v17 = vadd.f32 %v7834_v34, %v7833_v32  ;;  %v7836_v29 = vpop.f32.mrb[94].mxu1  ;;  %8017 = vmatprep.subr.bf16.mxu0 %v8736_v46 }
 0x27d   :  { %v5770_v23 = vadd.f32 %v7807_v25, %v5721_v47  ;;  %v7810_v30 = vadd.f32 %v7809_v28, %v7808_v26  ;;  %v7837_v22 = vpop.f32.mrb[95].mxu1 }
 0x27e   :  { %v7838_v39 = vadd.f32 %v7837_v22, %v7836_v29 }
 0x27f   :  { %v5773_v27 = vadd.f32 %v7810_v30, %v5724_v59  ;;  %v5819_v38 = vadd.f32 %v7835_v17, %v5770_v23  ;;  %8018 = vmatpush3.bf16.msra.mxu0 %v8737_v31 }
 0x280   :  { %8019 = vmatprep.subr.bf16.mxu0 %v8738_v44 }
 0x281   :  { %v5822_v37 = vadd.f32 %v7838_v39, %v5773_v27 }
 0x283   :  { %8020 = vmatpush3.bf16.msra.mxu0 %v8739_v36 }
 0x284   :  { %8021 = vmatprep.subr.bf16.mxu0 %v8740_v50 }
 0x287   :  { %8022 = vmatpush3.bf16.msra.mxu0 %v8741_v53 }
 0x288   :  { %8023 = vmatprep.subr.bf16.mxu0 %v8742_v56 }
 0x291   :  { %v7855_v51 = vpop.f32.mrb[96].mxu0 }
 0x292   :  { %v7883_v49 = vpop.f32.mrb[96].mxu1  ;;  %v7856_v55 = vpop.f32.mrb[97].mxu0 }
 0x293   :  { %v7857_v52 = vadd.f32 %v7856_v55, %v7855_v51  ;;  %v7884_v48 = vpop.f32.mrb[97].mxu1  ;;  %v7858_v47 = vpop.f32.mrb[98].mxu0 }
 0x294   :  { %v7885_v58 = vadd.f32 %v7884_v48, %v7883_v49  ;;  %v7886_v59 = vpop.f32.mrb[98].mxu1  ;;  %v7859_v61 = vpop.f32.mrb[99].mxu0 }
 0x295   :  { %v5860_v54 = vadd.f32 %v7857_v52, %v10736_v14  ;;  %v7860_v63 = vadd.f32 %v7859_v61, %v7858_v47  ;;  %v7887_v0 = vpop.f32.mrb[99].mxu1 }
 0x296   :  { %v7888_v1 = vadd.f32 %v7887_v0, %v7886_v59 }
 0x297   :  { %v5909_v3 = vadd.f32 %v7885_v58, %v5860_v54  ;;  %v5863_v62 = vadd.f32 %v7860_v63, %v10738_v8 }
 0x299   :  { %v5912_v4 = vadd.f32 %v7888_v1, %v5863_v62  ;;  %v7861_v5 = vpop.f32.mrb[100].mxu0 }
 0x29a   :  { %v7862_v7 = vpop.f32.mrb[101].mxu0  ;;  %v7889_v12 = vpop.f32.mrb[100].mxu1 }
 0x29b   :  { %v7863_v2 = vadd.f32 %v7862_v7, %v7861_v5  ;;  %v7864_v57 = vpop.f32.mrb[102].mxu0  ;;  %v7890_v15 = vpop.f32.mrb[101].mxu1 }
 0x29c   :  { %v7865_v11 = vpop.f32.mrb[103].mxu0  ;;  %v7891_v14 = vadd.f32 %v7890_v15, %v7889_v12  ;;  %v7892_v16 = vpop.f32.mrb[102].mxu1 }
 0x29d   :  { %v5868_v60 = vadd.f32 %v7863_v2, %v5819_v38  ;;  %v7866_v6 = vadd.f32 %v7865_v11, %v7864_v57  ;;  %v7893_v9 = vpop.f32.mrb[103].mxu1 }
 0x29e   :  { %v7894_v20 = vadd.f32 %v7893_v9, %v7892_v16 }
 0x29f   :  { %v5871_v13 = vadd.f32 %v7866_v6, %v5822_v37  ;;  %v5917_v19 = vadd.f32 %v7891_v14, %v5868_v60 }
 0x2a1   :  { %v5920_v18 = vadd.f32 %v7894_v20, %v5871_v13 }
 0x2b2   :  { %v7939_v24 = vpop.f32.mrb[104].mxu1 }
 0x2b3   :  { %v7940_v26 = vpop.f32.mrb[105].mxu1 }
 0x2b4   :  { %v7941_v28 = vadd.f32 %v7940_v26, %v7939_v24  ;;  %v7942_v23 = vpop.f32.mrb[106].mxu1 }
 0x2b5   :  { %v7943_v27 = vpop.f32.mrb[107].mxu1 }
 0x2b6   :  { %v7944_v34 = vadd.f32 %v7943_v27, %v7942_v23 }
 0x2ba   :  { %v7945_v43 = vpop.f32.mrb[108].mxu1 }
 0x2bb   :  { %v7946_v46 = vpop.f32.mrb[109].mxu1 }
 0x2bc   :  { %v7947_v31 = vadd.f32 %v7946_v46, %v7945_v43  ;;  %v7948_v44 = vpop.f32.mrb[110].mxu1  ;;  %v8747_v43 = vld [vmem:[%s10832_s8 + $0x38] sm:$0xff]  }
 0x2bd   :  { %v7949_v36 = vpop.f32.mrb[111].mxu1 }
 0x2be   :  { %v7950_v51 = vadd.f32 %v7949_v36, %v7948_v44  ;;  %v6314_v44 = vld [vmem:[%s10836_s6] sm:$0x3] }
 0x2cc   :  { %v7911_v10 = vpop.f32.mrb[104].mxu0 }
 0x2cd   :  { %v7912_v8 = vpop.f32.mrb[105].mxu0 }
 0x2ce   :  { %v7913_v25 = vadd.f32 %v7912_v8, %v7911_v10  ;;  %v7914_v21 = vpop.f32.mrb[106].mxu0 }
 0x2cf   :  { %v7915_v30 = vpop.f32.mrb[107].mxu0 }
 0x2d0   :  { %v5958_v32 = vadd.f32 %v7913_v25, %v5909_v3  ;;  %v7916_v33 = vadd.f32 %v7915_v30, %v7914_v21 }
 0x2d2   :  { %v6007_v35 = vadd.f32 %v7941_v28, %v5958_v32  ;;  %v5961_v17 = vadd.f32 %v7916_v33, %v5912_v4  ;;  %v7134_v33 = vld [vmem:[%s10833_s2] ss:$0 sm:$0xff] }
 0x2d4   :  { %v6010_v29 = vadd.f32 %v7944_v34, %v5961_v17  ;;  %v7917_v22 = vpop.f32.mrb[108].mxu0 }
 0x2d5   :  { %v7918_v38 = vpop.f32.mrb[109].mxu0 }
 0x2d6   :  { %v7919_v39 = vadd.f32 %v7918_v38, %v7917_v22  ;;  %v7920_v41 = vpop.f32.mrb[110].mxu0 }
 0x2d7   :  { %v7921_v37 = vpop.f32.mrb[111].mxu0 }
 0x2d8   :  { %v5966_v40 = vadd.f32 %v7919_v39, %v5917_v19  ;;  %v7922_v42 = vadd.f32 %v7921_v37, %v7920_v41  ;;  %v8743_v41 = vld [vmem:[%s10832_s8 + $0x28] sm:$0xff]   ;;  %v8744_v37 = vld [vmem:[%s10832_s8 + $0x70] sm:$0xff]  }
 0x2d9   :  { %8024 = vmatpush3.bf16.msra.mxu0 %v8743_v41 }
 0x2da   :  { %v5969_v45 = vadd.f32 %v7922_v42, %v5920_v18  ;;  %v6015_v50 = vadd.f32 %v7947_v31, %v5966_v40  ;;  %v8745_v40 = vld [vmem:[%s10832_s8 + $0x30] sm:$0xff]   ;;  %8025 = vmatprep.subr.bf16.mxu0 %v8744_v37  ;;  %v8746_v42 = vld [vmem:[%s10832_s8 + $0x78] sm:$0xff]  }
 0x2dc   :  { %v6018_v53 = vadd.f32 %v7950_v51, %v5969_v45  ;;  %v6316_v45 = vlaneseq }
 0x2dd   :  { %8026 = vmatpush3.bf16.msra.mxu0 %v8745_v40 }
 0x2de   :  { %8027 = vmatprep.subr.bf16.mxu0 %v8746_v42  ;;  %v6317_v46 = vshrl.u32 %v6316_v45, 7 }
 0x2e0   :  { %v6318_v31 = vsub.s32 0, %v6317_v46  ;;  %v6322_v36 = vsub.s32 1, %v6317_v46 }
 0x2e1   :  { %8028 = vmatpush3.bf16.msra.mxu0 %v8747_v43 }
 0x2e2   :  { %v6319_v51 = vrot.slane %v6314_v44, %v6318_v31 }
 0x2ec   :  { %v7967_v49 = vpop.f32.mrb[112].mxu0 }
 0x2ed   :  { %v7968_v55 = vpop.f32.mrb[113].mxu0  ;;  %v7995_v56 = vpop.f32.mrb[112].mxu1 }
 0x2ee   :  { %v7969_v52 = vadd.f32 %v7968_v55, %v7967_v49  ;;  %v7970_v48 = vpop.f32.mrb[114].mxu0  ;;  %v7996_v47 = vpop.f32.mrb[113].mxu1 }
 0x2ef   :  { %v7971_v58 = vpop.f32.mrb[115].mxu0  ;;  %v7997_v61 = vadd.f32 %v7996_v47, %v7995_v56  ;;  %v7998_v54 = vpop.f32.mrb[114].mxu1 }
 0x2f0   :  { %v6056_v59 = vadd.f32 %v7969_v52, %v6007_v35  ;;  %v7972_v63 = vadd.f32 %v7971_v58, %v7970_v48  ;;  %v7999_v0 = vpop.f32.mrb[115].mxu1  ;;  %v7135_v35 = vld [vmem:[%s10834_s3] ss:$0 sm:$0xff] }
 0x2f1   :  { %v8000_v3 = vadd.f32 %v7999_v0, %v7998_v54 }
 0x2f2   :  { %v6059_v1 = vadd.f32 %v7972_v63, %v6010_v29  ;;  %v6105_v62 = vadd.f32 %v7997_v61, %v6056_v59  ;;  %v7136_v29 = vld [vmem:[%s10835_s4] ss:$0 sm:$0xff] }
 0x2f4   :  { %v7973_v4 = vpop.f32.mrb[116].mxu0  ;;  %v6108_v5 = vadd.f32 %v8000_v3, %v6059_v1 }
 0x2f5   :  { %v7974_v7 = vpop.f32.mrb[117].mxu0  ;;  %v8001_v2 = vpop.f32.mrb[116].mxu1 }
 0x2f6   :  { %v7975_v57 = vadd.f32 %v7974_v7, %v7973_v4  ;;  %v7976_v11 = vpop.f32.mrb[118].mxu0  ;;  %v8002_v60 = vpop.f32.mrb[117].mxu1  ;;  %v7150_v4 = vld [vmem:[%s10838_s9] ss:$0 sm:$0xff] }
 0x2f7   :  { %v7977_v6 = vpop.f32.mrb[119].mxu0  ;;  %v8003_v13 = vadd.f32 %v8002_v60, %v8001_v2  ;;  %v8004_v15 = vpop.f32.mrb[118].mxu1 }
 0x2f8   :  { %v6064_v12 = vadd.f32 %v7975_v57, %v6015_v50  ;;  %v7978_v14 = vadd.f32 %v7977_v6, %v7976_v11  ;;  %v8005_v16 = vpop.f32.mrb[119].mxu1  ;;  %v6328_v50 = vld [vmem:[%s10837_s7] sm:$0x3] }
 0x2f9   :  { %v8006_v19 = vadd.f32 %v8005_v16, %v8004_v15  ;;  %v6333_v49 = vrot.slane %v6328_v50, %v6318_v31  ;;  %v6337_v56 = vrot.slane %v6328_v50, %v6322_v36 }
 0x2fa   :  { %v6067_v9 = vadd.f32 %v7978_v14, %v6018_v53  ;;  %v6113_v20 = vadd.f32 %v8003_v13, %v6064_v12  ;;  %v6323_v53 = vrot.slane %v6314_v44, %v6322_v36 }
 0x2fc   :  { %v6116_v18 = vadd.f32 %v8006_v19, %v6067_v9 }
 0x2fd   :  { %v8045_v10 = vpop.f32.mrb[120].mxu1 }
 0x2fe   :  { %v6162_v24 = vadd.f32 %v8045_v10, %v6113_v20  ;;  %v6153_v8 = vpop.f32.mrb[121].mxu1 }
 0x2ff   :  { %v6154_v25 = vadd.f32 %v6153_v8, %v6105_v62  ;;  %v8046_v26 = vpop.f32.mrb[122].mxu1 }
 0x300   :  { %v6165_v21 = vadd.f32 %v8046_v26, %v6116_v18  ;;  %v6156_v28 = vpop.f32.mrb[123].mxu1 }
 0x301   :  { %v6157_v23 = vadd.f32 %v6156_v28, %v6108_v5 }
 0x302   :  { %v6169_v30 = vmax.f32 %v6162_v24, %v6165_v21 }
 0x303   :  { %v6168_v32 = vmax.f32 %v6154_v25, %v6157_v23 }
 0x305   :  { %v6170_v27 = vmax.f32 %v6168_v32, %v6169_v30 }
 0x307   :  { %v6178_v34 = vadd.f32 %v7134_v33, %v6170_v27 }
 0x309   :  { %v6179_v17 = vmax.f32 %v6178_v34, 0.0 }
 0x30b   :  { %v6187_v22 = vmul.f32 %v7135_v35, %v6179_v17 }
 0x30d   :  { %v6195_v38 = vadd.f32 %v7136_v29, %v6187_v22 }
 0x30f   :  { %v6196_v39 = vpack.c.bf16 %v6195_v38, %v6195_v38 }
 0x311   :  { %7149 = vmatmul.mubr.msk.bf16.vlgmr.msra.gmra.mrb[124].mxu1 %vm6269_vm1, %v6196_v39 }
 0x3e4   :  { %v6307_v55 = vpop.f32.mrb[124].mxu1 }
 0x3e5   :  { %v6326_v52 = vmul.f32 %v6319_v51, %v6307_v55  ;;  %v6309_v48 = vpop.f32.mrb[125].mxu1 }
 0x3e6   :  { %v6327_v47 = vmul.f32 %v6323_v53, %v6309_v48  ;;  %v6311_v58 = vpop.f32.mrb[126].mxu1 }
 0x3e7   :  { %v6340_v59 = vadd.f32 %v6333_v49, %v6326_v52  ;;  %v6312_v61 = vpop.f32.mrb[127].mxu1 }
 0x3e8   :  { %v6341_v54 = vadd.f32 %v6337_v56, %v6327_v47 }
 0x3e9   :  { %v6342_v63 = vmax.f32 %v6340_v59, 0.0 }
 0x3ea   :  { %v6343_v0 = vmax.f32 %v6341_v54, 0.0 }
 0x3eb   :  { %v6344_v3 = vpack.c.bf16 %v6342_v63, %v6342_v63 }
 0x3ec   :  { %v6345_v1 = vpack.c.bf16 %v6343_v0, %v6343_v0 }
 0x3ee   :  { %6513 = vmatprep.mubr.bf16.mxu0 %v6345_v1 }
 0x3ef   :  { %6514 = vmatmul.mubr.bf16.vlgmr.msra.gmra.mrb[120].mxu0 %v6344_v3 }
 0x4c2   :  { %v8029_v62 = vpop.f32.mrb[120].mxu0 }
 0x4c3   :  { %v8030_v5 = vpop.f32.mrb[121].mxu0 }
 0x4c4   :  { %v8031_v7 = vadd.f32 %v8030_v5, %v8029_v62  ;;  %v8032_v2 = vpop.f32.mrb[122].mxu0 }
 0x4c5   :  { %v8033_v57 = vpop.f32.mrb[123].mxu0 }
 0x4c6   :  { %v6516_v11 = vadd.f32 %v8031_v7, %v7150_v4 }
 0x4c8   :  { %6521 = vst [vmem:[%s10839_s10] sm:$0xff] %v6516_v11 }

</bundles_post_ra>
